<compile_context>
chip_gen: v6e
topology: v6e:2x2x1
jax: 0.10.0
libtpu: 0.0.40
codegen_flags: <defaults>
</compile_context>

<pallas_src>
import functools

import jax
import jax.numpy as jnp
from jax import lax
from jax.experimental import pallas as pl
from jax.experimental.pallas import tpu as pltpu


def _heads_per_group(num_heads, head_size):
    """Largest head count per group with width <= 128 lanes that divides num_heads."""
    hpg = max(1, min(num_heads, 128 // max(1, head_size)))
    while num_heads % hpg:
        hpg -= 1
    return hpg


def prepare_mha_weights(wq, wk, wv, wproj, *, num_heads, head_size,
                        heads_per_group, mxu_dtype=jnp.bfloat16):
    """One-time weight prep (hoist out of the per-call path).

    Returns:
      wqkv_grouped : (G, C, 3*GW) bf16, per group [Q_g | K_g | V_g] columns,
                     Q pre-scaled by 1/sqrt(head_size).
      wproj_grouped: (G, GW, C)  bf16, rows of W_proj owned by each head group.
    """
    C, NH = wq.shape
    assert NH == num_heads * head_size
    assert wk.shape == (C, NH) and wv.shape == (C, NH)
    assert wproj.shape == (NH, C)
    HPG = heads_per_group
    GW = HPG * head_size
    G = num_heads // HPG

    scale = float(head_size) ** -0.5
    wq_g = jnp.transpose((wq * scale).reshape(C, G, GW), (1, 0, 2))   # (G, C, GW)
    wk_g = jnp.transpose(wk.reshape(C, G, GW), (1, 0, 2))
    wv_g = jnp.transpose(wv.reshape(C, G, GW), (1, 0, 2))
    wqkv_grouped = jnp.concatenate([wq_g, wk_g, wv_g], axis=-1).astype(mxu_dtype)
    wproj_grouped = wproj.reshape(G, GW, C).astype(mxu_dtype)
    return wqkv_grouped, wproj_grouped


def mha_kernel(x_ref, wqkv_ref, wproj_ref, bias_ref, o_ref, acc_ref, *,
               num_heads, head_size, heads_per_group, batch_block):
    # x_ref:    (BB, T, C)       batch_block sequences (bf16)
    # wqkv_ref: (G, C, 3*GW)     grouped [Q|K|V] weights (bf16, Q pre-scaled)
    # wproj_ref:(G, GW, C)       grouped output-projection rows (bf16)
    # bias_ref: (1, C)           output projection bias (f32)
    # o_ref:    (BB, T, C)       output, lane-dense last dim
    # acc_ref:  (BB*T, C) f32    VMEM accumulator for the K-split projection
    BB = batch_block
    T = x_ref.shape[1]
    C = x_ref.shape[2]
    H = head_size
    HPG = heads_per_group
    GW = HPG * H                        # lanes per head group (128 for H=32)
    G = num_heads // HPG                # number of head groups

    # Present M = BB*T rows to the MXU (free reshape: T % 8 == 0, C % 128 == 0).
    x2d = x_ref[...].reshape(BB * T, C)                       # (BB*T, C) bf16

    # Causal mask, hoisted out of the group loop. The block covers the full
    # sequence, so local iotas are global positions (no tile offsets needed).
    row = lax.broadcasted_iota(jnp.int32, (T, T), 0)
    col = lax.broadcasted_iota(jnp.int32, (T, T), 1)
    causal = col <= row

    acc_ref[...] = jnp.zeros_like(acc_ref)

    def group_body(g, carry):
        # Group QKV projection: (BB*T, C) @ (C, 3*GW), bf16 operands, f32 acc.
        # Dynamic index only on the LEADING (non-lane) weight dim.
        qkv_g = jnp.dot(x2d, wqkv_ref[g],
                        preferred_element_type=jnp.float32).astype(jnp.bfloat16)
        att_rows = []
        for bb in range(BB):                       # static, small (<= 4)
            r0 = bb * T
            pv_parts = []
            for hh in range(HPG):                  # static, <= 4 heads/group
                c0 = hh * H
                q_h = qkv_g[r0:r0 + T, c0:c0 + H]                      # (T, H)
                k_h = qkv_g[r0:r0 + T, GW + c0:GW + c0 + H]            # (T, H)
                v_h = qkv_g[r0:r0 + T, 2 * GW + c0:2 * GW + c0 + H]    # (T, H)
                # q @ k^T without a transpose: contract the last dims.
                s = lax.dot_general(q_h, k_h, (((1,), (1,)), ((), ())),
                                    preferred_element_type=jnp.float32)
                # Causal mask; every row keeps its diagonal -> no NaN risk.
                s = jnp.where(causal, s, -jnp.inf)
                s = s - jnp.max(s, axis=-1, keepdims=True)
                # exp in bf16 (s <= 0), f32 row sums.
                p = jnp.exp(s.astype(jnp.bfloat16))                    # (T, T)
                denom = jnp.sum(p, axis=-1, keepdims=True,
                                dtype=jnp.float32)                     # (T, 1)
                # Attention dropout: eval mode (identity).
                pv = jnp.dot(p, v_h, preferred_element_type=jnp.float32)
                # Normalize AFTER the PV matmul: (T, H) multiply, EUP recip.
                pv_parts.append(pv * pl.reciprocal(denom, approx=True))
            att_rows.append(jnp.concatenate(pv_parts, axis=-1))        # (T, GW)
        att_g = jnp.concatenate(att_rows, axis=0).astype(jnp.bfloat16)  # (BB*T, GW)
        # K-split output projection: accumulate this group's contribution.
        acc_ref[...] += jnp.dot(att_g, wproj_ref[g],
                                preferred_element_type=jnp.float32)
        return carry

    lax.fori_loop(0, G, group_body, 0)

    # Output dropout: eval mode (identity).
    out = acc_ref[...] + bias_ref[...]
    o_ref[...] = out.reshape(BB, T, C).astype(o_ref.dtype)


def mha_forward(x, wqkv_grouped, wproj_grouped, bias, *, num_heads, head_size,
                heads_per_group, batch_block=None, out_dtype=jnp.float32,
                mxu_dtype=jnp.bfloat16):
    """x: (B,T,C) f32; wqkv_grouped/wproj_grouped from prepare_mha_weights."""
    B, T, C = x.shape
    NH = num_heads * head_size
    HPG = heads_per_group
    GW = HPG * head_size
    G = num_heads // HPG
    assert wqkv_grouped.shape == (G, C, 3 * GW)
    assert wproj_grouped.shape == (G, GW, C)
    assert C % 128 == 0 and T % 8 == 0, "lane/sublane alignment assumptions"

    # Batch blocking so the projection matmuls present M = batch_block*T >= 256
    # (fills the 256-row MXU tile on v6e/v7x; v5e is already full at M=128).
    if batch_block is None:
        batch_block = 1
        if T % 16 == 0:
            for cand in (4, 2):
                if B % cand == 0 and cand * T <= 512:
                    batch_block = cand
                    break
    assert B % batch_block == 0

    kernel = functools.partial(
        mha_kernel, num_heads=num_heads, head_size=head_size,
        heads_per_group=heads_per_group, batch_block=batch_block)

    return pl.pallas_call(
        kernel,
        out_shape=jax.ShapeDtypeStruct((B, T, C), out_dtype),
        grid_spec=pltpu.PrefetchScalarGridSpec(
            num_scalar_prefetch=0,
            grid=(B // batch_block,),
            in_specs=[
                pl.BlockSpec((batch_block, T, C), lambda b: (b, 0, 0)),  # x
                pl.BlockSpec((G, C, 3 * GW), lambda b: (0, 0, 0)),       # wqkv
                pl.BlockSpec((G, GW, C), lambda b: (0, 0, 0)),           # wproj
                pl.BlockSpec((1, C), lambda b: (0, 0)),                  # bias
            ],
            out_specs=pl.BlockSpec((batch_block, T, C), lambda b: (b, 0, 0)),
            scratch_shapes=[
                pltpu.VMEM((batch_block * T, C), jnp.float32),  # proj accum
            ],
        ),
        compiler_params=pltpu.CompilerParams(
            dimension_semantics=("parallel",),
            vmem_limit_bytes=32 * 1024 * 1024,
        ),
    )(x.astype(mxu_dtype), wqkv_grouped, wproj_grouped,
      bias.reshape(1, C).astype(jnp.float32))


def mha_reference(x, wq, wk, wv, wproj, bias, num_heads, head_size):
    """Plain-JAX f32 reference mirroring the PyTorch forward (eval dropout)."""
    B, T, C = x.shape
    mask = jnp.tril(jnp.ones((T, T), dtype=bool))
    outs = []
    for h in range(num_heads):
        sl = slice(h * head_size, (h + 1) * head_size)
        q = x @ wq[:, sl]
        k = x @ wk[:, sl]
        v = x @ wv[:, sl]
        wei = jnp.einsum("btd,bsd->bts", q, k) * head_size ** -0.5
        wei = jnp.where(mask[None, :, :], wei, -jnp.inf)
        wei = jax.nn.softmax(wei, axis=-1)
        outs.append(wei @ v)
    att = jnp.concatenate(outs, axis=-1)
    return att @ wproj + bias


if __name__ == "__main__":
    # Shapes consistent with the module: n_embd=512, num_heads=16 -> head_size=32.
    # T kept small (<= block_size=512) so the test is quick.
    n_embd = 512
    num_heads = 16
    head_size = n_embd // num_heads     # 32
    B, T = 2, 128

    key = jax.random.PRNGKey(0)
    kx, kq, kk, kv, kp, kb = jax.random.split(key, 6)

    x = jax.random.normal(kx, (B, T, n_embd), dtype=jnp.float32)
    # Concatenated per-head projection weights (transposed nn.Linear layout).
    wq = jax.random.normal(kq, (n_embd, n_embd), dtype=jnp.float32) * (n_embd ** -0.5)
    wk = jax.random.normal(kk, (n_embd, n_embd), dtype=jnp.float32) * (n_embd ** -0.5)
    wv = jax.random.normal(kv, (n_embd, n_embd), dtype=jnp.float32) * (n_embd ** -0.5)
    wproj = jax.random.normal(kp, (n_embd, n_embd), dtype=jnp.float32) * (n_embd ** -0.5)
    bias = jax.random.normal(kb, (n_embd,), dtype=jnp.float32) * 0.02

    hpg = _heads_per_group(num_heads, head_size)            # 4 -> 128-lane groups

    # Weight prep hoisted out of the per-call path (done once).
    wqkv_g, wproj_g = prepare_mha_weights(
        wq, wk, wv, wproj, num_heads=num_heads, head_size=head_size,
        heads_per_group=hpg)

    fwd = jax.jit(functools.partial(
        mha_forward, num_heads=num_heads, head_size=head_size,
        heads_per_group=hpg))

    out = jax.block_until_ready(fwd(x, wqkv_g, wproj_g, bias))

    ref = mha_reference(x, wq, wk, wv, wproj, bias, num_heads, head_size)
    assert out.shape == (B, T, n_embd)
    # bf16 MXU operands / bf16 exp vs. f32 reference -> loosened tolerances.
    max_err = float(jnp.max(jnp.abs(out - ref)))
    assert jnp.allclose(out, ref, atol=5e-2, rtol=5e-2), max_err

    print("KERNEL_OK")
</pallas_src>

<mosaic_0001>
module attributes {stable_mosaic.version = 11 : i64} {
  func.func @mha_kernel(%arg0: i32, %arg1: memref<2x128x512xbf16, #tpu.memory_space<vmem>>, %arg2: memref<4x512x384xbf16, #tpu.memory_space<vmem>>, %arg3: memref<4x128x512xbf16, #tpu.memory_space<vmem>>, %arg4: memref<1x512xf32, #tpu.memory_space<vmem>>, %arg5: memref<2x128x512xf32, #tpu.memory_space<vmem>>, %arg6: memref<256x512xf32, #tpu.memory_space<vmem>>) attributes {dimension_semantics = [#tpu.dimension_semantics<parallel>], iteration_bounds = array<i64: 1>, scalar_prefetch = 0 : i64, scratch_operands = 1 : i64, tpu.core_type = #tpu.core_type<tc>, window_params = [{transform_indices = @transform_0, window_bounds = array<i64: 2, 128, 512>}, {pipeline_mode = #tpu.pipeline_mode<synchronous>, transform_indices = @transform_1, window_bounds = array<i64: 4, 512, 384>}, {pipeline_mode = #tpu.pipeline_mode<synchronous>, transform_indices = @transform_2, window_bounds = array<i64: 4, 128, 512>}, {pipeline_mode = #tpu.pipeline_mode<synchronous>, transform_indices = @transform_3, window_bounds = array<i64: 1, 512>}, {transform_indices = @transform_4, window_bounds = array<i64: 2, 128, 512>}]} {
    %c0 = arith.constant 0 : index
    %c0_0 = arith.constant 0 : index
    %c0_1 = arith.constant 0 : index
    %0 = vector.load %arg1[%c0, %c0_0, %c0_1] : memref<2x128x512xbf16, #tpu.memory_space<vmem>>, vector<2x128x512xbf16>
    %1 = vector.shape_cast %0 : vector<2x128x512xbf16> to vector<256x512xbf16>
    %2 = tpu.iota {dimensions = array<i32: 0>} : vector<128x128xi32>
    %3 = tpu.iota {dimensions = array<i32: 1>} : vector<128x128xi32>
    %4 = arith.cmpi sle, %3, %2 : vector<128x128xi32>
    %cst = arith.constant 0.000000e+00 : f32
    %5 = vector.broadcast %cst : f32 to vector<256x512xf32>
    %c0_2 = arith.constant 0 : index
    %c0_3 = arith.constant 0 : index
    %6 = vector.load %arg6[%c0_2, %c0_3] : memref<256x512xf32, #tpu.memory_space<vmem>>, vector<256x512xf32>
    tpu.vector_store %arg6[%c0_2, %c0_3], %5 {strides = array<i32>} : memref<256x512xf32, #tpu.memory_space<vmem>>, vector<256x512xf32>,
    %c0_i32 = arith.constant 0 : i32
    %c4_i32 = arith.constant 4 : i32
    %7 = arith.addi %c0_i32, %c4_i32 : i32
    %c1_i32 = arith.constant 1 : i32
    scf.for %arg7 = %c0_i32 to %7 step %c1_i32  : i32 {
      %14 = arith.index_cast %arg7 : i32 to index
      %c0_12 = arith.constant 0 : index
      %c0_13 = arith.constant 0 : index
      %15 = vector.load %arg2[%14, %c0_12, %c0_13] : memref<4x512x384xbf16, #tpu.memory_space<vmem>>, vector<1x512x384xbf16>
      %16 = vector.shape_cast %15 : vector<1x512x384xbf16> to vector<512x384xbf16>
      %cst_14 = arith.constant dense<0.000000e+00> : vector<256x384xf32>
      %17 = tpu.matmul %1, %16, %cst_14 {dimension_numbers = #tpu.dot_dimension_numbers<[1], [0], [0], [1], [0, 0, 1, 1], [], []>} : vector<256x512xbf16>, vector<512x384xbf16>, vector<256x384xf32> -> vector<256x384xf32>
      %18 = arith.truncf %17 : vector<256x384xf32> to vector<256x384xbf16>
      %19 = vector.extract_strided_slice %18 {offsets = [0, 0], sizes = [128, 32], strides = [1, 1]} : vector<256x384xbf16> to vector<128x32xbf16>
      %20 = vector.extract_strided_slice %18 {offsets = [0, 128], sizes = [128, 32], strides = [1, 1]} : vector<256x384xbf16> to vector<128x32xbf16>
      %21 = vector.extract_strided_slice %18 {offsets = [0, 256], sizes = [128, 32], strides = [1, 1]} : vector<256x384xbf16> to vector<128x32xbf16>
      %cst_15 = arith.constant dense<0.000000e+00> : vector<128x128xf32>
      %22 = tpu.matmul %19, %20, %cst_15 {dimension_numbers = #tpu.dot_dimension_numbers<[1], [1], [0], [0], [0, 0, 1, 0], [], []>} : vector<128x32xbf16>, vector<128x32xbf16>, vector<128x128xf32> -> vector<128x128xf32>
      %cst_16 = arith.constant 0xFF800000 : f32
      %23 = vector.broadcast %cst_16 : f32 to vector<128x128xf32>
      %24 = arith.select %4, %22, %23 : vector<128x128xi1>, vector<128x128xf32>
      %cst_17 = arith.constant dense<0xFF800000> : vector<128xf32>
      %25 = vector.multi_reduction <maximumf>, %24, %cst_17 [1] : vector<128x128xf32> to vector<128xf32>
      %26 = vector.shape_cast %25 : vector<128xf32> to vector<128x1xf32>
      %27 = vector.broadcast %26 : vector<128x1xf32> to vector<128x128xf32>
      %28 = arith.subf %24, %27 : vector<128x128xf32>
      %29 = arith.truncf %28 : vector<128x128xf32> to vector<128x128xbf16>
      %30 = math.exp %29 : vector<128x128xbf16>
      %31 = arith.extf %30 : vector<128x128xbf16> to vector<128x128xf32>
      %cst_18 = arith.constant dense<0.000000e+00> : vector<128xf32>
      %32 = vector.multi_reduction <add>, %31, %cst_18 [1] : vector<128x128xf32> to vector<128xf32>
      %33 = vector.shape_cast %32 : vector<128xf32> to vector<128x1xf32>
      %cst_19 = arith.constant dense<0.000000e+00> : vector<128x32xf32>
      %34 = tpu.matmul %30, %21, %cst_19 {dimension_numbers = #tpu.dot_dimension_numbers<[1], [0], [0], [1], [0, 0, 1, 1], [], []>} : vector<128x128xbf16>, vector<128x32xbf16>, vector<128x32xf32> -> vector<128x32xf32>
      %35 = tpu.reciprocal %33 {approx = true} : vector<128x1xf32> -> vector<128x1xf32>
      %36 = vector.broadcast %35 : vector<128x1xf32> to vector<128x32xf32>
      %37 = arith.mulf %34, %36 : vector<128x32xf32>
      %38 = vector.extract_strided_slice %18 {offsets = [0, 32], sizes = [128, 32], strides = [1, 1]} : vector<256x384xbf16> to vector<128x32xbf16>
      %39 = vector.extract_strided_slice %18 {offsets = [0, 160], sizes = [128, 32], strides = [1, 1]} : vector<256x384xbf16> to vector<128x32xbf16>
      %40 = vector.extract_strided_slice %18 {offsets = [0, 288], sizes = [128, 32], strides = [1, 1]} : vector<256x384xbf16> to vector<128x32xbf16>
      %cst_20 = arith.constant dense<0.000000e+00> : vector<128x128xf32>
      %41 = tpu.matmul %38, %39, %cst_20 {dimension_numbers = #tpu.dot_dimension_numbers<[1], [1], [0], [0], [0, 0, 1, 0], [], []>} : vector<128x32xbf16>, vector<128x32xbf16>, vector<128x128xf32> -> vector<128x128xf32>
      %cst_21 = arith.constant 0xFF800000 : f32
      %42 = vector.broadcast %cst_21 : f32 to vector<128x128xf32>
      %43 = arith.select %4, %41, %42 : vector<128x128xi1>, vector<128x128xf32>
      %cst_22 = arith.constant dense<0xFF800000> : vector<128xf32>
      %44 = vector.multi_reduction <maximumf>, %43, %cst_22 [1] : vector<128x128xf32> to vector<128xf32>
      %45 = vector.shape_cast %44 : vector<128xf32> to vector<128x1xf32>
      %46 = vector.broadcast %45 : vector<128x1xf32> to vector<128x128xf32>
      %47 = arith.subf %43, %46 : vector<128x128xf32>
      %48 = arith.truncf %47 : vector<128x128xf32> to vector<128x128xbf16>
      %49 = math.exp %48 : vector<128x128xbf16>
      %50 = arith.extf %49 : vector<128x128xbf16> to vector<128x128xf32>
      %cst_23 = arith.constant dense<0.000000e+00> : vector<128xf32>
      %51 = vector.multi_reduction <add>, %50, %cst_23 [1] : vector<128x128xf32> to vector<128xf32>
      %52 = vector.shape_cast %51 : vector<128xf32> to vector<128x1xf32>
      %cst_24 = arith.constant dense<0.000000e+00> : vector<128x32xf32>
      %53 = tpu.matmul %49, %40, %cst_24 {dimension_numbers = #tpu.dot_dimension_numbers<[1], [0], [0], [1], [0, 0, 1, 1], [], []>} : vector<128x128xbf16>, vector<128x32xbf16>, vector<128x32xf32> -> vector<128x32xf32>
      %54 = tpu.reciprocal %52 {approx = true} : vector<128x1xf32> -> vector<128x1xf32>
      %55 = vector.broadcast %54 : vector<128x1xf32> to vector<128x32xf32>
      %56 = arith.mulf %53, %55 : vector<128x32xf32>
      %57 = vector.extract_strided_slice %18 {offsets = [0, 64], sizes = [128, 32], strides = [1, 1]} : vector<256x384xbf16> to vector<128x32xbf16>
      %58 = vector.extract_strided_slice %18 {offsets = [0, 192], sizes = [128, 32], strides = [1, 1]} : vector<256x384xbf16> to vector<128x32xbf16>
      %59 = vector.extract_strided_slice %18 {offsets = [0, 320], sizes = [128, 32], strides = [1, 1]} : vector<256x384xbf16> to vector<128x32xbf16>
      %cst_25 = arith.constant dense<0.000000e+00> : vector<128x128xf32>
      %60 = tpu.matmul %57, %58, %cst_25 {dimension_numbers = #tpu.dot_dimension_numbers<[1], [1], [0], [0], [0, 0, 1, 0], [], []>} : vector<128x32xbf16>, vector<128x32xbf16>, vector<128x128xf32> -> vector<128x128xf32>
      %cst_26 = arith.constant 0xFF800000 : f32
      %61 = vector.broadcast %cst_26 : f32 to vector<128x128xf32>
      %62 = arith.select %4, %60, %61 : vector<128x128xi1>, vector<128x128xf32>
      %cst_27 = arith.constant dense<0xFF800000> : vector<128xf32>
      %63 = vector.multi_reduction <maximumf>, %62, %cst_27 [1] : vector<128x128xf32> to vector<128xf32>
      %64 = vector.shape_cast %63 : vector<128xf32> to vector<128x1xf32>
      %65 = vector.broadcast %64 : vector<128x1xf32> to vector<128x128xf32>
      %66 = arith.subf %62, %65 : vector<128x128xf32>
      %67 = arith.truncf %66 : vector<128x128xf32> to vector<128x128xbf16>
      %68 = math.exp %67 : vector<128x128xbf16>
      %69 = arith.extf %68 : vector<128x128xbf16> to vector<128x128xf32>
      %cst_28 = arith.constant dense<0.000000e+00> : vector<128xf32>
      %70 = vector.multi_reduction <add>, %69, %cst_28 [1] : vector<128x128xf32> to vector<128xf32>
      %71 = vector.shape_cast %70 : vector<128xf32> to vector<128x1xf32>
      %cst_29 = arith.constant dense<0.000000e+00> : vector<128x32xf32>
      %72 = tpu.matmul %68, %59, %cst_29 {dimension_numbers = #tpu.dot_dimension_numbers<[1], [0], [0], [1], [0, 0, 1, 1], [], []>} : vector<128x128xbf16>, vector<128x32xbf16>, vector<128x32xf32> -> vector<128x32xf32>
      %73 = tpu.reciprocal %71 {approx = true} : vector<128x1xf32> -> vector<128x1xf32>
      %74 = vector.broadcast %73 : vector<128x1xf32> to vector<128x32xf32>
      %75 = arith.mulf %72, %74 : vector<128x32xf32>
      %76 = vector.extract_strided_slice %18 {offsets = [0, 96], sizes = [128, 32], strides = [1, 1]} : vector<256x384xbf16> to vector<128x32xbf16>
      %77 = vector.extract_strided_slice %18 {offsets = [0, 224], sizes = [128, 32], strides = [1, 1]} : vector<256x384xbf16> to vector<128x32xbf16>
      %78 = vector.extract_strided_slice %18 {offsets = [0, 352], sizes = [128, 32], strides = [1, 1]} : vector<256x384xbf16> to vector<128x32xbf16>
      %cst_30 = arith.constant dense<0.000000e+00> : vector<128x128xf32>
      %79 = tpu.matmul %76, %77, %cst_30 {dimension_numbers = #tpu.dot_dimension_numbers<[1], [1], [0], [0], [0, 0, 1, 0], [], []>} : vector<128x32xbf16>, vector<128x32xbf16>, vector<128x128xf32> -> vector<128x128xf32>
      %cst_31 = arith.constant 0xFF800000 : f32
      %80 = vector.broadcast %cst_31 : f32 to vector<128x128xf32>
      %81 = arith.select %4, %79, %80 : vector<128x128xi1>, vector<128x128xf32>
      %cst_32 = arith.constant dense<0xFF800000> : vector<128xf32>
      %82 = vector.multi_reduction <maximumf>, %81, %cst_32 [1] : vector<128x128xf32> to vector<128xf32>
      %83 = vector.shape_cast %82 : vector<128xf32> to vector<128x1xf32>
      %84 = vector.broadcast %83 : vector<128x1xf32> to vector<128x128xf32>
      %85 = arith.subf %81, %84 : vector<128x128xf32>
      %86 = arith.truncf %85 : vector<128x128xf32> to vector<128x128xbf16>
      %87 = math.exp %86 : vector<128x128xbf16>
      %88 = arith.extf %87 : vector<128x128xbf16> to vector<128x128xf32>
      %cst_33 = arith.constant dense<0.000000e+00> : vector<128xf32>
      %89 = vector.multi_reduction <add>, %88, %cst_33 [1] : vector<128x128xf32> to vector<128xf32>
      %90 = vector.shape_cast %89 : vector<128xf32> to vector<128x1xf32>
      %cst_34 = arith.constant dense<0.000000e+00> : vector<128x32xf32>
      %91 = tpu.matmul %87, %78, %cst_34 {dimension_numbers = #tpu.dot_dimension_numbers<[1], [0], [0], [1], [0, 0, 1, 1], [], []>} : vector<128x128xbf16>, vector<128x32xbf16>, vector<128x32xf32> -> vector<128x32xf32>
      %92 = tpu.reciprocal %90 {approx = true} : vector<128x1xf32> -> vector<128x1xf32>
      %93 = vector.broadcast %92 : vector<128x1xf32> to vector<128x32xf32>
      %94 = arith.mulf %91, %93 : vector<128x32xf32>
      %95 = tpu.concatenate %37, %56, %75, %94 in 1 : vector<128x32xf32>, vector<128x32xf32>, vector<128x32xf32>, vector<128x32xf32> -> vector<128x128xf32>
      %96 = vector.extract_strided_slice %18 {offsets = [128, 0], sizes = [128, 32], strides = [1, 1]} : vector<256x384xbf16> to vector<128x32xbf16>
      %97 = vector.extract_strided_slice %18 {offsets = [128, 128], sizes = [128, 32], strides = [1, 1]} : vector<256x384xbf16> to vector<128x32xbf16>
      %98 = vector.extract_strided_slice %18 {offsets = [128, 256], sizes = [128, 32], strides = [1, 1]} : vector<256x384xbf16> to vector<128x32xbf16>
      %cst_35 = arith.constant dense<0.000000e+00> : vector<128x128xf32>
      %99 = tpu.matmul %96, %97, %cst_35 {dimension_numbers = #tpu.dot_dimension_numbers<[1], [1], [0], [0], [0, 0, 1, 0], [], []>} : vector<128x32xbf16>, vector<128x32xbf16>, vector<128x128xf32> -> vector<128x128xf32>
      %cst_36 = arith.constant 0xFF800000 : f32
      %100 = vector.broadcast %cst_36 : f32 to vector<128x128xf32>
      %101 = arith.select %4, %99, %100 : vector<128x128xi1>, vector<128x128xf32>
      %cst_37 = arith.constant dense<0xFF800000> : vector<128xf32>
      %102 = vector.multi_reduction <maximumf>, %101, %cst_37 [1] : vector<128x128xf32> to vector<128xf32>
      %103 = vector.shape_cast %102 : vector<128xf32> to vector<128x1xf32>
      %104 = vector.broadcast %103 : vector<128x1xf32> to vector<128x128xf32>
      %105 = arith.subf %101, %104 : vector<128x128xf32>
      %106 = arith.truncf %105 : vector<128x128xf32> to vector<128x128xbf16>
      %107 = math.exp %106 : vector<128x128xbf16>
      %108 = arith.extf %107 : vector<128x128xbf16> to vector<128x128xf32>
      %cst_38 = arith.constant dense<0.000000e+00> : vector<128xf32>
      %109 = vector.multi_reduction <add>, %108, %cst_38 [1] : vector<128x128xf32> to vector<128xf32>
      %110 = vector.shape_cast %109 : vector<128xf32> to vector<128x1xf32>
      %cst_39 = arith.constant dense<0.000000e+00> : vector<128x32xf32>
      %111 = tpu.matmul %107, %98, %cst_39 {dimension_numbers = #tpu.dot_dimension_numbers<[1], [0], [0], [1], [0, 0, 1, 1], [], []>} : vector<128x128xbf16>, vector<128x32xbf16>, vector<128x32xf32> -> vector<128x32xf32>
      %112 = tpu.reciprocal %110 {approx = true} : vector<128x1xf32> -> vector<128x1xf32>
      %113 = vector.broadcast %112 : vector<128x1xf32> to vector<128x32xf32>
      %114 = arith.mulf %111, %113 : vector<128x32xf32>
      %115 = vector.extract_strided_slice %18 {offsets = [128, 32], sizes = [128, 32], strides = [1, 1]} : vector<256x384xbf16> to vector<128x32xbf16>
      %116 = vector.extract_strided_slice %18 {offsets = [128, 160], sizes = [128, 32], strides = [1, 1]} : vector<256x384xbf16> to vector<128x32xbf16>
      %117 = vector.extract_strided_slice %18 {offsets = [128, 288], sizes = [128, 32], strides = [1, 1]} : vector<256x384xbf16> to vector<128x32xbf16>
      %cst_40 = arith.constant dense<0.000000e+00> : vector<128x128xf32>
      %118 = tpu.matmul %115, %116, %cst_40 {dimension_numbers = #tpu.dot_dimension_numbers<[1], [1], [0], [0], [0, 0, 1, 0], [], []>} : vector<128x32xbf16>, vector<128x32xbf16>, vector<128x128xf32> -> vector<128x128xf32>
      %cst_41 = arith.constant 0xFF800000 : f32
      %119 = vector.broadcast %cst_41 : f32 to vector<128x128xf32>
      %120 = arith.select %4, %118, %119 : vector<128x128xi1>, vector<128x128xf32>
      %cst_42 = arith.constant dense<0xFF800000> : vector<128xf32>
      %121 = vector.multi_reduction <maximumf>, %120, %cst_42 [1] : vector<128x128xf32> to vector<128xf32>
      %122 = vector.shape_cast %121 : vector<128xf32> to vector<128x1xf32>
      %123 = vector.broadcast %122 : vector<128x1xf32> to vector<128x128xf32>
      %124 = arith.subf %120, %123 : vector<128x128xf32>
      %125 = arith.truncf %124 : vector<128x128xf32> to vector<128x128xbf16>
      %126 = math.exp %125 : vector<128x128xbf16>
      %127 = arith.extf %126 : vector<128x128xbf16> to vector<128x128xf32>
      %cst_43 = arith.constant dense<0.000000e+00> : vector<128xf32>
      %128 = vector.multi_reduction <add>, %127, %cst_43 [1] : vector<128x128xf32> to vector<128xf32>
      %129 = vector.shape_cast %128 : vector<128xf32> to vector<128x1xf32>
      %cst_44 = arith.constant dense<0.000000e+00> : vector<128x32xf32>
      %130 = tpu.matmul %126, %117, %cst_44 {dimension_numbers = #tpu.dot_dimension_numbers<[1], [0], [0], [1], [0, 0, 1, 1], [], []>} : vector<128x128xbf16>, vector<128x32xbf16>, vector<128x32xf32> -> vector<128x32xf32>
      %131 = tpu.reciprocal %129 {approx = true} : vector<128x1xf32> -> vector<128x1xf32>
      %132 = vector.broadcast %131 : vector<128x1xf32> to vector<128x32xf32>
      %133 = arith.mulf %130, %132 : vector<128x32xf32>
      %134 = vector.extract_strided_slice %18 {offsets = [128, 64], sizes = [128, 32], strides = [1, 1]} : vector<256x384xbf16> to vector<128x32xbf16>
      %135 = vector.extract_strided_slice %18 {offsets = [128, 192], sizes = [128, 32], strides = [1, 1]} : vector<256x384xbf16> to vector<128x32xbf16>
      %136 = vector.extract_strided_slice %18 {offsets = [128, 320], sizes = [128, 32], strides = [1, 1]} : vector<256x384xbf16> to vector<128x32xbf16>
      %cst_45 = arith.constant dense<0.000000e+00> : vector<128x128xf32>
      %137 = tpu.matmul %134, %135, %cst_45 {dimension_numbers = #tpu.dot_dimension_numbers<[1], [1], [0], [0], [0, 0, 1, 0], [], []>} : vector<128x32xbf16>, vector<128x32xbf16>, vector<128x128xf32> -> vector<128x128xf32>
      %cst_46 = arith.constant 0xFF800000 : f32
      %138 = vector.broadcast %cst_46 : f32 to vector<128x128xf32>
      %139 = arith.select %4, %137, %138 : vector<128x128xi1>, vector<128x128xf32>
      %cst_47 = arith.constant dense<0xFF800000> : vector<128xf32>
      %140 = vector.multi_reduction <maximumf>, %139, %cst_47 [1] : vector<128x128xf32> to vector<128xf32>
      %141 = vector.shape_cast %140 : vector<128xf32> to vector<128x1xf32>
      %142 = vector.broadcast %141 : vector<128x1xf32> to vector<128x128xf32>
      %143 = arith.subf %139, %142 : vector<128x128xf32>
      %144 = arith.truncf %143 : vector<128x128xf32> to vector<128x128xbf16>
      %145 = math.exp %144 : vector<128x128xbf16>
      %146 = arith.extf %145 : vector<128x128xbf16> to vector<128x128xf32>
      %cst_48 = arith.constant dense<0.000000e+00> : vector<128xf32>
      %147 = vector.multi_reduction <add>, %146, %cst_48 [1] : vector<128x128xf32> to vector<128xf32>
      %148 = vector.shape_cast %147 : vector<128xf32> to vector<128x1xf32>
      %cst_49 = arith.constant dense<0.000000e+00> : vector<128x32xf32>
      %149 = tpu.matmul %145, %136, %cst_49 {dimension_numbers = #tpu.dot_dimension_numbers<[1], [0], [0], [1], [0, 0, 1, 1], [], []>} : vector<128x128xbf16>, vector<128x32xbf16>, vector<128x32xf32> -> vector<128x32xf32>
      %150 = tpu.reciprocal %148 {approx = true} : vector<128x1xf32> -> vector<128x1xf32>
      %151 = vector.broadcast %150 : vector<128x1xf32> to vector<128x32xf32>
      %152 = arith.mulf %149, %151 : vector<128x32xf32>
      %153 = vector.extract_strided_slice %18 {offsets = [128, 96], sizes = [128, 32], strides = [1, 1]} : vector<256x384xbf16> to vector<128x32xbf16>
      %154 = vector.extract_strided_slice %18 {offsets = [128, 224], sizes = [128, 32], strides = [1, 1]} : vector<256x384xbf16> to vector<128x32xbf16>
      %155 = vector.extract_strided_slice %18 {offsets = [128, 352], sizes = [128, 32], strides = [1, 1]} : vector<256x384xbf16> to vector<128x32xbf16>
      %cst_50 = arith.constant dense<0.000000e+00> : vector<128x128xf32>
      %156 = tpu.matmul %153, %154, %cst_50 {dimension_numbers = #tpu.dot_dimension_numbers<[1], [1], [0], [0], [0, 0, 1, 0], [], []>} : vector<128x32xbf16>, vector<128x32xbf16>, vector<128x128xf32> -> vector<128x128xf32>
      %cst_51 = arith.constant 0xFF800000 : f32
      %157 = vector.broadcast %cst_51 : f32 to vector<128x128xf32>
      %158 = arith.select %4, %156, %157 : vector<128x128xi1>, vector<128x128xf32>
      %cst_52 = arith.constant dense<0xFF800000> : vector<128xf32>
      %159 = vector.multi_reduction <maximumf>, %158, %cst_52 [1] : vector<128x128xf32> to vector<128xf32>
      %160 = vector.shape_cast %159 : vector<128xf32> to vector<128x1xf32>
      %161 = vector.broadcast %160 : vector<128x1xf32> to vector<128x128xf32>
      %162 = arith.subf %158, %161 : vector<128x128xf32>
      %163 = arith.truncf %162 : vector<128x128xf32> to vector<128x128xbf16>
      %164 = math.exp %163 : vector<128x128xbf16>
      %165 = arith.extf %164 : vector<128x128xbf16> to vector<128x128xf32>
      %cst_53 = arith.constant dense<0.000000e+00> : vector<128xf32>
      %166 = vector.multi_reduction <add>, %165, %cst_53 [1] : vector<128x128xf32> to vector<128xf32>
      %167 = vector.shape_cast %166 : vector<128xf32> to vector<128x1xf32>
      %cst_54 = arith.constant dense<0.000000e+00> : vector<128x32xf32>
      %168 = tpu.matmul %164, %155, %cst_54 {dimension_numbers = #tpu.dot_dimension_numbers<[1], [0], [0], [1], [0, 0, 1, 1], [], []>} : vector<128x128xbf16>, vector<128x32xbf16>, vector<128x32xf32> -> vector<128x32xf32>
      %169 = tpu.reciprocal %167 {approx = true} : vector<128x1xf32> -> vector<128x1xf32>
      %170 = vector.broadcast %169 : vector<128x1xf32> to vector<128x32xf32>
      %171 = arith.mulf %168, %170 : vector<128x32xf32>
      %172 = tpu.concatenate %114, %133, %152, %171 in 1 : vector<128x32xf32>, vector<128x32xf32>, vector<128x32xf32>, vector<128x32xf32> -> vector<128x128xf32>
      %173 = tpu.concatenate %95, %172 in 0 : vector<128x128xf32>, vector<128x128xf32> -> vector<256x128xf32>
      %174 = arith.truncf %173 : vector<256x128xf32> to vector<256x128xbf16>
      %c0_55 = arith.constant 0 : index
      %c0_56 = arith.constant 0 : index
      %175 = vector.load %arg6[%c0_55, %c0_56] : memref<256x512xf32, #tpu.memory_space<vmem>>, vector<256x512xf32>
      %176 = arith.index_cast %arg7 : i32 to index
      %c0_57 = arith.constant 0 : index
      %c0_58 = arith.constant 0 : index
      %177 = vector.load %arg3[%176, %c0_57, %c0_58] : memref<4x128x512xbf16, #tpu.memory_space<vmem>>, vector<1x128x512xbf16>
      %178 = vector.shape_cast %177 : vector<1x128x512xbf16> to vector<128x512xbf16>
      %cst_59 = arith.constant dense<0.000000e+00> : vector<256x512xf32>
      %179 = tpu.matmul %174, %178, %cst_59 {dimension_numbers = #tpu.dot_dimension_numbers<[1], [0], [0], [1], [0, 0, 1, 1], [], []>} : vector<256x128xbf16>, vector<128x512xbf16>, vector<256x512xf32> -> vector<256x512xf32>
      %180 = arith.addf %175, %179 : vector<256x512xf32>
      %c0_60 = arith.constant 0 : index
      %c0_61 = arith.constant 0 : index
      %181 = vector.load %arg6[%c0_60, %c0_61] : memref<256x512xf32, #tpu.memory_space<vmem>>, vector<256x512xf32>
      tpu.vector_store %arg6[%c0_60, %c0_61], %180 {strides = array<i32>} : memref<256x512xf32, #tpu.memory_space<vmem>>, vector<256x512xf32>,
    }
    %c4_i32_4 = arith.constant 4 : i32
    %c0_5 = arith.constant 0 : index
    %c0_6 = arith.constant 0 : index
    %8 = vector.load %arg6[%c0_5, %c0_6] : memref<256x512xf32, #tpu.memory_space<vmem>>, vector<256x512xf32>
    %c0_7 = arith.constant 0 : index
    %c0_8 = arith.constant 0 : index
    %9 = vector.load %arg4[%c0_7, %c0_8] : memref<1x512xf32, #tpu.memory_space<vmem>>, vector<1x512xf32>
    %10 = vector.broadcast %9 : vector<1x512xf32> to vector<256x512xf32>
    %11 = arith.addf %8, %10 : vector<256x512xf32>
    %12 = vector.shape_cast %11 : vector<256x512xf32> to vector<2x128x512xf32>
    %c0_9 = arith.constant 0 : index
    %c0_10 = arith.constant 0 : index
    %c0_11 = arith.constant 0 : index
    %13 = vector.load %arg5[%c0_9, %c0_10, %c0_11] : memref<2x128x512xf32, #tpu.memory_space<vmem>>, vector<2x128x512xf32>
    tpu.vector_store %arg5[%c0_9, %c0_10, %c0_11], %12 {strides = array<i32>} : memref<2x128x512xf32, #tpu.memory_space<vmem>>, vector<2x128x512xf32>,
    return
  }
  func.func @transform_0(%arg0: i32) -> (i32, i32, i32) {
    %c0_i32 = arith.constant 0 : i32
    %c0_i32_0 = arith.constant 0 : i32
    %c0_i32_1 = arith.constant 0 : i32
    return %arg0, %c0_i32, %c0_i32_0 : i32, i32, i32
  }
  func.func @transform_1(%arg0: i32) -> (i32, i32, i32) {
    %c0_i32 = arith.constant 0 : i32
    %c0_i32_0 = arith.constant 0 : i32
    %c0_i32_1 = arith.constant 0 : i32
    %c0_i32_2 = arith.constant 0 : i32
    return %c0_i32, %c0_i32_0, %c0_i32_1 : i32, i32, i32
  }
  func.func @transform_2(%arg0: i32) -> (i32, i32, i32) {
    %c0_i32 = arith.constant 0 : i32
    %c0_i32_0 = arith.constant 0 : i32
    %c0_i32_1 = arith.constant 0 : i32
    %c0_i32_2 = arith.constant 0 : i32
    return %c0_i32, %c0_i32_0, %c0_i32_1 : i32, i32, i32
  }
  func.func @transform_3(%arg0: i32) -> (i32, i32) {
    %c0_i32 = arith.constant 0 : i32
    %c0_i32_0 = arith.constant 0 : i32
    %c0_i32_1 = arith.constant 0 : i32
    return %c0_i32, %c0_i32_0 : i32, i32
  }
  func.func @transform_4(%arg0: i32) -> (i32, i32, i32) {
    %c0_i32 = arith.constant 0 : i32
    %c0_i32_0 = arith.constant 0 : i32
    %c0_i32_1 = arith.constant 0 : i32
    return %arg0, %c0_i32, %c0_i32_0 : i32, i32, i32
  }
}

</mosaic_0001>

<bundles_post_ra>
// kernel: mha_forward.1
= control target key start
LH: loop header
LB: loop body
LE: loop exit
PB: predicated region body
PF: predicated region fallthrough
CT: control target
= control target key end

     0   :  { %9 = vsyncpa [#allocation4], 0  ;;  %s14282_s0 = inlined_call_operand.vmem [shape: bf16[2,128,512], index: 0, kind: input, shape index: {}]   ;;  %s14283_s1 = inlined_call_operand.hbm [shape: bf16[4,512,384], index: 1, kind: input, shape index: {}]   ;;  %s14284_s2 = inlined_call_operand.hbm [shape: bf16[4,128,512], index: 2, kind: input, shape index: {}]   ;;  %s14285_s3 = inlined_call_operand.hbm [shape: f32[1,512], index: 3, kind: input, shape index: {}]   ;;  %s14286_s4 = inlined_call_operand.hbm [shape: f32[2,128,512], index: 4, kind: output, shape index: {}]  }
   0x1   :  { %10 = vsyncpa [#allocation7], 0 }
   0x2   :  { %11 = vsyncpa [#allocation5], 0  ;;  %s9901_s15 = smov [#allocation6]  }
   0x3   :  { %s31_s16 = sshll.u32 %s9901_s15, 4  ;;  %s32_s16 = int_to_ptr.vmem [resolvable:$true] %s31_s16 }
   0x4   :  { %s9815_s17 = scalar_lea.vmem %s32_s16, 16384  ;;  %p9820_p1 = scmp.lt.s32.totalorder %s32_s16, %s32_s16 }
   0x5   :  { %p9816_p0 = scmp.ne.s32.totalorder %s32_s16, %s9815_s17  ;;  %p9821_p2 = scmp.lt.s32.totalorder %s9815_s17, %s9815_s17 }
   0x7   :  { %p9822_p3 = por %p9821_p2, %p9820_p1 }
   0x9   :  { %p9823_p4 = pnand %p9822_p3, %p9816_p0 }
   0xb   :  { %9826 = shalt.err (!%p9823_p4)
}
   0xc   :  { %s9902_s18 = smov 256   ;;  %s9903_s19 = smov 16  }
   0xd   :  { %37 = dma.hbm_to_vmem [thread:$0]  %s14284_s2, 16384, %s32_s16, [#allocation7], %s9902_s18, %s9902_s18, %s9903_s19  }
   0xe   :  { %s9904_s22 = smov [#allocation3]  }
   0xf   :  { %s19_s23 = sshll.u32 %s9904_s22, 4  ;;  %s20_s23 = int_to_ptr.vmem [resolvable:$true] %s19_s23 }
  0x10   :  { %s9835_s24 = scalar_lea.vmem %s20_s23, 49152  ;;  %p9840_p6 = scmp.lt.s32.totalorder %s20_s23, %s20_s23 }
  0x11   :  { %p9836_p5 = scmp.ne.s32.totalorder %s20_s23, %s9835_s24  ;;  %p9841_p7 = scmp.lt.s32.totalorder %s9835_s24, %s9835_s24 }
  0x13   :  { %p9842_p8 = por %p9841_p7, %p9840_p6 }
  0x15   :  { %p9843_p9 = pnand %p9842_p8, %p9836_p5 }
  0x17   :  { %9846 = shalt.err (!%p9843_p9)
}
  0x18   :  { %s9905_s25 = smov 192   ;;  %s9906_s26 = smov 12  }
  0x19   :  { %25 = dma.hbm_to_vmem [thread:$0]  %s14283_s1, 49152, %s20_s23, [#allocation4], %s9905_s25, %s9905_s25, %s9906_s26  }
  0x1a   :  { %s9907_s29 = smov [#allocation8]  }
  0x1b   :  { %s44_s30 = sshll.u32 %s9907_s29, 4  ;;  %s45_s30 = int_to_ptr.vmem [resolvable:$true] %s44_s30 }
  0x1c   :  { %s9855_s2 = scalar_lea.vmem %s45_s30, 64  ;;  %p9860_p11 = scmp.lt.s32.totalorder %s45_s30, %s45_s30 }
  0x1d   :  { %p9856_p10 = scmp.ne.s32.totalorder %s45_s30, %s9855_s2  ;;  %p9861_p12 = scmp.lt.s32.totalorder %s9855_s2, %s9855_s2 }
  0x1f   :  { %p9862_p13 = por %p9861_p12, %p9860_p11 }
  0x21   :  { %p9863_p0 = pnand %p9862_p13, %p9856_p10 }
  0x23   :  { %9866 = shalt.err (!%p9863_p0)
}
  0x24   :  { %47 = dma.hbm_to_vmem [thread:$0]  %s14285_s3, 64, %s45_s30, [#allocation7]  }
  0x25   :  { %9891 = dma.done.wait [#allocation4], 49152  }
  0x26   :  { %9892 = vsyncadd [#allocation4], 4294918144 }
  0x27   :  { %9893 = dma.done.wait [#allocation7], 16448  }
  0x28   :  { %9894 = vsyncadd [#allocation7], 4294950848  ;;  %v122_v0 = vlaneseq  ;;  %v9908_v1 = vmov 0.0   ;;  %v10097_v16 = vld [vmem:[%s14282_s0] sm:$0xff]  ;;  %v10102_v17 = vld [vmem:[%s14282_s0 + $0x8] sm:$0xff]  ;;  %v14579_v22 = vmov 0 }
  0x29   :  { %157 = vst [vmem:[#allocation2 + $0x2b0] sm:$0xff] %v9908_v1  ;;  %158 = vst [vmem:[#allocation2 + $0x3b0] sm:$0xff] %v9908_v1  ;;  %v10107_v18 = vld [vmem:[%s14282_s0 + $0x10] sm:$0xff]  ;;  %v10120_v23 = vld [vmem:[%s14282_s0 + $0x18] sm:$0xff]  ;;  %v14585_v26 = vmov 0  ;;  %v14588_v27 = vmov 0 }
  0x2a   :  { %159 = vst [vmem:[#allocation2 + $0xd8] sm:$0xff] %v9908_v1  ;;  %160 = vst [vmem:[#allocation2 + $0x18] sm:$0xff] %v9908_v1  ;;  %v10079_v2 = vshrl.u32 %v122_v0, 7  ;;  %v140_v3 = vand.u32 127, %v122_v0  ;;  %v10125_v24 = vld [vmem:[%s14282_s0 + $0x20] sm:$0xff]  ;;  %v10130_v25 = vld [vmem:[%s14282_s0 + $0x28] sm:$0xff] }
  0x2b   :  { %161 = vst [vmem:[#allocation2 + $0x50] sm:$0xff] %v9908_v1  ;;  %162 = vst [vmem:[#allocation2 + $0x368] sm:$0xff] %v9908_v1  ;;  %v14591_v28 = vmov 0  ;;  %v14594_v29 = vmov 0  ;;  %v10151_v30 = vld [vmem:[%s14282_s0 + $0x30] sm:$0xff]  ;;  %v10156_v31 = vld [vmem:[%s14282_s0 + $0x38] sm:$0xff] }
  0x2c   :  { %163 = vst [vmem:[#allocation2 + $0x330] sm:$0xff] %v9908_v1  ;;  %164 = vst [vmem:[#allocation2 + $0x48] sm:$0xff] %v9908_v1  ;;  %v124_v4 = vadd.s32 8, %v10079_v2  ;;  %v125_v5 = vadd.s32 16, %v10079_v2  ;;  %v126_v6 = vadd.s32 24, %v10079_v2  ;;  %v127_v7 = vadd.s32 32, %v10079_v2 }
  0x2d   :  { %165 = vst [vmem:[#allocation2 + $0x380] sm:$0xff] %v9908_v1  ;;  %166 = vst [vmem:[#allocation2 + $0x110] sm:$0xff] %v9908_v1  ;;  %v128_v8 = vadd.s32 40, %v10079_v2  ;;  %v129_v9 = vadd.s32 48, %v10079_v2  ;;  %v130_v10 = vadd.s32 56, %v10079_v2  ;;  %v131_v11 = vadd.s32 64, %v10079_v2 }
  0x2e   :  { %167 = vst [vmem:[#allocation2 + $0x118] sm:$0xff] %v9908_v1  ;;  %168 = vst [vmem:[#allocation2 + $0x98] sm:$0xff] %v9908_v1  ;;  %v132_v12 = vadd.s32 72, %v10079_v2  ;;  %v133_v13 = vadd.s32 80, %v10079_v2  ;;  %v134_v14 = vadd.s32 88, %v10079_v2  ;;  %v135_v15 = vadd.s32 96, %v10079_v2 }
  0x2f   :  { %169 = vst [vmem:[#allocation2 + $0x320] sm:$0xff] %v9908_v1  ;;  %170 = vst [vmem:[#allocation2 + $0x150] sm:$0xff] %v9908_v1  ;;  %v136_v19 = vadd.s32 104, %v10079_v2  ;;  %v137_v20 = vadd.s32 112, %v10079_v2  ;;  %v138_v21 = vadd.s32 120, %v10079_v2  ;;  %vm10113_vm0 = vcmp.le.s32.totalorder %v140_v3, %v10079_v2  ;;  %v10161_v32 = vld [vmem:[%s14282_s0 + $0x40] sm:$0xff] }
  0x30   :  { %171 = vst [vmem:[#allocation2 + $0x108] sm:$0xff] %v9908_v1  ;;  %172 = vst [vmem:[#allocation2 + $0x60] sm:$0xff] %v9908_v1  ;;  %v14580_v22 = vsel %vm10113_vm0, 4294967295, %v14579_v22  ;;  %vm10132_vm1 = vcmp.le.s32.totalorder %v140_v3, %v124_v4  ;;  %vm10136_vm2 = vcmp.le.s32.totalorder %v140_v3, %v125_v5  ;;  %vm10140_vm3 = vcmp.le.s32.totalorder %v140_v3, %v126_v6  ;;  %v10182_v37 = vld [vmem:[%s14282_s0 + $0x48] sm:$0xff]  ;;  %v10187_v38 = vld [vmem:[%s14282_s0 + $0x50] sm:$0xff]  ;;  %s10482_s17 = smov 0  }
  0x31   :  { %173 = vst [vmem:[#allocation2 + $0x2e0] sm:$0xff] %v9908_v1  ;;  %174 = vst [vmem:[#allocation2 + $0x388] sm:$0xff] %v9908_v1  ;;  %v14586_v26 = vsel %vm10132_vm1, 4294967295, %v14585_v26  ;;  %v14589_v27 = vsel %vm10136_vm2, 4294967295, %v14588_v27  ;;  %v14592_v28 = vsel %vm10140_vm3, 4294967295, %v14591_v28  ;;  %vm10144_vm4 = vcmp.le.s32.totalorder %v140_v3, %v127_v7  ;;  %v10192_v39 = vld [vmem:[%s14282_s0 + $0x58] sm:$0xff] }
  0x32   :  { %175 = vst [vmem:[#allocation2 + $0x338] sm:$0xff] %v9908_v1  ;;  %176 = vst [vmem:[#allocation2 + $0x340] sm:$0xff] %v9908_v1  ;;  %v14595_v29 = vsel %vm10144_vm4, 4294967295, %v14594_v29  ;;  %vm10163_vm5 = vcmp.le.s32.totalorder %v140_v3, %v128_v8  ;;  %v14600_v33 = vmov 0  ;;  %vm10167_vm6 = vcmp.le.s32.totalorder %v140_v3, %v129_v9  ;;  %v10213_v44 = vld [vmem:[%s14282_s0 + $0x60] sm:$0xff]  ;;  %v10218_v45 = vld [vmem:[%s14282_s0 + $0x68] sm:$0xff] }
  0x33   :  { %177 = vst [vmem:[#allocation2 + $0x80] sm:$0xff] %v9908_v1  ;;  %178 = vst [vmem:[#allocation2 + $0x1a8] sm:$0xff] %v9908_v1  ;;  %v14601_v33 = vsel %vm10163_vm5, 4294967295, %v14600_v33  ;;  %v14603_v34 = vmov 0  ;;  %vm10171_vm7 = vcmp.le.s32.totalorder %v140_v3, %v130_v10  ;;  %v14606_v35 = vmov 0  ;;  %v10223_v46 = vld [vmem:[%s14282_s0 + $0x70] sm:$0xff] }
  0x34   :  { %179 = vst [vmem:[#allocation2 + $0x1b8] sm:$0xff] %v9908_v1  ;;  %180 = vst [vmem:[#allocation2 + $0x168] sm:$0xff] %v9908_v1  ;;  %v14604_v34 = vsel %vm10167_vm6, 4294967295, %v14603_v34  ;;  %v14607_v35 = vsel %vm10171_vm7, 4294967295, %v14606_v35  ;;  %vm10175_vm8 = vcmp.le.s32.totalorder %v140_v3, %v131_v11  ;;  %v14609_v36 = vmov 0  ;;  %v10240_v50 = vld [vmem:[%s14282_s0 + $0x78] sm:$0xff] }
  0x35   :  { %181 = vst [vmem:[#allocation2 + $0x3e8] sm:$0xff] %v9908_v1  ;;  %182 = vst [vmem:[#allocation2 + $0x2f8] sm:$0xff] %v9908_v1  ;;  %v14610_v36 = vsel %vm10175_vm8, 4294967295, %v14609_v36  ;;  %vm10194_vm9 = vcmp.le.s32.totalorder %v140_v3, %v132_v12  ;;  %v14615_v40 = vmov 0  ;;  %vm10198_vm10 = vcmp.le.s32.totalorder %v140_v3, %v133_v13  ;;  %v10245_v51 = vld [vmem:[%s14282_s0 + $0x80] sm:$0xff]  ;;  %v10250_v52 = vld [vmem:[%s14282_s0 + $0x88] sm:$0xff] }
  0x36   :  { %183 = vst [vmem:[#allocation2 + $0x290] sm:$0xff] %v9908_v1  ;;  %184 = vst [vmem:[#allocation2 + $0x28] sm:$0xff] %v9908_v1  ;;  %v14616_v40 = vsel %vm10194_vm9, 4294967295, %v14615_v40  ;;  %v14618_v41 = vmov 0  ;;  %vm10202_vm11 = vcmp.le.s32.totalorder %v140_v3, %v134_v14  ;;  %v14621_v42 = vmov 0  ;;  %v10255_v53 = vld [vmem:[%s14282_s0 + $0x90] sm:$0xff] }
  0x37   :  { %185 = vst [vmem:[#allocation2 + $0x138] sm:$0xff] %v9908_v1  ;;  %186 = vst [vmem:[#allocation2 + $0xc0] sm:$0xff] %v9908_v1  ;;  %v14619_v41 = vsel %vm10198_vm10, 4294967295, %v14618_v41  ;;  %v14622_v42 = vsel %vm10202_vm11, 4294967295, %v14621_v42  ;;  %vm10206_vm12 = vcmp.le.s32.totalorder %v140_v3, %v135_v15  ;;  %v14624_v43 = vmov 0  ;;  %v10260_v54 = vld [vmem:[%s14282_s0 + $0x98] sm:$0xff] }
  0x38   :  { %187 = vst [vmem:[#allocation2 + $0x1c0] sm:$0xff] %v9908_v1  ;;  %188 = vst [vmem:[#allocation2 + $0x280] sm:$0xff] %v9908_v1  ;;  %v14625_v43 = vsel %vm10206_vm12, 4294967295, %v14624_v43  ;;  %vm10225_vm13 = vcmp.le.s32.totalorder %v140_v3, %v136_v19  ;;  %v14630_v47 = vmov 0  ;;  %vm10229_vm14 = vcmp.le.s32.totalorder %v140_v3, %v137_v20  ;;  %v10265_v55 = vld [vmem:[%s14282_s0 + $0xa0] sm:$0xff]  ;;  %v10270_v56 = vld [vmem:[%s14282_s0 + $0xa8] sm:$0xff] }
  0x39   :  { %189 = vst [vmem:[#allocation2 + $0x100] sm:$0xff] %v9908_v1  ;;  %190 = vst [vmem:[#allocation2 + $0x3c0] sm:$0xff] %v9908_v1  ;;  %v14631_v47 = vsel %vm10225_vm13, 4294967295, %v14630_v47  ;;  %v14633_v48 = vmov 0  ;;  %vm10233_vm15 = vcmp.le.s32.totalorder %v140_v3, %v138_v21  ;;  %v14636_v49 = vmov 0  ;;  %v10275_v57 = vld [vmem:[%s14282_s0 + $0xb0] sm:$0xff] }
  0x3a   :  { %191 = vst [vmem:[#allocation2 + $0x158] sm:$0xff] %v9908_v1  ;;  %192 = vst [vmem:[#allocation2 + $0x3e0] sm:$0xff] %v9908_v1  ;;  %v14634_v48 = vsel %vm10229_vm14, 4294967295, %v14633_v48  ;;  %v14637_v49 = vsel %vm10233_vm15, 4294967295, %v14636_v49  ;;  %v10280_v58 = vld [vmem:[%s14282_s0 + $0xb8] sm:$0xff]  ;;  %v10285_v59 = vld [vmem:[%s14282_s0 + $0xc0] sm:$0xff] }
  0x3b   :  { %193 = vst [vmem:[#allocation2 + $0x218] sm:$0xff] %v9908_v1  ;;  %194 = vst [vmem:[#allocation2 + $0x3f8] sm:$0xff] %v9908_v1  ;;  %v10290_v60 = vld [vmem:[%s14282_s0 + $0xc8] sm:$0xff]  ;;  %v10295_v61 = vld [vmem:[%s14282_s0 + $0xd0] sm:$0xff] }
  0x3c   :  { %195 = vst [vmem:[#allocation2 + $0x8] sm:$0xff] %v9908_v1  ;;  %196 = vst [vmem:[#allocation2 + $0x128] sm:$0xff] %v9908_v1  ;;  %v10300_v62 = vld [vmem:[%s14282_s0 + $0xd8] sm:$0xff]  ;;  %v10305_v63 = vld [vmem:[%s14282_s0 + $0xe0] sm:$0xff] }
  0x3d   :  { %197 = vst [vmem:[#allocation2 + $0x2a0] sm:$0xff] %v9908_v1  ;;  %198 = vst [vmem:[#allocation2 + $0x3f0] sm:$0xff] %v9908_v1  ;;  %v10310_v0 = vld [vmem:[%s14282_s0 + $0xe8] sm:$0xff]  ;;  %v10320_v3 = vld [vmem:[%s14282_s0 + $0xf8] sm:$0xff] }
  0x3e   :  { %199 = vst [vmem:[#allocation2 + $0xa0] sm:$0xff] %v9908_v1  ;;  %200 = vst [vmem:[#allocation2 + $0x2c0] sm:$0xff] %v9908_v1  ;;  %v10325_v4 = vld [vmem:[%s14282_s0 + $0x100] sm:$0xff]  ;;  %v10330_v5 = vld [vmem:[%s14282_s0 + $0x108] sm:$0xff] }
  0x3f   :  { %201 = vst [vmem:[#allocation2 + $0xb0] sm:$0xff] %v9908_v1  ;;  %202 = vst [vmem:[#allocation2 + $0x1e0] sm:$0xff] %v9908_v1  ;;  %v10335_v6 = vld [vmem:[%s14282_s0 + $0x110] sm:$0xff]  ;;  %v10340_v7 = vld [vmem:[%s14282_s0 + $0x118] sm:$0xff] }
  0x40   :  { %203 = vst [vmem:[#allocation2 + $0x1f0] sm:$0xff] %v9908_v1  ;;  %204 = vst [vmem:[#allocation2 + $0x10] sm:$0xff] %v9908_v1  ;;  %v10345_v8 = vld [vmem:[%s14282_s0 + $0x120] sm:$0xff]  ;;  %v10350_v9 = vld [vmem:[%s14282_s0 + $0x128] sm:$0xff] }
  0x41   :  { %205 = vst [vmem:[#allocation2 + $0x230] sm:$0xff] %v9908_v1  ;;  %206 = vst [vmem:[#allocation2 + $0x240] sm:$0xff] %v9908_v1  ;;  %v10355_v10 = vld [vmem:[%s14282_s0 + $0x130] sm:$0xff]  ;;  %v10360_v11 = vld [vmem:[%s14282_s0 + $0x138] sm:$0xff] }
  0x42   :  { %207 = vst [vmem:[#allocation2 + $0x90] sm:$0xff] %v9908_v1  ;;  %208 = vst [vmem:[#allocation2 + $0x3a0] sm:$0xff] %v9908_v1  ;;  %v10365_v12 = vld [vmem:[%s14282_s0 + $0x140] sm:$0xff]  ;;  %v10370_v13 = vld [vmem:[%s14282_s0 + $0x148] sm:$0xff] }
  0x43   :  { %209 = vst [vmem:[#allocation2 + $0x208] sm:$0xff] %v9908_v1  ;;  %210 = vst [vmem:[#allocation2 + $0xd0] sm:$0xff] %v9908_v1  ;;  %v10375_v14 = vld [vmem:[%s14282_s0 + $0x150] sm:$0xff]  ;;  %v10380_v15 = vld [vmem:[%s14282_s0 + $0x158] sm:$0xff] }
  0x44   :  { %211 = vst [vmem:[#allocation2 + $0x88] sm:$0xff] %v9908_v1  ;;  %212 = vst [vmem:[#allocation2 + $0x2f0] sm:$0xff] %v9908_v1  ;;  %v10385_v19 = vld [vmem:[%s14282_s0 + $0x160] sm:$0xff]  ;;  %v10390_v20 = vld [vmem:[%s14282_s0 + $0x168] sm:$0xff] }
  0x45   :  { %213 = vst [vmem:[#allocation2 + $0x358] sm:$0xff] %v9908_v1  ;;  %214 = vst [vmem:[#allocation2 + $0x268] sm:$0xff] %v9908_v1  ;;  %v10395_v21 = vld [vmem:[%s14282_s0 + $0x170] sm:$0xff] }
  0x46   :  { %215 = vst [vmem:[#allocation2 + $0x350] sm:$0xff] %v9908_v1  ;;  %216 = vst [vmem:[#allocation2 + $0x188] sm:$0xff] %v9908_v1 }
  0x47   :  { %217 = vst [vmem:[#allocation2 + $0x1d8] sm:$0xff] %v9908_v1  ;;  %218 = vst [vmem:[#allocation2 + $0x30] sm:$0xff] %v9908_v1 }
  0x48   :  { %219 = vst [vmem:[#allocation2 + $0x140] sm:$0xff] %v9908_v1  ;;  %220 = vst [vmem:[#allocation2 + $0x2a8] sm:$0xff] %v9908_v1 }
  0x49   :  { %221 = vst [vmem:[#allocation2 + $0x130] sm:$0xff] %v9908_v1  ;;  %222 = vst [vmem:[#allocation2 + $0x200] sm:$0xff] %v9908_v1 }
  0x4a   :  { %223 = vst [vmem:[#allocation2 + $0x318] sm:$0xff] %v9908_v1  ;;  %224 = vst [vmem:[#allocation2 + $0x220] sm:$0xff] %v9908_v1 }
  0x4b   :  { %225 = vst [vmem:[#allocation2 + $0x70] sm:$0xff] %v9908_v1  ;;  %226 = vst [vmem:[#allocation2 + $0x300] sm:$0xff] %v9908_v1 }
  0x4c   :  { %227 = vst [vmem:[#allocation2 + $0xe0] sm:$0xff] %v9908_v1  ;;  %228 = vst [vmem:[#allocation2 + $0x178] sm:$0xff] %v9908_v1 }
  0x4d   :  { %229 = vst [vmem:[#allocation2 + $0x328] sm:$0xff] %v9908_v1  ;;  %230 = vst [vmem:[#allocation2 + $0x260] sm:$0xff] %v9908_v1 }
  0x4e   :  { %231 = vst [vmem:[#allocation2 + $0x3b8] sm:$0xff] %v9908_v1  ;;  %232 = vst [vmem:[#allocation2 + $0x2b8] sm:$0xff] %v9908_v1 }
  0x4f   :  { %233 = vst [vmem:[#allocation2 + $0x248] sm:$0xff] %v9908_v1  ;;  %234 = vst [vmem:[#allocation2 + $0x40] sm:$0xff] %v9908_v1 }
  0x50   :  { %235 = vst [vmem:[#allocation2 + $0x20] sm:$0xff] %v9908_v1  ;;  %236 = vst [vmem:[#allocation2 + $0xe8] sm:$0xff] %v9908_v1 }
  0x51   :  { %237 = vst [vmem:[#allocation2 + $0x288] sm:$0xff] %v9908_v1  ;;  %238 = vst [vmem:[#allocation2 + $0x3a8] sm:$0xff] %v9908_v1 }
  0x52   :  { %239 = vst [vmem:[#allocation2 + $0x3c8] sm:$0xff] %v9908_v1  ;;  %240 = vst [vmem:[#allocation2 + $0x160] sm:$0xff] %v9908_v1 }
  0x53   :  { %241 = vst [vmem:[#allocation2 + $0x2c8] sm:$0xff] %v9908_v1  ;;  %242 = vst [vmem:[#allocation2 + $0x210] sm:$0xff] %v9908_v1 }
  0x54   :  { %243 = vst [vmem:[#allocation2 + $0x3d8] sm:$0xff] %v9908_v1  ;;  %244 = vst [vmem:[#allocation2 + $0x1e8] sm:$0xff] %v9908_v1 }
  0x55   :  { %245 = vst [vmem:[#allocation2 + $0x1b0] sm:$0xff] %v9908_v1  ;;  %246 = vst [vmem:[#allocation2 + $0x1c8] sm:$0xff] %v9908_v1 }
  0x56   :  { %247 = vst [vmem:[#allocation2 + $0x2d0] sm:$0xff] %v9908_v1  ;;  %248 = vst [vmem:[#allocation2 + $0x1d0] sm:$0xff] %v9908_v1 }
  0x57   :  { %249 = vst [vmem:[#allocation2 + $0x58] sm:$0xff] %v9908_v1  ;;  %250 = vst [vmem:[#allocation2 + $0x120] sm:$0xff] %v9908_v1 }
  0x58   :  { %251 = vst [vmem:[#allocation2 + $0x198] sm:$0xff] %v9908_v1  ;;  %252 = vst [vmem:[#allocation2 + $0x2e8] sm:$0xff] %v9908_v1 }
  0x59   :  { %253 = vst [vmem:[#allocation2 + $0x1f8] sm:$0xff] %v9908_v1  ;;  %254 = vst [vmem:[#allocation2 + $0x238] sm:$0xff] %v9908_v1 }
  0x5a   :  { %255 = vst [vmem:[#allocation2 + $0x398] sm:$0xff] %v9908_v1  ;;  %256 = vst [vmem:[#allocation2 + $0x390] sm:$0xff] %v9908_v1 }
  0x5b   :  { %257 = vst [vmem:[#allocation2 + $0x1a0] sm:$0xff] %v9908_v1  ;;  %258 = vst [vmem:[#allocation2 + $0xa8] sm:$0xff] %v9908_v1 }
  0x5c   :  { %259 = vst [vmem:[#allocation2 + $0x258] sm:$0xff] %v9908_v1  ;;  %260 = vst [vmem:[#allocation2 + $0x2d8] sm:$0xff] %v9908_v1 }
  0x5d   :  { %261 = vst [vmem:[#allocation2 + $0xf0] sm:$0xff] %v9908_v1  ;;  %262 = vst [vmem:[#allocation2 + $0x180] sm:$0xff] %v9908_v1 }
  0x5e   :  { %263 = vst [vmem:[#allocation2 + $0x170] sm:$0xff] %v9908_v1  ;;  %264 = vst [vmem:[#allocation2 + $0x3d0] sm:$0xff] %v9908_v1 }
  0x5f   :  { %265 = vst [vmem:[#allocation2 + $0x250] sm:$0xff] %v9908_v1  ;;  %266 = vst [vmem:[#allocation2 + $0x378] sm:$0xff] %v9908_v1 }
  0x60   :  { %267 = vst [vmem:[#allocation2 + $0xb8] sm:$0xff] %v9908_v1  ;;  %268 = vst [vmem:[#allocation2 + $0x38] sm:$0xff] %v9908_v1 }
  0x61   :  { %269 = vst [vmem:[#allocation2 + $0x78] sm:$0xff] %v9908_v1  ;;  %270 = vst [vmem:[#allocation2 + $0x308] sm:$0xff] %v9908_v1 }
  0x62   :  { %271 = vst [vmem:[#allocation2 + $0x370] sm:$0xff] %v9908_v1  ;;  %272 = vst [vmem:[#allocation2 + $0xc8] sm:$0xff] %v9908_v1 }
  0x63   :  { %273 = vst [vmem:[#allocation2 + $0x278] sm:$0xff] %v9908_v1  ;;  %274 = vst [vmem:[#allocation2 + $0x360] sm:$0xff] %v9908_v1 }
  0x64   :  { %275 = vst [vmem:[#allocation2 + $0x228] sm:$0xff] %v9908_v1  ;;  %276 = vst [vmem:[#allocation2 + $0x348] sm:$0xff] %v9908_v1 }
  0x65   :  { %277 = vst [vmem:[#allocation2 + $0x148] sm:$0xff] %v9908_v1  ;;  %278 = vst [vmem:[#allocation2 + $0xf8] sm:$0xff] %v9908_v1 }
  0x66   :  { %279 = vst [vmem:[#allocation2 + $0x68] sm:$0xff] %v9908_v1  ;;  %280 = vst [vmem:[#allocation2] sm:$0xff] %v9908_v1 }
  0x67   :  { %281 = vst [vmem:[#allocation2 + $0x298] sm:$0xff] %v9908_v1  ;;  %282 = vst [vmem:[#allocation2 + $0x270] sm:$0xff] %v9908_v1 }
  0x68   :  { %283 = vst [vmem:[#allocation2 + $0x310] sm:$0xff] %v9908_v1  ;;  %284 = vst [vmem:[#allocation2 + $0x190] sm:$0xff] %v9908_v1  ;;  %v10315_v1 = vld [vmem:[%s14282_s0 + $0xf0] sm:$0xff] }
  0x69   :  { %14575 = vst [vmem:[#allocation13_spill] sm:$0xff] %v10079_v2  ;;  %14576 = vst [vmem:[#allocation14_spill] sm:$0xff] %v10097_v16  ;;  %v10400_v2 = vld [vmem:[%s14282_s0 + $0x178] sm:$0xff] }
  0x6a   :  { %14577 = vst [vmem:[#allocation15_spill] sm:$0xff] %v10102_v17  ;;  %14578 = vst [vmem:[#allocation16_spill] sm:$0xff] %v10107_v18 }
  0x6b   :  { %14581 = vst [vmem:[#allocation17_spill] sm:$0xff] %v14580_v22  ;;  %14582 = vst [vmem:[#allocation18_spill] sm:$0xff] %v10120_v23  ;;  %v10475_v22 = vld [vmem:[%s14282_s0 + $0x1f0] sm:$0xff] }
  0x6c   :  { %14583 = vst [vmem:[#allocation19_spill] sm:$0xff] %v10125_v24  ;;  %14584 = vst [vmem:[#allocation20_spill] sm:$0xff] %v10130_v25 }
  0x6d   :  { %14587 = vst [vmem:[#allocation21_spill] sm:$0xff] %v14586_v26  ;;  %14590 = vst [vmem:[#allocation22_spill] sm:$0xff] %v14589_v27  ;;  %v10470_v26 = vld [vmem:[%s14282_s0 + $0x1e8] sm:$0xff]  ;;  %v10480_v27 = vld [vmem:[%s14282_s0 + $0x1f8] sm:$0xff] }
  0x6e   :  { %14593 = vst [vmem:[#allocation23_spill] sm:$0xff] %v14592_v28  ;;  %14596 = vst [vmem:[#allocation24_spill] sm:$0xff] %v14595_v29  ;;  %v10450_v29 = vld [vmem:[%s14282_s0 + $0x1c8] sm:$0xff]  ;;  %v10465_v28 = vld [vmem:[%s14282_s0 + $0x1e0] sm:$0xff] }
  0x6f   :  { %14597 = vst [vmem:[#allocation25_spill] sm:$0xff] %v10151_v30  ;;  %14598 = vst [vmem:[#allocation26_spill] sm:$0xff] %v10156_v31 }
  0x70   :  { %14599 = vst [vmem:[#allocation27_spill] sm:$0xff] %v10161_v32  ;;  %14602 = vst [vmem:[#allocation28_spill] sm:$0xff] %v14601_v33  ;;  %v10445_v33 = vld [vmem:[%s14282_s0 + $0x1c0] sm:$0xff] }
  0x71   :  { %14605 = vst [vmem:[#allocation29_spill] sm:$0xff] %v14604_v34  ;;  %14608 = vst [vmem:[#allocation30_spill] sm:$0xff] %v14607_v35  ;;  %v10455_v35 = vld [vmem:[%s14282_s0 + $0x1d0] sm:$0xff]  ;;  %v10460_v34 = vld [vmem:[%s14282_s0 + $0x1d8] sm:$0xff] }
  0x72   :  { %14611 = vst [vmem:[#allocation31_spill] sm:$0xff] %v14610_v36  ;;  %14612 = vst [vmem:[#allocation32_spill] sm:$0xff] %v10182_v37  ;;  %v10430_v36 = vld [vmem:[%s14282_s0 + $0x1a8] sm:$0xff] }
  0x73   :  { %14613 = vst [vmem:[#allocation33_spill] sm:$0xff] %v10187_v38  ;;  %14614 = vst [vmem:[#allocation34_spill] sm:$0xff] %v10192_v39 }
  0x74   :  { %14617 = vst [vmem:[#allocation35_spill] sm:$0xff] %v14616_v40  ;;  %14620 = vst [vmem:[#allocation36_spill] sm:$0xff] %v14619_v41  ;;  %v10425_v40 = vld [vmem:[%s14282_s0 + $0x1a0] sm:$0xff]  ;;  %v10440_v41 = vld [vmem:[%s14282_s0 + $0x1b8] sm:$0xff] }
  0x75   :  { %14623 = vst [vmem:[#allocation37_spill] sm:$0xff] %v14622_v42  ;;  %14626 = vst [vmem:[#allocation38_spill] sm:$0xff] %v14625_v43  ;;  %v10410_v43 = vld [vmem:[%s14282_s0 + $0x188] sm:$0xff]  ;;  %v10435_v42 = vld [vmem:[%s14282_s0 + $0x1b0] sm:$0xff] }
  0x76   :  { %14627 = vst [vmem:[#allocation39_spill] sm:$0xff] %v10213_v44  ;;  %14628 = vst [vmem:[#allocation40_spill] sm:$0xff] %v10218_v45 }
  0x77   :  { %14629 = vst [vmem:[#allocation41_spill] sm:$0xff] %v10223_v46  ;;  %14632 = vst [vmem:[#allocation42_spill] sm:$0xff] %v14631_v47  ;;  %v10405_v47 = vld [vmem:[%s14282_s0 + $0x180] sm:$0xff] }
  0x78   :  { %14635 = vst [vmem:[#allocation43_spill] sm:$0xff] %v14634_v48  ;;  %14638 = vst [vmem:[#allocation44_spill] sm:$0xff] %v14637_v49  ;;  %v10415_v49 = vld [vmem:[%s14282_s0 + $0x190] sm:$0xff]  ;;  %v10420_v48 = vld [vmem:[%s14282_s0 + $0x198] sm:$0xff] }
  0x79   :  { %14639 = vst [vmem:[#allocation45_spill] sm:$0xff] %v10240_v50  ;;  %14640 = vst [vmem:[#allocation46_spill] sm:$0xff] %v10245_v51 }
  0x7a   :  { %14641 = vst [vmem:[#allocation47_spill] sm:$0xff] %v10250_v52  ;;  %14642 = vst [vmem:[#allocation48_spill] sm:$0xff] %v10255_v53 }
  0x7b   :  { %14643 = vst [vmem:[#allocation49_spill] sm:$0xff] %v10260_v54  ;;  %14644 = vst [vmem:[#allocation50_spill] sm:$0xff] %v10265_v55 }
  0x7c   :  { %14645 = vst [vmem:[#allocation51_spill] sm:$0xff] %v10270_v56  ;;  %14646 = vst [vmem:[#allocation52_spill] sm:$0xff] %v10275_v57 }
  0x7d   :  { %14647 = vst [vmem:[#allocation53_spill] sm:$0xff] %v10280_v58  ;;  %14648 = vst [vmem:[#allocation54_spill] sm:$0xff] %v10285_v59 }
  0x7e   :  { %14649 = vst [vmem:[#allocation55_spill] sm:$0xff] %v10290_v60  ;;  %14650 = vst [vmem:[#allocation56_spill] sm:$0xff] %v10295_v61 }
  0x7f   :  { %14651 = vst [vmem:[#allocation57_spill] sm:$0xff] %v10300_v62  ;;  %14652 = vst [vmem:[#allocation58_spill] sm:$0xff] %v10305_v63 }
  0x80   :  { %14653 = vst [vmem:[#allocation59_spill] sm:$0xff] %v10310_v0  ;;  %14654 = vst [vmem:[#allocation60_spill] sm:$0xff] %v10315_v1 }
  0x81   :  { %14655 = vst [vmem:[#allocation61_spill] sm:$0xff] %v10320_v3  ;;  %14656 = vst [vmem:[#allocation62_spill] sm:$0xff] %v10325_v4 }
  0x82   :  { %14657 = vst [vmem:[#allocation63_spill] sm:$0xff] %v10330_v5  ;;  %14658 = vst [vmem:[#allocation64_spill] sm:$0xff] %v10335_v6 }
  0x83   :  { %14659 = vst [vmem:[#allocation65_spill] sm:$0xff] %v10340_v7  ;;  %14660 = vst [vmem:[#allocation66_spill] sm:$0xff] %v10345_v8 }
  0x84   :  { %14661 = vst [vmem:[#allocation67_spill] sm:$0xff] %v10350_v9  ;;  %14662 = vst [vmem:[#allocation68_spill] sm:$0xff] %v10355_v10 }
  0x85   :  { %14663 = vst [vmem:[#allocation69_spill] sm:$0xff] %v10360_v11  ;;  %14664 = vst [vmem:[#allocation70_spill] sm:$0xff] %v10365_v12 }
  0x86   :  { %14665 = vst [vmem:[#allocation71_spill] sm:$0xff] %v10370_v13  ;;  %14666 = vst [vmem:[#allocation72_spill] sm:$0xff] %v10375_v14 }
  0x87   :  { %14667 = vst [vmem:[#allocation73_spill] sm:$0xff] %v10380_v15  ;;  %14668 = vst [vmem:[#allocation74_spill] sm:$0xff] %v10385_v19 }
  0x88   :  { %14669 = vst [vmem:[#allocation75_spill] sm:$0xff] %v10390_v20  ;;  %14670 = vst [vmem:[#allocation76_spill] sm:$0xff] %v10395_v21 }
  0x89   :  { %14671 = vst [vmem:[#allocation77_spill] sm:$0xff] %v10400_v2  ;;  %14672 = vst [vmem:[#allocation78_spill] sm:$0xff] %v10405_v47 }
  0x8a   :  { %14673 = vst [vmem:[#allocation79_spill] sm:$0xff] %v10410_v43  ;;  %14674 = vst [vmem:[#allocation80_spill] sm:$0xff] %v10415_v49 }
  0x8b   :  { %14675 = vst [vmem:[#allocation81_spill] sm:$0xff] %v10420_v48  ;;  %14676 = vst [vmem:[#allocation82_spill] sm:$0xff] %v10425_v40 }
  0x8c   :  { %14677 = vst [vmem:[#allocation83_spill] sm:$0xff] %v10430_v36  ;;  %14678 = vst [vmem:[#allocation84_spill] sm:$0xff] %v10435_v42 }
  0x8d   :  { %14679 = vst [vmem:[#allocation85_spill] sm:$0xff] %v10440_v41  ;;  %14680 = vst [vmem:[#allocation86_spill] sm:$0xff] %v10445_v33 }
  0x8e   :  { %14681 = vst [vmem:[#allocation87_spill] sm:$0xff] %v10450_v29  ;;  %14682 = vst [vmem:[#allocation88_spill] sm:$0xff] %v10455_v35 }
  0x8f   :  { %14683 = vst [vmem:[#allocation89_spill] sm:$0xff] %v10460_v34  ;;  %14684 = vst [vmem:[#allocation90_spill] sm:$0xff] %v10465_v28 }
  0x90   :  { %14685 = vst [vmem:[#allocation91_spill] sm:$0xff] %v10470_v26  ;;  %14686 = vst [vmem:[#allocation92_spill] sm:$0xff] %v10475_v22 }
  0x91   :  { %14687 = vst [vmem:[#allocation93_spill] sm:$0xff] %v10480_v27 }
  0x92 LB: > { %v14688_v63 = vld [vmem:[#allocation58_spill] sm:$0xff]  ;;  %v14689_v62 = vld [vmem:[#allocation57_spill] sm:$0xff]  ;;  %v14690_v61 = vld [vmem:[#allocation56_spill] sm:$0xff]  ;;  %s7894_s18 = smul.u32 768, %s9899_s17  ;;  %s9909_s19 = smov 96   ;;  %vm14423_vm13 = vcmask 261120   ;;  %s9899_s17 = sphi %s10482_s17, %s290_s17  }
  0x93   : > { %v14691_v60 = vld [vmem:[#allocation55_spill] sm:$0xff]  ;;  %v14692_v49 = vld [vmem:[#allocation80_spill] sm:$0xff]  ;;  %v14693_v47 = vld [vmem:[#allocation78_spill] sm:$0xff]  ;;  %s9910_s20 = smov 64   ;;  %s9911_s21 = smov 32  }
  0x94   : > { %v14694_v59 = vld [vmem:[#allocation54_spill] sm:$0xff]  ;;  %v14695_v58 = vld [vmem:[#allocation53_spill] sm:$0xff]  ;;  %v14696_v57 = vld [vmem:[#allocation52_spill] sm:$0xff]  ;;  %s10498_s0 = scalar_lea.vmem [#allocation3], %s7894_s18  ;;  %s7895_s22 = sshll.u32 %s9899_s17, 8 }
  0x95   : > { %v14697_v56 = vld [vmem:[#allocation51_spill] sm:$0xff]  ;;  %v14698_v21 = vld [vmem:[#allocation76_spill] sm:$0xff]  ;;  %v14700_v19 = vld [vmem:[#allocation74_spill] sm:$0xff]  ;;  %s13257_s23 = scalar_lea.vmem [#allocation6], %s7895_s22  ;;  %s290_s17 = sadd.s32 1, %s9899_s17  }
  0x96   : > { %v14699_v20 = vld [vmem:[#allocation75_spill] sm:$0xff]  ;;  %v14701_v2 = vld [vmem:[#allocation77_spill] sm:$0xff]  ;;  %v14702_v55 = vld [vmem:[#allocation50_spill] sm:$0xff]  ;;  %p287_p1 = scmp.ge.s32.totalorder %s290_s17, 4  }
  0x97   : > { %v14703_v54 = vld [vmem:[#allocation49_spill] sm:$0xff]  ;;  %v14705_v14 = vld [vmem:[#allocation72_spill] sm:$0xff]  ;;  %v14706_v13 = vld [vmem:[#allocation71_spill] sm:$0xff]  ;;  %s9913_s24 = smov (%p287_p1), [#allocation9]  }
  0x98   : > { %v14704_v15 = vld [vmem:[#allocation73_spill] sm:$0xff]  ;;  %v14707_v12 = vld [vmem:[#allocation70_spill] sm:$0xff]  ;;  %v14709_v10 = vld [vmem:[#allocation68_spill] sm:$0xff]  ;;  %s7613_s25 = sshll.u32 (%p287_p1), %s9913_s24, 4  ;;  %s7614_s25 = int_to_ptr.vmem [resolvable:$true] %s7613_s25 }
  0x99   : > { %v14708_v11 = vld [vmem:[#allocation69_spill] sm:$0xff]  ;;  %v14710_v9 = vld [vmem:[#allocation67_spill] sm:$0xff]  ;;  %v14711_v8 = vld [vmem:[#allocation66_spill] sm:$0xff]  ;;  %s9867_s26 = scalar_lea.vmem (%p287_p1), %s7614_s25, 16384  ;;  %p9872_p3 = scmp.lt.s32.totalorder (%p287_p1), %s7614_s25, %s7614_s25 }
  0x9a   : > { %v14712_v7 = vld [vmem:[#allocation65_spill] sm:$0xff]  ;;  %v14713_v6 = vld [vmem:[#allocation64_spill] sm:$0xff]  ;;  %v14714_v5 = vld [vmem:[#allocation63_spill] sm:$0xff]  ;;  %p9868_p2 = scmp.ne.s32.totalorder (%p287_p1), %s7614_s25, %s9867_s26  ;;  %p9873_p4 = scmp.lt.s32.totalorder (%p287_p1), %s9867_s26, %s9867_s26 }
  0x9b   : > { %v14715_v4 = vld [vmem:[#allocation62_spill] sm:$0xff]  ;;  %v14716_v53 = vld [vmem:[#allocation48_spill] sm:$0xff]  ;;  %v14717_v3 = vld [vmem:[#allocation61_spill] sm:$0xff] }
  0x9c   : > { %v14718_v1 = vld [vmem:[#allocation60_spill] sm:$0xff]  ;;  %v14719_v0 = vld [vmem:[#allocation59_spill] sm:$0xff]  ;;  %v14721_v51 = vld [vmem:[#allocation46_spill] sm:$0xff]  ;;  %p9874_p5 = por (%p287_p1), %p9873_p4, %p9872_p3 }
  0x9d   : > { %v14720_v52 = vld [vmem:[#allocation47_spill] sm:$0xff]  ;;  %v14722_v50 = vld [vmem:[#allocation45_spill] sm:$0xff]  ;;  %v14724_v45 = vld [vmem:[#allocation40_spill] sm:$0xff] }
  0x9e   : > { %v14723_v46 = vld [vmem:[#allocation41_spill] sm:$0xff]  ;;  %v14725_v44 = vld [vmem:[#allocation39_spill] sm:$0xff]  ;;  %v14726_v39 = vld [vmem:[#allocation34_spill] sm:$0xff]  ;;  %p9875_p6 = pnand (%p287_p1), %p9874_p5, %p9868_p2 }
  0x9f   : > { %v14727_v38 = vld [vmem:[#allocation33_spill] sm:$0xff]  ;;  %v14728_v37 = vld [vmem:[#allocation32_spill] sm:$0xff]  ;;  %v14729_v32 = vld [vmem:[#allocation27_spill] sm:$0xff] }
  0xa0   : > { %v14730_v31 = vld [vmem:[#allocation26_spill] sm:$0xff]  ;;  %v14731_v30 = vld [vmem:[#allocation25_spill] sm:$0xff]  ;;  %v14732_v25 = vld [vmem:[#allocation20_spill] sm:$0xff] }
  0xa1   : > { %v14733_v24 = vld [vmem:[#allocation19_spill] sm:$0xff]  ;;  %v14734_v23 = vld [vmem:[#allocation18_spill] sm:$0xff]  ;;  %v14735_v18 = vld [vmem:[#allocation16_spill] sm:$0xff] }
  0xa2   : > { %v14736_v17 = vld [vmem:[#allocation15_spill] sm:$0xff]  ;;  %v14737_v16 = vld [vmem:[#allocation14_spill] sm:$0xff]  ;;  %v9243_v36 = vld [vmem:[%s10498_s0 + $0x7c] ss:$12 sps:$4 sm:$0xff]  }
  0xa3   : > { %v10489_v26 = vcombine.high %v14737_v16, %v14735_v18  ;;  %v10493_v28 = vcombine.high %v14736_v17, %v14734_v23  ;;  %v9231_v27 = vld [vmem:[%s10498_s0 + $0xac] ss:$12 sps:$4 sm:$0xff]   ;;  %v9236_v29 = vld [vmem:[%s10498_s0 + $0x228] ss:$12 sps:$4 sm:$0xff]   ;;  %v9241_v33 = vld [vmem:[%s10498_s0 + $0x90] ss:$12 sps:$4 sm:$0xff]  }
  0xa4   : > { %v9233_v22 = vld [vmem:[%s10498_s0 + $0x22c] ss:$12 sps:$4 sm:$0xff]   ;;  %1254 = vmatprep.subr.bf16.mxu0 %v9231_v27  ;;  %v9239_v34 = vld [vmem:[%s10498_s0 + $0x214] ss:$12 sps:$4 sm:$0xff]   ;;  %v9242_v35 = vld [vmem:[%s10498_s0 + $0x210] ss:$12 sps:$4 sm:$0xff]  }
  0xa5   : > { %14738 = vst [vmem:[#allocation94_spill] sm:$0xff] %v10489_v26  ;;  %14739 = vst [vmem:[#allocation95_spill] sm:$0xff] %v10493_v28  ;;  %1286 = vmatprep.mubr.bf16.mxu0 %v10489_v26  ;;  %1479 = vmatprep.mubr.bf16.mxu1 %v10493_v28  ;;  %v9235_v26 = vld [vmem:[%s10498_s0 + $0xa8] ss:$12 sps:$4 sm:$0xff]   ;;  %v9247_v27 = vld [vmem:[%s10498_s0 + $0x78] ss:$12 sps:$4 sm:$0xff]  }
  0xa6   : > { %1447 = vmatprep.subr.bf16.mxu1 %v9233_v22  ;;  %v9237_v28 = vld [vmem:[%s10498_s0 + $0x94] ss:$12 sps:$4 sm:$0xff]   ;;  %1255 = vmatpush1.bf16.msra.mxu0 %v9235_v26  ;;  %v9245_v41 = vld [vmem:[%s10498_s0 + $0x1fc] ss:$12 sps:$4 sm:$0xff]   ;;  %v9248_v40 = vld [vmem:[%s10498_s0 + $0x1f8] ss:$12 sps:$4 sm:$0xff]  }
  0xa7   : > { %1448 = vmatpush1.bf16.msra.mxu1 %v9236_v29  ;;  %1256 = vmatprep.subr.bf16.mxu0 %v9237_v28  ;;  %v9249_v22 = vld [vmem:[%s10498_s0 + $0x64] ss:$12 sps:$4 sm:$0xff]   ;;  %v9253_v28 = vld [vmem:[%s10498_s0 + $0x60] ss:$12 sps:$4 sm:$0xff]  }
  0xa8   : > { %1449 = vmatprep.subr.bf16.mxu1 %v9239_v34  ;;  %v9251_v26 = vld [vmem:[%s10498_s0 + $0x1e4] ss:$12 sps:$4 sm:$0xff]   ;;  %v9254_v29 = vld [vmem:[%s10498_s0 + $0x1e0] ss:$12 sps:$4 sm:$0xff]  }
  0xa9   : > { %v9255_v34 = vld [vmem:[%s10498_s0 + $0x4c] ss:$12 sps:$4 sm:$0xff]  }
  0xaa   : > { %1257 = vmatpush1.bf16.msra.mxu0 %v9241_v33  ;;  %v9257_v42 = vld [vmem:[%s10498_s0 + $0x1cc] ss:$12 sps:$4 sm:$0xff]   ;;  %v9259_v33 = vld [vmem:[%s10498_s0 + $0x48] ss:$12 sps:$4 sm:$0xff]  }
  0xab   : > { %1450 = vmatpush1.bf16.msra.mxu1 %v9242_v35  ;;  %1258 = vmatprep.subr.bf16.mxu0 %v9243_v36  ;;  %v9260_v35 = vld [vmem:[%s10498_s0 + $0x1c8] ss:$12 sps:$4 sm:$0xff]   ;;  %v9320_v43 = vld [vmem:[%s10498_s0 + $0x258] ss:$12 sps:$4 sm:$0xff]   ;;  %v9326_v48 = vld [vmem:[%s10498_s0 + $0x240] ss:$12 sps:$4 sm:$0xff]  }
  0xac   : > { %1451 = vmatprep.subr.bf16.mxu1 %v9245_v41  ;;  %v9261_v36 = vld [vmem:[%s10498_s0 + $0x34] ss:$12 sps:$4 sm:$0xff]  }
  0xad   : > { %v9263_v41 = vld [vmem:[%s10498_s0 + $0x1b4] ss:$12 sps:$4 sm:$0xff]  }
  0xae   : > { %1259 = vmatpush1.bf16.msra.mxu0 %v9247_v27  ;;  %v9266_v27 = vld [vmem:[%s10498_s0 + $0x1b0] ss:$12 sps:$4 sm:$0xff]  }
  0xaf   : > { %1452 = vmatpush1.bf16.msra.mxu1 %v9248_v40  ;;  %1260 = vmatprep.subr.bf16.mxu0 %v9249_v22  ;;  %v9265_v40 = vld [vmem:[%s10498_s0 + $0x30] ss:$12 sps:$4 sm:$0xff]  }
  0xb0   : > { %1453 = vmatprep.subr.bf16.mxu1 %v9251_v26  ;;  %v9267_v22 = vld [vmem:[%s10498_s0 + $0x1c] ss:$12 sps:$4 sm:$0xff]  }
  0xb1   : > { %v9269_v26 = vld [vmem:[%s10498_s0 + $0x19c] ss:$12 sps:$4 sm:$0xff]  }
  0xb2   : > { %1261 = vmatpush1.bf16.msra.mxu0 %v9253_v28  ;;  %v9271_v28 = vld [vmem:[%s10498_s0 + $0x18] ss:$12 sps:$4 sm:$0xff]  }
  0xb3   : > { %1454 = vmatpush1.bf16.msra.mxu1 %v9254_v29  ;;  %1262 = vmatprep.subr.bf16.mxu0 %v9255_v34  ;;  %v9272_v29 = vld [vmem:[%s10498_s0 + $0x198] ss:$12 sps:$4 sm:$0xff]  }
  0xb4   : > { %1455 = vmatprep.subr.bf16.mxu1 %v9257_v42  ;;  %v9273_v42 = vld [vmem:[%s10498_s0 + $0x4] ss:$12 sps:$4 sm:$0xff]  }
  0xb5   : > { %v9275_v34 = vld [vmem:[%s10498_s0 + $0x184] ss:$12 sps:$4 sm:$0xff]  }
  0xb6   : > { %1263 = vmatpush1.bf16.msra.mxu0 %v9259_v33  ;;  %v9277_v33 = vld [vmem:[%s10498_s0] ss:$12 sps:$4 sm:$0xff]  }
  0xb7   : > { %1456 = vmatpush1.bf16.msra.mxu1 %v9260_v35  ;;  %1264 = vmatprep.subr.bf16.mxu0 %v9261_v36  ;;  %v9278_v35 = vld [vmem:[%s10498_s0 + $0x180] ss:$12 sps:$4 sm:$0xff]  }
  0xb8   : > { %1457 = vmatprep.subr.bf16.mxu1 %v9263_v41  ;;  %v9279_v36 = vld [vmem:[%s10498_s0 + $0x16c] ss:$12 sps:$4 sm:$0xff]  }
  0xb9   : > { %v9281_v41 = vld [vmem:[%s10498_s0 + $0x2ec] ss:$12 sps:$4 sm:$0xff]  }
  0xba   : > { %1265 = vmatpush1.bf16.msra.mxu0 %v9265_v40  ;;  %v9283_v40 = vld [vmem:[%s10498_s0 + $0x168] ss:$12 sps:$4 sm:$0xff]  }
  0xbb   : > { %1458 = vmatpush1.bf16.msra.mxu1 %v9266_v27  ;;  %1266 = vmatprep.subr.bf16.mxu0 %v9267_v22  ;;  %v9284_v27 = vld [vmem:[%s10498_s0 + $0x2e8] ss:$12 sps:$4 sm:$0xff]  }
  0xbc   : > { %1459 = vmatprep.subr.bf16.mxu1 %v9269_v26  ;;  %v9285_v22 = vld [vmem:[%s10498_s0 + $0x154] ss:$12 sps:$4 sm:$0xff]  }
  0xbd   : > { %v9287_v26 = vld [vmem:[%s10498_s0 + $0x2d4] ss:$12 sps:$4 sm:$0xff]  }
  0xbe   : > { %1267 = vmatpush1.bf16.msra.mxu0 %v9271_v28  ;;  %v9289_v28 = vld [vmem:[%s10498_s0 + $0x150] ss:$12 sps:$4 sm:$0xff]  }
  0xbf   : > { %1460 = vmatpush1.bf16.msra.mxu1 %v9272_v29  ;;  %1268 = vmatprep.subr.bf16.mxu0 %v9273_v42  ;;  %v9290_v29 = vld [vmem:[%s10498_s0 + $0x2d0] ss:$12 sps:$4 sm:$0xff]  }
  0xc0   : > { %1461 = vmatprep.subr.bf16.mxu1 %v9275_v34  ;;  %v9291_v42 = vld [vmem:[%s10498_s0 + $0x13c] ss:$12 sps:$4 sm:$0xff]  }
  0xc1   : > { %v9293_v34 = vld [vmem:[%s10498_s0 + $0x2bc] ss:$12 sps:$4 sm:$0xff]  }
  0xc2   : > { %1269 = vmatpush1.bf16.msra.mxu0 %v9277_v33  ;;  %v9295_v33 = vld [vmem:[%s10498_s0 + $0x138] ss:$12 sps:$4 sm:$0xff]  }
  0xc3   : > { %1462 = vmatpush1.bf16.msra.mxu1 %v9278_v35  ;;  %1270 = vmatprep.subr.bf16.mxu0 %v9279_v36  ;;  %v9296_v35 = vld [vmem:[%s10498_s0 + $0x2b8] ss:$12 sps:$4 sm:$0xff]  }
  0xc4   : > { %1463 = vmatprep.subr.bf16.mxu1 %v9281_v41  ;;  %v9297_v36 = vld [vmem:[%s10498_s0 + $0x124] ss:$12 sps:$4 sm:$0xff]  }
  0xc5   : > { %v9299_v41 = vld [vmem:[%s10498_s0 + $0x2a4] ss:$12 sps:$4 sm:$0xff]  }
  0xc6   : > { %1271 = vmatpush2.bf16.msra.mxu0 %v9283_v40  ;;  %v9301_v40 = vld [vmem:[%s10498_s0 + $0x120] ss:$12 sps:$4 sm:$0xff]  }
  0xc7   : > { %1464 = vmatpush2.bf16.msra.mxu1 %v9284_v27  ;;  %1272 = vmatprep.subr.bf16.mxu0 %v9285_v22  ;;  %v9302_v27 = vld [vmem:[%s10498_s0 + $0x2a0] ss:$12 sps:$4 sm:$0xff]  }
  0xc8   : > { %1465 = vmatprep.subr.bf16.mxu1 %v9287_v26  ;;  %v9303_v22 = vld [vmem:[%s10498_s0 + $0x10c] ss:$12 sps:$4 sm:$0xff]  }
  0xc9   : > { %v9305_v26 = vld [vmem:[%s10498_s0 + $0x28c] ss:$12 sps:$4 sm:$0xff]  }
  0xca   : > { %1273 = vmatpush2.bf16.msra.mxu0 %v9289_v28  ;;  %v9307_v28 = vld [vmem:[%s10498_s0 + $0x108] ss:$12 sps:$4 sm:$0xff]  }
  0xcb   : > { %1466 = vmatpush2.bf16.msra.mxu1 %v9290_v29  ;;  %1274 = vmatprep.subr.bf16.mxu0 %v9291_v42  ;;  %v9308_v29 = vld [vmem:[%s10498_s0 + $0x288] ss:$12 sps:$4 sm:$0xff]  }
  0xcc   : > { %1467 = vmatprep.subr.bf16.mxu1 %v9293_v34  ;;  %v9309_v42 = vld [vmem:[%s10498_s0 + $0xf4] ss:$12 sps:$4 sm:$0xff]  }
  0xcd   : > { %v9311_v34 = vld [vmem:[%s10498_s0 + $0x274] ss:$12 sps:$4 sm:$0xff]  }
  0xce   : > { %1275 = vmatpush2.bf16.msra.mxu0 %v9295_v33  ;;  %v9313_v33 = vld [vmem:[%s10498_s0 + $0xf0] ss:$12 sps:$4 sm:$0xff]  }
  0xcf   : > { %1468 = vmatpush2.bf16.msra.mxu1 %v9296_v35  ;;  %1276 = vmatprep.subr.bf16.mxu0 %v9297_v36  ;;  %v9314_v35 = vld [vmem:[%s10498_s0 + $0x270] ss:$12 sps:$4 sm:$0xff]  }
  0xd0   : > { %1469 = vmatprep.subr.bf16.mxu1 %v9299_v41  ;;  %v9315_v36 = vld [vmem:[%s10498_s0 + $0xdc] ss:$12 sps:$4 sm:$0xff]  }
  0xd1   : > { %v9317_v41 = vld [vmem:[%s10498_s0 + $0x25c] ss:$12 sps:$4 sm:$0xff]  }
  0xd2   : > { %1277 = vmatpush2.bf16.msra.mxu0 %v9301_v40  ;;  %v9319_v40 = vld [vmem:[%s10498_s0 + $0xd8] ss:$12 sps:$4 sm:$0xff]  }
  0xd3   : > { %1470 = vmatpush2.bf16.msra.mxu1 %v9302_v27  ;;  %1278 = vmatprep.subr.bf16.mxu0 %v9303_v22  ;;  %v9321_v27 = vld [vmem:[%s10498_s0 + $0xc4] ss:$12 sps:$4 sm:$0xff]  }
  0xd4   : > { %1471 = vmatprep.subr.bf16.mxu1 %v9305_v26  ;;  %v9323_v22 = vld [vmem:[%s10498_s0 + $0x244] ss:$12 sps:$4 sm:$0xff]   ;;  %v9325_v26 = vld [vmem:[%s10498_s0 + $0xc0] ss:$12 sps:$4 sm:$0xff]  }
  0xd6   : > { %1279 = vmatpush2.bf16.msra.mxu0 %v9307_v28  ;;  %v9327_v28 = vld [vmem:[%s10498_s0 + $0x170] ss:$12 sps:$4 sm:$0xff]  }
  0xd7   : > { %1472 = vmatpush2.bf16.msra.mxu1 %v9308_v29  ;;  %1280 = vmatprep.subr.bf16.mxu0 %v9309_v42  ;;  %v9343_v29 = vld [vmem:[%s10498_s0 + $0x2f0] ss:$12 sps:$4 sm:$0xff]   ;;  %v10568_v42 = vcombine.low %v14737_v16, %v14735_v18  ;;  %v10604_v16 = vcombine.high %v14729_v32, %v14727_v38  ;;  %v10624_v18 = vcombine.low %v14729_v32, %v14727_v38  ;;  %v9341_v32 = vld [vmem:[%s10498_s0 + $0xc8] ss:$12 sps:$4 sm:$0xff]  }
  0xd8   : > { %1473 = vmatprep.subr.bf16.mxu1 %v9311_v34  ;;  %v10572_v34 = vcombine.low %v14736_v17, %v14734_v23  ;;  %v9349_v17 = vld [vmem:[%s10498_s0 + $0x2a8] ss:$12 sps:$4 sm:$0xff]   ;;  %v10628_v23 = vcombine.low %v14728_v37, %v14726_v39 }
  0xd9   : > { %v9342_v38 = vld [vmem:[%s10498_s0 + $0x8] ss:$12 sps:$4 sm:$0xff]  }
  0xda   : > { %1281 = vmatpush2.bf16.msra.mxu0 %v9313_v33  ;;  %v9328_v33 = vld [vmem:[%s10498_s0 + $0xb0] ss:$12 sps:$4 sm:$0xff]  }
  0xdb   : > { %1474 = vmatpush2.bf16.msra.mxu1 %v9314_v35  ;;  %1282 = vmatprep.subr.bf16.mxu0 %v9315_v36  ;;  %v10581_v35 = vcombine.high %v14732_v25, %v14730_v31  ;;  %v9329_v36 = vld [vmem:[%s10498_s0 + $0x158] ss:$12 sps:$4 sm:$0xff]  }
  0xdc   : > { %1475 = vmatprep.subr.bf16.mxu1 %v9317_v41  ;;  %v9344_v41 = vld [vmem:[%s10498_s0 + $0x230] ss:$12 sps:$4 sm:$0xff]  }
  0xde   : > { %1283 = vmatpush2.bf16.msra.mxu0 %v9319_v40  ;;  %v9345_v40 = vld [vmem:[%s10498_s0 + $0x2d8] ss:$12 sps:$4 sm:$0xff]  }
  0xdf   : > { %1476 = vmatpush2.bf16.msra.mxu1 %v9320_v43  ;;  %1284 = vmatprep.subr.bf16.mxu0 %v9321_v27  ;;  %v10577_v43 = vcombine.high %v14733_v24, %v14731_v30  ;;  %v9331_v27 = vld [vmem:[%s10498_s0 + $0x140] ss:$12 sps:$4 sm:$0xff]  }
  0xe0   : > { %1477 = vmatprep.subr.bf16.mxu1 %v9323_v22  ;;  %v9346_v22 = vld [vmem:[%s10498_s0 + $0x218] ss:$12 sps:$4 sm:$0xff]  }
  0xe2   : > { %1285 = vmatpush2.bf16.msra.mxu0 %v9325_v26  ;;  %v9347_v26 = vld [vmem:[%s10498_s0 + $0x2c0] ss:$12 sps:$4 sm:$0xff]  }
  0xe3   : > { %1478 = vmatpush2.bf16.msra.mxu1 %v9326_v48  ;;  %7896 = vmatprep.subr.bf16.mxu0 %v9327_v28  ;;  %v9330_v48 = vld [vmem:[%s10498_s0 + $0x98] ss:$12 sps:$4 sm:$0xff]   ;;  %v10596_v28 = vcombine.low %v14733_v24, %v14731_v30  ;;  %v10652_v30 = vcombine.low %v14725_v44, %v14723_v46 }
  0xe4   : > { %8008 = vmatprep.subr.bf16.mxu1 %v9343_v29  ;;  %v10600_v29 = vcombine.low %v14732_v25, %v14730_v31  ;;  %v9337_v24 = vld [vmem:[%s10498_s0 + $0xf8] ss:$12 sps:$4 sm:$0xff]   ;;  %v10656_v31 = vcombine.low %v14724_v45, %v14722_v50 }
  0xe5   : > { %1287 = vmatmul.mubr.bf16.vlgmr.msra.gmra.mxu0 %v10568_v42  ;;  %v9353_v25 = vld [vmem:[%s10498_s0 + $0x278] ss:$12 sps:$4 sm:$0xff]  }
  0xe6   : > { %1480 = vmatmul.mubr.bf16.vlgmr.msra.gmra.mxu1 %v10572_v34  ;;  %1296 = vmatprep.mubr.bf16.mxu0 %v10577_v43 }
  0xe7   : > { %1489 = vmatprep.mubr.bf16.mxu1 %v10581_v35  ;;  %7897 = vmatpush3.bf16.msra.mxu0 %v9328_v33  ;;  %v10608_v33 = vcombine.high %v14728_v37, %v14726_v39  ;;  %v9357_v37 = vld [vmem:[%s10498_s0 + $0x248] ss:$12 sps:$4 sm:$0xff]  }
  0xe8   : > { %8009 = vmatpush3.bf16.msra.mxu1 %v9344_v41  ;;  %7898 = vmatprep.subr.bf16.mxu0 %v9329_v36  ;;  %v9332_v36 = vld [vmem:[%s10498_s0 + $0x80] ss:$12 sps:$4 sm:$0xff]   ;;  %v9358_v39 = vld [vmem:[%s10498_s0 + $0x188] ss:$12 sps:$4 sm:$0xff]  }
  0xe9   : > { %8010 = vmatprep.subr.bf16.mxu1 %v9345_v40  ;;  %v9348_v41 = vld [vmem:[%s10498_s0 + $0x200] ss:$12 sps:$4 sm:$0xff]   ;;  %v9333_v40 = vld [vmem:[%s10498_s0 + $0x128] ss:$12 sps:$4 sm:$0xff]  }
  0xeb   : > { %7899 = vmatpush3.bf16.msra.mxu0 %v9330_v48  ;;  %v9334_v48 = vld [vmem:[%s10498_s0 + $0x68] ss:$12 sps:$4 sm:$0xff]  }
  0xec   : > { %8011 = vmatpush3.bf16.msra.mxu1 %v9346_v22  ;;  %7900 = vmatprep.subr.bf16.mxu0 %v9331_v27  ;;  %v9350_v22 = vld [vmem:[%s10498_s0 + $0x1e8] ss:$12 sps:$4 sm:$0xff]   ;;  %v9335_v27 = vld [vmem:[%s10498_s0 + $0x110] ss:$12 sps:$4 sm:$0xff]  }
  0xed   : > { %8012 = vmatprep.subr.bf16.mxu1 %v9347_v26  ;;  %1297 = vmatmul.mubr.bf16.gmra.mxu0 %v10596_v28  ;;  %v9351_v26 = vld [vmem:[%s10498_s0 + $0x290] ss:$12 sps:$4 sm:$0xff]  }
  0xee   : > { %1490 = vmatmul.mubr.bf16.gmra.mxu1 %v10600_v29  ;;  %1306 = vmatprep.mubr.bf16.mxu0 %v10604_v16 }
  0xef   : > { %1499 = vmatprep.mubr.bf16.mxu1 %v10608_v33  ;;  %7901 = vmatpush3.bf16.msra.mxu0 %v9332_v36  ;;  %v10632_v36 = vcombine.high %v14725_v44, %v14723_v46  ;;  %v10726_v44 = vcombine.high %v14688_v63, %v14718_v1  ;;  %v10738_v46 = vcombine.low %v14688_v63, %v14718_v1 }
  0xf0   : > { %8013 = vmatpush3.bf16.msra.mxu1 %v9348_v41  ;;  %7902 = vmatprep.subr.bf16.mxu0 %v9333_v40  ;;  %v10636_v41 = vcombine.high %v14724_v45, %v14722_v50  ;;  %v9352_v40 = vld [vmem:[%s10498_s0 + $0x1d0] ss:$12 sps:$4 sm:$0xff]   ;;  %v10730_v45 = vcombine.high %v14719_v0, %v14717_v3  ;;  %v10742_v50 = vcombine.low %v14719_v0, %v14717_v3 }
  0xf1   : > { %8014 = vmatprep.subr.bf16.mxu1 %v9349_v17  ;;  %v9336_v17 = vld [vmem:[%s10498_s0 + $0x50] ss:$12 sps:$4 sm:$0xff]   ;;  %v10758_v0 = vcombine.low %v14715_v4, %v14713_v6  ;;  %v10762_v1 = vcombine.low %v14714_v5, %v14712_v7  ;;  %v10766_v3 = vcombine.high %v14711_v8, %v14709_v10 }
  0xf3   : > { %7903 = vmatpush3.bf16.msra.mxu0 %v9334_v48  ;;  %v9338_v48 = vld [vmem:[%s10498_s0 + $0x38] ss:$12 sps:$4 sm:$0xff]  }
  0xf4   : > { %8015 = vmatpush3.bf16.msra.mxu1 %v9350_v22  ;;  %7904 = vmatprep.subr.bf16.mxu0 %v9335_v27  ;;  %v9354_v22 = vld [vmem:[%s10498_s0 + $0x1b8] ss:$12 sps:$4 sm:$0xff]   ;;  %v9339_v27 = vld [vmem:[%s10498_s0 + $0xe0] ss:$12 sps:$4 sm:$0xff]  }
  0xf5   : > { %8016 = vmatprep.subr.bf16.mxu1 %v9351_v26  ;;  %1307 = vmatmul.mubr.bf16.gmra.mxu0 %v10624_v18  ;;  %v9355_v26 = vld [vmem:[%s10498_s0 + $0x260] ss:$12 sps:$4 sm:$0xff]  }
  0xf6   : > { %1500 = vmatmul.mubr.bf16.gmra.mxu1 %v10628_v23  ;;  %1316 = vmatprep.mubr.bf16.mxu0 %v10632_v36 }
  0xf7   : > { %1509 = vmatprep.mubr.bf16.mxu1 %v10636_v41  ;;  %7905 = vmatpush3.bf16.msra.mxu0 %v9336_v17  ;;  %v10660_v17 = vcombine.high %v14721_v51, %v14716_v53 }
  0xf8   : > { %8017 = vmatpush3.bf16.msra.mxu1 %v9352_v40  ;;  %7906 = vmatprep.subr.bf16.mxu0 %v9337_v24  ;;  %v10664_v40 = vcombine.high %v14720_v52, %v14703_v54  ;;  %v9340_v24 = vld [vmem:[%s10498_s0 + $0x20] ss:$12 sps:$4 sm:$0xff]  }
  0xf9   : > { %8018 = vmatprep.subr.bf16.mxu1 %v9353_v25  ;;  %v9356_v25 = vld [vmem:[%s10498_s0 + $0x1a0] ss:$12 sps:$4 sm:$0xff]  }
  0xfb   : > { %7907 = vmatpush3.bf16.msra.mxu0 %v9338_v48  ;;  %v10678_v48 = vcombine.low %v14721_v51, %v14716_v53  ;;  %v10746_v51 = vcombine.high %v14715_v4, %v14713_v6  ;;  %v10770_v53 = vcombine.high %v14710_v9, %v14708_v11  ;;  %v10778_v4 = vcombine.low %v14711_v8, %v14709_v10 }
  0xfc   : > { %8019 = vmatpush3.bf16.msra.mxu1 %v9354_v22  ;;  %7908 = vmatprep.subr.bf16.mxu0 %v9339_v27  ;;  %v10682_v22 = vcombine.low %v14720_v52, %v14703_v54  ;;  %v10686_v27 = vcombine.high %v14702_v55, %v14696_v57  ;;  %v10750_v52 = vcombine.high %v14714_v5, %v14712_v7  ;;  %v14741_v54 = vld [vmem:[#allocation79_spill] sm:$0xff] }
  0xfd   : > { %8020 = vmatprep.subr.bf16.mxu1 %v9355_v26  ;;  %1317 = vmatmul.mubr.bf16.gmra.mxu0 %v10652_v30  ;;  %v10690_v26 = vcombine.high %v14697_v56, %v14695_v58  ;;  %v10782_v5 = vcombine.low %v14710_v9, %v14708_v11  ;;  %v10786_v6 = vcombine.high %v14707_v12, %v14705_v14 }
  0xfe   : > { %1510 = vmatmul.mubr.bf16.gmra.mxu1 %v10656_v31  ;;  %1326 = vmatprep.mubr.bf16.mxu0 %v10660_v17  ;;  %v10790_v7 = vcombine.high %v14706_v13, %v14704_v15  ;;  %v10798_v8 = vcombine.low %v14707_v12, %v14705_v14  ;;  %v10802_v9 = vcombine.low %v14706_v13, %v14704_v15  ;;  %v14740_v15 = vld [vmem:[#allocation81_spill] sm:$0xff] }
  0xff   : > { %1519 = vmatprep.mubr.bf16.mxu1 %v10664_v40  ;;  %7909 = vmatpush3.bf16.msra.mxu0 %v9340_v24  ;;  %v10718_v24 = vcombine.low %v14694_v59, %v14690_v61  ;;  %v10806_v10 = vcombine.high %v14700_v19, %v14698_v21  ;;  %v10810_v11 = vcombine.high %v14699_v20, %v14701_v2 }
 0x100   : > { %8021 = vmatpush3.bf16.msra.mxu1 %v9356_v25  ;;  %7910 = vmatprep.subr.bf16.mxu0 %v9341_v32  ;;  %v10698_v32 = vcombine.low %v14702_v55, %v14696_v57  ;;  %v10722_v25 = vcombine.low %v14691_v60, %v14689_v62  ;;  %v10818_v12 = vcombine.low %v14700_v19, %v14698_v21  ;;  %v14744_v21 = vld [vmem:[#allocation82_spill] sm:$0xff]  ;;  %v14746_v57 = vld [vmem:[#allocation85_spill] sm:$0xff] }
 0x101   : > { %8022 = vmatprep.subr.bf16.mxu1 %v9357_v37  ;;  %v10702_v37 = vcombine.low %v14697_v56, %v14695_v58  ;;  %v10822_v13 = vcombine.low %v14699_v20, %v14701_v2  ;;  %v10826_v14 = vcombine.high %v14693_v47, %v14692_v49  ;;  %v10830_v55 = vcombine.high %v14741_v54, %v14740_v15  ;;  %v14743_v20 = vld [vmem:[#allocation84_spill] sm:$0xff]  ;;  %v14747_v58 = vld [vmem:[#allocation83_spill] sm:$0xff] }
 0x102   : > { %v10838_v2 = vcombine.low %v14693_v47, %v14692_v49  ;;  %v10842_v19 = vcombine.low %v14741_v54, %v14740_v15  ;;  %v10846_v56 = vcombine.high %v14744_v21, %v14743_v20  ;;  %v10858_v15 = vcombine.low %v14744_v21, %v14743_v20  ;;  %v14750_v49 = vld [vmem:[#allocation88_spill] sm:$0xff]  ;;  %v14751_v54 = vld [vmem:[#allocation86_spill] sm:$0xff] }
 0x103   : > { %7911 = vmatpush3.bf16.msra.mxu0 %v9342_v38  ;;  %v10706_v38 = vcombine.high %v14694_v59, %v14690_v61  ;;  %v10850_v59 = vcombine.high %v14747_v58, %v14746_v57  ;;  %v10862_v47 = vcombine.low %v14747_v58, %v14746_v57  ;;  %v14752_v61 = vld [vmem:[#allocation89_spill] sm:$0xff]  ;;  %v10878_v20 = vcombine.low %v14751_v54, %v14750_v49  ;;  %v14754_v57 = vld [vmem:[#allocation92_spill] sm:$0xff]  ;;  %v14755_v58 = vld [vmem:[#allocation90_spill] sm:$0xff] }
 0x104   : > { %8023 = vmatpush3.bf16.msra.mxu1 %v9358_v39  ;;  %v10710_v39 = vcombine.high %v14691_v60, %v14689_v62  ;;  %14742 = vst [vmem:[#allocation96_spill] sm:$0xff] %v10842_v19  ;;  %14745 = vst [vmem:[#allocation97_spill] sm:$0xff] %v10846_v56  ;;  %v10866_v60 = vcombine.high %v14751_v54, %v14750_v49  ;;  %v14753_v62 = vld [vmem:[#allocation87_spill] sm:$0xff]  ;;  %v10898_v49 = vcombine.low %v14755_v58, %v14754_v57 }
 0x105   : > { %1327 = vmatmul.mubr.bf16.gmra.mxu0 %v10678_v48  ;;  %14748 = vst [vmem:[#allocation98_spill] sm:$0xff] %v10850_v59  ;;  %14749 = vst [vmem:[#allocation99_spill] sm:$0xff] %v10858_v15  ;;  %v10870_v63 = vcombine.high %v14753_v62, %v14752_v61  ;;  %v10882_v21 = vcombine.low %v14753_v62, %v14752_v61  ;;  %v14758_v61 = vld [vmem:[#allocation94_spill] sm:$0xff]  ;;  %v14759_v62 = vld [vmem:[#allocation95_spill] sm:$0xff] }
 0x106   : > { %1520 = vmatmul.mubr.bf16.gmra.mxu1 %v10682_v22  ;;  %1336 = vmatprep.mubr.bf16.mxu0 %v10686_v27 }
 0x107   : > { %1529 = vmatprep.mubr.bf16.mxu1 %v10690_v26 }
 0x10d   : > { %1337 = vmatmul.mubr.bf16.gmra.mxu0 %v10698_v32 }
 0x10e   : > { %1530 = vmatmul.mubr.bf16.gmra.mxu1 %v10702_v37  ;;  %1346 = vmatprep.mubr.bf16.mxu0 %v10706_v38 }
 0x10f   : > { %1539 = vmatprep.mubr.bf16.mxu1 %v10710_v39 }
 0x115   : > { %1347 = vmatmul.mubr.bf16.gmra.mxu0 %v10718_v24 }
 0x116   : > { %1540 = vmatmul.mubr.bf16.gmra.mxu1 %v10722_v25  ;;  %1356 = vmatprep.mubr.bf16.mxu0 %v10726_v44 }
 0x117   : > { %1549 = vmatprep.mubr.bf16.mxu1 %v10730_v45 }
 0x11d   : > { %1357 = vmatmul.mubr.bf16.gmra.mxu0 %v10738_v46 }
 0x11e   : > { %1550 = vmatmul.mubr.bf16.gmra.mxu1 %v10742_v50  ;;  %1366 = vmatprep.mubr.bf16.mxu0 %v10746_v51 }
 0x11f   : > { %1559 = vmatprep.mubr.bf16.mxu1 %v10750_v52 }
 0x125   : > { %1367 = vmatmul.mubr.bf16.gmra.mxu0 %v10758_v0 }
 0x126   : > { %1560 = vmatmul.mubr.bf16.gmra.mxu1 %v10762_v1  ;;  %1376 = vmatprep.mubr.bf16.mxu0 %v10766_v3 }
 0x127   : > { %1569 = vmatprep.mubr.bf16.mxu1 %v10770_v53 }
 0x12d   : > { %1377 = vmatmul.mubr.bf16.gmra.mxu0 %v10778_v4 }
 0x12e   : > { %1570 = vmatmul.mubr.bf16.gmra.mxu1 %v10782_v5  ;;  %1386 = vmatprep.mubr.bf16.mxu0 %v10786_v6 }
 0x12f   : > { %1579 = vmatprep.mubr.bf16.mxu1 %v10790_v7 }
 0x135   : > { %1387 = vmatmul.mubr.bf16.gmra.mxu0 %v10798_v8 }
 0x136   : > { %1580 = vmatmul.mubr.bf16.gmra.mxu1 %v10802_v9  ;;  %1396 = vmatprep.mubr.bf16.mxu0 %v10806_v10 }
 0x137   : > { %1589 = vmatprep.mubr.bf16.mxu1 %v10810_v11 }
 0x13d   : > { %1397 = vmatmul.mubr.bf16.gmra.mxu0 %v10818_v12 }
 0x13e   : > { %1590 = vmatmul.mubr.bf16.gmra.mxu1 %v10822_v13  ;;  %1406 = vmatprep.mubr.bf16.mxu0 %v10826_v14 }
 0x13f   : > { %1599 = vmatprep.mubr.bf16.mxu1 %v10830_v55 }
 0x145   : > { %1407 = vmatmul.mubr.bf16.gmra.mxu0 %v10838_v2 }
 0x146   : > { %1600 = vmatmul.mubr.bf16.gmra.mxu1 %v10842_v19  ;;  %1416 = vmatprep.mubr.bf16.mxu0 %v10846_v56  ;;  %v14756_v56 = vld [vmem:[#allocation93_spill] sm:$0xff] }
 0x147   : > { %1609 = vmatprep.mubr.bf16.mxu1 %v10850_v59  ;;  %v10886_v59 = vcombine.high %v14755_v58, %v14754_v57 }
 0x14d   : > { %1417 = vmatmul.mubr.bf16.gmra.mxu0 %v10858_v15  ;;  %v14757_v15 = vld [vmem:[#allocation91_spill] sm:$0xff] }
 0x14e   : > { %1610 = vmatmul.mubr.bf16.gmra.mxu1 %v10862_v47  ;;  %1426 = vmatprep.mubr.bf16.mxu0 %v10866_v60  ;;  %v10890_v19 = vcombine.high %v14757_v15, %v14756_v56  ;;  %v10902_v54 = vcombine.low %v14757_v15, %v14756_v56 }
 0x14f   : > { %1619 = vmatprep.mubr.bf16.mxu1 %v10870_v63 }
 0x155   : > { %1427 = vmatmul.mubr.bf16.gmra.mxu0 %v10878_v20 }
 0x156   : > { %1620 = vmatmul.mubr.bf16.gmra.mxu1 %v10882_v21  ;;  %1436 = vmatprep.mubr.bf16.mxu0 %v10886_v59 }
 0x157   : > { %1629 = vmatprep.mubr.bf16.mxu1 %v10890_v19 }
 0x15d   : > { %1437 = vmatmul.mubr.bf16.gmra.mxu0 %v10898_v49 }
 0x15e   : > { %1630 = vmatmul.mubr.bf16.gmra.mxu1 %v10902_v54  ;;  %1672 = vmatprep.mubr.bf16.mxu0 %v14758_v61 }
 0x15f   : > { %1833 = vmatprep.mubr.bf16.mxu1 %v14759_v62 }
 0x165   : > { %1673 = vmatmul.mubr.bf16.vlgmr.msra.gmra.mxu0 %v10568_v42 }
 0x166   : > { %1834 = vmatmul.mubr.bf16.vlgmr.msra.gmra.mxu1 %v10572_v34  ;;  %1680 = vmatprep.mubr.bf16.mxu0 %v10577_v43 }
 0x167   : > { %1841 = vmatprep.mubr.bf16.mxu1 %v10581_v35 }
 0x16d   : > { %1681 = vmatmul.mubr.bf16.gmra.mxu0 %v10596_v28 }
 0x16e   : > { %1842 = vmatmul.mubr.bf16.gmra.mxu1 %v10600_v29  ;;  %1688 = vmatprep.mubr.bf16.mxu0 %v10604_v16 }
 0x16f   : > { %1849 = vmatprep.mubr.bf16.mxu1 %v10608_v33 }
 0x175   : > { %1689 = vmatmul.mubr.bf16.gmra.mxu0 %v10624_v18 }
 0x176   : > { %1850 = vmatmul.mubr.bf16.gmra.mxu1 %v10628_v23  ;;  %1696 = vmatprep.mubr.bf16.mxu0 %v10632_v36 }
 0x177   : > { %1857 = vmatprep.mubr.bf16.mxu1 %v10636_v41 }
 0x17d   : > { %1697 = vmatmul.mubr.bf16.gmra.mxu0 %v10652_v30 }
 0x17e   : > { %1858 = vmatmul.mubr.bf16.gmra.mxu1 %v10656_v31  ;;  %1704 = vmatprep.mubr.bf16.mxu0 %v10660_v17 }
 0x17f   : > { %1865 = vmatprep.mubr.bf16.mxu1 %v10664_v40 }
 0x185   : > { %1705 = vmatmul.mubr.bf16.gmra.mxu0 %v10678_v48 }
 0x186   : > { %1866 = vmatmul.mubr.bf16.gmra.mxu1 %v10682_v22  ;;  %1712 = vmatprep.mubr.bf16.mxu0 %v10686_v27 }
 0x187   : > { %1873 = vmatprep.mubr.bf16.mxu1 %v10690_v26 }
 0x18d   : > { %1713 = vmatmul.mubr.bf16.gmra.mxu0 %v10698_v32 }
 0x18e   : > { %1874 = vmatmul.mubr.bf16.gmra.mxu1 %v10702_v37  ;;  %1720 = vmatprep.mubr.bf16.mxu0 %v10706_v38 }
 0x18f   : > { %1881 = vmatprep.mubr.bf16.mxu1 %v10710_v39  ;;  %v14763_v39 = vld [vmem:[#allocation99_spill] sm:$0xff] }
 0x195   : > { %1721 = vmatmul.mubr.bf16.gmra.mxu0 %v10718_v24 }
 0x196   : > { %1882 = vmatmul.mubr.bf16.gmra.mxu1 %v10722_v25  ;;  %1728 = vmatprep.mubr.bf16.mxu0 %v10726_v44 }
 0x197   : > { %1889 = vmatprep.mubr.bf16.mxu1 %v10730_v45 }
 0x19d   : > { %1729 = vmatmul.mubr.bf16.gmra.mxu0 %v10738_v46 }
 0x19e   : > { %1890 = vmatmul.mubr.bf16.gmra.mxu1 %v10742_v50  ;;  %1736 = vmatprep.mubr.bf16.mxu0 %v10746_v51 }
 0x19f   : > { %1897 = vmatprep.mubr.bf16.mxu1 %v10750_v52 }
 0x1a5   : > { %v10940_v16 = vpop.f32.mrf.mxu0  ;;  %1737 = vmatmul.mubr.bf16.gmra.mxu0 %v10758_v0 }
 0x1a6   : > { %v10942_v18 = vpop.f32.mrf.mxu1  ;;  %1898 = vmatmul.mubr.bf16.gmra.mxu1 %v10762_v1  ;;  %1744 = vmatprep.mubr.bf16.mxu0 %v10766_v3 }
 0x1a7   : > { %1905 = vmatprep.mubr.bf16.mxu1 %v10770_v53  ;;  %v10948_v23 = vpop.f32.mrf.mxu0 }
 0x1a8   : > { %v10950_v30 = vpop.f32.mrf.mxu1 }
 0x1a9   : > { %v10952_v31 = vpop.f32.mrf.mxu0 }
 0x1aa   : > { %v10954_v44 = vpop.f32.mrf.mxu1 }
 0x1ab   : > { %v10956_v45 = vpop.f32.mrf.mxu0 }
 0x1ac   : > { %v10958_v46 = vpop.f32.mrf.mxu1 }
 0x1ad   : > { %v10960_v50 = vpop.f32.mrf.mxu0  ;;  %1745 = vmatmul.mubr.bf16.gmra.mxu0 %v10778_v4 }
 0x1ae   : > { %v10962_v51 = vpop.f32.mrf.mxu1  ;;  %1906 = vmatmul.mubr.bf16.gmra.mxu1 %v10782_v5  ;;  %1752 = vmatprep.mubr.bf16.mxu0 %v10786_v6 }
 0x1af   : > { %1913 = vmatprep.mubr.bf16.mxu1 %v10790_v7  ;;  %v1300_v52 = vpop.f32.mrf.mxu0 }
 0x1b0   : > { %v1493_v53 = vpop.f32.mrf.mxu1 }
 0x1b1   : > { %v10968_v61 = vadd.f32 %v1493_v53, %v1300_v52  ;;  %v10970_v62 = vpop.f32.mrf.mxu0 }
 0x1b2   : > { %v10972_v0 = vpop.f32.mrf.mxu1 }
 0x1b3   : > { %v10974_v1 = vpop.f32.mrf.mxu0 }
 0x1b4   : > { %v10976_v3 = vpop.f32.mrf.mxu1 }
 0x1b5   : > { %v1308_v42 = vpop.f32.mrf.mxu0  ;;  %1753 = vmatmul.mubr.bf16.gmra.mxu0 %v10798_v8 }
 0x1b6   : > { %v1501_v4 = vpop.f32.mrf.mxu1  ;;  %1914 = vmatmul.mubr.bf16.gmra.mxu1 %v10802_v9  ;;  %1760 = vmatprep.mubr.bf16.mxu0 %v10806_v10 }
 0x1b7   : > { %v10980_v5 = vadd.f32 %v1501_v4, %v1308_v42  ;;  %1921 = vmatprep.mubr.bf16.mxu1 %v10810_v11  ;;  %v10984_v6 = vpop.f32.mrf.mxu0 }
 0x1b8   : > { %v10986_v7 = vpop.f32.mrf.mxu1 }
 0x1b9   : > { %v10988_v34 = vpop.f32.mrf.mxu0 }
 0x1ba   : > { %v10990_v43 = vpop.f32.mrf.mxu1 }
 0x1bb   : > { %v1314_v35 = vpop.f32.mrf.mxu0 }
 0x1bc   : > { %v1507_v28 = vpop.f32.mrf.mxu1 }
 0x1bd   : > { %v10992_v29 = vpop.f32.mrf.mxu0  ;;  %1761 = vmatmul.mubr.bf16.gmra.mxu0 %v10818_v12 }
 0x1be   : > { %v10994_v8 = vpop.f32.mrf.mxu1  ;;  %1922 = vmatmul.mubr.bf16.gmra.mxu1 %v10822_v13  ;;  %1768 = vmatprep.mubr.bf16.mxu0 %v10826_v14  ;;  %v14760_v13 = vld [vmem:[#allocation96_spill] sm:$0xff]  ;;  %v14762_v14 = vld [vmem:[#allocation98_spill] sm:$0xff] }
 0x1bf   : > { %1929 = vmatprep.mubr.bf16.mxu1 %v10830_v55  ;;  %v11000_v9 = vpop.f32.mrf.mxu0  ;;  %v14761_v55 = vld [vmem:[#allocation97_spill] sm:$0xff] }
 0x1c0   : > { %v11002_v10 = vpop.f32.mrf.mxu1 }
 0x1c1   : > { %v11004_v11 = vpop.f32.mrf.mxu0 }
 0x1c2   : > { %v11006_v33 = vpop.f32.mrf.mxu1 }
 0x1c3   : > { %v11008_v36 = vpop.f32.mrf.mxu0 }
 0x1c4   : > { %v11010_v41 = vpop.f32.mrf.mxu1 }
 0x1c5   : > { %v11012_v17 = vpop.f32.mrf.mxu0  ;;  %1769 = vmatmul.mubr.bf16.gmra.mxu0 %v10838_v2 }
 0x1c6   : > { %v11014_v12 = vpop.f32.mrf.mxu1  ;;  %1930 = vmatmul.mubr.bf16.gmra.mxu1 %v14760_v13  ;;  %1776 = vmatprep.mubr.bf16.mxu0 %v14761_v55 }
 0x1c7   : > { %1937 = vmatprep.mubr.bf16.mxu1 %v14762_v14  ;;  %v1330_v40 = vpop.f32.mrf.mxu0 }
 0x1c8   : > { %v1523_v48 = vpop.f32.mrf.mxu1 }
 0x1c9   : > { %v11020_v22 = vpop.f32.mrf.mxu0 }
 0x1ca   : > { %v11022_v27 = vpop.f32.mrf.mxu1 }
 0x1cb   : > { %v1334_v26 = vpop.f32.mrf.mxu0 }
 0x1cc   : > { %v1527_v32 = vpop.f32.mrf.mxu1 }
 0x1cd   : > { %v11024_v37 = vpop.f32.mrf.mxu0  ;;  %1777 = vmatmul.mubr.bf16.gmra.mxu0 %v14763_v39 }
 0x1ce   : > { %v11026_v38 = vpop.f32.mrf.mxu1  ;;  %1938 = vmatmul.mubr.bf16.gmra.mxu1 %v10862_v47  ;;  %1784 = vmatprep.mubr.bf16.mxu0 %v10866_v60  ;;  %v1528_v47 = vadd.f32 %v1527_v32, %v1334_v26  ;;  %v1482_v26 = vadd.f32 %v10942_v18, %v10940_v16  ;;  %v1488_v16 = vadd.f32 %v10958_v46, %v10956_v45 }
 0x1cf   : > { %1945 = vmatprep.mubr.bf16.mxu1 %v10870_v63  ;;  %v1340_v2 = vpop.f32.mrf.mxu0 }
 0x1d0   : > { %v1533_v24 = vpop.f32.mrf.mxu1 }
 0x1d1   : > { %v11032_v25 = vpop.f32.mrf.mxu0  ;;  %v1534_v4 = vadd.f32 %v1533_v24, %v1340_v2  ;;  %v1486_v2 = vadd.f32 %v10954_v44, %v10952_v31  ;;  %v1524_v24 = vadd.f32 %v1523_v48, %v1330_v40  ;;  %v1504_v31 = vadd.f32 %v10986_v7, %v10984_v6 }
 0x1d2   : > { %v11034_v52 = vpop.f32.mrf.mxu1 }
 0x1d3   : > { %v1344_v53 = vpop.f32.mrf.mxu0  ;;  %v11056_v32 = vpack.c.bf16 %v1528_v47, %v1524_v24 }
 0x1d4   : > { %v1537_v42 = vpop.f32.mrf.mxu1 }
 0x1d5   : > { %v1538_v13 = vadd.f32 %v1537_v42, %v1344_v53  ;;  %v11036_v55 = vpop.f32.mrf.mxu0  ;;  %1785 = vmatmul.mubr.bf16.gmra.mxu0 %v10878_v20  ;;  %14765 = vst [vmem:[#allocation95_spill] sm:$0xff] %v11056_v32  ;;  %v11058_v42 = vpack.c.bf16 %v1486_v2, %v1482_v26  ;;  %v1516_v26 = vadd.f32 %v11006_v33, %v11004_v11 }
 0x1d6   : > { %v11038_v14 = vpop.f32.mrf.mxu1  ;;  %1946 = vmatmul.mubr.bf16.gmra.mxu1 %v10882_v21  ;;  %1792 = vmatprep.mubr.bf16.mxu0 %v10886_v59  ;;  %v1508_v59 = vadd.f32 %v1507_v28, %v1314_v35  ;;  %v1484_v35 = vadd.f32 %v10950_v30, %v10948_v23 }
 0x1d7   : > { %v11042_v60 = vpack.c.bf16 %v1538_v13, %v1534_v4  ;;  %1953 = vmatprep.mubr.bf16.mxu1 %v10890_v19  ;;  %v1350_v63 = vpop.f32.mrf.mxu0  ;;  %v1492_v4 = vadd.f32 %v10962_v51, %v10960_v50  ;;  %v1512_v50 = vadd.f32 %v10994_v8, %v10992_v29  ;;  %v1518_v29 = vadd.f32 %v11010_v41, %v11008_v36 }
 0x1d8   : > { %v1543_v39 = vpop.f32.mrf.mxu1  ;;  %v11070_v18 = vpack.c.bf16 %v1508_v59, %v1504_v31  ;;  %v11078_v48 = vpack.c.bf16 %v1488_v16, %v1484_v35  ;;  %v1536_v8 = vadd.f32 %v11034_v52, %v11032_v25  ;;  %v1514_v35 = vadd.f32 %v11002_v10, %v11000_v9 }
 0x1d9   : > { %14764 = vst [vmem:[#allocation94_spill] sm:$0xff] %v11042_v60  ;;  %2471 = vrot.lane.b32.xlu1 %v11042_v60, %s9909_s19  ;;  %v11050_v20 = vpop.f32.mrf.mxu0  ;;  %v1498_v41 = vadd.f32 %v10976_v3, %v10974_v1 }
 0x1da   : > { %v11052_v21 = vpop.f32.mrf.mxu1 }
 0x1db   : > { %v1354_v19 = vpop.f32.mrf.mxu0 }
 0x1dc   : > { %v1547_v53 = vpop.f32.mrf.mxu1 }
 0x1dd   : > { %2469 = vrot.lane.b32.xlu1 %v11056_v32, %s9909_s19  ;;  %v11064_v44 = vpop.f32.mrf.mxu0  ;;  %1793 = vmatmul.mubr.bf16.gmra.mxu0 %v10898_v49  ;;  %v1548_v23 = vadd.f32 %v1547_v53, %v1354_v19 }
 0x1de   : > { %v1551_v40 = vpop.f32.mrf.mxu1  ;;  %1954 = vmatmul.mubr.bf16.gmra.mxu1 %v10902_v54  ;;  %8392 = vmatprep.mubr.msk.bf16.mxu0 %vm14423_vm13, %v11058_v42  ;;  %v1496_v54 = vadd.f32 %v10972_v0, %v10970_v62  ;;  %v1544_v0 = vadd.f32 %v1543_v39, %v1350_v63  ;;  %v11106_v39 = vpack.c.bf16 %v1516_v26, %v1512_v50  ;;  %v2051_v50 = vsel %vm14423_vm13, %v11042_v60, 0 }
 0x1df   : > { %v1360_v6 = vpop.f32.mrf.mxu0  ;;  %v1506_v26 = vadd.f32 %v10990_v43, %v10988_v34  ;;  %v1526_v34 = vadd.f32 %v11022_v27, %v11020_v22  ;;  %v1546_v27 = vadd.f32 %v11052_v21, %v11050_v20 }
 0x1e0   : > { %v1553_v7 = vpop.f32.mrf.mxu1  ;;  %v11086_v24 = vpack.c.bf16 %v1496_v54, %v1492_v4  ;;  %v11102_v11 = vpack.c.bf16 %v1548_v23, %v1544_v0  ;;  %v1532_v54 = vadd.f32 %v11026_v38, %v11024_v37  ;;  %v1552_v4 = vadd.f32 %v1551_v40, %v11064_v44 }
 0x1e1   : > { %2465 = vrot.lane.b32.xlu1 %v11070_v18, %s9909_s19  ;;  %v1362_v49 = vpop.f32.mrf.mxu0  ;;  %v1554_v13 = vadd.f32 %v1553_v7, %v1360_v6 }
 0x1e2   : > { %v1555_v28 = vpop.f32.mrf.mxu1  ;;  %14768 = vst [vmem:[#allocation98_spill] sm:$0xff] %v11102_v11  ;;  %v2054_v1 = vsel %vm14423_vm13, %v11102_v11, 0 }
 0x1e3   : > { %v1364_v45 = vpop.f32.mrf.mxu0  ;;  %v1556_v9 = vadd.f32 %v1555_v28, %v1362_v49  ;;  %v11144_v49 = vpack.c.bf16 %v1498_v41, %v10968_v61 }
 0x1e4   : > { %v1557_v46 = vpop.f32.mrf.mxu1 }
 0x1e5   : > { %v1558_v47 = vadd.f32 %v1557_v46, %v1364_v45  ;;  %2461 = vrot.lane.b32.xlu1 %v11078_v48, %s9909_s19  ;;  %v1368_v30 = vpop.f32.mrf.mxu0  ;;  %v11130_v45 = vpack.c.bf16 %v1518_v29, %v1514_v35  ;;  %v11132_v46 = vpack.c.bf16 %v1536_v8, %v1532_v54  ;;  %v11146_v28 = vpack.c.bf16 %v1556_v9, %v1552_v4 }
 0x1e6   : > { %v1561_v2 = vpop.f32.mrf.mxu1  ;;  %v1542_v9 = vadd.f32 %v11038_v14, %v11036_v55 }
 0x1e7   : > { %v11090_v59 = vpack.c.bf16 %v1558_v47, %v1554_v13  ;;  %v1562_v62 = vadd.f32 %v1561_v2, %v1368_v30  ;;  %v1370_v16 = vpop.f32.mrf.mxu0 }
 0x1e8   : > { %v1563_v31 = vpop.f32.mrf.mxu1 }
 0x1e9   : > { %14766 = vst [vmem:[#allocation96_spill] sm:$0xff] %v11090_v59  ;;  %2439 = vrot.lane.b32.xlu1 %v11086_v24, %s9909_s19  ;;  %2475 = vrot.lane.b32.xlu0 %v11090_v59, %s9909_s19  ;;  %v2057_v51 = vsel %vm14423_vm13, %v11090_v59, 0  ;;  %v11100_v19 = vadd.f32 %v1563_v31, %v1370_v16  ;;  %v1372_v33 = vpop.f32.mrf.mxu0 }
 0x1ea   : > { %8904 = vmatprep.subr.msk.bf16.mxu0 %vm14423_vm13, %v11090_v59  ;;  %v1565_v63 = vpop.f32.mrf.mxu1 }
 0x1eb   : > { %14767 = vst [vmem:[#allocation97_spill] sm:$0xff] %v11100_v19  ;;  %8377 = vmatpush3.bf16.xpose.msra.mxu0 %v2057_v51  ;;  %v1566_v53 = vadd.f32 %v1565_v63, %v1372_v33  ;;  %v11114_v6 = vpop.f32.mrf.mxu0  ;;  %v11171_v63 = vpack.c.bf16 %v1506_v26, %v10980_v5 }
 0x1ec   : > { %8905 = vmatprep.subr.msk.bf16.mxu0 %vm14423_vm13, %v11102_v11  ;;  %14769 = vst [vmem:[#allocation99_spill] sm:$0xff] %v11114_v6  ;;  %v11116_v7 = vpop.f32.mrf.mxu1 }
 0x1ed   : > { %14770 = vst [vmem:[#allocation100_spill] sm:$0xff] %v11116_v7  ;;  %2443 = vrot.lane.b32.xlu1 %v11106_v39, %s9909_s19  ;;  %2473 = vrot.lane.b32.xlu0 %v11102_v11, %s9909_s19  ;;  %v11126_v36 = vpack.c.bf16 %v1566_v53, %v1562_v62  ;;  %v1378_v25 = vpop.f32.mrf.mxu0  ;;  %v1522_v53 = vadd.f32 %v11014_v12, %v11012_v17  ;;  %v2048_v12 = vsel %vm14423_vm13, %v11056_v32, 0 }
 0x1ee   : > { %v1571_v52 = vpop.f32.mrf.mxu1 }
 0x1ef   : > { %14771 = vst [vmem:[#allocation101_spill] sm:$0xff] %v11126_v36  ;;  %v1572_v10 = vadd.f32 %v1571_v52, %v1378_v25  ;;  %v1380_v37 = vpop.f32.mrf.mxu0  ;;  %v11187_v22 = vpack.c.bf16 %v1526_v34, %v1522_v53 }
 0x1f0   : > { %v1573_v38 = vpop.f32.mrf.mxu1 }
 0x1f1   : > { %2447 = vrot.lane.b32.xlu1 %v11132_v46, %s9909_s19  ;;  %2467 = vrot.lane.b32.xlu0 %v11130_v45, %s9909_s19  ;;  %v11139_v13 = vadd.f32 %v1573_v38, %v1380_v37  ;;  %v1382_v3 = vpop.f32.mrf.mxu0  ;;  %v11199_v38 = vpack.c.bf16 %v1546_v27, %v1542_v9  ;;  %v2042_v27 = vsel %vm14423_vm13, %v11070_v18, 0 }
 0x1f2   : > { %v1575_v47 = vpop.f32.mrf.mxu1 }
 0x1f3   : > { %14772 = vst [vmem:[#allocation102_spill] sm:$0xff] %v11139_v13  ;;  %8379 = vmatpush3.bf16.xpose.msra.mxu0 %v2054_v1  ;;  %v1576_v44 = vadd.f32 %v1575_v47, %v1382_v3  ;;  %v11150_v40 = vpop.f32.mrf.mxu0 }
 0x1f4   : > { %8906 = vmatprep.subr.msk.bf16.mxu0 %vm14423_vm13, %v11042_v60  ;;  %14773 = vst [vmem:[#allocation103_spill] sm:$0xff] %v11150_v40  ;;  %v11152_v23 = vpop.f32.mrf.mxu1 }
 0x1f5   : > { %14774 = vst [vmem:[#allocation104_spill] sm:$0xff] %v11152_v23  ;;  %2451 = vrot.lane.b32.xlu1 %v11146_v28, %s9909_s19  ;;  %2463 = vrot.lane.b32.xlu0 %v11144_v49, %s9909_s19  ;;  %v11158_v30 = vpack.c.bf16 %v1576_v44, %v1572_v10  ;;  %v1388_v61 = vpop.f32.mrf.mxu0 }
 0x1f6   : > { %v1581_v2 = vpop.f32.mrf.mxu1 }
 0x1f7   : > { %14775 = vst [vmem:[#allocation105_spill] sm:$0xff] %v11158_v30  ;;  %v1582_v62 = vadd.f32 %v1581_v2, %v1388_v61  ;;  %v1390_v0 = vpop.f32.mrf.mxu0  ;;  %v2045_v2 = vsel %vm14423_vm13, %v11130_v45, 0 }
 0x1f8   : > { %v1583_v31 = vpop.f32.mrf.mxu1 }
 0x1f9   : > { %2953 = vrot.lane.b32.xlu1 %v11042_v60, %s9910_s20  ;;  %2437 = vrot.lane.b32.xlu0 %v11058_v42, %s9909_s19  ;;  %v11166_v16 = vadd.f32 %v1583_v31, %v1390_v0  ;;  %v1392_v51 = vpop.f32.mrf.mxu0 }
 0x1fa   : > { %v1585_v33 = vpop.f32.mrf.mxu1 }
 0x1fb   : > { %14776 = vst [vmem:[#allocation106_spill] sm:$0xff] %v11166_v16  ;;  %8381 = vmatpush3.bf16.xpose.msra.mxu0 %v2051_v50  ;;  %v1586_v43 = vadd.f32 %v1585_v33, %v1392_v51  ;;  %v11177_v29 = vpop.f32.mrf.mxu0 }
 0x1fc   : > { %8907 = vmatprep.subr.msk.bf16.mxu0 %vm14423_vm13, %v11056_v32  ;;  %14777 = vst [vmem:[#allocation107_spill] sm:$0xff] %v11177_v29  ;;  %v11179_v8 = vpop.f32.mrf.mxu1 }
 0x1fd   : > { %14778 = vst [vmem:[#allocation108_spill] sm:$0xff] %v11179_v8  ;;  %2441 = vrot.lane.b32.xlu0 %v11171_v63, %s9909_s19  ;;  %v11185_v5 = vpack.c.bf16 %v1586_v43, %v1582_v62  ;;  %v1398_v35 = vpop.f32.mrf.mxu0 }
 0x1fe   : > { %v1591_v54 = vpop.f32.mrf.mxu1 }
 0x1ff   : > { %14779 = vst [vmem:[#allocation109_spill] sm:$0xff] %v11185_v5  ;;  %v1592_v41 = vadd.f32 %v1591_v54, %v1398_v35  ;;  %v1400_v25 = vpop.f32.mrf.mxu0 }
 0x200   : > { %v1593_v52 = vpop.f32.mrf.mxu1 }
 0x201   : > { %2445 = vrot.lane.b32.xlu0 %v11187_v22, %s9909_s19  ;;  %v11195_v17 = vadd.f32 %v1593_v52, %v1400_v25  ;;  %v1402_v10 = vpop.f32.mrf.mxu0 }
 0x202   : > { %v1595_v37 = vpop.f32.mrf.mxu1 }
 0x203   : > { %14780 = vst [vmem:[#allocation110_spill] sm:$0xff] %v11195_v17  ;;  %8383 = vmatpush3.bf16.xpose.msra.mxu0 %v2048_v12  ;;  %v1596_v20 = vadd.f32 %v1595_v37, %v1402_v10  ;;  %v11203_v21 = vpop.f32.mrf.mxu0 }
 0x204   : > { %8908 = vmatprep.subr.msk.bf16.mxu0 %vm14423_vm13, %v11130_v45  ;;  %14781 = vst [vmem:[#allocation111_spill] sm:$0xff] %v11203_v21  ;;  %v11205_v55 = vpop.f32.mrf.mxu1 }
 0x205   : > { %14782 = vst [vmem:[#allocation112_spill] sm:$0xff] %v11205_v55  ;;  %2449 = vrot.lane.b32.xlu0 %v11199_v38, %s9909_s19  ;;  %v11209_v14 = vpack.c.bf16 %v1596_v20, %v1592_v41  ;;  %v1408_v4 = vpop.f32.mrf.mxu0 }
 0x206   : > { %v1601_v1 = vpop.f32.mrf.mxu1 }
 0x207   : > { %14783 = vst [vmem:[#allocation113_spill] sm:$0xff] %v11209_v14  ;;  %v1602_v3 = vadd.f32 %v1601_v1, %v1408_v4  ;;  %v1410_v47 = vpop.f32.mrf.mxu0 }
 0x208   : > { %v1603_v44 = vpop.f32.mrf.mxu1 }
 0x209   : > { %2955 = vrot.lane.b32.xlu0 %v11102_v11, %s9910_s20  ;;  %v11213_v61 = vadd.f32 %v1603_v44, %v1410_v47  ;;  %v1412_v26 = vpop.f32.mrf.mxu0  ;;  %v2039_v44 = vsel %vm14423_vm13, %v11144_v49, 0 }
 0x20a   : > { %v1605_v62 = vpop.f32.mrf.mxu1 }
 0x20b   : > { %14784 = vst [vmem:[#allocation114_spill] sm:$0xff] %v11213_v61  ;;  %8385 = vmatpush3.bf16.xpose.msra.mxu0 %v2045_v2  ;;  %v1606_v0 = vadd.f32 %v1605_v62, %v1412_v26  ;;  %v11219_v31 = vpop.f32.mrf.mxu0 }
 0x20c   : > { %8909 = vmatprep.subr.msk.bf16.mxu0 %vm14423_vm13, %v11070_v18  ;;  %14785 = vst [vmem:[#allocation115_spill] sm:$0xff] %v11219_v31  ;;  %v11221_v50 = vpop.f32.mrf.mxu1 }
 0x20d   : > { %14786 = vst [vmem:[#allocation116_spill] sm:$0xff] %v11221_v50  ;;  %2951 = vrot.lane.b32.xlu0 %v11056_v32, %s9910_s20  ;;  %v11225_v51 = vpack.c.bf16 %v1606_v0, %v1602_v3  ;;  %v1418_v33 = vpop.f32.mrf.mxu0 }
 0x20e   : > { %v1611_v34 = vpop.f32.mrf.mxu1 }
 0x20f   : > { %14787 = vst [vmem:[#allocation117_spill] sm:$0xff] %v11225_v51  ;;  %v1612_v43 = vadd.f32 %v1611_v34, %v1418_v33  ;;  %v1420_v53 = vpop.f32.mrf.mxu0 }
 0x210   : > { %v1613_v35 = vpop.f32.mrf.mxu1 }
 0x211   : > { %2957 = vrot.lane.b32.xlu0 %v11090_v59, %s9910_s20  ;;  %v11229_v54 = vadd.f32 %v1613_v35, %v1420_v53  ;;  %v1422_v41 = vpop.f32.mrf.mxu0 }
 0x212   : > { %v1615_v25 = vpop.f32.mrf.mxu1 }
 0x213   : > { %14788 = vst [vmem:[#allocation118_spill] sm:$0xff] %v11229_v54  ;;  %8387 = vmatpush3.bf16.xpose.msra.mxu0 %v2042_v27  ;;  %v1616_v52 = vadd.f32 %v1615_v25, %v1422_v41  ;;  %v11235_v9 = vpop.f32.mrf.mxu0 }
 0x214   : > { %8910 = vmatprep.subr.msk.bf16.mxu0 %vm14423_vm13, %v11144_v49  ;;  %14789 = vst [vmem:[#allocation119_spill] sm:$0xff] %v11235_v9  ;;  %v11237_v12 = vpop.f32.mrf.mxu1  ;;  %v14818_v9 = vld [vmem:[#allocation28_spill] sm:$0xff] }
 0x215   : > { %14790 = vst [vmem:[#allocation120_spill] sm:$0xff] %v11237_v12  ;;  %v11239_v10 = vpack.c.bf16 %v1616_v52, %v1612_v43  ;;  %v1428_v37 = vpop.f32.mrf.mxu0  ;;  %v2036_v52 = vsel %vm14423_vm13, %v11078_v48, 0  ;;  %vm14819_vm5 = vnez %v14818_v9 }
 0x216   : > { %v1621_v20 = vpop.f32.mrf.mxu1 }
 0x217   : > { %14791 = vst [vmem:[#allocation121_spill] sm:$0xff] %v11239_v10  ;;  %v1622_v4 = vadd.f32 %v1621_v20, %v1428_v37  ;;  %v1430_v1 = vpop.f32.mrf.mxu0 }
 0x218   : > { %v1623_v3 = vpop.f32.mrf.mxu1 }
 0x219   : > { %v11241_v47 = vadd.f32 %v1623_v3, %v1430_v1  ;;  %v1432_v2 = vpop.f32.mrf.mxu0 }
 0x21a   : > { %v1625_v26 = vpop.f32.mrf.mxu1 }
 0x21b   : > { %14792 = vst [vmem:[#allocation122_spill] sm:$0xff] %v11241_v47  ;;  %8389 = vmatpush3.bf16.xpose.msra.mxu0 %v2039_v44  ;;  %v1626_v62 = vadd.f32 %v1625_v26, %v1432_v2  ;;  %v11247_v0 = vpop.f32.mrf.mxu0 }
 0x21c   : > { %8911 = vmatprep.subr.msk.bf16.mxu0 %vm14423_vm13, %v11078_v48  ;;  %14793 = vst [vmem:[#allocation123_spill] sm:$0xff] %v11247_v0  ;;  %v11249_v33 = vpop.f32.mrf.mxu1  ;;  %v14822_v0 = vld [vmem:[#allocation37_spill] sm:$0xff] }
 0x21d   : > { %14794 = vst [vmem:[#allocation124_spill] sm:$0xff] %v11249_v33  ;;  %v11251_v34 = vpack.c.bf16 %v1626_v62, %v1622_v4  ;;  %v1438_v43 = vpop.f32.mrf.mxu0  ;;  %vm14823_vm11 = vnez %v14822_v0 }
 0x21e   : > { %v1631_v53 = vpop.f32.mrf.mxu1 }
 0x21f   : > { %14795 = vst [vmem:[#allocation125_spill] sm:$0xff] %v11251_v34  ;;  %v1632_v35 = vadd.f32 %v1631_v53, %v1438_v43  ;;  %v1440_v27 = vpop.f32.mrf.mxu0 }
 0x220   : > { %v1633_v41 = vpop.f32.mrf.mxu1 }
 0x221   : > { %v11253_v25 = vadd.f32 %v1633_v41, %v1440_v27  ;;  %v1442_v20 = vpop.f32.mrf.mxu0 }
 0x222   : > { %v1635_v37 = vpop.f32.mrf.mxu1 }
 0x223   : > { %14796 = vst [vmem:[#allocation126_spill] sm:$0xff] %v11253_v25  ;;  %8391 = vmatpush3.bf16.xpose.msra.mxu0 %v2036_v52  ;;  %v1636_v1 = vadd.f32 %v1635_v37, %v1442_v20  ;;  %v11257_v3 = vpop.f32.mrf.mxu0  ;;  %v14820_v25 = vld [vmem:[#allocation36_spill] sm:$0xff] }
 0x224   : > { %14797 = vst [vmem:[#allocation127_spill] sm:$0xff] %v11257_v3  ;;  %v11259_v44 = vpop.f32.mrf.mxu1  ;;  %vm14821_vm10 = vnez %v14820_v25  ;;  %v14824_v3 = vld [vmem:[#allocation31_spill] sm:$0xff] }
 0x225   : > { %14798 = vst [vmem:[#allocation128_spill] sm:$0xff] %v11259_v44  ;;  %v11261_v4 = vpack.c.bf16 %v1636_v1, %v1632_v35  ;;  %v7912_v26 = vpop.f32.mrf.mxu0  ;;  %vm14825_vm8 = vnez %v14824_v3 }
 0x226   : > { %v8024_v2 = vpop.f32.mrf.mxu1 }
 0x227   : > { %14799 = vst [vmem:[#allocation129_spill] sm:$0xff] %v11261_v4  ;;  %v7913_v62 = vpop.f32.mrf.mxu0 }
 0x228   : > { %v8025_v43 = vpop.f32.mrf.mxu1  ;;  %v7914_v53 = vadd.f32 %v7913_v62, %v7912_v26 }
 0x229   : > { %v8026_v27 = vadd.f32 %v8025_v43, %v8024_v2  ;;  %v7915_v15 = vpop.f32.mrf.mxu0 }
 0x22a   : > { %8393 = vmatmul.mubr.msk.bf16.vlgmr.msra.gmra.mxu0 %vm14423_vm13, %v11086_v24  ;;  %v8027_v41 = vpop.f32.mrf.mxu1 }
 0x22b   : > { %8396 = vmatprep.mubr.msk.bf16.mxu0 %vm14423_vm13, %v11171_v63  ;;  %v7916_v52 = vpop.f32.mrf.mxu0  ;;  %v1836_v20 = vadd.f32 %v8026_v27, %v7914_v53 }
 0x22c   : > { %v8028_v37 = vpop.f32.mrf.mxu1  ;;  %v7917_v56 = vadd.f32 %v7916_v52, %v7915_v15 }
 0x22d   : > { %v8029_v35 = vadd.f32 %v8028_v37, %v8027_v41  ;;  %v7918_v57 = vpop.f32.mrf.mxu0 }
 0x22e   : > { %v8030_v1 = vpop.f32.mrf.mxu1 }
 0x22f   : > { %v1839_v58 = vadd.f32 %v8029_v35, %v7917_v56  ;;  %v7919_v4 = vpop.f32.mrf.mxu0 }
 0x230   : > { %v8031_v34 = vpop.f32.mrf.mxu1  ;;  %v7920_v2 = vadd.f32 %v7919_v4, %v7918_v57 }
 0x231   : > { %v11267_v26 = vpack.c.bf16 %v1839_v58, %v1836_v20  ;;  %v8032_v62 = vadd.f32 %v8031_v34, %v8030_v1  ;;  %v7921_v10 = vpop.f32.mrf.mxu0 }
 0x232   : > { %8397 = vmatmul.mubr.msk.bf16.gmra.mxu0 %vm14423_vm13, %v11106_v39  ;;  %v8033_v43 = vpop.f32.mrf.mxu1 }
 0x233   : > { %14800 = vst [vmem:[#allocation130_spill] sm:$0xff] %v11267_v26  ;;  %8400 = vmatprep.mubr.msk.bf16.mxu0 %vm14423_vm13, %v11187_v22  ;;  %2774 = vrot.lane.b32.xlu1 %v11267_v26, %s9909_s19  ;;  %v7922_v15 = vpop.f32.mrf.mxu0  ;;  %v1844_v56 = vadd.f32 %v8032_v62, %v7920_v2 }
 0x234   : > { %v8034_v53 = vpop.f32.mrf.mxu1  ;;  %v7923_v27 = vadd.f32 %v7922_v15, %v7921_v10 }
 0x235   : > { %v8035_v41 = vadd.f32 %v8034_v53, %v8033_v43  ;;  %v7924_v52 = vpop.f32.mrf.mxu0 }
 0x236   : > { %v8036_v58 = vpop.f32.mrf.mxu1 }
 0x237   : > { %v1847_v57 = vadd.f32 %v8035_v41, %v7923_v27  ;;  %v7925_v34 = vpop.f32.mrf.mxu0 }
 0x238   : > { %v8037_v4 = vpop.f32.mrf.mxu1  ;;  %v7926_v20 = vadd.f32 %v7925_v34, %v7924_v52 }
 0x239   : > { %v11275_v37 = vpack.c.bf16 %v1847_v57, %v1844_v56  ;;  %v8038_v35 = vadd.f32 %v8037_v4, %v8036_v58  ;;  %v7927_v51 = vpop.f32.mrf.mxu0 }
 0x23a   : > { %8401 = vmatmul.mubr.msk.bf16.gmra.mxu0 %vm14423_vm13, %v11132_v46  ;;  %v8039_v1 = vpop.f32.mrf.mxu1 }
 0x23b   : > { %8404 = vmatprep.mubr.msk.bf16.mxu0 %vm14423_vm13, %v11199_v38  ;;  %2776 = vrot.lane.b32.xlu0 %v11275_v37, %s9909_s19  ;;  %v7928_v10 = vpop.f32.mrf.mxu0  ;;  %v1852_v62 = vadd.f32 %v8038_v35, %v7926_v20 }
 0x23c   : > { %v8040_v2 = vpop.f32.mrf.mxu1  ;;  %v7929_v43 = vadd.f32 %v7928_v10, %v7927_v51 }
 0x23d   : > { %v8041_v15 = vadd.f32 %v8040_v2, %v8039_v1  ;;  %v7930_v56 = vpop.f32.mrf.mxu0 }
 0x23e   : > { %v8042_v53 = vpop.f32.mrf.mxu1 }
 0x23f   : > { %v1855_v27 = vadd.f32 %v8041_v15, %v7929_v43  ;;  %v7931_v41 = vpop.f32.mrf.mxu0 }
 0x240   : > { %v8043_v58 = vpop.f32.mrf.mxu1  ;;  %v7932_v57 = vadd.f32 %v7931_v41, %v7930_v56 }
 0x241   : > { %v11283_v52 = vpack.c.bf16 %v1855_v27, %v1852_v62  ;;  %v8044_v34 = vadd.f32 %v8043_v58, %v8042_v53  ;;  %v7933_v14 = vpop.f32.mrf.mxu0 }
 0x242   : > { %8405 = vmatmul.mubr.msk.bf16.gmra.mxu0 %vm14423_vm13, %v11146_v28  ;;  %v8045_v4 = vpop.f32.mrf.mxu1 }
 0x243   : > { %14801 = vst [vmem:[#allocation131_spill] sm:$0xff] %v11283_v52  ;;  %2778 = vrot.lane.b32.xlu1 %v11283_v52, %s9909_s19  ;;  %v7934_v20 = vpop.f32.mrf.mxu0  ;;  %v1860_v35 = vadd.f32 %v8044_v34, %v7932_v57 }
 0x244   : > { %v8046_v51 = vpop.f32.mrf.mxu1  ;;  %v7935_v1 = vadd.f32 %v7934_v20, %v7933_v14 }
 0x245   : > { %v8047_v10 = vadd.f32 %v8046_v51, %v8045_v4  ;;  %v7936_v43 = vpop.f32.mrf.mxu0 }
 0x246   : > { %v8048_v2 = vpop.f32.mrf.mxu1 }
 0x247   : > { %v1863_v15 = vadd.f32 %v8047_v10, %v7935_v1  ;;  %v7937_v62 = vpop.f32.mrf.mxu0 }
 0x248   : > { %v8049_v27 = vpop.f32.mrf.mxu1  ;;  %v7938_v53 = vadd.f32 %v7937_v62, %v7936_v43 }
 0x249   : > { %v11289_v56 = vpack.c.bf16 %v1863_v15, %v1860_v35  ;;  %v8050_v41 = vadd.f32 %v8049_v27, %v8048_v2  ;;  %v7939_v5 = vpop.f32.mrf.mxu0 }
 0x24a   : > { %v8051_v58 = vpop.f32.mrf.mxu1 }
 0x24b   : > { %2780 = vrot.lane.b32.xlu0 %v11289_v56, %s9909_s19  ;;  %v7940_v30 = vpop.f32.mrf.mxu0  ;;  %v1868_v19 = vadd.f32 %v8050_v41, %v7938_v53 }
 0x24c   : > { %v8052_v36 = vpop.f32.mrf.mxu1  ;;  %v7941_v57 = vadd.f32 %v7940_v30, %v7939_v5 }
 0x24d   : > { %v8053_v14 = vadd.f32 %v8052_v36, %v8051_v58  ;;  %v7942_v4 = vpop.f32.mrf.mxu0 }
 0x24e   : > { %v8054_v34 = vpop.f32.mrf.mxu1 }
 0x24f   : > { %v1871_v20 = vadd.f32 %v8053_v14, %v7941_v57  ;;  %v7943_v51 = vpop.f32.mrf.mxu0 }
 0x250   : > { %v8055_v1 = vpop.f32.mrf.mxu1  ;;  %v7944_v35 = vadd.f32 %v7943_v51, %v7942_v4 }
 0x251   : > { %v11293_v10 = vpack.c.bf16 %v1871_v20, %v1868_v19  ;;  %v8056_v43 = vadd.f32 %v8055_v1, %v8054_v34  ;;  %v7945_v15 = vpop.f32.mrf.mxu0 }
 0x252   : > { %v8057_v2 = vpop.f32.mrf.mxu1 }
 0x253   : > { %2782 = vrot.lane.b32.xlu1 %v11293_v10, %s9909_s19  ;;  %v7946_v62 = vpop.f32.mrf.mxu0  ;;  %v1876_v7 = vadd.f32 %v8056_v43, %v7944_v35 }
 0x254   : > { %v8058_v27 = vpop.f32.mrf.mxu1  ;;  %v7947_v53 = vadd.f32 %v7946_v62, %v7945_v15 }
 0x255   : > { %v8059_v30 = vadd.f32 %v8058_v27, %v8057_v2  ;;  %v7948_v5 = vpop.f32.mrf.mxu0 }
 0x256   : > { %v8060_v36 = vpop.f32.mrf.mxu1 }
 0x257   : > { %v1879_v41 = vadd.f32 %v8059_v30, %v7947_v53  ;;  %v7949_v58 = vpop.f32.mrf.mxu0 }
 0x258   : > { %v8061_v57 = vpop.f32.mrf.mxu1  ;;  %v7950_v19 = vadd.f32 %v7949_v58, %v7948_v5 }
 0x259   : > { %v11297_v14 = vpack.c.bf16 %v1879_v41, %v1876_v7  ;;  %v8062_v4 = vadd.f32 %v8061_v57, %v8060_v36  ;;  %v7951_v20 = vpop.f32.mrf.mxu0 }
 0x25a   : > { %v8063_v34 = vpop.f32.mrf.mxu1 }
 0x25b   : > { %v2476_v51 = vpop.permute.xlu0 %2475  ;;  %2784 = vrot.lane.b32.xlu1 %v11297_v14, %s9909_s19  ;;  %v7952_v35 = vpop.f32.mrf.mxu0  ;;  %v1884_v2 = vadd.f32 %v8062_v4, %v7950_v19 }
 0x25c   : > { %8912 = vmatprep.subr.msk.bf16.mxu0 %vm14423_vm13, %v2476_v51  ;;  %v2523_v1 = vsel %vm14423_vm13, %v2476_v51, 0  ;;  %v8064_v43 = vpop.f32.mrf.mxu1  ;;  %v7953_v15 = vadd.f32 %v7952_v35, %v7951_v20  ;;  %v2472_v20 = vpop.permute.xlu1 %2471 }
 0x25d   : > { %8441 = vmatpush3.bf16.xpose.msra.mxu0 %v2523_v1  ;;  %v8065_v62 = vadd.f32 %v8064_v43, %v8063_v34  ;;  %v7954_v7 = vpop.f32.mrf.mxu0 }
 0x25e   : > { %v8066_v27 = vpop.f32.mrf.mxu1 }
 0x25f   : > { %v2474_v53 = vpop.permute.xlu0 %2473  ;;  %v1887_v30 = vadd.f32 %v8065_v62, %v7953_v15  ;;  %v7955_v36 = vpop.f32.mrf.mxu0 }
 0x260   : > { %8913 = vmatprep.subr.msk.bf16.mxu0 %vm14423_vm13, %v2474_v53  ;;  %v8067_v5 = vpop.f32.mrf.mxu1  ;;  %v7956_v58 = vadd.f32 %v7955_v36, %v7954_v7  ;;  %v2520_v19 = vsel %vm14423_vm13, %v2474_v53, 0 }
 0x261   : > { %v11304_v41 = vpack.c.bf16 %v1887_v30, %v1884_v2  ;;  %v8068_v57 = vadd.f32 %v8067_v5, %v8066_v27  ;;  %v7957_v6 = vpop.f32.mrf.mxu0 }
 0x262   : > { %v8069_v51 = vpop.f32.mrf.mxu1 }
 0x263   : > { %v11306_v13 = vpop.permute.xlu0 %2467  ;;  %2786 = vrot.lane.b32.xlu0 %v11304_v41, %s9909_s19  ;;  %v7958_v4 = vpop.f32.mrf.mxu0  ;;  %v1892_v1 = vadd.f32 %v8068_v57, %v7956_v58  ;;  %v2517_v58 = vsel %vm14423_vm13, %v2472_v20, 0 }
 0x264   : > { %v8070_v34 = vpop.f32.mrf.mxu1  ;;  %v7959_v35 = vadd.f32 %v7958_v4, %v7957_v6 }
 0x265   : > { %8443 = vmatpush3.bf16.xpose.msra.mxu0 %v2520_v19  ;;  %v8071_v43 = vadd.f32 %v8070_v34, %v8069_v51  ;;  %v7960_v2 = vpop.f32.mrf.mxu0  ;;  %v2470_v19 = vpop.permute.xlu1 %2469 }
 0x266   : > { %8914 = vmatprep.subr.msk.bf16.mxu0 %vm14423_vm13, %v2472_v20  ;;  %v8072_v15 = vpop.f32.mrf.mxu1 }
 0x267   : > { %v11312_v62 = vpop.permute.xlu0 %2463  ;;  %v1895_v7 = vadd.f32 %v8071_v43, %v7959_v35  ;;  %v7961_v27 = vpop.f32.mrf.mxu0 }
 0x268   : > { %v8073_v30 = vpop.f32.mrf.mxu1  ;;  %v7962_v5 = vadd.f32 %v7961_v27, %v7960_v2 }
 0x269   : > { %v11314_v36 = vpack.c.bf16 %v1895_v7, %v1892_v1  ;;  %v8074_v53 = vadd.f32 %v8073_v30, %v8072_v15  ;;  %v7963_v23 = vpop.f32.mrf.mxu0 }
 0x26a   : > { %v8075_v40 = vpop.f32.mrf.mxu1 }
 0x26b   : > { %v2438_v16 = vpop.permute.xlu0 %2437  ;;  %8408 = vmatprep.subr.bf16.mxu1 %v11314_v36  ;;  %2788 = vrot.lane.b32.xlu1 %v11314_v36, %s9909_s19  ;;  %v1900_v6 = vadd.f32 %v8074_v53, %v7962_v5  ;;  %v7964_v57 = vpop.f32.mrf.mxu0 }
 0x26c   : > { %8456 = vmatprep.mubr.msk.bf16.mxu0 %vm14423_vm13, %v2438_v16  ;;  %8409 = vmatpush3.bf16.msra.mxu1 %v11314_v36  ;;  %v8076_v51 = vpop.f32.mrf.mxu1  ;;  %v7965_v4 = vadd.f32 %v7964_v57, %v7963_v23 }
 0x26d   : > { %8445 = vmatpush3.bf16.xpose.msra.mxu0 %v2517_v58  ;;  %8410 = vmatprep.subr.bf16.mxu1 %v11304_v41  ;;  %v8077_v34 = vadd.f32 %v8076_v51, %v8075_v40  ;;  %v7966_v1 = vpop.f32.mrf.mxu0  ;;  %v2514_v40 = vsel %vm14423_vm13, %v2470_v19, 0 }
 0x26e   : > { %8915 = vmatprep.subr.msk.bf16.mxu0 %vm14423_vm13, %v2470_v19  ;;  %v8078_v35 = vpop.f32.mrf.mxu1 }
 0x26f   : > { %v1903_v43 = vadd.f32 %v8077_v34, %v7965_v4  ;;  %v7967_v16 = vpop.f32.mrf.mxu0 }
 0x270   : > { %8411 = vmatpush3.bf16.msra.mxu1 %v11304_v41  ;;  %v8079_v2 = vpop.f32.mrf.mxu1  ;;  %v7968_v20 = vadd.f32 %v7967_v16, %v7966_v1 }
 0x271   : > { %8412 = vmatprep.subr.bf16.mxu1 %v11297_v14  ;;  %v11326_v15 = vpack.c.bf16 %v1903_v43, %v1900_v6  ;;  %v8080_v7 = vadd.f32 %v8079_v2, %v8078_v35  ;;  %v7969_v27 = vpop.f32.mrf.mxu0 }
 0x272   : > { %v8081_v30 = vpop.f32.mrf.mxu1 }
 0x273   : > { %14802 = vst [vmem:[#allocation132_spill] sm:$0xff] %v11326_v15  ;;  %v1908_v5 = vadd.f32 %v8080_v7, %v7968_v20  ;;  %v7970_v23 = vpop.f32.mrf.mxu0  ;;  %v2511_v7 = vsel %vm14423_vm13, %v11306_v13, 0 }
 0x274   : > { %8413 = vmatpush3.bf16.msra.mxu1 %v11297_v14  ;;  %v8082_v53 = vpop.f32.mrf.mxu1  ;;  %v7971_v58 = vadd.f32 %v7970_v23, %v7969_v27 }
 0x275   : > { %8447 = vmatpush3.bf16.xpose.msra.mxu0 %v2514_v40  ;;  %8414 = vmatprep.subr.bf16.mxu1 %v11293_v10  ;;  %v8083_v57 = vadd.f32 %v8082_v53, %v8081_v30  ;;  %v7972_v6 = vpop.f32.mrf.mxu0  ;;  %v2466_v40 = vpop.permute.xlu1 %2465 }
 0x276   : > { %8916 = vmatprep.subr.msk.bf16.mxu0 %vm14423_vm13, %v11306_v13  ;;  %v8084_v51 = vpop.f32.mrf.mxu1 }
 0x277   : > { %v1911_v4 = vadd.f32 %v8083_v57, %v7971_v58  ;;  %v7973_v34 = vpop.f32.mrf.mxu0 }
 0x278   : > { %8415 = vmatpush3.bf16.msra.mxu1 %v11293_v10  ;;  %v8085_v1 = vpop.f32.mrf.mxu1  ;;  %v7974_v19 = vadd.f32 %v7973_v34, %v7972_v6 }
 0x279   : > { %8416 = vmatprep.subr.bf16.mxu1 %v11289_v56  ;;  %v11335_v35 = vpack.c.bf16 %v1911_v4, %v1908_v5  ;;  %v8086_v43 = vadd.f32 %v8085_v1, %v8084_v51  ;;  %v7975_v16 = vpop.f32.mrf.mxu0 }
 0x27a   : > { %v8087_v2 = vpop.f32.mrf.mxu1 }
 0x27b   : > { %14803 = vst [vmem:[#allocation133_spill] sm:$0xff] %v11335_v35  ;;  %v1916_v20 = vadd.f32 %v8086_v43, %v7974_v19  ;;  %v7976_v27 = vpop.f32.mrf.mxu0  ;;  %v14826_v35 = vld [vmem:[#allocation35_spill] sm:$0xff] }
 0x27c   : > { %8417 = vmatpush3.bf16.msra.mxu1 %v11289_v56  ;;  %v8088_v30 = vpop.f32.mrf.mxu1  ;;  %v7977_v23 = vadd.f32 %v7976_v27, %v7975_v16  ;;  %v2508_v16 = vsel %vm14423_vm13, %v2466_v40, 0  ;;  %vm14827_vm9 = vnez %v14826_v35 }
 0x27d   : > { %8449 = vmatpush3.bf16.xpose.msra.mxu0 %v2511_v7  ;;  %8418 = vmatprep.subr.bf16.mxu1 %v11283_v52  ;;  %v8089_v53 = vadd.f32 %v8088_v30, %v8087_v2  ;;  %v7978_v5 = vpop.f32.mrf.mxu0 }
 0x27e   : > { %8917 = vmatprep.subr.msk.bf16.mxu0 %vm14423_vm13, %v2466_v40  ;;  %v8090_v58 = vpop.f32.mrf.mxu1 }
 0x27f   : > { %v1919_v57 = vadd.f32 %v8089_v53, %v7977_v23  ;;  %v7979_v6 = vpop.f32.mrf.mxu0 }
 0x280   : > { %8419 = vmatpush3.bf16.msra.mxu1 %v11283_v52  ;;  %v8091_v51 = vpop.f32.mrf.mxu1  ;;  %v7980_v13 = vadd.f32 %v7979_v6, %v7978_v5 }
 0x281   : > { %8420 = vmatprep.subr.bf16.mxu1 %v11275_v37  ;;  %v11344_v4 = vpack.c.bf16 %v1919_v57, %v1916_v20  ;;  %v8092_v34 = vadd.f32 %v8091_v51, %v8090_v58  ;;  %v7981_v1 = vpop.f32.mrf.mxu0 }
 0x282   : > { %v8093_v19 = vpop.f32.mrf.mxu1 }
 0x283   : > { %14804 = vst [vmem:[#allocation134_spill] sm:$0xff] %v11344_v4  ;;  %v1924_v43 = vadd.f32 %v8092_v34, %v7980_v13  ;;  %v7982_v2 = vpop.f32.mrf.mxu0 }
 0x284   : > { %8421 = vmatpush3.bf16.msra.mxu1 %v11275_v37  ;;  %v8094_v7 = vpop.f32.mrf.mxu1  ;;  %v7983_v27 = vadd.f32 %v7982_v2, %v7981_v1  ;;  %v2505_v1 = vsel %vm14423_vm13, %v11312_v62, 0  ;;  %v2462_v2 = vpop.permute.xlu1 %2461 }
 0x285   : > { %8451 = vmatpush3.bf16.xpose.msra.mxu0 %v2508_v16  ;;  %8422 = vmatprep.subr.bf16.mxu1 %v11267_v26  ;;  %v8095_v30 = vadd.f32 %v8094_v7, %v8093_v19  ;;  %v7984_v20 = vpop.f32.mrf.mxu0  ;;  %v2502_v29 = vsel %vm14423_vm13, %v2462_v2, 0 }
 0x286   : > { %8918 = vmatprep.subr.msk.bf16.mxu0 %vm14423_vm13, %v11312_v62  ;;  %v8096_v23 = vpop.f32.mrf.mxu1 }
 0x287   : > { %v1927_v53 = vadd.f32 %v8095_v30, %v7983_v27  ;;  %v7985_v5 = vpop.f32.mrf.mxu0 }
 0x288   : > { %8423 = vmatpush3.bf16.msra.mxu1 %v11267_v26  ;;  %v8097_v58 = vpop.f32.mrf.mxu1  ;;  %v7986_v40 = vadd.f32 %v7985_v5, %v7984_v20 }
 0x289   : > { %v11352_v57 = vpack.c.bf16 %v1927_v53, %v1924_v43  ;;  %v8098_v6 = vadd.f32 %v8097_v58, %v8096_v23  ;;  %v7987_v51 = vpop.f32.mrf.mxu0 }
 0x28a   : > { %v8099_v13 = vpop.f32.mrf.mxu1 }
 0x28b   : > { %14805 = vst [vmem:[#allocation135_spill] sm:$0xff] %v11352_v57  ;;  %v1932_v34 = vadd.f32 %v8098_v6, %v7986_v40  ;;  %v7988_v19 = vpop.f32.mrf.mxu0  ;;  %v14828_v57 = vld [vmem:[#allocation43_spill] sm:$0xff] }
 0x28c   : > { %v8100_v16 = vpop.f32.mrf.mxu1  ;;  %v7989_v7 = vadd.f32 %v7988_v19, %v7987_v51  ;;  %vm14829_vm14 = vnez %v14828_v57 }
 0x28d   : > { %8453 = vmatpush3.bf16.xpose.msra.mxu0 %v2505_v1  ;;  %v8101_v27 = vadd.f32 %v8100_v16, %v8099_v13  ;;  %v7990_v30 = vpop.f32.mrf.mxu0 }
 0x28e   : > { %8919 = vmatprep.subr.msk.bf16.mxu0 %vm14423_vm13, %v2462_v2  ;;  %v8102_v8 = vpop.f32.mrf.mxu1 }
 0x28f   : > { %v1935_v20 = vadd.f32 %v8101_v27, %v7989_v7  ;;  %v7991_v43 = vpop.f32.mrf.mxu0 }
 0x290   : > { %v8103_v53 = vpop.f32.mrf.mxu1  ;;  %v7992_v23 = vadd.f32 %v7991_v43, %v7990_v30  ;;  %v2440_v43 = vpop.permute.xlu1 %2439 }
 0x291   : > { %v11357_v5 = vpack.c.bf16 %v1935_v20, %v1932_v34  ;;  %v8104_v58 = vadd.f32 %v8103_v53, %v8102_v8  ;;  %v7993_v40 = vpop.f32.mrf.mxu0  ;;  %v2442_v53 = vpop.permute.xlu0 %2441 }
 0x292   : > { %v8105_v6 = vpop.f32.mrf.mxu1 }
 0x293   : > { %14806 = vst [vmem:[#allocation136_spill] sm:$0xff] %v11357_v5  ;;  %v1940_v62 = vadd.f32 %v8104_v58, %v7992_v23  ;;  %v7994_v17 = vpop.f32.mrf.mxu0 }
 0x294   : > { %v8106_v1 = vpop.f32.mrf.mxu1  ;;  %v7995_v51 = vadd.f32 %v7994_v17, %v7993_v40 }
 0x295   : > { %8455 = vmatpush3.bf16.xpose.msra.mxu0 %v2502_v29  ;;  %v8107_v13 = vadd.f32 %v8106_v1, %v8105_v6  ;;  %v7996_v19 = vpop.f32.mrf.mxu0 }
 0x296   : > { %v8108_v16 = vpop.f32.mrf.mxu1 }
 0x297   : > { %v1943_v55 = vadd.f32 %v8107_v13, %v7995_v51  ;;  %v7997_v7 = vpop.f32.mrf.mxu0 }
 0x298   : > { %v8109_v27 = vpop.f32.mrf.mxu1  ;;  %v7998_v21 = vadd.f32 %v7997_v7, %v7996_v19 }
 0x299   : > { %v11360_v30 = vpack.c.bf16 %v1943_v55, %v1940_v62  ;;  %v8110_v34 = vadd.f32 %v8109_v27, %v8108_v16  ;;  %v7999_v8 = vpop.f32.mrf.mxu0  ;;  %v2446_v27 = vpop.permute.xlu0 %2445 }
 0x29a   : > { %v8111_v20 = vpop.f32.mrf.mxu1 }
 0x29b   : > { %14807 = vst [vmem:[#allocation137_spill] sm:$0xff] %v11360_v30  ;;  %v1948_v23 = vadd.f32 %v8110_v34, %v7998_v21  ;;  %v8000_v2 = vpop.f32.mrf.mxu0  ;;  %v2444_v21 = vpop.permute.xlu1 %2443  ;;  %v14830_v30 = vld [vmem:[#allocation44_spill] sm:$0xff] }
 0x29c   : > { %8457 = vmatmul.mubr.msk.bf16.vlgmr.msra.gmra.mxu0 %vm14423_vm13, %v2440_v43  ;;  %v8112_v29 = vpop.f32.mrf.mxu1  ;;  %v8001_v17 = vadd.f32 %v8000_v2, %v7999_v8  ;;  %vm14831_vm15 = vnez %v14830_v30 }
 0x29d   : > { %8460 = vmatprep.mubr.msk.bf16.mxu0 %vm14423_vm13, %v2442_v53  ;;  %v8113_v58 = vadd.f32 %v8112_v29, %v8111_v20  ;;  %v8002_v40 = vpop.f32.mrf.mxu0 }
 0x29e   : > { %v8114_v6 = vpop.f32.mrf.mxu1 }
 0x29f   : > { %v1951_v1 = vadd.f32 %v8113_v58, %v8001_v17  ;;  %v8003_v51 = vpop.f32.mrf.mxu0  ;;  %v2448_v17 = vpop.permute.xlu1 %2447 }
 0x2a0   : > { %v8115_v55 = vpop.f32.mrf.mxu1  ;;  %v8004_v62 = vadd.f32 %v8003_v51, %v8002_v40 }
 0x2a1   : > { %v11364_v13 = vpack.c.bf16 %v1951_v1, %v1948_v23  ;;  %v8116_v19 = vadd.f32 %v8115_v55, %v8114_v6  ;;  %v8005_v16 = vpop.f32.mrf.mxu0  ;;  %v2450_v23 = vpop.permute.xlu0 %2449 }
 0x2a2   : > { %v8117_v7 = vpop.f32.mrf.mxu1 }
 0x2a3   : > { %14808 = vst [vmem:[#allocation138_spill] sm:$0xff] %v11364_v13  ;;  %v1956_v34 = vadd.f32 %v8116_v19, %v8004_v62  ;;  %v8006_v43 = vpop.f32.mrf.mxu0  ;;  %v2452_v58 = vpop.permute.xlu1 %2451 }
 0x2a4   : > { %8461 = vmatmul.mubr.msk.bf16.gmra.mxu0 %vm14423_vm13, %v2444_v21  ;;  %v8118_v53 = vpop.f32.mrf.mxu1  ;;  %v8007_v8 = vadd.f32 %v8006_v43, %v8005_v16 }
 0x2a5   : > { %8464 = vmatprep.mubr.msk.bf16.mxu0 %vm14423_vm13, %v2446_v27  ;;  %v8119_v20 = vadd.f32 %v8118_v53, %v8117_v7  ;;  %v11466_v60 = vpop.permute.xlu0 %2955 }
 0x2a6   : > { %14836 = vst [vmem:[#allocation141_spill] sm:$0xff] %v11466_v60 }
 0x2a7   : > { %v1959_v2 = vadd.f32 %v8119_v20, %v8007_v8  ;;  %v11373_v40 = vpop.permute.xlu1 %2953 }
 0x2a8   : > { %14810 = vst [vmem:[#allocation140_spill] sm:$0xff] %v11373_v40  ;;  %v14834_v40 = vld [vmem:[#allocation42_spill] sm:$0xff] }
 0x2a9   : > { %v11368_v29 = vpack.c.bf16 %v1959_v2, %v1956_v34 }
 0x2ab   : > { %14809 = vst [vmem:[#allocation139_spill] sm:$0xff] %v11368_v29  ;;  %v11375_v6 = vpop.permute.xlu1 %2774  ;;  %v14832_v29 = vld [vmem:[#allocation38_spill] sm:$0xff] }
 0x2ac   : > { %8465 = vmatmul.mubr.msk.bf16.gmra.mxu0 %vm14423_vm13, %v2448_v17  ;;  %vm14833_vm12 = vnez %v14832_v29 }
 0x2ad   : > { %8468 = vmatprep.mubr.msk.bf16.mxu0 %vm14423_vm13, %v2450_v23 }
 0x2b4   : > { %8469 = vmatmul.mubr.msk.bf16.gmra.mxu0 %vm14423_vm13, %v2452_v58  ;;  %vm14835_vm13 = vnez %v14834_v40 }
 0x2b5   : > { %v11377_v1 = vpop.permute.xlu1 %2778 }
 0x2c5   : > { %v11379_v51 = vpop.permute.xlu1 %2782 }
 0x2cd   : > { %v11381_v55 = vpop.permute.xlu1 %2784 }
 0x2dd   : > { %v11383_v62 = vpop.permute.xlu1 %2788 }
 0x2de   : > { %8472 = vmatprep.subr.bf16.mxu1 %v11383_v62 }
 0x2ea   : > { %v8394_v19 = vpop.f32.mrf.mxu0 }
 0x2eb   : > { %v11388_v7 = vsel %vm10136_vm2, %v8394_v19, -inf }
 0x2ec   : > { %v2093_v21 = vpop.f32.mrf.mxu0  ;;  %2176 = vmax.xlane.f32.xlu0 %v11388_v7 }
 0x2ed   : > { %v11393_v43 = vsel %vm10113_vm0, %v2093_v21, -inf }
 0x2ee   : > { %v8395_v27 = vpop.f32.mrf.mxu0 }
 0x2ef   : > { %v11403_v23 = vsel %vm10140_vm3, %v8395_v27, -inf }
 0x2f0   : > { %v2096_v53 = vpop.f32.mrf.mxu0  ;;  %2172 = vmax.xlane.f32.xlu0 %v11393_v43 }
 0x2f1   : > { %v11398_v20 = vsel %vm10132_vm1, %v2096_v53, -inf }
 0x2f2   : > { %v8398_v2 = vpop.f32.mrf.mxu0  ;;  %2174 = vmax.xlane.f32.xlu1 %v11398_v20 }
 0x2f3   : > { %v11408_v21 = vsel %vm10167_vm6, %v8398_v2, -inf }
 0x2f4   : > { %v2109_v58 = vpop.f32.mrf.mxu0  ;;  %2178 = vmax.xlane.f32.xlu0 %v11403_v23 }
 0x2f5   : > { %v11418_v27 = vsel %vm10144_vm4, %v2109_v58, -inf }
 0x2f6   : > { %v8399_v61 = vpop.f32.mrf.mxu0  ;;  %2184 = vmax.xlane.f32.xlu1 %v11408_v21 }
 0x2f7   : > { %v11413_v53 = vsel %vm10171_vm7, %v8399_v61, -inf }
 0x2f8   : > { %v2112_v31 = vpop.f32.mrf.mxu0  ;;  %2186 = vmax.xlane.f32.xlu0 %v11413_v53 }
 0x2f9   : > { %v11423_v2 = vsel %vm14819_vm5, %v2112_v31, -inf }
 0x2fa   : > { %v8402_v12 = vpop.f32.mrf.mxu0  ;;  %2180 = vmax.xlane.f32.xlu1 %v11418_v27 }
 0x2fb   : > { %v11428_v61 = vsel %vm14821_vm10, %v8402_v12, -inf }
 0x2fc   : > { %v2125_v47 = vpop.f32.mrf.mxu0  ;;  %2182 = vmax.xlane.f32.xlu0 %v11423_v2 }
 0x2fd   : > { %v11438_v31 = vsel %vm14825_vm8, %v2125_v47, -inf }
 0x2fe   : > { %v8403_v33 = vpop.f32.mrf.mxu0  ;;  %2192 = vmax.xlane.f32.xlu1 %v11428_v61 }
 0x2ff   : > { %v11433_v58 = vsel %vm14823_vm11, %v8403_v33, -inf }
 0x300   : > { %v2128_v44 = vpop.f32.mrf.mxu0  ;;  %2194 = vmax.xlane.f32.xlu0 %v11433_v58 }
 0x301   : > { %v11443_v12 = vsel %vm14827_vm9, %v2128_v44, -inf }
 0x302   : > { %v8406_v15 = vpop.f32.mrf.mxu0  ;;  %2188 = vmax.xlane.f32.xlu1 %v11438_v31 }
 0x303   : > { %v11448_v33 = vsel %vm14829_vm14, %v8406_v15, -inf }
 0x304   : > { %v2141_v4 = vpop.f32.mrf.mxu0  ;;  %2190 = vmax.xlane.f32.xlu0 %v11443_v12 }
 0x305   : > { %v11458_v44 = vsel %vm14833_vm12, %v2141_v4, -inf  ;;  %v11473_v4 = vpop.permute.xlu0 %2951 }
 0x306   : > { %v8407_v5 = vpop.f32.mrf.mxu0  ;;  %2200 = vmax.xlane.f32.xlu1 %v11448_v33  ;;  %14838 = vst [vmem:[#allocation143_spill] sm:$0xff] %v11473_v4 }
 0x307   : > { %v11453_v47 = vsel %vm14831_vm15, %v8407_v5, -inf }
 0x308   : > { %v2144_v13 = vpop.f32.mrf.mxu0  ;;  %2202 = vmax.xlane.f32.xlu0 %v11453_v47 }
 0x309   : > { %v11463_v15 = vsel %vm14835_vm13, %v2144_v13, -inf  ;;  %v11485_v16 = vpop.permute.xlu0 %2957 }
 0x30a   : > { %2196 = vmax.xlane.f32.xlu1 %v11458_v44 }
 0x30c   : > { %2198 = vmax.xlane.f32.xlu0 %v11463_v15 }
 0x30d   : > { %v11497_v17 = vpop.permute.xlu0 %2776 }
 0x35c   : > { %v8458_v32 = vpop.f32.mrf.mxu0 }
 0x35d   : > { %v11470_v5 = vsel %vm10136_vm2, %v8458_v32, -inf }
 0x35e   : > { %14837 = vst [vmem:[#allocation142_spill] sm:$0xff] %v11470_v5  ;;  %v2559_v26 = vpop.f32.mrf.mxu0  ;;  %2642 = vmax.xlane.f32.xlu1 %v11470_v5 }
 0x35f   : > { %v11481_v13 = vsel %vm10113_vm0, %v2559_v26, -inf }
 0x360   : > { %v8459_v11 = vpop.f32.mrf.mxu0  ;;  %14840 = vst [vmem:[#allocation145_spill] sm:$0xff] %v11481_v13 }
 0x361   : > { %v11477_v52 = vsel %vm10140_vm3, %v8459_v11, -inf }
 0x362   : > { %14839 = vst [vmem:[#allocation144_spill] sm:$0xff] %v11477_v52  ;;  %v2562_v60 = vpop.f32.mrf.mxu0  ;;  %2644 = vmax.xlane.f32.xlu0 %v11477_v52  ;;  %2638 = vmax.xlane.f32.xlu1 %v11481_v13 }
 0x363   : > { %v11489_v4 = vsel %vm10132_vm1, %v2562_v60, -inf }
 0x364   : > { %v8462_v32 = vpop.f32.mrf.mxu0  ;;  %14841 = vst [vmem:[#allocation146_spill] sm:$0xff] %v11489_v4 }
 0x365   : > { %v11501_v34 = vsel %vm10167_vm6, %v8462_v32, -inf }
 0x366   : > { %v2575_v5 = vpop.f32.mrf.mxu0  ;;  %2640 = vmax.xlane.f32.xlu0 %v11489_v4  ;;  %14843 = vst [vmem:[#allocation148_spill] sm:$0xff] %v11501_v34 }
 0x367   : > { %v11494_v11 = vsel %vm10144_vm4, %v2575_v5, -inf  ;;  %v11509_v5 = vpop.permute.xlu0 %2780 }
 0x368   : > { %14842 = vst [vmem:[#allocation147_spill] sm:$0xff] %v11494_v11  ;;  %v8463_v26 = vpop.f32.mrf.mxu0  ;;  %2646 = vmax.xlane.f32.xlu1 %v11494_v11 }
 0x369   : > { %v11506_v60 = vsel %vm10171_vm7, %v8463_v26, -inf }
 0x36a   : > { %v2578_v13 = vpop.f32.mrf.mxu0  ;;  %2650 = vmax.xlane.f32.xlu0 %v11501_v34  ;;  %14844 = vst [vmem:[#allocation149_spill] sm:$0xff] %v11506_v60 }
 0x36b   : > { %v11513_v54 = vsel %vm14819_vm5, %v2578_v13, -inf  ;;  %v11521_v26 = vpop.permute.xlu0 %2786 }
 0x36c   : > { %v8466_v8 = vpop.f32.mrf.mxu0  ;;  %2652 = vmax.xlane.f32.xlu1 %v11506_v60  ;;  %14845 = vst [vmem:[#allocation150_spill] sm:$0xff] %v11513_v54 }
 0x36d   : > { %v11518_v32 = vsel %vm14821_vm10, %v8466_v8, -inf }
 0x36e   : > { %2648 = vmax.xlane.f32.xlu0 %v11513_v54  ;;  %14846 = vst [vmem:[#allocation151_spill] sm:$0xff] %v11518_v32  ;;  %v2591_v19 = vpop.f32.mrf.mxu0 }
 0x36f   : > { %v11525_v50 = vsel %vm14825_vm8, %v2591_v19, -inf }
 0x370   : > { %2658 = vmax.xlane.f32.xlu1 %v11518_v32  ;;  %14847 = vst [vmem:[#allocation152_spill] sm:$0xff] %v11525_v50  ;;  %v8467_v11 = vpop.f32.mrf.mxu0 }
 0x371   : > { %v11530_v9 = vsel %vm14823_vm11, %v8467_v11, -inf }
 0x372   : > { %14848 = vst [vmem:[#allocation153_spill] sm:$0xff] %v11530_v9  ;;  %v2594_v25 = vpop.f32.mrf.mxu0 }
 0x373   : > { %v11535_v32 = vsel %vm14827_vm9, %v2594_v25, -inf }
 0x374   : > { %2654 = vmax.xlane.f32.xlu1 %v11525_v50 }
 0x375   : > { %v2177_v13 = vpop.xlane.xlu0 %2176 }
 0x376   : > { %v2206_v0 = vsub.f32 %v11388_v7, %v2177_v13 }
 0x378   : > { %2660 = vmax.xlane.f32.xlu1 %v11530_v9 }
 0x379   : > { %v2173_v8 = vpop.xlane.xlu0 %2172 }
 0x37a   : > { %v2204_v19 = vsub.f32 %v11393_v43, %v2173_v8 }
 0x37b   : > { %v2175_v54 = vpop.xlane.xlu1 %2174 }
 0x37c   : > { %v2205_v3 = vsub.f32 %v11398_v20, %v2175_v54  ;;  %2656 = vmax.xlane.f32.xlu1 %v11535_v32 }
 0x37d   : > { %v2179_v50 = vpop.xlane.xlu0 %2178 }
 0x37e   : > { %v2220_v11 = vpack.c.bf16 %v2205_v3, %v2204_v19  ;;  %v2207_v60 = vsub.f32 %v11403_v23, %v2179_v50 }
 0x37f   : > { %v2185_v34 = vpop.xlane.xlu1 %2184 }
 0x380   : > { %v2229_v9 = vmul.bf16 1069105081, %v2220_v11  ;;  %v2221_v4 = vpack.c.bf16 %v2207_v60, %v2206_v0  ;;  %v2210_v54 = vsub.f32 %v11408_v21, %v2185_v34 }
 0x381   : > { %v2187_v52 = vpop.xlane.xlu0 %2186 }
 0x382   : > { %9407 = vpow.bf16 %v2229_v9  ;;  %v2232_v35 = vmul.bf16 1069105081, %v2221_v4  ;;  %v2211_v25 = vsub.f32 %v11413_v53, %v2187_v52 }
 0x383   : > { %v2181_v59 = vpop.xlane.xlu1 %2180 }
 0x384   : > { %9409 = vpow.bf16 %v2232_v35  ;;  %2947 = vrot.lane.b32.xlu0 %v11070_v18, %s9910_s20  ;;  %v2223_v7 = vpack.c.bf16 %v2211_v25, %v2210_v54  ;;  %v2208_v3 = vsub.f32 %v11418_v27, %v2181_v59 }
 0x385   : > { %v2183_v43 = vpop.xlane.xlu0 %2182 }
 0x386   : > { %v2209_v50 = vsub.f32 %v11423_v2, %v2183_v43  ;;  %v2238_v9 = vmul.bf16 1069105081, %v2223_v7 }
 0x387   : > { %v2193_v20 = vpop.xlane.xlu1 %2192 }
 0x388   : > { %v2222_v0 = vpack.c.bf16 %v2209_v50, %v2208_v3  ;;  %v2214_v35 = vsub.f32 %v11428_v61, %v2193_v20 }
 0x389   : > { %v2195_v23 = vpop.xlane.xlu0 %2194 }
 0x38a   : > { %v2235_v4 = vmul.bf16 1069105081, %v2222_v0  ;;  %v2215_v52 = vsub.f32 %v11433_v58, %v2195_v23 }
 0x38b   : > { %v2189_v53 = vpop.xlane.xlu1 %2188 }
 0x38c   : > { %9411 = vpow.bf16 %v2235_v4  ;;  %v2225_v21 = vpack.c.bf16 %v2215_v52, %v2214_v35  ;;  %v2212_v59 = vsub.f32 %v11438_v31, %v2189_v53  ;;  %v14860_v52 = vld [vmem:[#allocation98_spill] sm:$0xff] }
 0x38d   : > { %v2191_v34 = vpop.xlane.xlu0 %2190  ;;  %2949 = vrot.lane.b32.xlu1 %v11130_v45, %s9910_s20  ;;  %9413 = vpow.bf16 %v2238_v9  ;;  %v14861_v53 = vld [vmem:[#allocation130_spill] sm:$0xff] }
 0x38e   : > { %v2213_v27 = vsub.f32 %v11443_v12, %v2191_v34  ;;  %v2244_v61 = vmul.bf16 1069105081, %v2225_v21  ;;  %v14862_v34 = vld [vmem:[#allocation95_spill] sm:$0xff]  ;;  %v14863_v21 = vld [vmem:[#allocation94_spill] sm:$0xff] }
 0x38f   : > { %v2201_v2 = vpop.xlane.xlu1 %2200 }
 0x390   : > { %v11554_v60 = vpop.eup %9407  ;;  %v2224_v13 = vpack.c.bf16 %v2213_v27, %v2212_v59  ;;  %v2218_v31 = vsub.f32 %v11448_v33, %v2201_v2  ;;  %v14864_v27 = vld [vmem:[#allocation144_spill] sm:$0xff] }
 0x391   : > { %14849 = vst [vmem:[#allocation154_spill] sm:$0xff] %v11554_v60  ;;  %v2203_v8 = vpop.xlane.xlu0 %2202  ;;  %8424 = vmatprep.mubr.bf16.mxu1 %v11554_v60 }
 0x392   : > { %v11557_v58 = vpop.eup %9409  ;;  %v2241_v19 = vmul.bf16 1069105081, %v2224_v13  ;;  %v2219_v11 = vsub.f32 %v11453_v47, %v2203_v8  ;;  %v14865_v13 = vld [vmem:[#allocation142_spill] sm:$0xff] }
 0x393   : > { %14850 = vst [vmem:[#allocation155_spill] sm:$0xff] %v11557_v58  ;;  %v2197_v25 = vpop.xlane.xlu1 %2196  ;;  %8425 = vmatmul.mubr.bf16.vlgmr.msra.gmra.mxu1 %v11557_v58  ;;  %v15009_v58 = vld [vmem:[#allocation124_spill] sm:$0xff] }
 0x394   : > { %9415 = vpow.bf16 %v2241_v19  ;;  %8473 = vmatpush3.bf16.msra.mxu1 %v11383_v62  ;;  %v2227_v54 = vpack.c.bf16 %v2219_v11, %v2218_v31  ;;  %v2216_v43 = vsub.f32 %v11458_v44, %v2197_v25  ;;  %v8470_v44 = vpop.f32.mrf.mxu0  ;;  %v14866_v25 = vld [vmem:[#allocation145_spill] sm:$0xff] }
 0x395   : > { %8474 = vmatprep.subr.bf16.mxu1 %v11521_v26  ;;  %v2199_v12 = vpop.xlane.xlu0 %2198  ;;  %9417 = vpow.bf16 %v2244_v61 }
 0x396   : > { %v2217_v7 = vsub.f32 %v11463_v15, %v2199_v12  ;;  %v2250_v50 = vmul.bf16 1069105081, %v2227_v54  ;;  %v2607_v20 = vpop.f32.mrf.mxu0  ;;  %v14867_v12 = vld [vmem:[#allocation146_spill] sm:$0xff] }
 0x398   : > { %v2226_v3 = vpack.c.bf16 %v2217_v7, %v2216_v43  ;;  %8475 = vmatpush3.bf16.msra.mxu1 %v11521_v26  ;;  %v11582_v26 = vsel %vm14829_vm14, %v8470_v44, -inf  ;;  %v8471_v0 = vpop.f32.mrf.mxu0 }
 0x399   : > { %8476 = vmatprep.subr.bf16.mxu1 %v11381_v55 }
 0x39a   : > { %v11568_v47 = vpop.eup %9411  ;;  %v2247_v33 = vmul.bf16 1069105081, %v2226_v3  ;;  %v2610_v4 = vpop.f32.mrf.mxu0 }
 0x39b   : > { %14851 = vst [vmem:[#allocation156_spill] sm:$0xff] %v11568_v47  ;;  %8428 = vmatprep.mubr.bf16.mxu1 %v11568_v47  ;;  %v11571_v62 = vpop.eup %9413 }
 0x39c   : > { %14852 = vst [vmem:[#allocation157_spill] sm:$0xff] %v11571_v62  ;;  %9419 = vpow.bf16 %v2247_v33  ;;  %8477 = vmatpush3.bf16.msra.mxu1 %v11381_v55 }
 0x39d   : > { %8429 = vmatmul.mubr.bf16.gmra.mxu1 %v11571_v62  ;;  %8478 = vmatprep.subr.bf16.mxu1 %v11379_v51  ;;  %9421 = vpow.bf16 %v2250_v50 }
 0x3a0   : > { %8479 = vmatpush3.bf16.msra.mxu1 %v11379_v51  ;;  %v11593_v51 = vsel %vm14833_vm12, %v2607_v20, -inf  ;;  %v14868_v20 = vld [vmem:[#allocation148_spill] sm:$0xff] }
 0x3a1   : > { %8480 = vmatprep.subr.bf16.mxu1 %v11509_v5 }
 0x3a2   : > { %v11578_v15 = vpop.eup %9415 }
 0x3a3   : > { %14853 = vst [vmem:[#allocation158_spill] sm:$0xff] %v11578_v15  ;;  %8432 = vmatprep.mubr.bf16.mxu1 %v11578_v15  ;;  %2666 = vmax.xlane.f32.xlu0 %v11582_v26  ;;  %v11586_v55 = vpop.eup %9417  ;;  %v14945_v15 = vld [vmem:[#allocation37_spill] sm:$0xff] }
 0x3a4   : > { %14854 = vst [vmem:[#allocation159_spill] sm:$0xff] %v11586_v55  ;;  %8481 = vmatpush3.bf16.msra.mxu1 %v11509_v5  ;;  %v11602_v5 = vsel %vm14831_vm15, %v8471_v0, -inf  ;;  %vm14857_vm15 = vcmask 261120  }
 0x3a5   : > { %8433 = vmatmul.mubr.bf16.gmra.mxu1 %v11586_v55  ;;  %8482 = vmatprep.subr.bf16.mxu1 %v11377_v1 }
 0x3a7   : > { %2662 = vmax.xlane.f32.xlu0 %v11593_v51 }
 0x3a8   : > { %8483 = vmatpush3.bf16.msra.mxu1 %v11377_v1  ;;  %v11614_v1 = vsel %vm14835_vm13, %v2610_v4, -inf  ;;  %v14869_v4 = vld [vmem:[#allocation149_spill] sm:$0xff]  ;;  %vm14876_vm13 = vmmov %vm14857_vm15 }
 0x3a9   : > { %8484 = vmatprep.subr.bf16.mxu1 %v11497_v17  ;;  %vm14879_vm12 = vmmov %vm14876_vm13 }
 0x3aa   : > { %v11598_v23 = vpop.eup %9419  ;;  %vm14884_vm14 = vmmov %vm14879_vm12 }
 0x3ab   : > { %14855 = vst [vmem:[#allocation160_spill] sm:$0xff] %v11598_v23  ;;  %8436 = vmatprep.mubr.bf16.mxu1 %v11598_v23  ;;  %2668 = vmax.xlane.f32.xlu0 %v11602_v5  ;;  %v11606_v9 = vpop.eup %9421  ;;  %vm14890_vm9 = vmmov %vm14879_vm12 }
 0x3ac   : > { %14856 = vst [vmem:[#allocation161_spill] sm:$0xff] %v11606_v9  ;;  %8485 = vmatpush3.bf16.msra.mxu1 %v11497_v17  ;;  %v14859_v17 = vld [vmem:[#allocation131_spill] sm:$0xff] }
 0x3ad   : > { %8437 = vmatmul.mubr.bf16.gmra.mxu1 %v11606_v9  ;;  %8486 = vmatprep.subr.bf16.mxu1 %v11375_v6 }
 0x3b0   : > { %8487 = vmatpush3.bf16.msra.mxu1 %v11375_v6  ;;  %v14858_v6 = vld [vmem:[#allocation96_spill] sm:$0xff] }
 0x3b1   : > { %8920 = vmatprep.subr.msk.bf16.mxu1 %vm14857_vm15, %v11485_v16  ;;  %2664 = vmax.xlane.f32.xlu1 %v11614_v1 }
 0x3c1   : > { %2945 = vrot.lane.b32.xlu0 %v11144_v49, %s9910_s20 }
 0x3c2   : > { %2943 = vrot.lane.b32.xlu1 %v11078_v48, %s9910_s20 }
 0x3c5   : > { %2927 = vrot.lane.b32.xlu0 %v11058_v42, %s9910_s20 }
 0x3c6   : > { %2929 = vrot.lane.b32.xlu1 %v11086_v24, %s9910_s20 }
 0x3c9   : > { %2931 = vrot.lane.b32.xlu0 %v11171_v63, %s9910_s20 }
 0x3ca   : > { %2933 = vrot.lane.b32.xlu1 %v11106_v39, %s9910_s20 }
 0x3cd   : > { %2935 = vrot.lane.b32.xlu0 %v11187_v22, %s9910_s20 }
 0x3ce   : > { %2937 = vrot.lane.b32.xlu1 %v11132_v46, %s9910_s20 }
 0x3d1   : > { %2939 = vrot.lane.b32.xlu0 %v11199_v38, %s9910_s20 }
 0x3d2   : > { %2941 = vrot.lane.b32.xlu1 %v11146_v28, %s9910_s20 }
 0x3d5   : > { %3260 = vrot.lane.b32.xlu0 %v11304_v41, %s9910_s20 }
 0x3d6   : > { %3262 = vrot.lane.b32.xlu1 %v11314_v36, %s9910_s20 }
 0x3d9   : > { %3254 = vrot.lane.b32.xlu0 %v11289_v56, %s9910_s20 }
 0x3da   : > { %3258 = vrot.lane.b32.xlu1 %v11297_v14, %s9910_s20 }
 0x3dd   : > { %3250 = vrot.lane.b32.xlu0 %v11275_v37, %s9910_s20 }
 0x3de   : > { %3256 = vrot.lane.b32.xlu1 %v11293_v10, %s9910_s20 }
 0x3e1   : > { %3431 = vrot.lane.b32.xlu0 %v14858_v6, %s9911_s21 }
 0x3e2   : > { %3252 = vrot.lane.b32.xlu1 %v14859_v17, %s9910_s20 }
 0x3e5   : > { %3429 = vrot.lane.b32.xlu0 %v14860_v52, %s9911_s21 }
 0x3e6   : > { %3248 = vrot.lane.b32.xlu1 %v14861_v53, %s9910_s20 }
 0x3e7   : > { %v2643_v35 = vpop.xlane.xlu1 %2642 }
 0x3e8   : > { %v2672_v8 = vsub.f32 %v14865_v13, %v2643_v35  ;;  %v14870_v35 = vld [vmem:[#allocation147_spill] sm:$0xff] }
 0x3e9   : > { %3425 = vrot.lane.b32.xlu0 %v14862_v34, %s9911_s21 }
 0x3ea   : > { %3427 = vrot.lane.b32.xlu1 %v14863_v21, %s9911_s21 }
 0x3eb   : > { %v2645_v59 = vpop.xlane.xlu0 %2644  ;;  %v2639_v61 = vpop.xlane.xlu1 %2638 }
 0x3ec   : > { %v2673_v2 = vsub.f32 %v14864_v27, %v2645_v59  ;;  %v2670_v31 = vsub.f32 %v14866_v25, %v2639_v61  ;;  %v14871_v59 = vld [vmem:[#allocation150_spill] sm:$0xff]  ;;  %v14872_v25 = vld [vmem:[#allocation153_spill] sm:$0xff] }
 0x3ee   : > { %v2687_v19 = vpack.c.bf16 %v2673_v2, %v2672_v8 }
 0x3ef   : > { %v2641_v11 = vpop.xlane.xlu0 %2640 }
 0x3f0   : > { %v2671_v54 = vsub.f32 %v14867_v12, %v2641_v11  ;;  %v2698_v3 = vmul.bf16 1069105081, %v2687_v19  ;;  %v14873_v12 = vld [vmem:[#allocation151_spill] sm:$0xff] }
 0x3f1   : > { %v2647_v43 = vpop.xlane.xlu1 %2646 }
 0x3f2   : > { %v2686_v7 = vpack.c.bf16 %v2671_v54, %v2670_v31  ;;  %v2674_v34 = vsub.f32 %v14870_v35, %v2647_v43 }
 0x3f3   : > { %v2651_v50 = vpop.xlane.xlu0 %2650 }
 0x3f4   : > { %v2695_v33 = vmul.bf16 1069105081, %v2686_v7  ;;  %v2676_v0 = vsub.f32 %v14868_v20, %v2651_v50 }
 0x3f5   : > { %v2653_v44 = vpop.xlane.xlu1 %2652 }
 0x3f6   : > { %9423 = vpow.bf16 %v2695_v33  ;;  %v2677_v6 = vsub.f32 %v14869_v4, %v2653_v44  ;;  %v14874_v33 = vld [vmem:[#allocation152_spill] sm:$0xff] }
 0x3f7   : > { %9425 = vpow.bf16 %v2698_v3  ;;  %v2649_v52 = vpop.xlane.xlu0 %2648 }
 0x3f8   : > { %v2689_v21 = vpack.c.bf16 %v2677_v6, %v2676_v0  ;;  %v2675_v27 = vsub.f32 %v14871_v59, %v2649_v52  ;;  %v3005_v0 = vsel %vm14857_vm15, %v11485_v16, 0  ;;  %v14875_v6 = vld [vmem:[#allocation141_spill] sm:$0xff]  ;;  %vm14881_vm15 = vmmov %vm14879_vm12 }
 0x3f9   : > { %v2659_v2 = vpop.xlane.xlu1 %2658  ;;  %v3002_v16 = vsel %vm14879_vm12, %v14875_v6, 0 }
 0x3fa   : > { %v2688_v13 = vpack.c.bf16 %v2675_v27, %v2674_v34  ;;  %v2704_v8 = vmul.bf16 1069105081, %v2689_v21  ;;  %v2680_v54 = vsub.f32 %v14873_v12, %v2659_v2  ;;  %v14883_v27 = vld [vmem:[#allocation143_spill] sm:$0xff] }
 0x3fc   : > { %v2701_v61 = vmul.bf16 1069105081, %v2688_v13 }
 0x3fd   : > { %v2655_v19 = vpop.xlane.xlu1 %2654 }
 0x3fe   : > { %9427 = vpow.bf16 %v2701_v61  ;;  %v2678_v44 = vsub.f32 %v14874_v33, %v2655_v19 }
 0x3ff   : > { %9429 = vpow.bf16 %v2704_v8  ;;  %v2996_v8 = vsel %vm14879_vm12, %v14883_v27, 0 }
 0x401   : > { %v2661_v11 = vpop.xlane.xlu1 %2660 }
 0x402   : > { %v2681_v31 = vsub.f32 %v14872_v25, %v2661_v11  ;;  %v2948_v11 = vpop.permute.xlu0 %2947 }
 0x404   : > { %v11673_v7 = vpop.eup %9423  ;;  %v2691_v43 = vpack.c.bf16 %v2681_v31, %v2680_v54  ;;  %v2990_v31 = vsel %vm14890_vm9, %v2948_v11, 0 }
 0x405   : > { %v11675_v3 = vpop.eup %9425  ;;  %v2657_v50 = vpop.xlane.xlu1 %2656  ;;  %8488 = vmatprep.mubr.bf16.mxu1 %v11673_v7 }
 0x406   : > { %v2679_v20 = vsub.f32 %v11535_v32, %v2657_v50  ;;  %8489 = vmatmul.mubr.bf16.vlgmr.msra.gmra.mxu1 %v11675_v3  ;;  %v2710_v52 = vmul.bf16 1069105081, %v2691_v43  ;;  %v14880_v32 = vld [vmem:[#allocation140_spill] sm:$0xff] }
 0x407   : > { %8505 = vmatpush3.bf16.xpose.msra.mxu1 %v3005_v0 }
 0x408   : > { %v2690_v4 = vpack.c.bf16 %v2679_v20, %v2678_v44  ;;  %8921 = vmatprep.subr.msk.bf16.mxu1 %vm14876_vm13, %v14875_v6  ;;  %vm14882_vm13 = vmmov %vm14879_vm12 }
 0x409   : > { %v2999_v59 = vsel %vm14882_vm13, %v14880_v32, 0  ;;  %v2950_v61 = vpop.permute.xlu1 %2949  ;;  %vm14888_vm13 = vmmov %vm14879_vm12 }
 0x40a   : > { %v2707_v35 = vmul.bf16 1069105081, %v2690_v4  ;;  %v2993_v19 = vsel %vm14888_vm13, %v2950_v61, 0  ;;  %vm14893_vm13 = vmmov %vm14890_vm9 }
 0x40c   : > { %v11685_v34 = vpop.eup %9427  ;;  %9431 = vpow.bf16 %v2707_v35 }
 0x40d   : > { %14877 = vst [vmem:[#allocation96_spill] sm:$0xff] %v11685_v34  ;;  %v11687_v21 = vpop.eup %9429  ;;  %9433 = vpow.bf16 %v2710_v52  ;;  %8492 = vmatprep.mubr.bf16.mxu1 %v11685_v34 }
 0x40e   : > { %14878 = vst [vmem:[#allocation131_spill] sm:$0xff] %v11687_v21  ;;  %8493 = vmatmul.mubr.bf16.gmra.mxu1 %v11687_v21 }
 0x40f   : > { %8507 = vmatpush3.bf16.xpose.msra.mxu1 %v3002_v16 }
 0x410   : > { %8922 = vmatprep.subr.msk.bf16.mxu1 %vm14881_vm15, %v14880_v32  ;;  %vm14887_vm15 = vmmov %vm14879_vm12 }
 0x417   : > { %8509 = vmatpush3.bf16.xpose.msra.mxu1 %v2999_v59 }
 0x418   : > { %8923 = vmatprep.subr.msk.bf16.mxu1 %vm14884_vm14, %v14883_v27  ;;  %vm14889_vm14 = vmmov %vm14879_vm12 }
 0x419   : > { %vm14891_vm12 = vmmov %vm14890_vm9 }
 0x41a   : > { %v11699_v2 = vpop.eup %9431 }
 0x41b   : > { %14885 = vst [vmem:[#allocation98_spill] sm:$0xff] %v11699_v2  ;;  %v11701_v13 = vpop.eup %9433  ;;  %8496 = vmatprep.mubr.bf16.mxu1 %v11699_v2 }
 0x41c   : > { %14886 = vst [vmem:[#allocation130_spill] sm:$0xff] %v11701_v13  ;;  %8497 = vmatmul.mubr.bf16.gmra.mxu1 %v11701_v13 }
 0x41f   : > { %8511 = vmatpush3.bf16.xpose.msra.mxu1 %v2996_v8 }
 0x420   : > { %8924 = vmatprep.subr.msk.bf16.mxu1 %vm14887_vm15, %v2950_v61  ;;  %vm14892_vm15 = vmmov %vm14890_vm9 }
 0x427   : > { %8513 = vmatpush3.bf16.xpose.msra.mxu1 %v2993_v19 }
 0x428   : > { %8925 = vmatprep.subr.msk.bf16.mxu1 %vm14889_vm14, %v2948_v11  ;;  %vm14896_vm14 = vmmov %vm14890_vm9 }
 0x42c   : > { %v2667_v25 = vpop.xlane.xlu0 %2666 }
 0x42d   : > { %v2684_v50 = vsub.f32 %v11582_v26, %v2667_v25 }
 0x42f   : > { %8515 = vmatpush3.bf16.xpose.msra.mxu1 %v2990_v31 }
 0x430   : > { %v2663_v12 = vpop.xlane.xlu0 %2662 }
 0x431   : > { %v2682_v4 = vsub.f32 %v11593_v51, %v2663_v12 }
 0x434   : > { %v2669_v54 = vpop.xlane.xlu0 %2668 }
 0x435   : > { %v2685_v43 = vsub.f32 %v11602_v5, %v2669_v54 }
 0x437   : > { %v2693_v20 = vpack.c.bf16 %v2685_v43, %v2684_v50 }
 0x438   : > { %v2946_v33 = vpop.permute.xlu0 %2945 }
 0x439   : > { %8926 = vmatprep.subr.msk.bf16.mxu1 %vm14891_vm12, %v2946_v33  ;;  %v2987_v44 = vsel %vm14892_vm15, %v2946_v33, 0  ;;  %v2716_v16 = vmul.bf16 1069105081, %v2693_v20  ;;  %vm14897_vm12 = vmmov %vm14890_vm9 }
 0x43a   : > { %v2665_v0 = vpop.xlane.xlu1 %2664  ;;  %8517 = vmatpush3.bf16.xpose.msra.mxu1 %v2987_v44  ;;  %vm14898_vm15 = vmmov %vm14890_vm9 }
 0x43b   : > { %v2683_v6 = vsub.f32 %v11614_v1, %v2665_v0 }
 0x43c   : > { %v2928_v52 = vpop.permute.xlu0 %2927 }
 0x43d   : > { %v2692_v35 = vpack.c.bf16 %v2683_v6, %v2682_v4 }
 0x43e   : > { %v2944_v32 = vpop.permute.xlu1 %2943 }
 0x43f   : > { %v2713_v59 = vmul.bf16 1069105081, %v2692_v35  ;;  %8927 = vmatprep.subr.msk.bf16.mxu1 %vm14890_vm9, %v2944_v32  ;;  %v2984_v26 = vsel %vm14893_vm13, %v2944_v32, 0  ;;  %vm14899_vm13 = vmmov %vm14890_vm9 }
 0x440   : > { %v2932_v5 = vpop.permute.xlu0 %2931 }
 0x441   : > { %9435 = vpow.bf16 %v2713_v59 }
 0x442   : > { %9437 = vpow.bf16 %v2716_v16  ;;  %v2930_v27 = vpop.permute.xlu1 %2929  ;;  %8519 = vmatpush3.bf16.xpose.msra.mxu1 %v2984_v26 }
 0x444   : > { %v2936_v61 = vpop.permute.xlu0 %2935 }
 0x446   : > { %v2934_v8 = vpop.permute.xlu1 %2933 }
 0x448   : > { %v2940_v51 = vpop.permute.xlu0 %2939 }
 0x44a   : > { %v2938_v19 = vpop.permute.xlu1 %2937 }
 0x44c   : > { %v3261_v12 = vpop.permute.xlu0 %3260 }
 0x44e   : > { %v2942_v11 = vpop.permute.xlu1 %2941 }
 0x44f   : > { %v11719_v1 = vpop.eup %9435 }
 0x450   : > { %14894 = vst [vmem:[#allocation95_spill] sm:$0xff] %v11719_v1  ;;  %v11721_v25 = vpop.eup %9437  ;;  %8500 = vmatprep.mubr.bf16.mxu1 %v11719_v1  ;;  %v3255_v50 = vpop.permute.xlu0 %3254 }
 0x451   : > { %14895 = vst [vmem:[#allocation94_spill] sm:$0xff] %v11721_v25  ;;  %8501 = vmatmul.mubr.bf16.gmra.mxu1 %v11721_v25 }
 0x452   : > { %v3263_v31 = vpop.permute.xlu1 %3262  ;;  %8520 = vmatprep.mubr.msk.bf16.mxu1 %vm14896_vm14, %v2928_v52  ;;  %vm14900_vm14 = vmmov %vm14890_vm9 }
 0x453   : > { %8536 = vmatprep.subr.bf16.mxu0 %v3263_v31  ;;  %v11737_v4 = vpop.f32.mrf.mxu1 }
 0x454   : > { %8537 = vmatpush3.bf16.msra.mxu0 %v3263_v31  ;;  %v3251_v44 = vpop.permute.xlu0 %3250  ;;  %14903 = vst [vmem:[#allocation144_spill] sm:$0xff] %v11737_v4 }
 0x455   : > { %8538 = vmatprep.subr.bf16.mxu0 %v3261_v12  ;;  %v11739_v6 = vpop.f32.mrf.mxu1 }
 0x456   : > { %v3259_v54 = vpop.permute.xlu1 %3258  ;;  %14904 = vst [vmem:[#allocation142_spill] sm:$0xff] %v11739_v6 }
 0x457   : > { %v11741_v52 = vpop.f32.mrf.mxu1 }
 0x458   : > { %8539 = vmatpush3.bf16.msra.mxu0 %v3261_v12  ;;  %v11732_v0 = vpop.permute.xlu0 %3431  ;;  %14905 = vst [vmem:[#allocation145_spill] sm:$0xff] %v11741_v52 }
 0x459   : > { %8521 = vmatmul.mubr.msk.bf16.vlgmr.msra.gmra.mxu1 %vm14897_vm12, %v2930_v27  ;;  %8540 = vmatprep.subr.bf16.mxu0 %v3259_v54  ;;  %vm14901_vm12 = vmmov %vm14890_vm9  ;;  %v11743_v35 = vpop.f32.mrf.mxu1 }
 0x45a   : > { %8524 = vmatprep.mubr.msk.bf16.mxu1 %vm14898_vm15, %v2932_v5  ;;  %v3257_v43 = vpop.permute.xlu1 %3256  ;;  %vm14902_vm15 = vmmov %vm14890_vm9  ;;  %14906 = vst [vmem:[#allocation146_spill] sm:$0xff] %v11743_v35 }
 0x45c   : > { %8541 = vmatpush3.bf16.msra.mxu0 %v3259_v54 }
 0x45d   : > { %8542 = vmatprep.subr.bf16.mxu0 %v3257_v43  ;;  %v11745_v16 = vpop.f32.mrf.mxu1 }
 0x45e   : > { %v3253_v33 = vpop.permute.xlu1 %3252  ;;  %14907 = vst [vmem:[#allocation148_spill] sm:$0xff] %v11745_v16 }
 0x45f   : > { %v11747_v32 = vpop.f32.mrf.mxu1 }
 0x460   : > { %8543 = vmatpush3.bf16.msra.mxu0 %v3257_v43  ;;  %14908 = vst [vmem:[#allocation149_spill] sm:$0xff] %v11747_v32 }
 0x461   : > { %8525 = vmatmul.mubr.msk.bf16.gmra.mxu1 %vm14890_vm9, %v2934_v8  ;;  %8544 = vmatprep.subr.bf16.mxu0 %v3255_v50  ;;  %v11749_v59 = vpop.f32.mrf.mxu1 }
 0x462   : > { %8528 = vmatprep.mubr.msk.bf16.mxu1 %vm14899_vm13, %v2936_v61  ;;  %v3249_v20 = vpop.permute.xlu1 %3248  ;;  %14909 = vst [vmem:[#allocation147_spill] sm:$0xff] %v11749_v59 }
 0x463   : > { %v11751_v26 = vpop.f32.mrf.mxu1 }
 0x464   : > { %8545 = vmatpush3.bf16.msra.mxu0 %v3255_v50  ;;  %14910 = vst [vmem:[#allocation150_spill] sm:$0xff] %v11751_v26 }
 0x465   : > { %8546 = vmatprep.subr.bf16.mxu0 %v3253_v33  ;;  %v11753_v5 = vpop.f32.mrf.mxu1 }
 0x466   : > { %14911 = vst [vmem:[#allocation153_spill] sm:$0xff] %v11753_v5 }
 0x467   : > { %v11755_v27 = vpop.f32.mrf.mxu1 }
 0x468   : > { %8547 = vmatpush3.bf16.msra.mxu0 %v3253_v33  ;;  %14912 = vst [vmem:[#allocation151_spill] sm:$0xff] %v11755_v27 }
 0x469   : > { %8529 = vmatmul.mubr.msk.bf16.gmra.mxu1 %vm14900_vm14, %v2938_v19  ;;  %8548 = vmatprep.subr.bf16.mxu0 %v3251_v44  ;;  %v11757_v8 = vpop.f32.mrf.mxu1  ;;  %vm14948_vm14 = vnez %v14828_v57 }
 0x46a   : > { %8532 = vmatprep.mubr.msk.bf16.mxu1 %vm14901_vm12, %v2940_v51  ;;  %14913 = vst [vmem:[#allocation152_spill] sm:$0xff] %v11757_v8  ;;  %vm14949_vm12 = vnez %v14832_v29 }
 0x46b   : > { %v11759_v61 = vpop.f32.mrf.mxu1 }
 0x46c   : > { %8549 = vmatpush3.bf16.msra.mxu0 %v3251_v44  ;;  %14914 = vst [vmem:[#allocation141_spill] sm:$0xff] %v11759_v61 }
 0x46d   : > { %8550 = vmatprep.subr.bf16.mxu0 %v3249_v20  ;;  %v11761_v19 = vpop.f32.mrf.mxu1 }
 0x46e   : > { %14915 = vst [vmem:[#allocation140_spill] sm:$0xff] %v11761_v19 }
 0x46f   : > { %v11763_v51 = vpop.f32.mrf.mxu1 }
 0x470   : > { %8551 = vmatpush3.bf16.msra.mxu0 %v3249_v20  ;;  %14916 = vst [vmem:[#allocation143_spill] sm:$0xff] %v11763_v51 }
 0x471   : > { %8533 = vmatmul.mubr.msk.bf16.gmra.mxu1 %vm14902_vm15, %v2942_v11  ;;  %8928 = vmatprep.subr.msk.bf16.mxu0 %vm14890_vm9, %v11732_v0  ;;  %v11765_v11 = vpop.f32.mrf.mxu1  ;;  %vm14950_vm15 = vnez %v14830_v30  ;;  %vm14951_vm9 = vnez %v14834_v40 }
 0x472   : > { %14917 = vst [vmem:[#allocation162_spill] sm:$0xff] %v11765_v11 }
 0x473   : > { %v11767_v31 = vpop.f32.mrf.mxu1 }
 0x474   : > { %14918 = vst [vmem:[#allocation163_spill] sm:$0xff] %v11767_v31 }
 0x4c6   : > { %v11769_v12 = vpop.f32.mrf.mxu1 }
 0x4c7   : > { %14919 = vst [vmem:[#allocation164_spill] sm:$0xff] %v11769_v12  ;;  %v14944_v12 = vld [vmem:[#allocation31_spill] sm:$0xff] }
 0x4c8   : > { %v11771_v54 = vpop.f32.mrf.mxu1 }
 0x4c9   : > { %14920 = vst [vmem:[#allocation165_spill] sm:$0xff] %v11771_v54  ;;  %v14946_v54 = vld [vmem:[#allocation35_spill] sm:$0xff] }
 0x4ca   : > { %v11773_v43 = vpop.f32.mrf.mxu1  ;;  %vm14947_vm13 = vnez %v14946_v54 }
 0x4cb   : > { %14921 = vst [vmem:[#allocation166_spill] sm:$0xff] %v11773_v43 }
 0x4cc   : > { %v11775_v50 = vpop.f32.mrf.mxu1 }
 0x4cd   : > { %14922 = vst [vmem:[#allocation167_spill] sm:$0xff] %v11775_v50 }
 0x4ce   : > { %v11777_v33 = vpop.f32.mrf.mxu1 }
 0x4cf   : > { %14923 = vst [vmem:[#allocation168_spill] sm:$0xff] %v11777_v33 }
 0x4d0   : > { %v11779_v44 = vpop.f32.mrf.mxu1 }
 0x4d1   : > { %14924 = vst [vmem:[#allocation169_spill] sm:$0xff] %v11779_v44  ;;  %v14942_v44 = vld [vmem:[#allocation28_spill] sm:$0xff] }
 0x4d2   : > { %v11781_v20 = vpop.f32.mrf.mxu1 }
 0x4d3   : > { %14925 = vst [vmem:[#allocation170_spill] sm:$0xff] %v11781_v20 }
 0x4d4   : > { %v11783_v19 = vpop.f32.mrf.mxu1 }
 0x4d5   : > { %14926 = vst [vmem:[#allocation171_spill] sm:$0xff] %v11783_v19  ;;  %v14943_v19 = vld [vmem:[#allocation36_spill] sm:$0xff] }
 0x4dc   : > { %v11785_v51 = vpop.f32.mrf.mxu1 }
 0x4dd   : > { %14927 = vst [vmem:[#allocation172_spill] sm:$0xff] %v11785_v51 }
 0x4de   : > { %v11787_v11 = vpop.f32.mrf.mxu1 }
 0x4df   : > { %14928 = vst [vmem:[#allocation173_spill] sm:$0xff] %v11787_v11 }
 0x4e0   : > { %v11789_v31 = vpop.f32.mrf.mxu1 }
 0x4e1   : > { %14929 = vst [vmem:[#allocation174_spill] sm:$0xff] %v11789_v31 }
 0x4e2   : > { %v11791_v5 = vpop.f32.mrf.mxu1 }
 0x4e3   : > { %14930 = vst [vmem:[#allocation175_spill] sm:$0xff] %v11791_v5 }
 0x511   : > { %v11793_v8 = vpop.f32.mrf.mxu1 }
 0x512   : > { %14931 = vst [vmem:[#allocation176_spill] sm:$0xff] %v11793_v8 }
 0x513   : > { %v11795_v61 = vpop.f32.mrf.mxu1 }
 0x514   : > { %14932 = vst [vmem:[#allocation177_spill] sm:$0xff] %v11795_v61 }
 0x515   : > { %v11797_v27 = vpop.f32.mrf.mxu1 }
 0x516   : > { %14933 = vst [vmem:[#allocation178_spill] sm:$0xff] %v11797_v27 }
 0x517   : > { %v11799_v16 = vpop.f32.mrf.mxu1 }
 0x518   : > { %14934 = vst [vmem:[#allocation179_spill] sm:$0xff] %v11799_v16 }
 0x519   : > { %v8522_v59 = vpop.f32.mrf.mxu1 }
 0x51a   : > { %v11803_v32 = vsel %vm10136_vm2, %v8522_v59, -inf }
 0x51b   : > { %3124 = vmax.xlane.f32.xlu0 %v11803_v32  ;;  %v3041_v4 = vpop.f32.mrf.mxu1 }
 0x51c   : > { %v11808_v35 = vsel %vm10113_vm0, %v3041_v4, -inf }
 0x51d   : > { %v8523_v52 = vpop.f32.mrf.mxu1 }
 0x51e   : > { %v11818_v51 = vsel %vm10140_vm3, %v8523_v52, -inf }
 0x51f   : > { %3120 = vmax.xlane.f32.xlu0 %v11808_v35  ;;  %v3044_v8 = vpop.f32.mrf.mxu1 }
 0x520   : > { %v11813_v27 = vsel %vm10132_vm1, %v3044_v8, -inf }
 0x521   : > { %3122 = vmax.xlane.f32.xlu1 %v11813_v27  ;;  %v8526_v16 = vpop.f32.mrf.mxu1 }
 0x522   : > { %v11828_v8 = vsel %vm10167_vm6, %v8526_v16, -inf }
 0x523   : > { %3126 = vmax.xlane.f32.xlu0 %v11818_v51  ;;  %v3057_v31 = vpop.f32.mrf.mxu1 }
 0x524   : > { %v11823_v4 = vsel %vm10144_vm4, %v3057_v31, -inf }
 0x525   : > { %3128 = vmax.xlane.f32.xlu1 %v11823_v4  ;;  %v8527_v5 = vpop.f32.mrf.mxu1 }
 0x526   : > { %v11833_v52 = vsel %vm10171_vm7, %v8527_v5, -inf }
 0x527   : > { %3132 = vmax.xlane.f32.xlu0 %v11828_v8  ;;  %v3060_v33 = vpop.f32.mrf.mxu1 }
 0x528   : > { %v11838_v31 = vsel %vm14819_vm5, %v3060_v33, -inf }
 0x529   : > { %3134 = vmax.xlane.f32.xlu1 %v11833_v52  ;;  %v8530_v23 = vpop.f32.mrf.mxu1 }
 0x52a   : > { %v11843_v16 = vsel %vm14821_vm10, %v8530_v23, -inf }
 0x52b   : > { %3130 = vmax.xlane.f32.xlu0 %v11838_v31  ;;  %v3073_v55 = vpop.f32.mrf.mxu1 }
 0x52c   : > { %v11848_v5 = vsel %vm14825_vm8, %v3073_v55, -inf }
 0x52d   : > { %3140 = vmax.xlane.f32.xlu1 %v11843_v16  ;;  %v8531_v43 = vpop.f32.mrf.mxu1 }
 0x52e   : > { %v11853_v33 = vsel %vm14823_vm11, %v8531_v43, -inf }
 0x52f   : > { %v3076_v50 = vpop.f32.mrf.mxu1 }
 0x530   : > { %v11858_v23 = vsel %vm14947_vm13, %v3076_v50, -inf }
 0x531   : > { %3136 = vmax.xlane.f32.xlu1 %v11848_v5  ;;  %v8534_v55 = vpop.f32.mrf.mxu1 }
 0x532   : > { %v11867_v43 = vsel %vm14948_vm14, %v8534_v55, -inf }
 0x533   : > { %v3089_v62 = vpop.f32.mrf.mxu1 }
 0x534   : > { %v11872_v50 = vsel %vm14949_vm12, %v3089_v62, -inf }
 0x535   : > { %3142 = vmax.xlane.f32.xlu1 %v11853_v33  ;;  %v8535_v47 = vpop.f32.mrf.mxu1 }
 0x539   : > { %3138 = vmax.xlane.f32.xlu1 %v11858_v23 }
 0x541   : > { %3421 = vrot.lane.b32.xlu0 %v11070_v18, %s9911_s21  ;;  %v11877_v18 = vsel %vm14950_vm15, %v8535_v47, -inf  ;;  %vm14952_vm15 = vcmask 261120  }
 0x54a   : > { %3423 = vrot.lane.b32.xlu1 %v11130_v45, %s9911_s21  ;;  %v3092_v45 = vpop.f32.mrf.mxu1 }
 0x54b   : > { %v11882_v55 = vsel %vm14951_vm9, %v3092_v45, -inf  ;;  %vm14953_vm9 = vmmov %vm14952_vm15 }
 0x54c   : > { %vm14955_vm11 = vmmov %vm14953_vm9 }
 0x54d   : > { %vm14958_vm14 = vmmov %vm14953_vm9 }
 0x54e   : > { %vm14964_vm13 = vmmov %vm14953_vm9 }
 0x560   : > { %3148 = vmax.xlane.f32.xlu0 %v11867_v43 }
 0x564   : > { %3144 = vmax.xlane.f32.xlu0 %v11872_v50 }
 0x568   : > { %3150 = vmax.xlane.f32.xlu0 %v11877_v18 }
 0x56e   : > { %3146 = vmax.xlane.f32.xlu1 %v11882_v55 }
 0x57e   : > { %3419 = vrot.lane.b32.xlu0 %v11144_v49, %s9911_s21 }
 0x57f   : > { %3417 = vrot.lane.b32.xlu1 %v11078_v48, %s9911_s21 }
 0x582   : > { %3401 = vrot.lane.b32.xlu0 %v11058_v42, %s9911_s21  ;;  %v3430_v42 = vpop.permute.xlu0 %3429 }
 0x583   : > { %3403 = vrot.lane.b32.xlu1 %v11086_v24, %s9911_s21 }
 0x586   : > { %3405 = vrot.lane.b32.xlu0 %v11171_v63, %s9911_s21  ;;  %v11917_v48 = vpop.permute.xlu0 %3425 }
 0x587   : > { %3407 = vrot.lane.b32.xlu1 %v11106_v39, %s9911_s21  ;;  %v3428_v39 = vpop.permute.xlu1 %3427 }
 0x58a   : > { %3409 = vrot.lane.b32.xlu0 %v11187_v22, %s9911_s21 }
 0x58b   : > { %3411 = vrot.lane.b32.xlu1 %v11132_v46, %s9911_s21 }
 0x58e   : > { %3413 = vrot.lane.b32.xlu0 %v11199_v38, %s9911_s21 }
 0x58f   : > { %3415 = vrot.lane.b32.xlu1 %v11146_v28, %s9911_s21 }
 0x592   : > { %3734 = vrot.lane.b32.xlu0 %v11304_v41, %s9911_s21 }
 0x593   : > { %3736 = vrot.lane.b32.xlu1 %v11314_v36, %s9911_s21 }
 0x596   : > { %3728 = vrot.lane.b32.xlu0 %v11289_v56, %s9911_s21 }
 0x597   : > { %3732 = vrot.lane.b32.xlu1 %v11297_v14, %s9911_s21 }
 0x59b   : > { %3730 = vrot.lane.b32.xlu1 %v11293_v10, %s9911_s21 }
 0x59f   : > { %3726 = vrot.lane.b32.xlu1 %v14859_v17, %s9911_s21 }
 0x5a4   : > { %v3125_v24 = vpop.xlane.xlu0 %3124 }
 0x5a5   : > { %v3154_v38 = vsub.f32 %v11803_v32, %v3125_v24 }
 0x5a8   : > { %v3121_v46 = vpop.xlane.xlu0 %3120 }
 0x5a9   : > { %v3152_v28 = vsub.f32 %v11808_v35, %v3121_v46 }
 0x5aa   : > { %v3123_v49 = vpop.xlane.xlu1 %3122 }
 0x5ab   : > { %v3153_v63 = vsub.f32 %v11813_v27, %v3123_v49 }
 0x5ac   : > { %v3127_v22 = vpop.xlane.xlu0 %3126 }
 0x5ad   : > { %v3168_v56 = vpack.c.bf16 %v3153_v63, %v3152_v28  ;;  %v3155_v14 = vsub.f32 %v11818_v51, %v3127_v22 }
 0x5ae   : > { %v3129_v10 = vpop.xlane.xlu1 %3128 }
 0x5af   : > { %v3177_v41 = vmul.bf16 1069105081, %v3168_v56  ;;  %v3169_v36 = vpack.c.bf16 %v3155_v14, %v3154_v38  ;;  %v3156_v27 = vsub.f32 %v11823_v4, %v3129_v10 }
 0x5b0   : > { %v3133_v47 = vpop.xlane.xlu0 %3132 }
 0x5b1   : > { %9439 = vpow.bf16 %v3177_v41  ;;  %v3180_v62 = vmul.bf16 1069105081, %v3169_v36  ;;  %v3158_v45 = vsub.f32 %v11828_v8, %v3133_v47 }
 0x5b2   : > { %v3135_v17 = vpop.xlane.xlu1 %3134 }
 0x5b3   : > { %9441 = vpow.bf16 %v3180_v62  ;;  %v3159_v35 = vsub.f32 %v11833_v52, %v3135_v17  ;;  %v3476_v17 = vsel %vm14955_vm11, %v3430_v42, 0  ;;  %vm14961_vm11 = vmmov %vm14953_vm9 }
 0x5b4   : > { %v3131_v46 = vpop.xlane.xlu0 %3130 }
 0x5b5   : > { %v3171_v49 = vpack.c.bf16 %v3159_v35, %v3158_v45  ;;  %v3157_v32 = vsub.f32 %v11838_v31, %v3131_v46  ;;  %v3479_v31 = vsel %vm14952_vm15, %v11732_v0, 0  ;;  %vm14957_vm15 = vmmov %vm14953_vm9 }
 0x5b6   : > { %v3141_v24 = vpop.xlane.xlu1 %3140 }
 0x5b7   : > { %v3170_v51 = vpack.c.bf16 %v3157_v32, %v3156_v27  ;;  %v3186_v28 = vmul.bf16 1069105081, %v3171_v49  ;;  %v3162_v52 = vsub.f32 %v11843_v16, %v3141_v24 }
 0x5b8   : > { %v3422_v46 = vpop.permute.xlu0 %3421 }
 0x5b9   : > { %v3183_v63 = vmul.bf16 1069105081, %v3170_v51  ;;  %v3464_v49 = vsel %vm14964_vm13, %v3422_v46, 0  ;;  %vm14967_vm13 = vmmov %vm14953_vm9 }
 0x5ba   : > { %v3137_v22 = vpop.xlane.xlu1 %3136 }
 0x5bb   : > { %9443 = vpow.bf16 %v3183_v63  ;;  %v3160_v41 = vsub.f32 %v11848_v5, %v3137_v22  ;;  %v3473_v5 = vsel %vm14958_vm14, %v3428_v39, 0  ;;  %vm14963_vm14 = vmmov %vm14953_vm9 }
 0x5bc   : > { %9445 = vpow.bf16 %v3186_v28 }
 0x5be   : > { %v3143_v38 = vpop.xlane.xlu1 %3142 }
 0x5bf   : > { %v11927_v56 = vpop.eup %9439  ;;  %v3163_v8 = vsub.f32 %v11853_v33, %v3143_v38 }
 0x5c0   : > { %8552 = vmatprep.mubr.bf16.mxu0 %v11927_v56 }
 0x5c1   : > { %v11932_v4 = vpop.eup %9441  ;;  %v3173_v14 = vpack.c.bf16 %v3163_v8, %v3162_v52 }
 0x5c2   : > { %8553 = vmatmul.mubr.bf16.vlgmr.msra.gmra.mxu0 %v11932_v4  ;;  %v3139_v10 = vpop.xlane.xlu1 %3138 }
 0x5c3   : > { %8569 = vmatpush3.bf16.xpose.msra.mxu0 %v3479_v31  ;;  %v3161_v36 = vsub.f32 %v11858_v23, %v3139_v10  ;;  %v3192_v16 = vmul.bf16 1069105081, %v3173_v14 }
 0x5c4   : > { %8929 = vmatprep.subr.msk.bf16.mxu0 %vm14953_vm9, %v3430_v42  ;;  %v3470_v42 = vsel %vm14961_vm11, %v11917_v48, 0  ;;  %vm14965_vm11 = vmmov %vm14953_vm9 }
 0x5c5   : > { %v3172_v33 = vpack.c.bf16 %v3161_v36, %v3160_v41 }
 0x5c6   : > { %v3424_v35 = vpop.permute.xlu1 %3423 }
 0x5c7   : > { %v3189_v47 = vmul.bf16 1069105081, %v3172_v33 }
 0x5c9   : > { %v11940_v62 = vpop.eup %9443  ;;  %9447 = vpow.bf16 %v3189_v47 }
 0x5ca   : > { %14954 = vst [vmem:[#allocation180_spill] sm:$0xff] %v11940_v62  ;;  %9449 = vpow.bf16 %v3192_v16  ;;  %8556 = vmatprep.mubr.bf16.mxu0 %v11940_v62  ;;  %v11944_v0 = vpop.eup %9445  ;;  %v14969_v16 = vld [vmem:[#allocation139_spill] sm:$0xff] }
 0x5cb   : > { %14956 = vst [vmem:[#allocation181_spill] sm:$0xff] %v11944_v0  ;;  %8571 = vmatpush3.bf16.xpose.msra.mxu0 %v3476_v17 }
 0x5cc   : > { %8557 = vmatmul.mubr.bf16.gmra.mxu0 %v11944_v0  ;;  %8930 = vmatprep.subr.msk.bf16.mxu0 %vm14957_vm15, %v3428_v39  ;;  %vm14962_vm15 = vmmov %vm14953_vm9  ;;  %v3467_v39 = vsel %vm14963_vm14, %v3424_v35, 0 }
 0x5cd   : > { %vm14968_vm14 = vmmov %vm14953_vm9 }
 0x5d3   : > { %8573 = vmatpush3.bf16.xpose.msra.mxu0 %v3473_v5 }
 0x5d4   : > { %8931 = vmatprep.subr.msk.bf16.mxu0 %vm14953_vm9, %v11917_v48 }
 0x5d7   : > { %v11951_v23 = vpop.eup %9447 }
 0x5d8   : > { %14959 = vst [vmem:[#allocation182_spill] sm:$0xff] %v11951_v23  ;;  %v11953_v45 = vpop.eup %9449  ;;  %8560 = vmatprep.mubr.bf16.mxu0 %v11951_v23 }
 0x5d9   : > { %14960 = vst [vmem:[#allocation183_spill] sm:$0xff] %v11953_v45  ;;  %8561 = vmatmul.mubr.bf16.gmra.mxu0 %v11953_v45 }
 0x5db   : > { %8575 = vmatpush3.bf16.xpose.msra.mxu0 %v3470_v42 }
 0x5dc   : > { %8932 = vmatprep.subr.msk.bf16.mxu0 %vm14962_vm15, %v3424_v35  ;;  %vm14966_vm15 = vmmov %vm14953_vm9 }
 0x5e3   : > { %8577 = vmatpush3.bf16.xpose.msra.mxu0 %v3467_v39 }
 0x5e4   : > { %8933 = vmatprep.subr.msk.bf16.mxu0 %vm14953_vm9, %v3422_v46 }
 0x5e9   : > { %v3149_v27 = vpop.xlane.xlu0 %3148 }
 0x5ea   : > { %v3166_v48 = vsub.f32 %v11867_v43, %v3149_v27 }
 0x5eb   : > { %8579 = vmatpush3.bf16.xpose.msra.mxu0 %v3464_v49  ;;  %v14974_v49 = vld [vmem:[#allocation138_spill] sm:$0xff] }
 0x5ed   : > { %v3145_v32 = vpop.xlane.xlu0 %3144 }
 0x5ee   : > { %v3164_v8 = vsub.f32 %v11872_v50, %v3145_v32 }
 0x5f1   : > { %v3151_v24 = vpop.xlane.xlu0 %3150 }
 0x5f2   : > { %v3167_v51 = vsub.f32 %v11877_v18, %v3151_v24  ;;  %v14975_v24 = vld [vmem:[#allocation137_spill] sm:$0xff] }
 0x5f4   : > { %v3175_v22 = vpack.c.bf16 %v3167_v51, %v3166_v48  ;;  %v14978_v48 = vld [vmem:[#allocation136_spill] sm:$0xff] }
 0x5f5   : > { %v3420_v28 = vpop.permute.xlu0 %3419 }
 0x5f6   : > { %8934 = vmatprep.subr.msk.bf16.mxu0 %vm14965_vm11, %v3420_v28  ;;  %v3461_v63 = vsel %vm14966_vm15, %v3420_v28, 0  ;;  %v3198_v10 = vmul.bf16 1069105081, %v3175_v22  ;;  %vm14972_vm11 = vmmov %vm14953_vm9  ;;  %v14981_v22 = vld [vmem:[#allocation134_spill] sm:$0xff] }
 0x5f7   : > { %8581 = vmatpush3.bf16.xpose.msra.mxu0 %v3461_v63  ;;  %v3147_v38 = vpop.xlane.xlu1 %3146  ;;  %vm14973_vm15 = vmmov %vm14953_vm9  ;;  %v14979_v63 = vld [vmem:[#allocation135_spill] sm:$0xff] }
 0x5f8   : > { %v3165_v52 = vsub.f32 %v11882_v55, %v3147_v38  ;;  %v14982_v38 = vld [vmem:[#allocation133_spill] sm:$0xff] }
 0x5f9   : > { %v3402_v14 = vpop.permute.xlu0 %3401 }
 0x5fa   : > { %v3174_v31 = vpack.c.bf16 %v3165_v52, %v3164_v8  ;;  %v14984_v8 = vld [vmem:[#allocation132_spill] sm:$0xff] }
 0x5fb   : > { %v3418_v41 = vpop.permute.xlu1 %3417 }
 0x5fc   : > { %v3195_v36 = vmul.bf16 1069105081, %v3174_v31  ;;  %8935 = vmatprep.subr.msk.bf16.mxu0 %vm14967_vm13, %v3418_v41  ;;  %v3458_v43 = vsel %vm14968_vm14, %v3418_v41, 0  ;;  %vm14976_vm13 = vmmov %vm14953_vm9 }
 0x5fd   : > { %v3406_v18 = vpop.permute.xlu0 %3405  ;;  %vm14977_vm14 = vmmov %vm14953_vm9 }
 0x5fe   : > { %9451 = vpow.bf16 %v3195_v36 }
 0x5ff   : > { %9453 = vpow.bf16 %v3198_v10  ;;  %8583 = vmatpush3.bf16.xpose.msra.mxu0 %v3458_v43  ;;  %v3404_v33 = vpop.permute.xlu1 %3403 }
 0x600   : > { %8664 = vmatprep.subr.bf16.mxu0 %v14969_v16 }
 0x601   : > { %v3410_v50 = vpop.permute.xlu0 %3409 }
 0x603   : > { %v3408_v47 = vpop.permute.xlu1 %3407 }
 0x605   : > { %v3414_v55 = vpop.permute.xlu0 %3413 }
 0x607   : > { %v3412_v17 = vpop.permute.xlu1 %3411 }
 0x609   : > { %v3735_v46 = vpop.permute.xlu0 %3734 }
 0x60b   : > { %v3416_v5 = vpop.permute.xlu1 %3415 }
 0x60c   : > { %v11972_v42 = vpop.eup %9451 }
 0x60d   : > { %14970 = vst [vmem:[#allocation139_spill] sm:$0xff] %v11972_v42  ;;  %v11974_v35 = vpop.eup %9453  ;;  %8564 = vmatprep.mubr.bf16.mxu0 %v11972_v42  ;;  %v3729_v51 = vpop.permute.xlu0 %3728 }
 0x60e   : > { %14971 = vst [vmem:[#allocation184_spill] sm:$0xff] %v11974_v35  ;;  %8565 = vmatmul.mubr.bf16.gmra.mxu0 %v11974_v35  ;;  %v15010_v35 = vld [vmem:[#allocation126_spill] sm:$0xff] }
 0x60f   : > { %8584 = vmatprep.mubr.msk.bf16.mxu0 %vm14953_vm9, %v3402_v14  ;;  %v3737_v39 = vpop.permute.xlu1 %3736 }
 0x610   : > { %8600 = vmatprep.subr.bf16.mxu1 %v3737_v39 }
 0x611   : > { %8601 = vmatpush3.bf16.msra.mxu1 %v3737_v39 }
 0x612   : > { %8602 = vmatprep.subr.bf16.mxu1 %v3735_v46 }
 0x613   : > { %v3733_v27 = vpop.permute.xlu1 %3732 }
 0x615   : > { %8603 = vmatpush3.bf16.msra.mxu1 %v3735_v46 }
 0x616   : > { %8585 = vmatmul.mubr.msk.bf16.vlgmr.msra.gmra.mxu0 %vm14972_vm11, %v3404_v33  ;;  %8604 = vmatprep.subr.bf16.mxu1 %v3733_v27  ;;  %vm14980_vm11 = vmmov %vm14953_vm9 }
 0x617   : > { %8665 = vmatpush3.bf16.msra.mxu0 %v14969_v16  ;;  %8588 = vmatprep.mubr.msk.bf16.mxu0 %vm14973_vm15, %v3406_v18  ;;  %v3731_v32 = vpop.permute.xlu1 %3730  ;;  %vm14983_vm15 = vmmov %vm14953_vm9 }
 0x618   : > { %8666 = vmatprep.subr.bf16.mxu0 %v14974_v49 }
 0x619   : > { %8605 = vmatpush3.bf16.msra.mxu1 %v3733_v27 }
 0x61a   : > { %8606 = vmatprep.subr.bf16.mxu1 %v3731_v32 }
 0x61b   : > { %8667 = vmatpush3.bf16.msra.mxu0 %v14974_v49  ;;  %v3727_v28 = vpop.permute.xlu1 %3726 }
 0x61c   : > { %8668 = vmatprep.subr.bf16.mxu0 %v14975_v24 }
 0x61d   : > { %8607 = vmatpush3.bf16.msra.mxu1 %v3731_v32 }
 0x61e   : > { %8589 = vmatmul.mubr.msk.bf16.gmra.mxu0 %vm14976_vm13, %v3408_v47  ;;  %8608 = vmatprep.subr.bf16.mxu1 %v3729_v51  ;;  %vm15001_vm13 = vnez %v14946_v54 }
 0x61f   : > { %8669 = vmatpush3.bf16.msra.mxu0 %v14975_v24  ;;  %8592 = vmatprep.mubr.msk.bf16.mxu0 %vm14977_vm14, %v3410_v50  ;;  %vm15002_vm14 = vnez %v14828_v57 }
 0x620   : > { %8670 = vmatprep.subr.bf16.mxu0 %v14978_v48 }
 0x621   : > { %8609 = vmatpush3.bf16.msra.mxu1 %v3729_v51 }
 0x622   : > { %8610 = vmatprep.subr.bf16.mxu1 %v3727_v28 }
 0x623   : > { %8671 = vmatpush3.bf16.msra.mxu0 %v14978_v48 }
 0x624   : > { %8672 = vmatprep.subr.bf16.mxu0 %v14979_v63 }
 0x625   : > { %8611 = vmatpush3.bf16.msra.mxu1 %v3727_v28 }
 0x626   : > { %8593 = vmatmul.mubr.msk.bf16.gmra.mxu0 %vm14953_vm9, %v3412_v17  ;;  %vm15003_vm9 = vnez %v14945_v15 }
 0x627   : > { %8673 = vmatpush3.bf16.msra.mxu0 %v14979_v63  ;;  %8596 = vmatprep.mubr.msk.bf16.mxu0 %vm14980_vm11, %v3414_v55  ;;  %vm15004_vm11 = vnez %v14834_v40 }
 0x628   : > { %8674 = vmatprep.subr.bf16.mxu0 %v14981_v22 }
 0x62b   : > { %8675 = vmatpush3.bf16.msra.mxu0 %v14981_v22 }
 0x62c   : > { %8676 = vmatprep.subr.bf16.mxu0 %v14982_v38 }
 0x62e   : > { %8597 = vmatmul.mubr.msk.bf16.gmra.mxu0 %vm14983_vm15, %v3416_v5  ;;  %vm15005_vm15 = vnez %v14830_v30 }
 0x62f   : > { %8677 = vmatpush3.bf16.msra.mxu0 %v14982_v38 }
 0x630   : > { %8678 = vmatprep.subr.bf16.mxu0 %v14984_v8 }
 0x633   : > { %8679 = vmatpush3.bf16.msra.mxu0 %v14984_v8 }
 0x682   : > { %v12001_v52 = vpop.f32.mrf.mxu0 }
 0x683   : > { %14985 = vst [vmem:[#allocation138_spill] sm:$0xff] %v12001_v52 }
 0x684   : > { %v12003_v14 = vpop.f32.mrf.mxu0 }
 0x685   : > { %14986 = vst [vmem:[#allocation137_spill] sm:$0xff] %v12003_v14 }
 0x686   : > { %v12005_v31 = vpop.f32.mrf.mxu0 }
 0x687   : > { %14987 = vst [vmem:[#allocation136_spill] sm:$0xff] %v12005_v31 }
 0x688   : > { %v12007_v10 = vpop.f32.mrf.mxu0 }
 0x689   : > { %14988 = vst [vmem:[#allocation135_spill] sm:$0xff] %v12007_v10  ;;  %v15007_v10 = vld [vmem:[#allocation128_spill] sm:$0xff] }
 0x68c   : > { %v12009_v41 = vpop.f32.mrf.mxu0 }
 0x68d   : > { %14989 = vst [vmem:[#allocation134_spill] sm:$0xff] %v12009_v41 }
 0x68e   : > { %v12011_v36 = vpop.f32.mrf.mxu0 }
 0x68f   : > { %14990 = vst [vmem:[#allocation133_spill] sm:$0xff] %v12011_v36 }
 0x690   : > { %v12013_v43 = vpop.f32.mrf.mxu0 }
 0x691   : > { %14991 = vst [vmem:[#allocation132_spill] sm:$0xff] %v12013_v43 }
 0x692   : > { %v12015_v18 = vpop.f32.mrf.mxu0 }
 0x693   : > { %14992 = vst [vmem:[#allocation185_spill] sm:$0xff] %v12015_v18 }
 0x699   : > { %v12017_v33 = vpop.f32.mrf.mxu0 }
 0x69a   : > { %14993 = vst [vmem:[#allocation186_spill] sm:$0xff] %v12017_v33 }
 0x69b   : > { %v12019_v47 = vpop.f32.mrf.mxu0 }
 0x69c   : > { %14994 = vst [vmem:[#allocation187_spill] sm:$0xff] %v12019_v47 }
 0x69d   : > { %v12021_v50 = vpop.f32.mrf.mxu0 }
 0x69e   : > { %14995 = vst [vmem:[#allocation188_spill] sm:$0xff] %v12021_v50 }
 0x69f   : > { %v12023_v17 = vpop.f32.mrf.mxu0 }
 0x6a0   : > { %14996 = vst [vmem:[#allocation189_spill] sm:$0xff] %v12023_v17 }
 0x6ce   : > { %v12025_v55 = vpop.f32.mrf.mxu0 }
 0x6cf   : > { %14997 = vst [vmem:[#allocation190_spill] sm:$0xff] %v12025_v55 }
 0x6d0   : > { %v12027_v5 = vpop.f32.mrf.mxu0 }
 0x6d1   : > { %14998 = vst [vmem:[#allocation191_spill] sm:$0xff] %v12027_v5 }
 0x6d2   : > { %v12029_v39 = vpop.f32.mrf.mxu0 }
 0x6d3   : > { %14999 = vst [vmem:[#allocation192_spill] sm:$0xff] %v12029_v39 }
 0x6d4   : > { %v12031_v46 = vpop.f32.mrf.mxu0 }
 0x6d5   : > { %15000 = vst [vmem:[#allocation193_spill] sm:$0xff] %v12031_v46 }
 0x6d6   : > { %v8586_v27 = vpop.f32.mrf.mxu0 }
 0x6d7   : > { %v12035_v32 = vsel %vm10136_vm2, %v8586_v27, -inf }
 0x6d8   : > { %3598 = vmax.xlane.f32.xlu0 %v12035_v32  ;;  %v3515_v51 = vpop.f32.mrf.mxu0 }
 0x6d9   : > { %v3578_v33 = vsel %vm10113_vm0, %v3515_v51, -inf }
 0x6da   : > { %v8587_v28 = vpop.f32.mrf.mxu0 }
 0x6db   : > { %v3581_v39 = vsel %vm10140_vm3, %v8587_v28, -inf }
 0x6dc   : > { %3594 = vmax.xlane.f32.xlu0 %v3578_v33  ;;  %v3518_v55 = vpop.f32.mrf.mxu0 }
 0x6dd   : > { %v3579_v5 = vsel %vm10132_vm1, %v3518_v55, -inf }
 0x6de   : > { %3596 = vmax.xlane.f32.xlu1 %v3579_v5  ;;  %v8590_v27 = vpop.f32.mrf.mxu0 }
 0x6e0   : > { %3600 = vmax.xlane.f32.xlu0 %v3581_v39  ;;  %v3531_v46 = vpop.f32.mrf.mxu0 }
 0x6e2   : > { %v8591_v50 = vpop.f32.mrf.mxu0 }
 0x6e4   : > { %v3534_v51 = vpop.f32.mrf.mxu0 }
 0x6e5   : > { %v12050_v55 = vsel %vm14819_vm5, %v3534_v51, -inf  ;;  %v12065_v51 = vsel %vm10167_vm6, %v8590_v27, -inf }
 0x6e6   : > { %v8594_v47 = vpop.f32.mrf.mxu0 }
 0x6e7   : > { %v12070_v36 = vsel %vm14821_vm10, %v8594_v47, -inf }
 0x6e8   : > { %v3547_v17 = vpop.f32.mrf.mxu0 }
 0x6ea   : > { %v8595_v41 = vpop.f32.mrf.mxu0 }
 0x6ec   : > { %v3550_v43 = vpop.f32.mrf.mxu0 }
 0x6ed   : > { %v12085_v27 = vsel %vm15001_vm13, %v3550_v43, -inf }
 0x6ee   : > { %v8598_v28 = vpop.f32.mrf.mxu0 }
 0x6ef   : > { %3722 = vrot.lane.b32.xlu1 %v14861_v53, %s9911_s21  ;;  %v12055_v53 = vsel %vm10144_vm4, %v3531_v46, -inf  ;;  %v12090_v52 = vsel %vm15002_vm14, %v8598_v28, -inf  ;;  %v15006_v28 = vld [vmem:[#allocation127_spill] sm:$0xff] }
 0x6f0   : > { %v3563_v46 = vpop.f32.mrf.mxu0  ;;  %v1638_v14 = vadd.f32 %v15007_v10, %v15006_v28 }
 0x6f1   : > { %v12080_v18 = vsel %vm14949_vm12, %v3563_v46, -inf }
 0x6f2   : > { %v8599_v47 = vpop.f32.mrf.mxu0  ;;  %v12113_v25 = vpack.c.bf16 %v1638_v14, %v15010_v35 }
 0x6f3   : > { %v12105_v31 = vsel %vm15005_vm15, %v8599_v47, -inf }
 0x6f4   : > { %v3566_v46 = vpop.f32.mrf.mxu0 }
 0x6f5   : > { %v12100_v43 = vsel %vm15004_vm11, %v3566_v46, -inf  ;;  %v15011_v46 = vld [vmem:[#allocation122_spill] sm:$0xff]  ;;  %vm15012_vm11 = vcmask 261120  }
 0x6f6   : > { %3724 = vrot.lane.b32.xlu0 %v11275_v37, %s9911_s21  ;;  %v12060_v37 = vsel %vm14825_vm8, %v3547_v17, -inf  ;;  %v12075_v17 = vsel %vm10171_vm7, %v8591_v50, -inf  ;;  %v12095_v50 = vsel %vm15003_vm9, %v8595_v41, -inf  ;;  %v15008_v41 = vld [vmem:[#allocation123_spill] sm:$0xff]  ;;  %vm15013_vm15 = vmmov %vm15012_vm11 }
 0x6f7   : > { %v1628_v60 = vadd.f32 %v15009_v58, %v15008_v41  ;;  %vm15014_vm12 = vmmov %vm15012_vm11 }
 0x6f8   : > { %vm15018_vm9 = vmmov %vm15012_vm11 }
 0x6f9   : > { %v12118_v42 = vpack.c.bf16 %v1628_v60, %v15011_v46  ;;  %v15020_v46 = vld [vmem:[#allocation116_spill] sm:$0xff]  ;;  %vm15056_vm8 = vmmov %vm15018_vm9 }
 0x6fa   : > { %vm15058_vm10 = vmmov %vm15056_vm8 }
 0x6fb   : > { %vm15060_vm5 = vmmov %vm15056_vm8 }
 0x713   : > { %3604 = vmax.xlane.f32.xlu1 %v12050_v55 }
 0x715   : > { %3602 = vmax.xlane.f32.xlu0 %v12055_v53 }
 0x717   : > { %3610 = vmax.xlane.f32.xlu1 %v12060_v37 }
 0x719   : > { %3606 = vmax.xlane.f32.xlu0 %v12065_v51 }
 0x71b   : > { %3614 = vmax.xlane.f32.xlu1 %v12070_v36 }
 0x71d   : > { %3608 = vmax.xlane.f32.xlu0 %v12075_v17 }
 0x71f   : > { %3618 = vmax.xlane.f32.xlu1 %v12080_v18 }
 0x721   : > { %3612 = vmax.xlane.f32.xlu0 %v12085_v27 }
 0x723   : > { %3622 = vmax.xlane.f32.xlu1 %v12090_v52 }
 0x725   : > { %3616 = vmax.xlane.f32.xlu0 %v12095_v50 }
 0x729   : > { %3620 = vmax.xlane.f32.xlu0 %v12100_v43 }
 0x72d   : > { %3624 = vmax.xlane.f32.xlu0 %v12105_v31 }
 0x734   : > { %4581 = vrot.lane.b32.xlu1 %v12113_v25, %s9909_s19 }
 0x738   : > { %4579 = vrot.lane.b32.xlu1 %v12118_v42, %s9909_s19 }
 0x761   : > { %v3599_v47 = vpop.xlane.xlu0 %3598 }
 0x762   : > { %v3628_v58 = vsub.f32 %v12035_v32, %v3599_v47  ;;  %v15019_v32 = vld [vmem:[#allocation115_spill] sm:$0xff] }
 0x763   : > { %v1608_v47 = vadd.f32 %v15020_v46, %v15019_v32  ;;  %v15030_v46 = vld [vmem:[#allocation106_spill] sm:$0xff] }
 0x765   : > { %v3595_v1 = vpop.xlane.xlu0 %3594 }
 0x766   : > { %v3626_v13 = vsub.f32 %v3578_v33, %v3595_v1  ;;  %v15017_v33 = vld [vmem:[#allocation118_spill] sm:$0xff] }
 0x767   : > { %v3597_v45 = vpop.xlane.xlu1 %3596 }
 0x768   : > { %v3627_v10 = vsub.f32 %v3579_v5, %v3597_v45 }
 0x769   : > { %v3601_v28 = vpop.xlane.xlu0 %3600 }
 0x76a   : > { %v3642_v41 = vpack.c.bf16 %v3627_v10, %v3626_v13  ;;  %v3629_v35 = vsub.f32 %v3581_v39, %v3601_v28  ;;  %v4160_v39 = vsel %vm15012_vm11, %v12118_v42, 0  ;;  %v15021_v10 = vld [vmem:[#allocation114_spill] sm:$0xff] }
 0x76b   : > { %v3723_v60 = vpop.permute.xlu1 %3722  ;;  %v12147_v28 = vpack.c.bf16 %v1608_v47, %v15021_v10 }
 0x76c   : > { %v3651_v14 = vmul.bf16 1069105081, %v3642_v41  ;;  %v3643_v23 = vpack.c.bf16 %v3629_v35, %v3628_v58  ;;  %v15024_v41 = vld [vmem:[#allocation111_spill] sm:$0xff]  ;;  %v15025_v35 = vld [vmem:[#allocation112_spill] sm:$0xff] }
 0x76d   : > { %v3725_v2 = vpop.permute.xlu0 %3724 }
 0x76e   : > { %9455 = vpow.bf16 %v3651_v14  ;;  %v3654_v0 = vmul.bf16 1069105081, %v3643_v23  ;;  %8612 = vmatprep.subr.bf16.mxu1 %v3725_v2  ;;  %v4163_v23 = vsel %vm15013_vm15, %v12113_v25, 0  ;;  %vm15023_vm15 = vmmov %vm15018_vm9  ;;  %v1598_v14 = vadd.f32 %v15025_v35, %v15024_v41 }
 0x76f   : > { %8613 = vmatpush3.bf16.msra.mxu1 %v3725_v2  ;;  %v15015_v2 = vld [vmem:[#allocation119_spill] sm:$0xff] }
 0x770   : > { %9457 = vpow.bf16 %v3654_v0  ;;  %8614 = vmatprep.subr.bf16.mxu1 %v3723_v60  ;;  %v15016_v0 = vld [vmem:[#allocation120_spill] sm:$0xff] }
 0x771   : > { %v1618_v45 = vadd.f32 %v15016_v0, %v15015_v2  ;;  %v4154_v2 = vsel %vm15018_vm9, %v12147_v28, 0  ;;  %v15028_v0 = vld [vmem:[#allocation107_spill] sm:$0xff] }
 0x773   : > { %8615 = vmatpush3.bf16.msra.mxu1 %v3723_v60  ;;  %v12138_v5 = vpack.c.bf16 %v1618_v45, %v15017_v33  ;;  %v15026_v60 = vld [vmem:[#allocation110_spill] sm:$0xff]  ;;  %v15029_v45 = vld [vmem:[#allocation108_spill] sm:$0xff] }
 0x774   : > { %8936 = vmatprep.subr.msk.bf16.mxu1 %vm15012_vm11, %v12113_v25  ;;  %vm15027_vm11 = vmmov %vm15018_vm9  ;;  %v1588_v33 = vadd.f32 %v15029_v45, %v15028_v0  ;;  %v15034_v0 = vld [vmem:[#allocation104_spill] sm:$0xff] }
 0x776   : > { %v12165_v47 = vpack.c.bf16 %v1588_v33, %v15030_v46 }
 0x77c   : > { %v12125_v1 = vpop.eup %9455 }
 0x77d   : > { %8616 = vmatprep.mubr.bf16.mxu1 %v12125_v1 }
 0x77e   : > { %v12128_v13 = vpop.eup %9457 }
 0x77f   : > { %8617 = vmatmul.mubr.bf16.vlgmr.msra.gmra.mxu1 %v12128_v13 }
 0x780   : > { %8633 = vmatpush3.bf16.xpose.msra.mxu1 %v4163_v23  ;;  %v12156_v23 = vpack.c.bf16 %v1598_v14, %v15026_v60 }
 0x781   : > { %8937 = vmatprep.subr.msk.bf16.mxu1 %vm15014_vm12, %v12118_v42  ;;  %vm15022_vm12 = vmmov %vm15018_vm9 }
 0x782   : > { %v4157_v58 = vsel %vm15022_vm12, %v12138_v5, 0  ;;  %vm15031_vm12 = vmmov %vm15018_vm9 }
 0x783   : > { %v4151_v41 = vsel %vm15031_vm12, %v12156_v23, 0  ;;  %vm15040_vm12 = vmmov %vm15018_vm9 }
 0x788   : > { %8635 = vmatpush3.bf16.xpose.msra.mxu1 %v4160_v39 }
 0x789   : > { %8938 = vmatprep.subr.msk.bf16.mxu1 %vm15018_vm9, %v12138_v5 }
 0x790   : > { %8637 = vmatpush3.bf16.xpose.msra.mxu1 %v4157_v58 }
 0x791   : > { %8939 = vmatprep.subr.msk.bf16.mxu1 %vm15023_vm15, %v12147_v28  ;;  %vm15032_vm15 = vmmov %vm15018_vm9 }
 0x798   : > { %8639 = vmatpush3.bf16.xpose.msra.mxu1 %v4154_v2  ;;  %v15033_v2 = vld [vmem:[#allocation103_spill] sm:$0xff] }
 0x799   : > { %8940 = vmatprep.subr.msk.bf16.mxu1 %vm15027_vm11, %v12156_v23  ;;  %v1578_v45 = vadd.f32 %v15034_v0, %v15033_v2  ;;  %vm15036_vm11 = vmmov %vm15018_vm9  ;;  %v15038_v2 = vld [vmem:[#allocation100_spill] sm:$0xff] }
 0x79c   : > { %v3605_v39 = vpop.xlane.xlu1 %3604 }
 0x79d   : > { %v3631_v10 = vsub.f32 %v12050_v55, %v3605_v39  ;;  %v15035_v55 = vld [vmem:[#allocation102_spill] sm:$0xff] }
 0x79e   : > { %v3603_v32 = vpop.xlane.xlu0 %3602  ;;  %v12176_v39 = vpack.c.bf16 %v1578_v45, %v15035_v55 }
 0x79f   : > { %v3630_v58 = vsub.f32 %v12055_v53, %v3603_v32 }
 0x7a0   : > { %8641 = vmatpush3.bf16.xpose.msra.mxu1 %v4151_v41  ;;  %v3611_v35 = vpop.xlane.xlu1 %3610 }
 0x7a1   : > { %v3644_v14 = vpack.c.bf16 %v3631_v10, %v3630_v58  ;;  %8941 = vmatprep.subr.msk.bf16.mxu1 %vm15032_vm15, %v12165_v47  ;;  %v4148_v10 = vsel %vm15018_vm9, %v12165_v47, 0  ;;  %v3634_v45 = vsub.f32 %v12060_v37, %v3611_v35  ;;  %vm15041_vm15 = vmmov %vm15018_vm9 }
 0x7a2   : > { %v3607_v60 = vpop.xlane.xlu0 %3606 }
 0x7a3   : > { %v3657_v21 = vmul.bf16 1069105081, %v3644_v14  ;;  %v3632_v53 = vsub.f32 %v12065_v51, %v3607_v60  ;;  %v15037_v14 = vld [vmem:[#allocation99_spill] sm:$0xff] }
 0x7a4   : > { %v3615_v33 = vpop.xlane.xlu1 %3614 }
 0x7a5   : > { %9459 = vpow.bf16 %v3657_v21  ;;  %v1568_v21 = vadd.f32 %v15038_v2, %v15037_v14  ;;  %v4145_v14 = vsel %vm15040_vm12, %v12176_v39, 0  ;;  %vm15049_vm12 = vmmov %vm15018_vm9 }
 0x7a6   : > { %v3609_v46 = vpop.xlane.xlu0 %3608 }
 0x7a7   : > { %v3633_v32 = vsub.f32 %v12075_v17, %v3609_v46  ;;  %v15039_v46 = vld [vmem:[#allocation97_spill] sm:$0xff] }
 0x7a8   : > { %8643 = vmatpush3.bf16.xpose.msra.mxu1 %v4148_v10  ;;  %v3619_v58 = vpop.xlane.xlu1 %3618  ;;  %v12189_v62 = vpack.c.bf16 %v1568_v21, %v15039_v46  ;;  %v15050_v46 = vld [vmem:[#allocation105_spill] sm:$0xff] }
 0x7a9   : > { %v3645_v41 = vpack.c.bf16 %v3633_v32, %v3632_v53  ;;  %8942 = vmatprep.subr.msk.bf16.mxu1 %vm15036_vm11, %v12176_v39  ;;  %v3636_v53 = vsub.f32 %v12070_v36, %v3615_v33  ;;  %v3638_v36 = vsub.f32 %v12080_v18, %v3619_v58  ;;  %vm15042_vm11 = vmmov %vm15018_vm9 }
 0x7aa   : > { %v3613_v0 = vpop.xlane.xlu0 %3612 }
 0x7ab   : > { %v3660_v55 = vmul.bf16 1069105081, %v3645_v41  ;;  %v3635_v51 = vsub.f32 %v12085_v27, %v3613_v0 }
 0x7ac   : > { %v3623_v60 = vpop.xlane.xlu1 %3622 }
 0x7ad   : > { %9461 = vpow.bf16 %v3660_v55  ;;  %v3646_v17 = vpack.c.bf16 %v3635_v51, %v3634_v45  ;;  %v4142_v55 = vsel %vm15042_vm11, %v12189_v62, 0  ;;  %vm15054_vm11 = vmmov %vm15018_vm9 }
 0x7ae   : > { %v3617_v10 = vpop.xlane.xlu0 %3616 }
 0x7af   : > { %v3663_v32 = vmul.bf16 1069105081, %v3646_v17  ;;  %v3637_v34 = vsub.f32 %v12095_v50, %v3617_v10  ;;  %v15048_v17 = vld [vmem:[#allocation101_spill] sm:$0xff] }
 0x7b0   : > { %8645 = vmatpush3.bf16.xpose.msra.mxu1 %v4145_v14  ;;  %v12195_v37 = vpop.permute.xlu1 %4581  ;;  %v15052_v10 = vld [vmem:[#allocation109_spill] sm:$0xff] }
 0x7b1   : > { %9463 = vpow.bf16 %v3663_v32  ;;  %v3647_v27 = vpack.c.bf16 %v3637_v34, %v3636_v53  ;;  %8943 = vmatprep.subr.msk.bf16.mxu1 %vm15041_vm15, %v12189_v62  ;;  %8944 = vmatprep.subr.msk.bf16.mxu0 %vm15018_vm9, %v12195_v37  ;;  %v3640_v34 = vsub.f32 %v12090_v52, %v3623_v60  ;;  %vm15051_vm15 = vmmov %vm15018_vm9  ;;  %v15053_v53 = vld [vmem:[#allocation113_spill] sm:$0xff] }
 0x7b2   : > { %v3621_v35 = vpop.xlane.xlu0 %3620  ;;  %v15055_v32 = vld [vmem:[#allocation117_spill] sm:$0xff] }
 0x7b3   : > { %v12201_v41 = vpop.eup %9459  ;;  %v3666_v50 = vmul.bf16 1069105081, %v3647_v27  ;;  %v3639_v33 = vsub.f32 %v12100_v43, %v3621_v35  ;;  %v15057_v14 = vld [vmem:[#allocation121_spill] sm:$0xff] }
 0x7b4   : > { %8620 = vmatprep.mubr.bf16.mxu1 %v12201_v41  ;;  %v15059_v27 = vld [vmem:[#allocation125_spill] sm:$0xff] }
 0x7b5   : > { %9465 = vpow.bf16 %v3666_v50  ;;  %v3648_v2 = vpack.c.bf16 %v3639_v33, %v3638_v36  ;;  %v15061_v35 = vld [vmem:[#allocation129_spill] sm:$0xff] }
 0x7b6   : > { %v3625_v21 = vpop.xlane.xlu0 %3624 }
 0x7b7   : > { %v3669_v0 = vmul.bf16 1069105081, %v3648_v2  ;;  %v3641_v45 = vsub.f32 %v12105_v31, %v3625_v21 }
 0x7b8   : > { %8647 = vmatpush3.bf16.xpose.msra.mxu1 %v4142_v55 }
 0x7b9   : > { %9467 = vpow.bf16 %v3669_v0  ;;  %v3649_v51 = vpack.c.bf16 %v3641_v45, %v3640_v34 }
 0x7bb   : > { %v12210_v18 = vpop.eup %9461  ;;  %v3672_v58 = vmul.bf16 1069105081, %v3649_v51 }
 0x7bc   : > { %15043 = vst [vmem:[#allocation127_spill] sm:$0xff] %v12210_v18  ;;  %8621 = vmatmul.mubr.bf16.gmra.mxu1 %v12210_v18 }
 0x7bd   : > { %9469 = vpow.bf16 %v3672_v58 }
 0x7bf   : > { %v12213_v43 = vpop.eup %9463 }
 0x7c0   : > { %15044 = vst [vmem:[#allocation128_spill] sm:$0xff] %v12213_v43  ;;  %8624 = vmatprep.mubr.bf16.mxu1 %v12213_v43 }
 0x7c3   : > { %v12216_v52 = vpop.eup %9465 }
 0x7c4   : > { %15045 = vst [vmem:[#allocation123_spill] sm:$0xff] %v12216_v52  ;;  %8625 = vmatmul.mubr.bf16.gmra.mxu1 %v12216_v52 }
 0x7c7   : > { %v12219_v31 = vpop.eup %9467 }
 0x7c8   : > { %15046 = vst [vmem:[#allocation124_spill] sm:$0xff] %v12219_v31  ;;  %8628 = vmatprep.mubr.bf16.mxu1 %v12219_v31 }
 0x7cb   : > { %v12222_v60 = vpop.eup %9469 }
 0x7cc   : > { %15047 = vst [vmem:[#allocation126_spill] sm:$0xff] %v12222_v60  ;;  %8629 = vmatmul.mubr.bf16.gmra.mxu1 %v12222_v60 }
 0x7cd   : > { %8648 = vmatprep.mubr.msk.bf16.mxu1 %vm15049_vm12, %v15048_v17  ;;  %vm15062_vm12 = vmmov %vm15060_vm5 }
 0x7d4   : > { %8649 = vmatmul.mubr.msk.bf16.vlgmr.msra.gmra.mxu1 %vm15051_vm15, %v15050_v46  ;;  %vm15082_vm15 = vnez %v14945_v15 }
 0x7d5   : > { %8652 = vmatprep.mubr.msk.bf16.mxu1 %vm15018_vm9, %v15052_v10  ;;  %vm15083_vm9 = vnez %v14832_v29 }
 0x7dc   : > { %8653 = vmatmul.mubr.msk.bf16.gmra.mxu1 %vm15054_vm11, %v15053_v53  ;;  %vm15084_vm11 = vnez %v14830_v30 }
 0x7dd   : > { %8656 = vmatprep.mubr.msk.bf16.mxu1 %vm15056_vm8, %v15055_v32  ;;  %vm15080_vm8 = vnez %v14943_v19 }
 0x7e4   : > { %8657 = vmatmul.mubr.msk.bf16.gmra.mxu1 %vm15058_vm10, %v15057_v14  ;;  %vm15081_vm10 = vnez %v14944_v12 }
 0x7e5   : > { %8660 = vmatprep.mubr.msk.bf16.mxu1 %vm15060_vm5, %v15059_v27  ;;  %vm15079_vm5 = vnez %v14942_v44 }
 0x7ec   : > { %8661 = vmatmul.mubr.msk.bf16.gmra.mxu1 %vm15062_vm12, %v15061_v35  ;;  %vm15085_vm12 = vnez %v14834_v40 }
 0x83f   : > { %v12241_v36 = vpop.f32.mrf.mxu1 }
 0x840   : > { %15063 = vst [vmem:[#allocation122_spill] sm:$0xff] %v12241_v36 }
 0x841   : > { %v12243_v50 = vpop.f32.mrf.mxu1 }
 0x842   : > { %15064 = vst [vmem:[#allocation119_spill] sm:$0xff] %v12243_v50 }
 0x843   : > { %v12245_v33 = vpop.f32.mrf.mxu1 }
 0x844   : > { %15065 = vst [vmem:[#allocation120_spill] sm:$0xff] %v12245_v33 }
 0x845   : > { %v12247_v2 = vpop.f32.mrf.mxu1 }
 0x846   : > { %15066 = vst [vmem:[#allocation118_spill] sm:$0xff] %v12247_v2 }
 0x849   : > { %v15189_v26 = vld [vmem:[#allocation119_spill] sm:$0xff] }
 0x87c   : > { %v12249_v21 = vpop.f32.mrf.mxu1 }
 0x87d   : > { %15067 = vst [vmem:[#allocation115_spill] sm:$0xff] %v12249_v21 }
 0x87e   : > { %v12251_v34 = vpop.f32.mrf.mxu1 }
 0x87f   : > { %15068 = vst [vmem:[#allocation116_spill] sm:$0xff] %v12251_v34 }
 0x880   : > { %v12253_v0 = vpop.f32.mrf.mxu1 }
 0x881   : > { %15069 = vst [vmem:[#allocation114_spill] sm:$0xff] %v12253_v0 }
 0x882   : > { %v12255_v45 = vpop.f32.mrf.mxu1 }
 0x883   : > { %15070 = vst [vmem:[#allocation111_spill] sm:$0xff] %v12255_v45 }
 0x884   : > { %v12257_v55 = vpop.f32.mrf.mxu1 }
 0x885   : > { %15071 = vst [vmem:[#allocation112_spill] sm:$0xff] %v12257_v55 }
 0x886   : > { %v12259_v51 = vpop.f32.mrf.mxu1 }
 0x887   : > { %15072 = vst [vmem:[#allocation110_spill] sm:$0xff] %v12259_v51 }
 0x888   : > { %v12261_v58 = vpop.f32.mrf.mxu1 }
 0x889   : > { %15073 = vst [vmem:[#allocation107_spill] sm:$0xff] %v12261_v58 }
 0x88a   : > { %v12263_v36 = vpop.f32.mrf.mxu1 }
 0x88b   : > { %15074 = vst [vmem:[#allocation108_spill] sm:$0xff] %v12263_v36 }
 0x88c   : > { %v12265_v50 = vpop.f32.mrf.mxu1 }
 0x88d   : > { %15075 = vst [vmem:[#allocation106_spill] sm:$0xff] %v12265_v50 }
 0x88e   : > { %v12267_v33 = vpop.f32.mrf.mxu1 }
 0x88f   : > { %15076 = vst [vmem:[#allocation103_spill] sm:$0xff] %v12267_v33 }
 0x890   : > { %v12269_v2 = vpop.f32.mrf.mxu1 }
 0x891   : > { %15077 = vst [vmem:[#allocation104_spill] sm:$0xff] %v12269_v2 }
 0x892   : > { %v12271_v21 = vpop.f32.mrf.mxu1 }
 0x893   : > { %15078 = vst [vmem:[#allocation102_spill] sm:$0xff] %v12271_v21 }
 0x894   : > { %v8650_v34 = vpop.f32.mrf.mxu1 }
 0x895   : > { %v12275_v0 = vsel %vm10136_vm2, %v8650_v34, -inf }
 0x896   : > { %4282 = vmax.xlane.f32.xlu1 %v12275_v0  ;;  %v4199_v55 = vpop.f32.mrf.mxu1 }
 0x897   : > { %v12280_v58 = vsel %vm10113_vm0, %v4199_v55, -inf }
 0x898   : > { %v8651_v51 = vpop.f32.mrf.mxu1 }
 0x899   : > { %v12284_v50 = vsel %vm10140_vm3, %v8651_v51, -inf }
 0x89a   : > { %4278 = vmax.xlane.f32.xlu1 %v12280_v58  ;;  %4284 = vmax.xlane.f32.xlu0 %v12284_v50  ;;  %v4202_v2 = vpop.f32.mrf.mxu1 }
 0x89b   : > { %v12290_v34 = vsel %vm10132_vm1, %v4202_v2, -inf }
 0x89c   : > { %v8654_v55 = vpop.f32.mrf.mxu1 }
 0x89d   : > { %v12304_v43 = vsel %vm10167_vm6, %v8654_v55, -inf }
 0x89e   : > { %4280 = vmax.xlane.f32.xlu0 %v12290_v34  ;;  %v4215_v33 = vpop.f32.mrf.mxu1 }
 0x89f   : > { %v12314_v54 = vsel %vm10144_vm4, %v4215_v33, -inf }
 0x8a0   : > { %v8655_v51 = vpop.f32.mrf.mxu1 }
 0x8a2   : > { %v4218_v21 = vpop.f32.mrf.mxu1 }
 0x8a4   : > { %v8658_v36 = vpop.f32.mrf.mxu1 }
 0x8a5   : > { %v12329_v55 = vsel %vm15080_vm8, %v8658_v36, -inf }
 0x8a6   : > { %v4231_v45 = vpop.f32.mrf.mxu1 }
 0x8a7   : > { %v12336_v33 = vsel %vm15081_vm10, %v4231_v45, -inf }
 0x8a8   : > { %v8659_v60 = vpop.f32.mrf.mxu1 }
 0x8aa   : > { %v4234_v31 = vpop.f32.mrf.mxu1 }
 0x8ab   : > { %4575 = vrot.lane.b32.xlu1 %v12147_v28, %s9909_s19  ;;  %v12299_v2 = vsel %vm15001_vm13, %v4234_v31, -inf  ;;  %v12319_v31 = vsel %vm10171_vm7, %v8655_v51, -inf }
 0x8ac   : > { %v8662_v52 = vpop.f32.mrf.mxu1 }
 0x8ad   : > { %v12308_v18 = vsel %vm15002_vm14, %v8662_v52, -inf  ;;  %v12324_v52 = vsel %vm15079_vm5, %v4218_v21, -inf  ;;  %v12343_v21 = vsel %vm15082_vm15, %v8659_v60, -inf }
 0x8ae   : > { %v4247_v36 = vpop.f32.mrf.mxu1 }
 0x8af   : > { %v12348_v51 = vsel %vm15083_vm9, %v4247_v36, -inf }
 0x8b0   : > { %v8663_v45 = vpop.f32.mrf.mxu1 }
 0x8b1   : > { %v12357_v60 = vsel %vm15084_vm11, %v8663_v45, -inf  ;;  %v4580_v45 = vpop.permute.xlu1 %4579  ;;  %vm15088_vm11 = vcmask 261120  }
 0x8b2   : > { %v4250_v57 = vpop.f32.mrf.mxu1  ;;  %vm15090_vm9 = vmmov %vm15088_vm11 }
 0x8b3   : > { %v12364_v36 = vsel %vm15085_vm12, %v4250_v57, -inf  ;;  %vm15089_vm12 = vmmov %vm15088_vm11 }
 0x8b4   : > { %4577 = vrot.lane.b32.xlu0 %v12138_v5, %s9909_s19  ;;  %vm15107_vm14 = vmmov %vm15090_vm9 }
 0x8cf   : > { %4296 = vmax.xlane.f32.xlu1 %v12299_v2 }
 0x8d3   : > { %4290 = vmax.xlane.f32.xlu0 %v12304_v43  ;;  %4306 = vmax.xlane.f32.xlu1 %v12308_v18 }
 0x8d7   : > { %4286 = vmax.xlane.f32.xlu0 %v12314_v54 }
 0x8db   : > { %4292 = vmax.xlane.f32.xlu0 %v12319_v31 }
 0x8df   : > { %4288 = vmax.xlane.f32.xlu0 %v12324_v52 }
 0x8e3   : > { %4298 = vmax.xlane.f32.xlu0 %v12329_v55 }
 0x8e4   : > { %4571 = vrot.lane.b32.xlu1 %v12165_v47, %s9909_s19 }
 0x8e7   : > { %4294 = vmax.xlane.f32.xlu0 %v12336_v33 }
 0x8e8   : > { %4569 = vrot.lane.b32.xlu1 %v12176_v39, %s9909_s19 }
 0x8eb   : > { %4300 = vmax.xlane.f32.xlu0 %v12343_v21 }
 0x8ef   : > { %4302 = vmax.xlane.f32.xlu0 %v12348_v51 }
 0x905   : > { %4573 = vrot.lane.b32.xlu0 %v12156_v23, %s9909_s19 }
 0x909   : > { %4547 = vrot.lane.b32.xlu0 %v15052_v10, %s9909_s19 }
 0x90c   : > { %4308 = vmax.xlane.f32.xlu1 %v12357_v60 }
 0x90d   : > { %4551 = vrot.lane.b32.xlu0 %v15055_v32, %s9909_s19 }
 0x910   : > { %4304 = vmax.xlane.f32.xlu1 %v12364_v36 }
 0x911   : > { %4555 = vrot.lane.b32.xlu0 %v15059_v27, %s9909_s19 }
 0x915   : > { %4892 = vrot.lane.b32.xlu0 %v14974_v49, %s9909_s19 }
 0x919   : > { %4886 = vrot.lane.b32.xlu0 %v14979_v63, %s9909_s19 }
 0x91d   : > { %4882 = vrot.lane.b32.xlu0 %v14982_v38, %s9909_s19 }
 0x91f   : > { %v4283_v30 = vpop.xlane.xlu1 %4282 }
 0x920   : > { %v4312_v29 = vsub.f32 %v12275_v0, %v4283_v30 }
 0x921   : > { %5063 = vrot.lane.b32.xlu0 %v12113_v25, %s9910_s20  ;;  %4567 = vrot.lane.b32.xlu1 %v12189_v62, %s9909_s19 }
 0x923   : > { %v4285_v57 = vpop.xlane.xlu0 %4284  ;;  %v4279_v44 = vpop.xlane.xlu1 %4278 }
 0x924   : > { %v4313_v40 = vsub.f32 %v12284_v50, %v4285_v57  ;;  %v4310_v12 = vsub.f32 %v12280_v58, %v4279_v44 }
 0x925   : > { %5061 = vrot.lane.b32.xlu0 %v12118_v42, %s9910_s20  ;;  %4543 = vrot.lane.b32.xlu1 %v15048_v17, %s9909_s19 }
 0x926   : > { %v4327_v9 = vpack.c.bf16 %v4313_v40, %v4312_v29 }
 0x927   : > { %v4281_v15 = vpop.xlane.xlu0 %4280  ;;  %v4576_v44 = vpop.permute.xlu1 %4575 }
 0x928   : > { %v4311_v19 = vsub.f32 %v12290_v34, %v4281_v15  ;;  %v4338_v50 = vmul.bf16 1069105081, %v4327_v9  ;;  %v4629_v15 = vsel %vm15088_vm11, %v12195_v37, 0  ;;  %v4626_v9 = vsel %vm15090_vm9, %v4580_v45, 0  ;;  %vm15091_vm11 = vmmov %vm15090_vm9 }
 0x929   : > { %5057 = vrot.lane.b32.xlu0 %v12147_v28, %s9910_s20  ;;  %4545 = vrot.lane.b32.xlu1 %v15050_v46, %s9909_s19 }
 0x92a   : > { %v4326_v30 = vpack.c.bf16 %v4311_v19, %v4310_v12 }
 0x92b   : > { %v4578_v19 = vpop.permute.xlu0 %4577 }
 0x92c   : > { %v4335_v0 = vmul.bf16 1069105081, %v4326_v30 }
 0x92d   : > { %5053 = vrot.lane.b32.xlu0 %v12165_v47, %s9910_s20  ;;  %4549 = vrot.lane.b32.xlu1 %v15053_v53, %s9909_s19 }
 0x92e   : > { %9471 = vpow.bf16 %v4335_v0 }
 0x92f   : > { %9473 = vpow.bf16 %v4338_v50 }
 0x931   : > { %5051 = vrot.lane.b32.xlu0 %v12176_v39, %s9910_s20  ;;  %4553 = vrot.lane.b32.xlu1 %v15057_v14, %s9909_s19 }
 0x935   : > { %5033 = vrot.lane.b32.xlu0 %v15048_v17, %s9910_s20  ;;  %4557 = vrot.lane.b32.xlu1 %v15061_v35, %s9909_s19 }
 0x939   : > { %5037 = vrot.lane.b32.xlu0 %v15052_v10, %s9910_s20  ;;  %4894 = vrot.lane.b32.xlu1 %v14969_v16, %s9909_s19 }
 0x93c   : > { %v12407_v29 = vpop.eup %9471 }
 0x93d   : > { %15086 = vst [vmem:[#allocation99_spill] sm:$0xff] %v12407_v29  ;;  %v12409_v40 = vpop.eup %9473  ;;  %8680 = vmatprep.mubr.bf16.mxu0 %v12407_v29  ;;  %5041 = vrot.lane.b32.xlu0 %v15055_v32, %s9910_s20 }
 0x93e   : > { %15087 = vst [vmem:[#allocation100_spill] sm:$0xff] %v12409_v40  ;;  %4890 = vrot.lane.b32.xlu1 %v14975_v24, %s9909_s19  ;;  %8681 = vmatmul.mubr.bf16.vlgmr.msra.gmra.mxu0 %v12409_v40  ;;  %v15157_v40 = vld [vmem:[#allocation183_spill] sm:$0xff] }
 0x93f   : > { %8697 = vmatpush3.bf16.xpose.msra.mxu0 %v4629_v15 }
 0x940   : > { %8945 = vmatprep.subr.msk.bf16.mxu0 %vm15089_vm12, %v4580_v45  ;;  %vm15092_vm12 = vmmov %vm15090_vm9 }
 0x941   : > { %5045 = vrot.lane.b32.xlu0 %v15059_v27, %s9910_s20  ;;  %v4623_v12 = vsel %vm15092_vm12, %v4578_v19, 0  ;;  %vm15095_vm12 = vmmov %vm15090_vm9 }
 0x942   : > { %4888 = vrot.lane.b32.xlu1 %v14978_v48, %s9909_s19 }
 0x945   : > { %5366 = vrot.lane.b32.xlu0 %v14974_v49, %s9910_s20 }
 0x946   : > { %4884 = vrot.lane.b32.xlu1 %v14981_v22, %s9909_s19 }
 0x947   : > { %8699 = vmatpush3.bf16.xpose.msra.mxu0 %v4626_v9 }
 0x948   : > { %8946 = vmatprep.subr.msk.bf16.mxu0 %vm15091_vm11, %v4578_v19  ;;  %vm15093_vm11 = vmmov %vm15090_vm9 }
 0x949   : > { %5360 = vrot.lane.b32.xlu0 %v14979_v63, %s9910_s20  ;;  %v4620_v37 = vsel %vm15093_vm11, %v4576_v44, 0  ;;  %vm15097_vm11 = vmmov %vm15090_vm9 }
 0x94a   : > { %4880 = vrot.lane.b32.xlu1 %v14984_v8, %s9909_s19 }
 0x94d   : > { %5356 = vrot.lane.b32.xlu0 %v14982_v38, %s9910_s20 }
 0x94e   : > { %5059 = vrot.lane.b32.xlu1 %v12138_v5, %s9910_s20 }
 0x94f   : > { %8701 = vmatpush3.bf16.xpose.msra.mxu0 %v4623_v12 }
 0x950   : > { %8947 = vmatprep.subr.msk.bf16.mxu0 %vm15090_vm9, %v4576_v44 }
 0x951   : > { %5537 = vrot.lane.b32.xlu0 %v12113_v25, %s9911_s21 }
 0x952   : > { %5055 = vrot.lane.b32.xlu1 %v12156_v23, %s9910_s20 }
 0x955   : > { %5535 = vrot.lane.b32.xlu0 %v12118_v42, %s9911_s21 }
 0x956   : > { %5049 = vrot.lane.b32.xlu1 %v12189_v62, %s9910_s20 }
 0x957   : > { %8703 = vmatpush3.bf16.xpose.msra.mxu0 %v4620_v37 }
 0x959   : > { %5531 = vrot.lane.b32.xlu0 %v12147_v28, %s9911_s21 }
 0x95a   : > { %5035 = vrot.lane.b32.xlu1 %v15050_v46, %s9910_s20 }
 0x95c   : > { %v4291_v58 = vpop.xlane.xlu0 %4290 }
 0x95d   : > { %5527 = vrot.lane.b32.xlu0 %v12165_v47, %s9911_s21  ;;  %v4316_v47 = vsub.f32 %v12304_v43, %v4291_v58  ;;  %v4297_v43 = vpop.xlane.xlu1 %4296 }
 0x95e   : > { %5039 = vrot.lane.b32.xlu1 %v15053_v53, %s9910_s20 }
 0x960   : > { %v4287_v25 = vpop.xlane.xlu0 %4286 }
 0x961   : > { %5525 = vrot.lane.b32.xlu0 %v12176_v39, %s9911_s21  ;;  %v4314_v45 = vsub.f32 %v12314_v54, %v4287_v25 }
 0x962   : > { %5043 = vrot.lane.b32.xlu1 %v15057_v14, %s9910_s20 }
 0x964   : > { %v4293_v42 = vpop.xlane.xlu0 %4292 }
 0x965   : > { %v4317_v28 = vsub.f32 %v12319_v31, %v4293_v42  ;;  %5507 = vrot.lane.b32.xlu0 %v15048_v17, %s9911_s21 }
 0x966   : > { %5047 = vrot.lane.b32.xlu1 %v15061_v35, %s9910_s20 }
 0x967   : > { %v4329_v57 = vpack.c.bf16 %v4317_v28, %v4316_v47 }
 0x968   : > { %v4289_v34 = vpop.xlane.xlu0 %4288 }
 0x969   : > { %v4315_v39 = vsub.f32 %v12324_v52, %v4289_v34  ;;  %5511 = vrot.lane.b32.xlu0 %v15052_v10, %s9911_s21  ;;  %v4344_v17 = vmul.bf16 1069105081, %v4329_v57  ;;  %v4319_v52 = vsub.f32 %v12299_v2, %v4297_v43 }
 0x96a   : > { %5368 = vrot.lane.b32.xlu1 %v14969_v16, %s9910_s20 }
 0x96b   : > { %v4328_v31 = vpack.c.bf16 %v4315_v39, %v4314_v45 }
 0x96c   : > { %v4299_v30 = vpop.xlane.xlu0 %4298 }
 0x96d   : > { %v4341_v50 = vmul.bf16 1069105081, %v4328_v31  ;;  %5515 = vrot.lane.b32.xlu0 %v15055_v32, %s9911_s21  ;;  %v4320_v32 = vsub.f32 %v12329_v55, %v4299_v30 }
 0x96e   : > { %5364 = vrot.lane.b32.xlu1 %v14975_v24, %s9910_s20 }
 0x96f   : > { %9475 = vpow.bf16 %v4341_v50 }
 0x970   : > { %v4295_v54 = vpop.xlane.xlu0 %4294  ;;  %9477 = vpow.bf16 %v4344_v17 }
 0x971   : > { %v4318_v10 = vsub.f32 %v12336_v33, %v4295_v54  ;;  %5519 = vrot.lane.b32.xlu0 %v15059_v27, %s9911_s21  ;;  %v4307_v27 = vpop.xlane.xlu1 %4306 }
 0x972   : > { %5362 = vrot.lane.b32.xlu1 %v14978_v48, %s9910_s20  ;;  %v4324_v34 = vsub.f32 %v12308_v18, %v4307_v27 }
 0x973   : > { %v4330_v0 = vpack.c.bf16 %v4319_v52, %v4318_v10 }
 0x974   : > { %v4301_v15 = vpop.xlane.xlu0 %4300 }
 0x975   : > { %v4347_v9 = vmul.bf16 1069105081, %v4330_v0  ;;  %v4321_v19 = vsub.f32 %v12343_v21, %v4301_v15  ;;  %5840 = vrot.lane.b32.xlu0 %v14974_v49, %s9911_s21  ;;  %v4572_v37 = vpop.permute.xlu1 %4571 }
 0x976   : > { %5358 = vrot.lane.b32.xlu1 %v14981_v22, %s9910_s20 }
 0x977   : > { %9479 = vpow.bf16 %v4347_v9  ;;  %v4331_v2 = vpack.c.bf16 %v4321_v19, %v4320_v32 }
 0x978   : > { %v4303_v33 = vpop.xlane.xlu0 %4302 }
 0x979   : > { %v4350_v12 = vmul.bf16 1069105081, %v4331_v2  ;;  %5832 = vrot.lane.b32.xlu0 %v14981_v22, %s9911_s21  ;;  %v4570_v58 = vpop.permute.xlu1 %4569  ;;  %v4322_v39 = vsub.f32 %v12348_v51, %v4303_v33 }
 0x97a   : > { %5354 = vrot.lane.b32.xlu1 %v14984_v8, %s9910_s20 }
 0x97b   : > { %9481 = vpow.bf16 %v4350_v12 }
 0x97c   : > { %v4574_v55 = vpop.permute.xlu0 %4573 }
 0x97d   : > { %v12493_v21 = vpop.eup %9475  ;;  %8948 = vmatprep.subr.msk.bf16.mxu0 %vm15095_vm12, %v4574_v55  ;;  %v4617_v49 = vsel %vm15090_vm9, %v4574_v55, 0  ;;  %vm15099_vm12 = vmmov %vm15090_vm9  ;;  %v2718_v55 = vunpack.c.l.bf16 %v11673_v7 }
 0x97e   : > { %15094 = vst [vmem:[#allocation97_spill] sm:$0xff] %v12493_v21  ;;  %5533 = vrot.lane.b32.xlu1 %v12138_v5, %s9911_s21  ;;  %8684 = vmatprep.mubr.bf16.mxu0 %v12493_v21  ;;  %v12500_v44 = vpop.eup %9477  ;;  %v4614_v5 = vsel %vm15099_vm12, %v4572_v37, 0  ;;  %vm15102_vm12 = vmmov %vm15090_vm9 }
 0x97f   : > { %15096 = vst [vmem:[#allocation101_spill] sm:$0xff] %v12500_v44  ;;  %8705 = vmatpush3.bf16.xpose.msra.mxu0 %v4617_v49 }
 0x980   : > { %8685 = vmatmul.mubr.bf16.gmra.mxu0 %v12500_v44  ;;  %8949 = vmatprep.subr.msk.bf16.mxu0 %vm15097_vm11, %v4572_v37  ;;  %vm15101_vm11 = vmmov %vm15090_vm9  ;;  %v3200_v37 = vunpack.c.l.bf16 %v11927_v56 }
 0x982   : > { %5529 = vrot.lane.b32.xlu1 %v12156_v23, %s9911_s21  ;;  %v4548_v23 = vpop.permute.xlu0 %4547 }
 0x985   : > { %v12506_v22 = vpop.eup %9479 }
 0x986   : > { %15098 = vst [vmem:[#allocation105_spill] sm:$0xff] %v12506_v22  ;;  %5523 = vrot.lane.b32.xlu1 %v12189_v62, %s9911_s21  ;;  %8688 = vmatprep.mubr.bf16.mxu0 %v12506_v22  ;;  %v4611_v62 = vsel %vm15101_vm11, %v4570_v58, 0  ;;  %v4552_v42 = vpop.permute.xlu0 %4551  ;;  %vm15105_vm11 = vmmov %vm15090_vm9 }
 0x987   : > { %8707 = vmatpush3.bf16.xpose.msra.mxu0 %v4614_v5 }
 0x988   : > { %8950 = vmatprep.subr.msk.bf16.mxu0 %vm15090_vm9, %v4570_v58 }
 0x989   : > { %v12513_v25 = vpop.eup %9481 }
 0x98a   : > { %15100 = vst [vmem:[#allocation109_spill] sm:$0xff] %v12513_v25  ;;  %5509 = vrot.lane.b32.xlu1 %v15050_v46, %s9911_s21  ;;  %8689 = vmatmul.mubr.bf16.gmra.mxu0 %v12513_v25  ;;  %v2719_v46 = vunpack.c.h.bf16 %v11673_v7  ;;  %v4556_v45 = vpop.permute.xlu0 %4555 }
 0x98e   : > { %5513 = vrot.lane.b32.xlu1 %v15053_v53, %s9911_s21 }
 0x98f   : > { %8709 = vmatpush3.bf16.xpose.msra.mxu0 %v4611_v62 }
 0x992   : > { %5517 = vrot.lane.b32.xlu1 %v15057_v14, %s9911_s21 }
 0x995   : > { %v4309_v28 = vpop.xlane.xlu1 %4308 }
 0x996   : > { %v4325_v47 = vsub.f32 %v12357_v60, %v4309_v28  ;;  %5521 = vrot.lane.b32.xlu1 %v15061_v35, %s9911_s21  ;;  %v4893_v35 = vpop.permute.xlu0 %4892 }
 0x998   : > { %2736 = vadd.xlane.f32.xlu0 %v2719_v46  ;;  %v4333_v53 = vpack.c.bf16 %v4325_v47, %v4324_v34  ;;  %v3202_v47 = vunpack.c.l.bf16 %v11932_v4 }
 0x999   : > { %v4305_v57 = vpop.xlane.xlu1 %4304 }
 0x99a   : > { %5842 = vrot.lane.b32.xlu1 %v14969_v16, %s9911_s21  ;;  %v4323_v14 = vsub.f32 %v12364_v36, %v4305_v57  ;;  %v4356_v60 = vmul.bf16 1069105081, %v4333_v53  ;;  %v4887_v16 = vpop.permute.xlu0 %4886 }
 0x99c   : > { %v4332_v31 = vpack.c.bf16 %v4323_v14, %v4322_v39  ;;  %v15112_v39 = vld [vmem:[#allocation96_spill] sm:$0xff] }
 0x99d   : > { %v4568_v30 = vpop.permute.xlu1 %4567  ;;  %v2722_v14 = vunpack.c.l.bf16 %v15112_v39 }
 0x99e   : > { %v4353_v17 = vmul.bf16 1069105081, %v4332_v31  ;;  %5838 = vrot.lane.b32.xlu1 %v14975_v24, %s9911_s21  ;;  %8951 = vmatprep.subr.msk.bf16.mxu0 %vm15102_vm12, %v4568_v30  ;;  %v4608_v18 = vsel %vm15090_vm9, %v4568_v30, 0  ;;  %v4883_v24 = vpop.permute.xlu0 %4882  ;;  %vm15106_vm12 = vmmov %vm15090_vm9 }
 0x99f   : > { %8711 = vmatpush3.bf16.xpose.msra.mxu0 %v4608_v18  ;;  %v3678_v18 = vunpack.c.l.bf16 %v12201_v41 }
 0x9a0   : > { %9483 = vpow.bf16 %v4353_v17 }
 0x9a1   : > { %9485 = vpow.bf16 %v4356_v60  ;;  %v4544_v51 = vpop.permute.xlu1 %4543  ;;  %v15113_v60 = vld [vmem:[#allocation180_spill] sm:$0xff] }
 0x9a2   : > { %5836 = vrot.lane.b32.xlu1 %v14978_v48, %s9911_s21  ;;  %v12550_v48 = vpop.permute.xlu0 %5063  ;;  %v3204_v30 = vunpack.c.l.bf16 %v15113_v60 }
 0x9a5   : > { %v4546_v36 = vpop.permute.xlu1 %4545 }
 0x9a6   : > { %5834 = vrot.lane.b32.xlu1 %v14979_v63, %s9911_s21 }
 0x9a9   : > { %v4550_v50 = vpop.permute.xlu1 %4549 }
 0x9aa   : > { %5830 = vrot.lane.b32.xlu1 %v14982_v38, %s9911_s21  ;;  %v12553_v38 = vpop.permute.xlu0 %5061 }
 0x9ad   : > { %v4554_v43 = vpop.permute.xlu1 %4553 }
 0x9ae   : > { %v12542_v54 = vpop.eup %9483  ;;  %5828 = vrot.lane.b32.xlu1 %v14984_v8, %s9911_s21  ;;  %v12557_v0 = vpop.permute.xlu0 %5057 }
 0x9af   : > { %15103 = vst [vmem:[#allocation113_spill] sm:$0xff] %v12542_v54  ;;  %v12546_v52 = vpop.eup %9485  ;;  %8692 = vmatprep.mubr.bf16.mxu0 %v12542_v54 }
 0x9b0   : > { %15104 = vst [vmem:[#allocation117_spill] sm:$0xff] %v12546_v52  ;;  %8693 = vmatmul.mubr.bf16.gmra.mxu0 %v12546_v52  ;;  %v2721_v52 = vunpack.c.h.bf16 %v11675_v3 }
 0x9b1   : > { %8712 = vmatprep.mubr.msk.bf16.mxu0 %vm15105_vm11, %v4544_v51  ;;  %v4558_v63 = vpop.permute.xlu1 %4557  ;;  %vm15108_vm11 = vmmov %vm15090_vm9  ;;  %v15114_v51 = vld [vmem:[#allocation131_spill] sm:$0xff] }
 0x9b2   : > { %v12561_v9 = vpop.permute.xlu0 %5053 }
 0x9b5   : > { %v4895_v10 = vpop.permute.xlu1 %4894 }
 0x9b6   : > { %8728 = vmatprep.subr.bf16.mxu1 %v4895_v10  ;;  %v12564_v2 = vpop.permute.xlu0 %5051 }
 0x9b7   : > { %8729 = vmatpush3.bf16.msra.mxu1 %v4895_v10 }
 0x9b8   : > { %8713 = vmatmul.mubr.msk.bf16.vlgmr.msra.gmra.mxu0 %vm15106_vm12, %v4546_v36  ;;  %8730 = vmatprep.subr.bf16.mxu1 %v4893_v35  ;;  %vm15109_vm12 = vmmov %vm15090_vm9 }
 0x9b9   : > { %8716 = vmatprep.mubr.msk.bf16.mxu0 %vm15090_vm9, %v4548_v23  ;;  %v4891_v8 = vpop.permute.xlu1 %4890  ;;  %v3674_v23 = vunpack.c.l.bf16 %v12125_v1 }
 0x9ba   : > { %v12571_v12 = vpop.permute.xlu0 %5033 }
 0x9bb   : > { %8731 = vmatpush3.bf16.msra.mxu1 %v4893_v35 }
 0x9bc   : > { %8732 = vmatprep.subr.bf16.mxu1 %v4891_v8 }
 0x9bd   : > { %v4889_v15 = vpop.permute.xlu1 %4888 }
 0x9be   : > { %v12580_v5 = vpop.permute.xlu0 %5037 }
 0x9bf   : > { %8733 = vmatpush3.bf16.msra.mxu1 %v4891_v8 }
 0x9c0   : > { %8717 = vmatmul.mubr.msk.bf16.gmra.mxu0 %vm15107_vm14, %v4550_v50  ;;  %8734 = vmatprep.subr.bf16.mxu1 %v4889_v15  ;;  %vm15110_vm14 = vmmov %vm15090_vm9 }
 0x9c1   : > { %8720 = vmatprep.mubr.msk.bf16.mxu0 %vm15108_vm11, %v4552_v42  ;;  %v4885_v32 = vpop.permute.xlu1 %4884  ;;  %vm15111_vm11 = vmmov %vm15090_vm9  ;;  %v2720_v42 = vunpack.c.l.bf16 %v11675_v3  ;;  %v3677_v3 = vunpack.c.h.bf16 %v12128_v13 }
 0x9c2   : > { %v12587_v7 = vpop.permute.xlu0 %5041 }
 0x9c3   : > { %8735 = vmatpush3.bf16.msra.mxu1 %v4889_v15 }
 0x9c4   : > { %8736 = vmatprep.subr.bf16.mxu1 %v4887_v16 }
 0x9c5   : > { %v4881_v19 = vpop.permute.xlu1 %4880 }
 0x9c6   : > { %v12593_v46 = vpop.permute.xlu0 %5045 }
 0x9c7   : > { %8737 = vmatpush3.bf16.msra.mxu1 %v4887_v16  ;;  %v2724_v16 = vunpack.c.l.bf16 %v15114_v51 }
 0x9c8   : > { %8721 = vmatmul.mubr.msk.bf16.gmra.mxu0 %vm15109_vm12, %v4554_v43  ;;  %8738 = vmatprep.subr.bf16.mxu1 %v4885_v32  ;;  %vm15116_vm12 = vmmov %vm15090_vm9 }
 0x9c9   : > { %8724 = vmatprep.mubr.msk.bf16.mxu0 %vm15090_vm9, %v4556_v45  ;;  %v12567_v33 = vpop.permute.xlu1 %5059  ;;  %v3676_v45 = vunpack.c.l.bf16 %v12128_v13  ;;  %v3205_v13 = vunpack.c.h.bf16 %v15113_v60  ;;  %v15148_v60 = vld [vmem:[#allocation182_spill] sm:$0xff] }
 0x9ca   : > { %v5367_v57 = vpop.permute.xlu0 %5366 }
 0x9cb   : > { %8739 = vmatpush3.bf16.msra.mxu1 %v4885_v32 }
 0x9cc   : > { %8740 = vmatprep.subr.bf16.mxu1 %v4883_v24 }
 0x9cd   : > { %v12569_v27 = vpop.permute.xlu1 %5055 }
 0x9ce   : > { %v5361_v35 = vpop.permute.xlu0 %5360 }
 0x9cf   : > { %8741 = vmatpush3.bf16.msra.mxu1 %v4883_v24 }
 0x9d0   : > { %8725 = vmatmul.mubr.msk.bf16.gmra.mxu0 %vm15110_vm14, %v4558_v63  ;;  %8742 = vmatprep.subr.bf16.mxu1 %v4881_v19 }
 0x9d1   : > { %v12575_v49 = vpop.permute.xlu1 %5049 }
 0x9d2   : > { %2734 = vadd.xlane.f32.xlu1 %v2718_v55  ;;  %v5357_v50 = vpop.permute.xlu0 %5356 }
 0x9d3   : > { %8743 = vmatpush3.bf16.msra.mxu1 %v4881_v19 }
 0x9d4   : > { %8952 = vmatprep.subr.msk.bf16.mxu1 %vm15111_vm11, %v12550_v48 }
 0x9d5   : > { %v12582_v58 = vpop.permute.xlu1 %5035 }
 0x9d6   : > { %3216 = vadd.xlane.f32.xlu1 %v3200_v37  ;;  %v12602_v43 = vpop.permute.xlu0 %5537 }
 0x9d7   : > { %15115 = vst [vmem:[#allocation121_spill] sm:$0xff] %v12602_v43 }
 0x9d9   : > { %v12585_v62 = vpop.permute.xlu1 %5039 }
 0x9da   : > { %3690 = vadd.xlane.f32.xlu1 %v3674_v23 }
 0x9dd   : > { %v12590_v28 = vpop.permute.xlu1 %5043 }
 0x9de   : > { %2738 = vadd.xlane.f32.xlu1 %v2720_v42 }
 0x9e1   : > { %v12595_v34 = vpop.permute.xlu1 %5047 }
 0x9e2   : > { %3220 = vadd.xlane.f32.xlu1 %v3202_v47 }
 0x9e5   : > { %v5369_v53 = vpop.permute.xlu1 %5368 }
 0x9e6   : > { %3694 = vadd.xlane.f32.xlu1 %v3676_v45  ;;  %8792 = vmatprep.subr.bf16.mxu0 %v5369_v53 }
 0x9e7   : > { %8793 = vmatpush3.bf16.msra.mxu0 %v5369_v53 }
 0x9e8   : > { %8794 = vmatprep.subr.bf16.mxu0 %v5367_v57 }
 0x9e9   : > { %v5365_v31 = vpop.permute.xlu1 %5364 }
 0x9ea   : > { %2742 = vadd.xlane.f32.xlu1 %v2722_v14 }
 0x9eb   : > { %8795 = vmatpush3.bf16.msra.mxu0 %v5367_v57 }
 0x9ec   : > { %8796 = vmatprep.subr.bf16.mxu0 %v5365_v31 }
 0x9ed   : > { %v5363_v17 = vpop.permute.xlu1 %5362 }
 0x9ee   : > { %3224 = vadd.xlane.f32.xlu1 %v3204_v30 }
 0x9ef   : > { %8797 = vmatpush3.bf16.msra.mxu0 %v5365_v31 }
 0x9f0   : > { %8798 = vmatprep.subr.bf16.mxu0 %v5363_v17 }
 0x9f1   : > { %v5359_v36 = vpop.permute.xlu1 %5358 }
 0x9f2   : > { %3698 = vadd.xlane.f32.xlu1 %v3678_v18 }
 0x9f3   : > { %8799 = vmatpush3.bf16.msra.mxu0 %v5363_v17 }
 0x9f4   : > { %8800 = vmatprep.subr.bf16.mxu0 %v5361_v35 }
 0x9f5   : > { %v5355_v24 = vpop.permute.xlu1 %5354 }
 0x9f6   : > { %2746 = vadd.xlane.f32.xlu1 %v2724_v16 }
 0x9f7   : > { %8801 = vmatpush3.bf16.msra.mxu0 %v5361_v35 }
 0x9f8   : > { %8802 = vmatprep.subr.bf16.mxu0 %v5359_v36 }
 0x9fb   : > { %8803 = vmatpush3.bf16.msra.mxu0 %v5359_v36 }
 0x9fc   : > { %8804 = vmatprep.subr.bf16.mxu0 %v5357_v50 }
 0x9fe   : > { %v12606_v63 = vpop.f32.mrf.mxu0 }
 0x9ff   : > { %8805 = vmatpush3.bf16.msra.mxu0 %v5357_v50  ;;  %15117 = vst [vmem:[#allocation125_spill] sm:$0xff] %v12606_v63  ;;  %v3679_v63 = vunpack.c.h.bf16 %v12201_v41 }
 0xa00   : > { %8806 = vmatprep.subr.bf16.mxu0 %v5355_v24  ;;  %v12608_v10 = vpop.f32.mrf.mxu0 }
 0xa01   : > { %15118 = vst [vmem:[#allocation129_spill] sm:$0xff] %v12608_v10 }
 0xa02   : > { %v12610_v8 = vpop.f32.mrf.mxu0 }
 0xa03   : > { %8807 = vmatpush3.bf16.msra.mxu0 %v5355_v24  ;;  %15119 = vst [vmem:[#allocation96_spill] sm:$0xff] %v12610_v8 }
 0xa04   : > { %8960 = vmatprep.subr.msk.bf16.mxu0 %vm15116_vm12, %v12602_v43  ;;  %v12612_v15 = vpop.f32.mrf.mxu0 }
 0xa05   : > { %15120 = vst [vmem:[#allocation180_spill] sm:$0xff] %v12612_v15  ;;  %v12711_v15 = vpop.permute.xlu0 %5535 }
 0xa09   : > { %v12725_v22 = vpop.permute.xlu0 %5531 }
 0xa0a   : > { %15151 = vst [vmem:[#allocation209_spill] sm:$0xff] %v12725_v22  ;;  %v15158_v22 = vld [vmem:[#allocation38_spill] sm:$0xff] }
 0xa0b   : > { %vm15159_vm14 = vnez %v15158_v22 }
 0xa40   : > { %v12614_v32 = vpop.f32.mrf.mxu0 }
 0xa41   : > { %15121 = vst [vmem:[#allocation131_spill] sm:$0xff] %v12614_v32 }
 0xa42   : > { %v12616_v19 = vpop.f32.mrf.mxu0 }
 0xa43   : > { %15122 = vst [vmem:[#allocation194_spill] sm:$0xff] %v12616_v19 }
 0xa44   : > { %v12618_v55 = vpop.f32.mrf.mxu0 }
 0xa45   : > { %15123 = vst [vmem:[#allocation195_spill] sm:$0xff] %v12618_v55 }
 0xa46   : > { %v12620_v37 = vpop.f32.mrf.mxu0 }
 0xa47   : > { %15124 = vst [vmem:[#allocation196_spill] sm:$0xff] %v12620_v37 }
 0xa4a   : > { %v12622_v23 = vpop.f32.mrf.mxu0 }
 0xa4b   : > { %15125 = vst [vmem:[#allocation197_spill] sm:$0xff] %v12622_v23 }
 0xa4c   : > { %v12624_v42 = vpop.f32.mrf.mxu0 }
 0xa4d   : > { %15126 = vst [vmem:[#allocation198_spill] sm:$0xff] %v12624_v42 }
 0xa4e   : > { %v12626_v47 = vpop.f32.mrf.mxu0 }
 0xa4f   : > { %15127 = vst [vmem:[#allocation199_spill] sm:$0xff] %v12626_v47  ;;  %v3675_v47 = vunpack.c.h.bf16 %v12125_v1  ;;  %v3203_v1 = vunpack.c.h.bf16 %v11932_v4  ;;  %v2723_v4 = vunpack.c.h.bf16 %v15112_v39  ;;  %v15145_v39 = vld [vmem:[#allocation98_spill] sm:$0xff] }
 0xa50   : > { %v12628_v45 = vpop.f32.mrf.mxu0  ;;  %15146 = vst [vmem:[#allocation98_spill] sm:$0xff] %v12711_v15  ;;  %v15163_v15 = vld [vmem:[#allocation44_spill] sm:$0xff] }
 0xa51   : > { %15128 = vst [vmem:[#allocation200_spill] sm:$0xff] %v12628_v45  ;;  %vm15164_vm12 = vnez %v15163_v15 }
 0xa70   : > { %v12630_v53 = vpop.f32.mrf.mxu0 }
 0xa71   : > { %15129 = vst [vmem:[#allocation201_spill] sm:$0xff] %v12630_v53  ;;  %v12658_v53 = vpop.permute.xlu1 %5533 }
 0xa72   : > { %v12632_v57 = vpop.f32.mrf.mxu0  ;;  %15133 = vst [vmem:[#allocation205_spill] sm:$0xff] %v12658_v53 }
 0xa73   : > { %15130 = vst [vmem:[#allocation202_spill] sm:$0xff] %v12632_v57 }
 0xa74   : > { %v12634_v14 = vpop.f32.mrf.mxu0 }
 0xa75   : > { %15131 = vst [vmem:[#allocation203_spill] sm:$0xff] %v12634_v14  ;;  %v12672_v23 = vpop.permute.xlu1 %5529 }
 0xa76   : > { %v12636_v31 = vpop.f32.mrf.mxu0  ;;  %15134 = vst [vmem:[#allocation206_spill] sm:$0xff] %v12672_v23  ;;  %v3210_v23 = vunpack.c.l.bf16 %v15157_v40 }
 0xa77   : > { %15132 = vst [vmem:[#allocation204_spill] sm:$0xff] %v12636_v31  ;;  %v3201_v31 = vunpack.c.h.bf16 %v11927_v56 }
 0xa78   : > { %v8714_v30 = vpop.f32.mrf.mxu0 }
 0xa79   : > { %v12640_v17 = vsel %vm10136_vm2, %v8714_v30, -inf  ;;  %v12676_v56 = vpop.permute.xlu1 %5523 }
 0xa7a   : > { %4748 = vmax.xlane.f32.xlu0 %v12640_v17  ;;  %v4665_v18 = vpop.f32.mrf.mxu0 }
 0xa7b   : > { %v12645_v16 = vsel %vm10113_vm0, %v4665_v18, -inf }
 0xa7c   : > { %v8715_v35 = vpop.f32.mrf.mxu0 }
 0xa7d   : > { %v12655_v30 = vsel %vm10140_vm3, %v8715_v35, -inf }
 0xa7e   : > { %4744 = vmax.xlane.f32.xlu0 %v12645_v16  ;;  %v4668_v36 = vpop.f32.mrf.mxu0 }
 0xa7f   : > { %v12650_v50 = vsel %vm10132_vm1, %v4668_v36, -inf }
 0xa80   : > { %4746 = vmax.xlane.f32.xlu1 %v12650_v50  ;;  %v8718_v24 = vpop.f32.mrf.mxu0 }
 0xa81   : > { %v12715_v10 = vsel %vm10167_vm6, %v8718_v24, -inf }
 0xa82   : > { %4750 = vmax.xlane.f32.xlu0 %v12655_v30  ;;  %v4681_v14 = vpop.f32.mrf.mxu0 }
 0xa83   : > { %v12662_v18 = vsel %vm10144_vm4, %v4681_v14, -inf  ;;  %v15135_v14 = vld [vmem:[#allocation181_spill] sm:$0xff] }
 0xa84   : > { %4752 = vmax.xlane.f32.xlu1 %v12662_v18  ;;  %v8719_v36 = vpop.f32.mrf.mxu0  ;;  %v3206_v45 = vunpack.c.l.bf16 %v15135_v14  ;;  %15136 = vst [vmem:[#allocation181_spill] sm:$0xff] %v12676_v56 }
 0xa85   : > { %v12668_v57 = vsel %vm10171_vm7, %v8719_v36, -inf }
 0xa86   : > { %3218 = vadd.xlane.f32.xlu0 %v3201_v31  ;;  %v4684_v35 = vpop.f32.mrf.mxu0 }
 0xa88   : > { %4758 = vmax.xlane.f32.xlu1 %v12668_v57  ;;  %v8722_v42 = vpop.f32.mrf.mxu0 }
 0xa89   : > { %v12680_v36 = vsel %vm15080_vm8, %v8722_v42, -inf }
 0xa8a   : > { %3692 = vadd.xlane.f32.xlu0 %v3675_v47  ;;  %v4697_v55 = vpop.f32.mrf.mxu0  ;;  %v3211_v47 = vunpack.c.h.bf16 %v15157_v40 }
 0xa8b   : > { %v12686_v32 = vsel %vm15081_vm10, %v4697_v55, -inf }
 0xa8c   : > { %3228 = vadd.xlane.f32.xlu1 %v3206_v45  ;;  %v8723_v45 = vpop.f32.mrf.mxu0 }
 0xa8d   : > { %v12694_v19 = vsel %vm15082_vm15, %v8723_v45, -inf }
 0xa8e   : > { %2740 = vadd.xlane.f32.xlu0 %v2721_v52  ;;  %v12690_v52 = vpop.permute.xlu1 %5509  ;;  %v4700_v37 = vpop.f32.mrf.mxu0 }
 0xa8f   : > { %15139 = vst [vmem:[#allocation207_spill] sm:$0xff] %v12690_v52  ;;  %v12702_v8 = vsel %vm15001_vm13, %v4700_v37, -inf }
 0xa90   : > { %4764 = vmax.xlane.f32.xlu1 %v12680_v36 }
 0xa92   : > { %3222 = vadd.xlane.f32.xlu0 %v3203_v1  ;;  %v12698_v55 = vpop.permute.xlu1 %5513 }
 0xa93   : > { %15141 = vst [vmem:[#allocation208_spill] sm:$0xff] %v12698_v55 }
 0xa94   : > { %4760 = vmax.xlane.f32.xlu1 %v12686_v32 }
 0xa96   : > { %3696 = vadd.xlane.f32.xlu0 %v3677_v3  ;;  %v15143_v3 = vld [vmem:[#allocation127_spill] sm:$0xff]  ;;  %v12708_v54 = vpop.permute.xlu1 %5517 }
 0xa97   : > { %v3680_v45 = vunpack.c.l.bf16 %v15143_v3  ;;  %15144 = vst [vmem:[#allocation127_spill] sm:$0xff] %v12708_v54  ;;  %v2725_v54 = vunpack.c.h.bf16 %v15114_v51  ;;  %v3681_v41 = vunpack.c.h.bf16 %v15143_v3  ;;  %v15172_v3 = vld [vmem:[#allocation94_spill] sm:$0xff] }
 0xa98   : > { %4766 = vmax.xlane.f32.xlu1 %v12694_v19  ;;  %v2732_v1 = vunpack.c.l.bf16 %v15172_v3 }
 0xa9a   : > { %2744 = vadd.xlane.f32.xlu0 %v2723_v4  ;;  %v2726_v4 = vunpack.c.l.bf16 %v15145_v39  ;;  %v12719_v25 = vpop.permute.xlu1 %5521 }
 0xa9b   : > { %15149 = vst [vmem:[#allocation182_spill] sm:$0xff] %v12719_v25  ;;  %v15153_v25 = vld [vmem:[#allocation130_spill] sm:$0xff] }
 0xa9c   : > { %4762 = vmax.xlane.f32.xlu1 %v12702_v8  ;;  %v2728_v21 = vunpack.c.l.bf16 %v15153_v25 }
 0xa9e   : > { %3226 = vadd.xlane.f32.xlu0 %v3205_v13  ;;  %v3208_v13 = vunpack.c.l.bf16 %v15148_v60  ;;  %v12730_v55 = vpop.permute.xlu1 %5842 }
 0xaa0   : > { %3702 = vadd.xlane.f32.xlu1 %v3680_v45  ;;  %v8726_v45 = vpop.f32.mrf.mxu0 }
 0xaa2   : > { %3700 = vadd.xlane.f32.xlu0 %v3679_v63  ;;  %v12723_v63 = vsel %vm15079_vm5, %v4684_v35, -inf  ;;  %v4713_v24 = vpop.f32.mrf.mxu0  ;;  %v15155_v35 = vld [vmem:[#allocation43_spill] sm:$0xff] }
 0xaa3   : > { %vm15156_vm9 = vnez %v15155_v35 }
 0xaa4   : > { %2750 = vadd.xlane.f32.xlu1 %v2726_v4  ;;  %v15152_v4 = vld [vmem:[#allocation128_spill] sm:$0xff]  ;;  %v8727_v52 = vpop.f32.mrf.mxu0  ;;  %v12737_v56 = vsel %vm15156_vm9, %v8726_v45, -inf }
 0xaa5   : > { %v3682_v44 = vunpack.c.l.bf16 %v15152_v4  ;;  %v12759_v43 = vsel %vm15164_vm12, %v8727_v52, -inf  ;;  %v15169_v52 = vld [vmem:[#allocation139_spill] sm:$0xff]  ;;  %vm15188_vm12 = vcmask 261120  }
 0xaa6   : > { %4756 = vmax.xlane.f32.xlu0 %v12715_v10  ;;  %v4716_v51 = vpop.f32.mrf.mxu0  ;;  %v3212_v37 = vunpack.c.l.bf16 %v15169_v52  ;;  %vm15192_vm9 = vmmov %vm15188_vm12 }
 0xaa7   : > { %vm15211_vm5 = vmmov %vm15192_vm9 }
 0xaa8   : > { %3232 = vadd.xlane.f32.xlu1 %v3208_v13  ;;  %v12733_v13 = vpop.permute.xlu0 %5527 }
 0xaa9   : > { %15154 = vst [vmem:[#allocation128_spill] sm:$0xff] %v12733_v13 }
 0xaaa   : > { %4754 = vmax.xlane.f32.xlu0 %v12723_v63 }
 0xaac   : > { %3706 = vadd.xlane.f32.xlu1 %v3682_v44  ;;  %v12741_v44 = vpop.permute.xlu1 %5838  ;;  %v12747_v53 = vpop.permute.xlu0 %5525 }
 0xaad   : > { %15160 = vst [vmem:[#allocation130_spill] sm:$0xff] %v12747_v53  ;;  %v3207_v53 = vunpack.c.h.bf16 %v15135_v14  ;;  %v15170_v14 = vld [vmem:[#allocation124_spill] sm:$0xff] }
 0xaae   : > { %2748 = vadd.xlane.f32.xlu0 %v2725_v54  ;;  %v12745_v54 = vsel %vm15159_vm14, %v4713_v24, -inf  ;;  %v3687_v59 = vunpack.c.h.bf16 %v15170_v14  ;;  %vm15191_vm14 = vmmov %vm15188_vm12 }
 0xab0   : > { %2754 = vadd.xlane.f32.xlu1 %v2728_v21  ;;  %v15161_v21 = vld [vmem:[#allocation42_spill] sm:$0xff]  ;;  %v12755_v13 = vpop.permute.xlu1 %5836  ;;  %v12763_v29 = vpop.permute.xlu0 %5507 }
 0xab1   : > { %vm15162_vm11 = vnez %v15161_v21  ;;  %15166 = vst [vmem:[#allocation183_spill] sm:$0xff] %v12763_v29  ;;  %v2727_v21 = vunpack.c.h.bf16 %v15145_v39  ;;  %v15174_v39 = vld [vmem:[#allocation184_spill] sm:$0xff] }
 0xab2   : > { %4772 = vmax.xlane.f32.xlu0 %v12737_v56  ;;  %v12752_v45 = vsel %vm15162_vm11, %v4716_v51, -inf  ;;  %v15167_v51 = vld [vmem:[#allocation95_spill] sm:$0xff] }
 0xab3   : > { %v2730_v22 = vunpack.c.l.bf16 %v15167_v51  ;;  %v2731_v20 = vunpack.c.h.bf16 %v15167_v51 }
 0xab4   : > { %3236 = vadd.xlane.f32.xlu1 %v3210_v23  ;;  %v15165_v23 = vld [vmem:[#allocation123_spill] sm:$0xff]  ;;  %v12767_v35 = vpop.permute.xlu1 %5834  ;;  %v12770_v15 = vpop.permute.xlu0 %5511 }
 0xab5   : > { %v3684_v24 = vunpack.c.l.bf16 %v15165_v23  ;;  %15168 = vst [vmem:[#allocation123_spill] sm:$0xff] %v12770_v15 }
 0xab6   : > { %4768 = vmax.xlane.f32.xlu0 %v12745_v54 }
 0xab8   : > { %4770 = vmax.xlane.f32.xlu1 %v12752_v45  ;;  %v12774_v29 = vpop.permute.xlu1 %5830 }
 0xaba   : > { %4774 = vmax.xlane.f32.xlu0 %v12759_v43 }
 0xabc   : > { %3710 = vadd.xlane.f32.xlu1 %v3684_v24  ;;  %v12777_v24 = vpop.permute.xlu0 %5515  ;;  %v12781_v15 = vpop.permute.xlu1 %5828 }
 0xabd   : > { %15171 = vst [vmem:[#allocation95_spill] sm:$0xff] %v12777_v24  ;;  %v2729_v24 = vunpack.c.h.bf16 %v15153_v25 }
 0xabe   : > { %3230 = vadd.xlane.f32.xlu0 %v3207_v53  ;;  %v3686_v53 = vunpack.c.l.bf16 %v15170_v14 }
 0xac0   : > { %2758 = vadd.xlane.f32.xlu1 %v2730_v22  ;;  %v3209_v22 = vunpack.c.h.bf16 %v15148_v60  ;;  %v2735_v42 = vpop.xlane.xlu1 %2734 }
 0xac1   : > { %9487 = vrcp.f32 %v2735_v42  ;;  %v3215_v42 = vunpack.c.h.bf16 %v15174_v39 }
 0xac2   : > { %3704 = vadd.xlane.f32.xlu0 %v3681_v41  ;;  %v12784_v41 = vpop.permute.xlu0 %5519 }
 0xac3   : > { %15173 = vst [vmem:[#allocation139_spill] sm:$0xff] %v12784_v41 }
 0xac4   : > { %3240 = vadd.xlane.f32.xlu1 %v3212_v37  ;;  %v3683_v37 = vunpack.c.h.bf16 %v15152_v4  ;;  %v15176_v4 = vld [vmem:[#allocation126_spill] sm:$0xff] }
 0xac5   : > { %v3688_v31 = vunpack.c.l.bf16 %v15176_v4 }
 0xac6   : > { %2752 = vadd.xlane.f32.xlu0 %v2727_v21  ;;  %v3214_v21 = vunpack.c.l.bf16 %v15174_v39 }
 0xac8   : > { %3714 = vadd.xlane.f32.xlu1 %v3686_v53  ;;  %v15175_v53 = vld [vmem:[#allocation154_spill] sm:$0xff] }
 0xac9   : > { %v2252_v60 = vunpack.c.l.bf16 %v15175_v53  ;;  %v2253_v61 = vunpack.c.h.bf16 %v15175_v53 }
 0xaca   : > { %3234 = vadd.xlane.f32.xlu0 %v3209_v22  ;;  %v12789_v22 = vpop.permute.xlu0 %5840 }
 0xacc   : > { %2762 = vadd.xlane.f32.xlu1 %v2732_v1  ;;  %v3217_v1 = vpop.xlane.xlu1 %3216 }
 0xace   : > { %3708 = vadd.xlane.f32.xlu0 %v3683_v37  ;;  %v3685_v37 = vunpack.c.h.bf16 %v15165_v23  ;;  %v12794_v41 = vpop.permute.xlu0 %5832  ;;  %v15179_v23 = vld [vmem:[#allocation157_spill] sm:$0xff]  ;;  %v9488_v51 = vpop.eup %9487 }
 0xad0   : > { %3244 = vadd.xlane.f32.xlu1 %v3214_v21  ;;  %v15177_v21 = vld [vmem:[#allocation155_spill] sm:$0xff] }
 0xad1   : > { %v2254_v25 = vunpack.c.l.bf16 %v15177_v21  ;;  %v2255_v39 = vunpack.c.h.bf16 %v15177_v21 }
 0xad2   : > { %2756 = vadd.xlane.f32.xlu0 %v2729_v24  ;;  %v3691_v24 = vpop.xlane.xlu1 %3690  ;;  %v2737_v11 = vpop.xlane.xlu0 %2736 }
 0xad3   : > { %9489 = vrcp.f32 %v2737_v11 }
 0xad4   : > { %2268 = vadd.xlane.f32.xlu1 %v2252_v60  ;;  %v15178_v60 = vld [vmem:[#allocation156_spill] sm:$0xff]  ;;  %9491 = vrcp.f32 %v3217_v1 }
 0xad5   : > { %v2256_v40 = vunpack.c.l.bf16 %v15178_v60  ;;  %9493 = vrcp.f32 %v3691_v24 }
 0xad6   : > { %3238 = vadd.xlane.f32.xlu0 %v3211_v47  ;;  %v3213_v47 = vunpack.c.h.bf16 %v15169_v52  ;;  %v15180_v52 = vld [vmem:[#allocation165_spill] sm:$0xff] }
 0xad8   : > { %3718 = vadd.xlane.f32.xlu1 %v3688_v31  ;;  %v12800_v31 = vpop.xlane.xlu1 %2738 }
 0xada   : > { %3712 = vadd.xlane.f32.xlu0 %v3685_v37  ;;  %v2258_v37 = vunpack.c.l.bf16 %v15179_v23 }
 0xadc   : > { %2272 = vadd.xlane.f32.xlu1 %v2254_v25  ;;  %v12804_v25 = vpop.xlane.xlu1 %3220 }
 0xade   : > { %2760 = vadd.xlane.f32.xlu0 %v2731_v20  ;;  %v2733_v20 = vunpack.c.h.bf16 %v15172_v3  ;;  %v3689_v3 = vunpack.c.h.bf16 %v15176_v4 }
 0xae0   : > { %2276 = vadd.xlane.f32.xlu1 %v2256_v40  ;;  %v12808_v40 = vpop.xlane.xlu1 %3694  ;;  %v9490_v11 = vpop.eup %9489 }
 0xae2   : > { %3242 = vadd.xlane.f32.xlu0 %v3213_v47  ;;  %v2911_v47 = vmul.f32 %v9488_v51, %v15180_v52  ;;  %v2257_v51 = vunpack.c.h.bf16 %v15178_v60 }
 0xae4   : > { %2280 = vadd.xlane.f32.xlu1 %v2258_v37  ;;  %v15181_v37 = vld [vmem:[#allocation167_spill] sm:$0xff] }
 0xae5   : > { %v2912_v6 = vmul.f32 %v9490_v11, %v15181_v37 }
 0xae6   : > { %3716 = vadd.xlane.f32.xlu0 %v3687_v59  ;;  %v12813_v59 = vpop.xlane.xlu1 %2742 }
 0xae7   : > { %15182 = vst [vmem:[#allocation124_spill] sm:$0xff] %v12813_v59  ;;  %v8991_v14 = vpack.i.bf16 %v2912_v6, %v2911_v47 }
 0xaea   : > { %2764 = vadd.xlane.f32.xlu0 %v2733_v20  ;;  %v12818_v20 = vpop.xlane.xlu1 %3224 }
 0xaee   : > { %3246 = vadd.xlane.f32.xlu0 %v3215_v42  ;;  %v12821_v53 = vpop.xlane.xlu1 %3698 }
 0xaef   : > { %15183 = vst [vmem:[#allocation94_spill] sm:$0xff] %v12821_v53  ;;  %v15190_v53 = vld [vmem:[#allocation118_spill] sm:$0xff] }
 0xaf2   : > { %2270 = vadd.xlane.f32.xlu0 %v2253_v61  ;;  %v2259_v61 = vunpack.c.h.bf16 %v15179_v23  ;;  %v12824_v6 = vpop.xlane.xlu1 %2746 }
 0xaf3   : > { %15184 = vst [vmem:[#allocation184_spill] sm:$0xff] %v12824_v6 }
 0xaf5   : > { %8992 = vrot.lane.b32.xlu1 %v8991_v14, %s9911_s21 }
 0xaf6   : > { %3720 = vadd.xlane.f32.xlu0 %v3689_v3 }
 0xafa   : > { %2274 = vadd.xlane.f32.xlu0 %v2255_v39 }
 0xafe   : > { %2278 = vadd.xlane.f32.xlu0 %v2257_v51 }
 0xb02   : > { %2282 = vadd.xlane.f32.xlu0 %v2259_v61 }
 0xb03   : > { %v4749_v42 = vpop.xlane.xlu0 %4748 }
 0xb04   : > { %v4778_v37 = vsub.f32 %v12640_v17, %v4749_v42 }
 0xb07   : > { %v4745_v4 = vpop.xlane.xlu0 %4744 }
 0xb08   : > { %v4776_v52 = vsub.f32 %v12645_v16, %v4745_v4 }
 0xb09   : > { %v4747_v11 = vpop.xlane.xlu1 %4746 }
 0xb0a   : > { %v4777_v21 = vsub.f32 %v12650_v50, %v4747_v11 }
 0xb0b   : > { %v4751_v47 = vpop.xlane.xlu0 %4750 }
 0xb0c   : > { %v4792_v14 = vpack.c.bf16 %v4777_v21, %v4776_v52  ;;  %v4779_v60 = vsub.f32 %v12655_v30, %v4751_v47  ;;  %v9492_v30 = vpop.eup %9491  ;;  %v15186_v47 = vld [vmem:[#allocation137_spill] sm:$0xff] }
 0xb0d   : > { %v12830_v3 = vpop.xlane.xlu1 %4752  ;;  %v9494_v1 = vpop.eup %9493 }
 0xb0e   : > { %v4801_v23 = vmul.bf16 1069105081, %v4792_v14  ;;  %v4793_v39 = vpack.c.bf16 %v4779_v60, %v4778_v37  ;;  %v3385_v37 = vmul.f32 %v9492_v30, %v15186_v47  ;;  %v15187_v14 = vld [vmem:[#allocation135_spill] sm:$0xff] }
 0xb0f   : > { %v3219_v51 = vpop.xlane.xlu0 %3218 }
 0xb10   : > { %9495 = vpow.bf16 %v4801_v23  ;;  %v4804_v61 = vmul.bf16 1069105081, %v4793_v39 }
 0xb11   : > { %9497 = vrcp.f32 %v3219_v51  ;;  %v4759_v6 = vpop.xlane.xlu1 %4758  ;;  %v5111_v51 = vsel %vm15188_vm12, %v12550_v48, 0  ;;  %v5108_v48 = vsel %vm15188_vm12, %v12553_v38, 0  ;;  %vm15195_vm12 = vmmov %vm15192_vm9 }
 0xb12   : > { %9499 = vpow.bf16 %v4804_v61 }
 0xb13   : > { %v3693_v16 = vpop.xlane.xlu0 %3692 }
 0xb14   : > { %9501 = vrcp.f32 %v3693_v16 }
 0xb15   : > { %v12832_v50 = vpop.xlane.xlu1 %3228 }
 0xb16   : > { %15185 = vst [vmem:[#allocation154_spill] sm:$0xff] %v12832_v50  ;;  %v3859_v50 = vmul.f32 %v9494_v1, %v15189_v26 }
 0xb17   : > { %v12834_v17 = vpop.xlane.xlu0 %2740 }
 0xb19   : > { %v4765_v42 = vpop.xlane.xlu1 %4764 }
 0xb1b   : > { %v12836_v4 = vpop.xlane.xlu0 %3222 }
 0xb1d   : > { %v4761_v11 = vpop.xlane.xlu1 %4760 }
 0xb1e   : > { %v12838_v52 = vpop.eup %9495 }
 0xb1f   : > { %v9498_v24 = vpop.eup %9497  ;;  %v12840_v21 = vpop.xlane.xlu0 %3696  ;;  %8744 = vmatprep.mubr.bf16.mxu1 %v12838_v52 }
 0xb20   : > { %v3386_v60 = vmul.f32 %v9498_v24, %v15187_v14  ;;  %v12845_v23 = vpop.eup %9499 }
 0xb21   : > { %v9502_v39 = vpop.eup %9501  ;;  %8745 = vmatmul.mubr.bf16.vlgmr.msra.gmra.mxu1 %v12845_v23  ;;  %v4767_v61 = vpop.xlane.xlu1 %4766 }
 0xb22   : > { %v8996_v16 = vpack.i.bf16 %v3386_v60, %v3385_v37  ;;  %8761 = vmatpush3.bf16.xpose.msra.mxu1 %v5111_v51  ;;  %v3860_v59 = vmul.f32 %v9502_v39, %v15190_v53  ;;  %v4784_v51 = vsub.f32 %v12686_v32, %v4761_v11 }
 0xb23   : > { %8953 = vmatprep.subr.msk.bf16.mxu1 %vm15191_vm14, %v12553_v38  ;;  %v12855_v30 = vpop.xlane.xlu0 %2744  ;;  %vm15194_vm14 = vmmov %vm15192_vm9  ;;  %v4783_v38 = vsub.f32 %v12668_v57, %v4759_v6  ;;  %v4787_v57 = vsub.f32 %v12694_v19, %v4767_v61 }
 0xb24   : > { %8997 = vrot.lane.b32.xlu0 %v8996_v16, %s9910_s20  ;;  %v9001_v24 = vpack.i.bf16 %v3860_v59, %v3859_v50  ;;  %v5105_v60 = vsel %vm15194_vm14, %v12567_v33, 0  ;;  %vm15196_vm14 = vmmov %vm15192_vm9 }
 0xb25   : > { %v4763_v47 = vpop.xlane.xlu1 %4762 }
 0xb26   : > { %9002 = vrot.lane.b32.xlu1 %v9001_v24, %s9909_s19  ;;  %v4785_v50 = vsub.f32 %v12702_v8, %v4763_v47  ;;  %v4780_v24 = vsub.f32 %v12662_v18, %v12830_v3  ;;  %v4786_v18 = vsub.f32 %v12680_v36, %v4765_v42 }
 0xb27   : > { %v12858_v14 = vpop.xlane.xlu0 %3226 }
 0xb28   : > { %v4796_v47 = vpack.c.bf16 %v4785_v50, %v4784_v51  ;;  %v4797_v3 = vpack.c.bf16 %v4787_v57, %v4786_v18  ;;  %v15197_v50 = vld [vmem:[#allocation158_spill] sm:$0xff] }
 0xb29   : > { %v12862_v37 = vpop.xlane.xlu1 %3702 }
 0xb2a   : > { %8763 = vmatpush3.bf16.xpose.msra.mxu1 %v5108_v48  ;;  %v4813_v11 = vmul.bf16 1069105081, %v4796_v47 }
 0xb2b   : > { %8954 = vmatprep.subr.msk.bf16.mxu1 %vm15192_vm9, %v12567_v33  ;;  %v12866_v26 = vpop.xlane.xlu0 %3700 }
 0xb2d   : > { %v12868_v53 = vpop.xlane.xlu1 %2750 }
 0xb2e   : > { %15193 = vst [vmem:[#allocation126_spill] sm:$0xff] %v12868_v53 }
 0xb2f   : > { %v4757_v1 = vpop.xlane.xlu0 %4756 }
 0xb30   : > { %v4782_v59 = vsub.f32 %v12715_v10, %v4757_v1 }
 0xb31   : > { %v12874_v39 = vpop.xlane.xlu1 %3232 }
 0xb32   : > { %8765 = vmatpush3.bf16.xpose.msra.mxu1 %v5105_v60  ;;  %v4795_v10 = vpack.c.bf16 %v4783_v38, %v4782_v59  ;;  %v5102_v60 = vsel %vm15195_vm12, %v12557_v0, 0  ;;  %v4816_v59 = vmul.bf16 1069105081, %v4797_v3  ;;  %v2260_v38 = vunpack.c.l.bf16 %v15197_v50  ;;  %vm15198_vm12 = vmmov %vm15192_vm9  ;;  %v15204_v3 = vld [vmem:[#allocation136_spill] sm:$0xff] }
 0xb33   : > { %8955 = vmatprep.subr.msk.bf16.mxu1 %vm15192_vm9, %v12557_v0  ;;  %v4755_v16 = vpop.xlane.xlu0 %4754  ;;  %v5099_v0 = vsel %vm15192_vm9, %v12569_v27, 0 }
 0xb34   : > { %v4781_v8 = vsub.f32 %v12723_v63, %v4755_v16  ;;  %v4810_v6 = vmul.bf16 1069105081, %v4795_v10 }
 0xb35   : > { %v12883_v48 = vpop.xlane.xlu1 %3706 }
 0xb36   : > { %v4794_v33 = vpack.c.bf16 %v4781_v8, %v4780_v24 }
 0xb37   : > { %v12885_v1 = vpop.xlane.xlu0 %2748 }
 0xb38   : > { %v4807_v32 = vmul.bf16 1069105081, %v4794_v33  ;;  %v15201_v33 = vld [vmem:[#allocation166_spill] sm:$0xff] }
 0xb39   : > { %v12890_v53 = vpop.xlane.xlu1 %2754 }
 0xb3a   : > { %9503 = vpow.bf16 %v4807_v32  ;;  %8767 = vmatpush3.bf16.xpose.msra.mxu1 %v5102_v60 }
 0xb3b   : > { %8956 = vmatprep.subr.msk.bf16.mxu1 %vm15196_vm14, %v12569_v27  ;;  %v4773_v63 = vpop.xlane.xlu0 %4772  ;;  %9505 = vpow.bf16 %v4810_v6  ;;  %vm15199_vm14 = vmmov %vm15192_vm9 }
 0xb3c   : > { %9507 = vpow.bf16 %v4813_v11  ;;  %v4790_v24 = vsub.f32 %v12737_v56, %v4773_v63  ;;  %v5096_v56 = vsel %vm15199_vm14, %v12561_v9, 0  ;;  %vm15202_vm14 = vmmov %vm15192_vm9 }
 0xb3d   : > { %v12895_v19 = vpop.xlane.xlu1 %3236  ;;  %9509 = vrcp.f32 %v12834_v17 }
 0xb3e   : > { %9511 = vrcp.f32 %v12800_v31  ;;  %v2261_v31 = vunpack.c.h.bf16 %v15197_v50 }
 0xb3f   : > { %v4769_v61 = vpop.xlane.xlu0 %4768  ;;  %9513 = vpow.bf16 %v4816_v59  ;;  %v15205_v59 = vld [vmem:[#allocation138_spill] sm:$0xff] }
 0xb40   : > { %v4788_v36 = vsub.f32 %v12745_v54, %v4769_v61  ;;  %9515 = vrcp.f32 %v12836_v4 }
 0xb41   : > { %v4771_v51 = vpop.xlane.xlu1 %4770  ;;  %9517 = vrcp.f32 %v12804_v25 }
 0xb42   : > { %8769 = vmatpush3.bf16.xpose.msra.mxu1 %v5099_v0  ;;  %v4789_v42 = vsub.f32 %v12752_v45, %v4771_v51  ;;  %v5090_v0 = vsel %vm15192_vm9, %v12575_v49, 0 }
 0xb43   : > { %2284 = vadd.xlane.f32.xlu0 %v2260_v38  ;;  %8957 = vmatprep.subr.msk.bf16.mxu1 %vm15198_vm12, %v12561_v9  ;;  %v4775_v16 = vpop.xlane.xlu0 %4774  ;;  %vm15200_vm12 = vmmov %vm15192_vm9 }
 0xb44   : > { %v4798_v10 = vpack.c.bf16 %v4789_v42, %v4788_v36  ;;  %v4791_v27 = vsub.f32 %v12759_v43, %v4775_v16  ;;  %v5093_v9 = vsel %vm15200_vm12, %v12564_v2, 0  ;;  %v15206_v36 = vld [vmem:[#allocation120_spill] sm:$0xff]  ;;  %vm15207_vm12 = vmmov %vm15192_vm9  ;;  %v15208_v16 = vld [vmem:[#allocation122_spill] sm:$0xff] }
 0xb46   : > { %v4819_v17 = vmul.bf16 1069105081, %v4798_v10  ;;  %v4799_v54 = vpack.c.bf16 %v4791_v27, %v4790_v24  ;;  %v15221_v27 = vld [vmem:[#allocation111_spill] sm:$0xff] }
 0xb48   : > { %v12910_v8 = vpop.eup %9503  ;;  %9519 = vpow.bf16 %v4819_v17  ;;  %v4822_v45 = vmul.bf16 1069105081, %v4799_v54  ;;  %v15222_v54 = vld [vmem:[#allocation116_spill] sm:$0xff] }
 0xb49   : > { %9521 = vrcp.f32 %v12840_v21  ;;  %8748 = vmatprep.mubr.bf16.mxu1 %v12910_v8  ;;  %v12917_v43 = vpop.eup %9505 }
 0xb4a   : > { %9523 = vpow.bf16 %v4822_v45  ;;  %8771 = vmatpush3.bf16.xpose.msra.mxu1 %v5096_v56  ;;  %2286 = vadd.xlane.f32.xlu1 %v2261_v31  ;;  %v12919_v4 = vpop.eup %9507  ;;  %v15223_v56 = vld [vmem:[#allocation160_spill] sm:$0xff] }
 0xb4b   : > { %8749 = vmatmul.mubr.bf16.gmra.mxu1 %v12917_v43  ;;  %8958 = vmatprep.subr.msk.bf16.mxu1 %vm15192_vm9, %v12564_v2  ;;  %9525 = vrcp.f32 %v12808_v40  ;;  %v9510_v25 = vpop.eup %9509  ;;  %v15203_v40 = vld [vmem:[#allocation164_spill] sm:$0xff] }
 0xb4c   : > { %8752 = vmatprep.mubr.bf16.mxu1 %v12919_v4  ;;  %v9512_v21 = vpop.eup %9511  ;;  %v2914_v57 = vmul.f32 %v9510_v25, %v15201_v33  ;;  %9527 = vrcp.f32 %v12858_v14  ;;  %v2264_v25 = vunpack.c.l.bf16 %v15223_v56  ;;  %v4831_v33 = vunpack.c.h.bf16 %v12917_v43 }
 0xb4d   : > { %v12928_v47 = vpop.eup %9513  ;;  %v2913_v11 = vmul.f32 %v9512_v21, %v15203_v40  ;;  %9529 = vrcp.f32 %v12818_v20  ;;  %v15220_v20 = vld [vmem:[#allocation169_spill] sm:$0xff]  ;;  %v4827_v21 = vunpack.c.h.bf16 %v12845_v23  ;;  %v4826_v40 = vunpack.c.l.bf16 %v12845_v23  ;;  %v15224_v23 = vld [vmem:[#allocation154_spill] sm:$0xff] }
 0xb4e   : > { %v9516_v6 = vpop.eup %9515  ;;  %9531 = vrcp.f32 %v12855_v30 }
 0xb4f   : > { %v9518_v32 = vpop.eup %9517  ;;  %v9006_v63 = vpack.i.bf16 %v2914_v57, %v2913_v11  ;;  %v3388_v2 = vmul.f32 %v9516_v6, %v15204_v3  ;;  %v4829_v57 = vunpack.c.h.bf16 %v12910_v8  ;;  %v2265_v6 = vunpack.c.h.bf16 %v15223_v56 }
 0xb50   : > { %v3387_v50 = vmul.f32 %v9518_v32, %v15205_v59  ;;  %v4835_v32 = vunpack.c.h.bf16 %v12928_v47  ;;  %v4832_v11 = vunpack.c.l.bf16 %v12919_v4  ;;  %v4828_v3 = vunpack.c.l.bf16 %v12910_v8 }
 0xb51   : > { %v4834_v59 = vunpack.c.l.bf16 %v12928_v47 }
 0xb52   : > { %8773 = vmatpush3.bf16.xpose.msra.mxu1 %v5093_v9  ;;  %v9011_v51 = vpack.i.bf16 %v3388_v2, %v3387_v50  ;;  %v4825_v9 = vunpack.c.h.bf16 %v12838_v52  ;;  %v3231_v2 = vpop.xlane.xlu0 %3230  ;;  %v4833_v50 = vunpack.c.h.bf16 %v12919_v4 }
 0xb53   : > { %8753 = vmatmul.mubr.bf16.gmra.mxu1 %v12928_v47  ;;  %8959 = vmatprep.subr.msk.bf16.mxu1 %vm15202_vm14, %v12575_v49  ;;  %vm15209_vm14 = vmmov %vm15192_vm9 }
 0xb56   : > { %v12935_v60 = vpop.eup %9519 }
 0xb57   : > { %v9522_v18 = vpop.eup %9521  ;;  %8756 = vmatprep.mubr.bf16.mxu1 %v12935_v60 }
 0xb58   : > { %v12939_v61 = vpop.eup %9523  ;;  %v3862_v42 = vmul.f32 %v9522_v18, %v15206_v36  ;;  %v4824_v18 = vunpack.c.l.bf16 %v12838_v52  ;;  %v15226_v36 = vld [vmem:[#allocation134_spill] sm:$0xff] }
 0xb59   : > { %9007 = vrot.lane.b32.xlu0 %v9006_v63, %s9911_s21  ;;  %v9526_v38 = vpop.eup %9525  ;;  %v4830_v63 = vunpack.c.l.bf16 %v12917_v43 }
 0xb5a   : > { %8775 = vmatpush3.bf16.xpose.msra.mxu1 %v5090_v0  ;;  %v3861_v24 = vmul.f32 %v9526_v38, %v15208_v16  ;;  %v15225_v0 = vld [vmem:[#allocation132_spill] sm:$0xff] }
 0xb5b   : > { %8757 = vmatmul.mubr.bf16.gmra.mxu1 %v12939_v61  ;;  %8856 = vmatprep.subr.bf16.mxu1 %v12730_v55 }
 0xb5c   : > { %9012 = vrot.lane.b32.xlu1 %v9011_v51, %s9910_s20  ;;  %8776 = vmatprep.mubr.msk.bf16.mxu1 %vm15207_vm12, %v12571_v12  ;;  %v9016_v10 = vpack.i.bf16 %v3862_v42, %v3861_v24  ;;  %vm15210_vm12 = vmmov %vm15192_vm9  ;;  %v15214_v12 = vld [vmem:[#allocation159_spill] sm:$0xff] }
 0xb5d   : > { %v2263_v49 = vunpack.c.h.bf16 %v15214_v12 }
 0xb60   : > { %9017 = vrot.lane.b32.xlu1 %v9016_v10, %s9909_s19  ;;  %v13025_v10 = vpop.xlane.xlu0 %3704 }
 0xb63   : > { %8777 = vmatmul.mubr.msk.bf16.vlgmr.msra.gmra.mxu1 %vm15209_vm14, %v12582_v58  ;;  %vm15212_vm14 = vmmov %vm15211_vm5  ;;  %v2262_v58 = vunpack.c.l.bf16 %v15214_v12 }
 0xb64   : > { %8857 = vmatpush3.bf16.msra.mxu1 %v12730_v55  ;;  %8780 = vmatprep.mubr.msk.bf16.mxu1 %vm15192_vm9, %v12580_v5  ;;  %vm15213_vm9 = vmmov %vm15211_vm5  ;;  %v15215_v5 = vld [vmem:[#allocation124_spill] sm:$0xff] }
 0xb65   : > { %8858 = vmatprep.subr.bf16.mxu1 %v12789_v22  ;;  %9533 = vrcp.f32 %v15215_v5  ;;  %v13033_v5 = vpop.xlane.xlu0 %2752 }
 0xb66   : > { %9535 = vrcp.f32 %v12866_v26 }
 0xb68   : > { %8859 = vmatpush3.bf16.msra.mxu1 %v12789_v22 }
 0xb69   : > { %8860 = vmatprep.subr.bf16.mxu1 %v12741_v44 }
 0xb6b   : > { %8781 = vmatmul.mubr.msk.bf16.gmra.mxu1 %vm15210_vm12, %v12585_v62  ;;  %v9528_v62 = vpop.eup %9527 }
 0xb6c   : > { %8861 = vmatpush3.bf16.msra.mxu1 %v12741_v44  ;;  %8784 = vmatprep.mubr.msk.bf16.mxu1 %vm15211_vm5, %v12587_v7  ;;  %v15216_v7 = vld [vmem:[#allocation94_spill] sm:$0xff]  ;;  %v15219_v44 = vld [vmem:[#allocation171_spill] sm:$0xff] }
 0xb6d   : > { %8862 = vmatprep.subr.bf16.mxu1 %v12755_v13  ;;  %9537 = vrcp.f32 %v15216_v7 }
 0xb6e   : > { %9539 = vrcp.f32 %v3231_v2 }
 0xb6f   : > { %9541 = vrcp.f32 %v15224_v23 }
 0xb70   : > { %8863 = vmatpush3.bf16.msra.mxu1 %v12755_v13  ;;  %9543 = vrcp.f32 %v12885_v1 }
 0xb71   : > { %8864 = vmatprep.subr.bf16.mxu1 %v12767_v35 }
 0xb73   : > { %8785 = vmatmul.mubr.msk.bf16.gmra.mxu1 %vm15212_vm14, %v12590_v28  ;;  %v9530_v28 = vpop.eup %9529 }
 0xb74   : > { %8865 = vmatpush3.bf16.msra.mxu1 %v12767_v35  ;;  %8788 = vmatprep.mubr.msk.bf16.mxu1 %vm15213_vm9, %v12593_v46  ;;  %v15217_v46 = vld [vmem:[#allocation185_spill] sm:$0xff]  ;;  %v9532_v35 = vpop.eup %9531 }
 0xb75   : > { %8866 = vmatprep.subr.bf16.mxu1 %v12794_v41 }
 0xb78   : > { %2290 = vadd.xlane.f32.xlu0 %v2263_v49  ;;  %8867 = vmatpush3.bf16.msra.mxu1 %v12794_v41  ;;  %v2916_v41 = vmul.f32 %v9532_v35, %v15219_v44 }
 0xb79   : > { %8868 = vmatprep.subr.bf16.mxu1 %v12774_v29 }
 0xb7b   : > { %8789 = vmatmul.mubr.msk.bf16.gmra.mxu1 %vm15211_vm5, %v12595_v34  ;;  %v3390_v34 = vmul.f32 %v9528_v62, %v15217_v46 }
 0xb7c   : > { %8869 = vmatpush3.bf16.msra.mxu1 %v12774_v29  ;;  %v15218_v29 = vld [vmem:[#allocation133_spill] sm:$0xff] }
 0xb7d   : > { %8870 = vmatprep.subr.bf16.mxu1 %v12781_v15  ;;  %v3389_v55 = vmul.f32 %v9530_v28, %v15218_v29  ;;  %v13041_v28 = vpop.xlane.xlu0 %3234 }
 0xb7f   : > { %v9026_v13 = vpack.i.bf16 %v3390_v34, %v3389_v55  ;;  %v13049_v55 = vpop.xlane.xlu1 %3710 }
 0xb80   : > { %8871 = vmatpush3.bf16.msra.mxu1 %v12781_v15  ;;  %v9534_v15 = vpop.eup %9533 }
 0xb81   : > { %v9536_v22 = vpop.eup %9535  ;;  %v2915_v30 = vmul.f32 %v9534_v15, %v15220_v20 }
 0xb82   : > { %v9538_v14 = vpop.eup %9537  ;;  %v3864_v17 = vmul.f32 %v9536_v22, %v15221_v27 }
 0xb83   : > { %v9021_v26 = vpack.i.bf16 %v2916_v41, %v2915_v30  ;;  %v3863_v45 = vmul.f32 %v9538_v14, %v15222_v54  ;;  %v9540_v38 = vpop.eup %9539  ;;  %v13059_v41 = vpop.xlane.xlu1 %2758 }
 0xb84   : > { %2288 = vadd.xlane.f32.xlu1 %v2262_v58  ;;  %v9542_v52 = vpop.eup %9541  ;;  %v3392_v51 = vmul.f32 %v9540_v38, %v15225_v0 }
 0xb85   : > { %v9031_v31 = vpack.i.bf16 %v3864_v17, %v3863_v45  ;;  %v3391_v43 = vmul.f32 %v9542_v52, %v15226_v36 }
 0xb87   : > { %v9041_v42 = vpack.i.bf16 %v3392_v51, %v3391_v43  ;;  %v13068_v17 = vpop.xlane.xlu1 %3240 }
 0xb8e   : > { %9027 = vrot.lane.b32.xlu0 %v9026_v13, %s9910_s20  ;;  %v13051_v13 = vpop.xlane.xlu0 %3708 }
 0xb92   : > { %v13061_v22 = vpop.xlane.xlu0 %2756 }
 0xb95   : > { %9022 = vrot.lane.b32.xlu1 %v9021_v26, %s9911_s21 }
 0xb96   : > { %v13070_v54 = vpop.xlane.xlu0 %3238 }
 0xb99   : > { %9032 = vrot.lane.b32.xlu1 %v9031_v31, %s9909_s19 }
 0xbad   : > { %2292 = vadd.xlane.f32.xlu0 %v2264_v25 }
 0xbb1   : > { %4846 = vadd.xlane.f32.xlu0 %v4827_v21 }
 0xbb5   : > { %4842 = vadd.xlane.f32.xlu0 %v4825_v9 }
 0xbb9   : > { %4854 = vadd.xlane.f32.xlu0 %v4831_v33  ;;  %v4836_v33 = vunpack.c.l.bf16 %v12935_v60 }
 0xbbd   : > { %4850 = vadd.xlane.f32.xlu0 %v4829_v57  ;;  %2294 = vadd.xlane.f32.xlu1 %v2265_v6 }
 0xbc1   : > { %4862 = vadd.xlane.f32.xlu0 %v4835_v32  ;;  %4844 = vadd.xlane.f32.xlu1 %v4826_v40  ;;  %v13088_v32 = vpop.xlane.xlu1 %3714  ;;  %v13090_v40 = vpop.xlane.xlu0 %3712 }
 0xbc5   : > { %4856 = vadd.xlane.f32.xlu0 %v4832_v11  ;;  %4840 = vadd.xlane.f32.xlu1 %v4824_v18  ;;  %v13105_v38 = vpop.xlane.xlu0 %2760 }
 0xbc9   : > { %4852 = vadd.xlane.f32.xlu1 %v4830_v63  ;;  %v15248_v63 = vld [vmem:[#allocation184_spill] sm:$0xff] }
 0xbca   : > { %9545 = vrcp.f32 %v15248_v63 }
 0xbcb   : > { %9547 = vrcp.f32 %v13025_v10 }
 0xbcc   : > { %9549 = vrcp.f32 %v12862_v37  ;;  %v15257_v37 = vld [vmem:[#allocation114_spill] sm:$0xff] }
 0xbcd   : > { %4848 = vadd.xlane.f32.xlu1 %v4828_v3  ;;  %9551 = vrcp.f32 %v13041_v28 }
 0xbce   : > { %9553 = vrcp.f32 %v13033_v5 }
 0xbcf   : > { %9555 = vrcp.f32 %v12874_v39 }
 0xbd1   : > { %4860 = vadd.xlane.f32.xlu1 %v4834_v59  ;;  %v15268_v59 = vld [vmem:[#allocation38_spill] sm:$0xff] }
 0xbd2   : > { %vm15269_vm9 = vnez %v15268_v59  ;;  %v15276_v59 = vld [vmem:[#allocation161_spill] sm:$0xff] }
 0xbd3   : > { %v2267_v45 = vunpack.c.h.bf16 %v15276_v59 }
 0xbd5   : > { %4858 = vadd.xlane.f32.xlu1 %v4833_v50  ;;  %v13103_v50 = vpop.xlane.xlu1 %2762 }
 0xbe1   : > { %v13017_v8 = vpop.f32.mrf.mxu1 }
 0xbe2   : > { %15227 = vst [vmem:[#allocation155_spill] sm:$0xff] %v13017_v8 }
 0xbe3   : > { %v13019_v16 = vpop.f32.mrf.mxu1 }
 0xbe4   : > { %15228 = vst [vmem:[#allocation156_spill] sm:$0xff] %v13019_v16 }
 0xbe5   : > { %v13021_v47 = vpop.f32.mrf.mxu1 }
 0xbe6   : > { %9042 = vrot.lane.b32.xlu1 %v9041_v42, %s9910_s20  ;;  %15229 = vst [vmem:[#allocation157_spill] sm:$0xff] %v13021_v47  ;;  %v9544_v42 = vpop.eup %9543  ;;  %v15258_v47 = vld [vmem:[#allocation115_spill] sm:$0xff] }
 0xbe7   : > { %v13023_v24 = vpop.f32.mrf.mxu1  ;;  %v9546_v63 = vpop.eup %9545 }
 0xbe8   : > { %15230 = vst [vmem:[#allocation165_spill] sm:$0xff] %v13023_v24 }
 0xc0b   : > { %v13027_v4 = vpop.f32.mrf.mxu1 }
 0xc0c   : > { %15231 = vst [vmem:[#allocation167_spill] sm:$0xff] %v13027_v4 }
 0xc0d   : > { %v13029_v12 = vpop.f32.mrf.mxu1 }
 0xc0e   : > { %15232 = vst [vmem:[#allocation137_spill] sm:$0xff] %v13029_v12 }
 0xc0f   : > { %v13031_v49 = vpop.f32.mrf.mxu1 }
 0xc10   : > { %15233 = vst [vmem:[#allocation135_spill] sm:$0xff] %v13031_v49 }
 0xc11   : > { %v13035_v58 = vpop.f32.mrf.mxu1 }
 0xc12   : > { %15234 = vst [vmem:[#allocation119_spill] sm:$0xff] %v13035_v58 }
 0xc13   : > { %v13037_v62 = vpop.f32.mrf.mxu1 }
 0xc14   : > { %15235 = vst [vmem:[#allocation118_spill] sm:$0xff] %v13037_v62 }
 0xc15   : > { %v13039_v7 = vpop.f32.mrf.mxu1 }
 0xc16   : > { %15236 = vst [vmem:[#allocation158_spill] sm:$0xff] %v13039_v7  ;;  %v15254_v7 = vld [vmem:[#allocation168_spill] sm:$0xff] }
 0xc17   : > { %v13043_v46 = vpop.f32.mrf.mxu1 }
 0xc18   : > { %15237 = vst [vmem:[#allocation166_spill] sm:$0xff] %v13043_v46  ;;  %v2917_v46 = vmul.f32 %v9546_v63, %v15254_v7 }
 0xc19   : > { %v13045_v34 = vpop.f32.mrf.mxu1 }
 0xc1a   : > { %15238 = vst [vmem:[#allocation164_spill] sm:$0xff] %v13045_v34 }
 0xc1b   : > { %v13047_v29 = vpop.f32.mrf.mxu1 }
 0xc1c   : > { %15239 = vst [vmem:[#allocation136_spill] sm:$0xff] %v13047_v29 }
 0xc1d   : > { %v13053_v35 = vpop.f32.mrf.mxu1 }
 0xc1e   : > { %15240 = vst [vmem:[#allocation138_spill] sm:$0xff] %v13053_v35 }
 0xc1f   : > { %v13055_v15 = vpop.f32.mrf.mxu1 }
 0xc20   : > { %15241 = vst [vmem:[#allocation120_spill] sm:$0xff] %v13055_v15 }
 0xc21   : > { %v13057_v44 = vpop.f32.mrf.mxu1 }
 0xc22   : > { %15242 = vst [vmem:[#allocation122_spill] sm:$0xff] %v13057_v44 }
 0xc23   : > { %v8778_v20 = vpop.f32.mrf.mxu1 }
 0xc24   : > { %v13065_v14 = vsel %vm10136_vm2, %v8778_v20, -inf  ;;  %v13112_v20 = vpop.xlane.xlu1 %3244 }
 0xc25   : > { %5230 = vmax.xlane.f32.xlu0 %v13065_v14  ;;  %v5147_v26 = vpop.f32.mrf.mxu1 }
 0xc26   : > { %v13074_v31 = vsel %vm10113_vm0, %v5147_v26, -inf  ;;  %v13114_v26 = vpop.xlane.xlu0 %3242 }
 0xc27   : > { %v8779_v27 = vpop.f32.mrf.mxu1 }
 0xc28   : > { %v13084_v57 = vsel %vm10140_vm3, %v8779_v27, -inf  ;;  %v13128_v34 = vpop.xlane.xlu1 %2268 }
 0xc29   : > { %5226 = vmax.xlane.f32.xlu0 %v13074_v31  ;;  %v5150_v56 = vpop.f32.mrf.mxu1 }
 0xc2a   : > { %v13079_v21 = vsel %vm10132_vm1, %v5150_v56, -inf }
 0xc2b   : > { %5228 = vmax.xlane.f32.xlu1 %v13079_v21  ;;  %v8782_v9 = vpop.f32.mrf.mxu1 }
 0xc2c   : > { %v13170_v27 = vsel %vm10167_vm6, %v8782_v9, -inf }
 0xc2d   : > { %5232 = vmax.xlane.f32.xlu0 %v13084_v57  ;;  %v5163_v6 = vpop.f32.mrf.mxu1 }
 0xc2e   : > { %v13094_v18 = vsel %vm10144_vm4, %v5163_v6, -inf }
 0xc2f   : > { %5234 = vmax.xlane.f32.xlu1 %v13094_v18  ;;  %v8783_v3 = vpop.f32.mrf.mxu1 }
 0xc30   : > { %v13100_v1 = vsel %vm10171_vm7, %v8783_v3, -inf }
 0xc31   : > { %v5166_v2 = vpop.f32.mrf.mxu1 }
 0xc33   : > { %5240 = vmax.xlane.f32.xlu1 %v13100_v1  ;;  %v8786_v23 = vpop.f32.mrf.mxu1 }
 0xc34   : > { %v13109_v51 = vsel %vm15080_vm8, %v8786_v23, -inf  ;;  %v15252_v23 = vld [vmem:[#allocation170_spill] sm:$0xff] }
 0xc35   : > { %v5179_v52 = vpop.f32.mrf.mxu1  ;;  %v2918_v35 = vmul.f32 %v9544_v42, %v15252_v23 }
 0xc36   : > { %v13118_v56 = vsel %vm15081_vm10, %v5179_v52, -inf  ;;  %v13130_v52 = vpop.xlane.xlu0 %3716 }
 0xc37   : > { %5246 = vmax.xlane.f32.xlu1 %v13109_v51  ;;  %v8787_v36 = vpop.f32.mrf.mxu1  ;;  %v9036_v62 = vpack.i.bf16 %v2918_v35, %v2917_v46 }
 0xc38   : > { %v13124_v44 = vsel %vm15082_vm15, %v8787_v36, -inf  ;;  %v13140_v36 = vpop.xlane.xlu1 %3718 }
 0xc39   : > { %v5182_v43 = vpop.f32.mrf.mxu1 }
 0xc3a   : > { %v13135_v4 = vsel %vm15001_vm13, %v5182_v43, -inf  ;;  %v13142_v7 = vpop.xlane.xlu0 %2764  ;;  %v9548_v43 = vpop.eup %9547 }
 0xc3b   : > { %5242 = vmax.xlane.f32.xlu1 %v13118_v56  ;;  %v8790_v6 = vpop.f32.mrf.mxu1  ;;  %v3866_v12 = vmul.f32 %v9548_v43, %v15257_v37 }
 0xc3c   : > { %v13149_v10 = vpop.xlane.xlu1 %2272 }
 0xc3d   : > { %v5195_v3 = vpop.f32.mrf.mxu1 }
 0xc3e   : > { %v13151_v35 = vpop.xlane.xlu0 %3246  ;;  %v13195_v11 = vsel %vm15269_vm9, %v5195_v3, -inf }
 0xc3f   : > { %5248 = vmax.xlane.f32.xlu1 %v13124_v44  ;;  %v8791_v29 = vpop.f32.mrf.mxu1 }
 0xc40   : > { %v13153_v23 = vpop.xlane.xlu1 %2276 }
 0xc41   : > { %v5198_v42 = vpop.f32.mrf.mxu1 }
 0xc42   : > { %v13146_v46 = vsel %vm15162_vm11, %v5198_v42, -inf  ;;  %v13155_v58 = vpop.xlane.xlu0 %2270  ;;  %vm15302_vm11 = vcmask 261120  }
 0xc43   : > { %9037 = vrot.lane.b32.xlu0 %v9036_v62, %s9911_s21  ;;  %5244 = vmax.xlane.f32.xlu1 %v13135_v4  ;;  %v9550_v62 = vpop.eup %9549 }
 0xc44   : > { %v3865_v8 = vmul.f32 %v9550_v62, %v15258_v47  ;;  %v13159_v63 = vpop.xlane.xlu1 %2280 }
 0xc45   : > { %15259 = vst [vmem:[#allocation159_spill] sm:$0xff] %v13159_v63 }
 0xc46   : > { %v9046_v49 = vpack.i.bf16 %v3866_v12, %v3865_v8  ;;  %v13161_v42 = vpop.xlane.xlu0 %3720  ;;  %v15261_v8 = vld [vmem:[#allocation28_spill] sm:$0xff] }
 0xc47   : > { %5252 = vmax.xlane.f32.xlu1 %v13146_v46  ;;  %vm15262_vm12 = vnez %v15261_v8  ;;  %v15270_v8 = vld [vmem:[#allocation44_spill] sm:$0xff] }
 0xc48   : > { %v13164_v24 = vpop.permute.xlu1 %8992  ;;  %v13179_v12 = vsel %vm15262_vm12, %v5166_v2, -inf  ;;  %vm15271_vm5 = vnez %v15270_v8 }
 0xc49   : > { %v13202_v15 = vsel %vm15271_vm5, %v8791_v29, -inf  ;;  %v4837_v29 = vunpack.c.h.bf16 %v12935_v60  ;;  %vm15305_vm5 = vmmov %vm15302_vm11 }
 0xc4a   : > { %v13166_v16 = vpop.xlane.xlu0 %2274  ;;  %vm15307_vm9 = vmmov %vm15305_vm5 }
 0xc4b   : > { %vm15312_vm13 = vmmov %vm15305_vm5 }
 0xc4c   : > { %v13172_v0 = vpop.permute.xlu1 %9002 }
 0xc4e   : > { %v13175_v47 = vpop.xlane.xlu0 %2278 }
 0xc50   : > { %v13181_v43 = vpop.xlane.xlu1 %2286 }
 0xc51   : > { %15263 = vst [vmem:[#allocation124_spill] sm:$0xff] %v13181_v43 }
 0xc52   : > { %v13188_v9 = vpop.xlane.xlu0 %2282 }
 0xc53   : > { %15266 = vst [vmem:[#allocation94_spill] sm:$0xff] %v13188_v9  ;;  %v15289_v9 = vld [vmem:[#allocation108_spill] sm:$0xff] }
 0xc54   : > { %v13191_v37 = vpop.permute.xlu1 %9012 }
 0xc55   : > { %15267 = vst [vmem:[#allocation185_spill] sm:$0xff] %v13191_v37 }
 0xc56   : > { %v13197_v2 = vpop.permute.xlu0 %8997 }
 0xc58   : > { %9047 = vrot.lane.b32.xlu1 %v9046_v49, %s9909_s19  ;;  %v15264_v49 = vld [vmem:[#allocation43_spill] sm:$0xff] }
 0xc59   : > { %vm15265_vm14 = vnez %v15264_v49  ;;  %v13206_v49 = vpop.permute.xlu1 %9017 }
 0xc5a   : > { %v13186_v62 = vsel %vm15265_vm14, %v8790_v6, -inf  ;;  %v13204_v6 = vpop.xlane.xlu0 %2284  ;;  %15273 = vst [vmem:[#allocation171_spill] sm:$0xff] %v13206_v49  ;;  %v15288_v49 = vld [vmem:[#allocation173_spill] sm:$0xff]  ;;  %vm15310_vm14 = vmmov %vm15305_vm5 }
 0xc5b   : > { %15272 = vst [vmem:[#allocation133_spill] sm:$0xff] %v13204_v6 }
 0xc5d   : > { %v13210_v25 = vpop.xlane.xlu1 %2288 }
 0xc5e   : > { %15274 = vst [vmem:[#allocation169_spill] sm:$0xff] %v13210_v25  ;;  %v13212_v3 = vpop.permute.xlu0 %9007  ;;  %v15279_v25 = vld [vmem:[#allocation126_spill] sm:$0xff] }
 0xc5f   : > { %15275 = vst [vmem:[#allocation111_spill] sm:$0xff] %v13212_v3  ;;  %9557 = vrcp.f32 %v15279_v25  ;;  %v15284_v25 = vld [vmem:[#allocation189_spill] sm:$0xff] }
 0xc60   : > { %9559 = vrcp.f32 %v13051_v13 }
 0xc61   : > { %v13221_v30 = vpop.permute.xlu1 %9022  ;;  %9561 = vrcp.f32 %v12883_v48 }
 0xc62   : > { %5238 = vmax.xlane.f32.xlu0 %v13170_v27  ;;  %v13219_v8 = vpop.xlane.xlu0 %2290  ;;  %15278 = vst [vmem:[#allocation160_spill] sm:$0xff] %v13221_v30  ;;  %9563 = vrcp.f32 %v13061_v22 }
 0xc63   : > { %15277 = vst [vmem:[#allocation116_spill] sm:$0xff] %v13219_v8  ;;  %9565 = vrcp.f32 %v12890_v53 }
 0xc64   : > { %9567 = vrcp.f32 %v13070_v54 }
 0xc65   : > { %v13229_v60 = vpop.permute.xlu1 %9032  ;;  %9569 = vrcp.f32 %v12895_v19  ;;  %v15299_v19 = vld [vmem:[#allocation188_spill] sm:$0xff] }
 0xc66   : > { %5236 = vmax.xlane.f32.xlu0 %v13179_v12  ;;  %v13227_v28 = vpop.permute.xlu0 %9027  ;;  %15281 = vst [vmem:[#allocation132_spill] sm:$0xff] %v13229_v60 }
 0xc67   : > { %15280 = vst [vmem:[#allocation154_spill] sm:$0xff] %v13227_v28  ;;  %v15287_v28 = vld [vmem:[#allocation187_spill] sm:$0xff] }
 0xc69   : > { %v13233_v39 = vpop.xlane.xlu1 %2294 }
 0xc6a   : > { %5254 = vmax.xlane.f32.xlu0 %v13186_v62  ;;  %v13231_v5 = vpop.xlane.xlu0 %2292  ;;  %15283 = vst [vmem:[#allocation184_spill] sm:$0xff] %v13233_v39 }
 0xc6b   : > { %15282 = vst [vmem:[#allocation134_spill] sm:$0xff] %v13231_v5 }
 0xc6d   : > { %v13239_v48 = vpop.xlane.xlu1 %4844 }
 0xc6e   : > { %5250 = vmax.xlane.f32.xlu0 %v13195_v11 }
 0xc72   : > { %5256 = vmax.xlane.f32.xlu0 %v13202_v15 }
 0xc76   : > { %4864 = vadd.xlane.f32.xlu0 %v4836_v33  ;;  %v2266_v33 = vunpack.c.l.bf16 %v15276_v59  ;;  %v15285_v59 = vld [vmem:[#allocation175_spill] sm:$0xff] }
 0xc7a   : > { %2298 = vadd.xlane.f32.xlu0 %v2267_v45  ;;  %v9552_v45 = vpop.eup %9551 }
 0xc7b   : > { %v9554_v8 = vpop.eup %9553  ;;  %v3394_v6 = vmul.f32 %v9552_v45, %v15284_v25 }
 0xc7c   : > { %4866 = vadd.xlane.f32.xlu1 %v4837_v29  ;;  %v9556_v29 = vpop.eup %9555  ;;  %v2920_v30 = vmul.f32 %v9554_v8, %v15285_v59  ;;  %v15290_v8 = vld [vmem:[#allocation110_spill] sm:$0xff]  ;;  %v13249_v59 = vpop.xlane.xlu1 %4840 }
 0xc7d   : > { %v9558_v43 = vpop.eup %9557  ;;  %v3393_v60 = vmul.f32 %v9556_v29, %v15287_v28 }
 0xc7e   : > { %v9560_v13 = vpop.eup %9559  ;;  %v2919_v5 = vmul.f32 %v9558_v43, %v15288_v49 }
 0xc7f   : > { %v9562_v37 = vpop.eup %9561  ;;  %v9056_v39 = vpack.i.bf16 %v3394_v6, %v3393_v60  ;;  %v3868_v63 = vmul.f32 %v9560_v13, %v15289_v9 }
 0xc80   : > { %2296 = vadd.xlane.f32.xlu1 %v2266_v33  ;;  %v13237_v33 = vpop.xlane.xlu0 %4846  ;;  %v9051_v3 = vpack.i.bf16 %v2920_v30, %v2919_v5  ;;  %v3867_v45 = vmul.f32 %v9562_v37, %v15290_v8  ;;  %v13254_v43 = vpop.xlane.xlu1 %4852 }
 0xc81   : > { %15286 = vst [vmem:[#allocation170_spill] sm:$0xff] %v13237_v33 }
 0xc82   : > { %v9061_v33 = vpack.i.bf16 %v3868_v63, %v3867_v45 }
 0xc84   : > { %v13247_v25 = vpop.xlane.xlu0 %4842  ;;  %v13261_v49 = vpop.xlane.xlu1 %4848 }
 0xc88   : > { %v13252_v28 = vpop.xlane.xlu0 %4854  ;;  %v13265_v37 = vpop.xlane.xlu1 %4860 }
 0xc89   : > { %15291 = vst [vmem:[#allocation168_spill] sm:$0xff] %v13252_v28  ;;  %15293 = vst [vmem:[#allocation115_spill] sm:$0xff] %v13265_v37  ;;  %v4838_v37 = vunpack.c.l.bf16 %v12939_v61 }
 0xc8c   : > { %v13259_v30 = vpop.xlane.xlu0 %4850  ;;  %v13269_v63 = vpop.xlane.xlu1 %4858 }
 0xc8d   : > { %15295 = vst [vmem:[#allocation126_spill] sm:$0xff] %v13269_v63 }
 0xc90   : > { %9057 = vrot.lane.b32.xlu0 %v9056_v39, %s9910_s20  ;;  %v13263_v9 = vpop.xlane.xlu0 %4862  ;;  %v13272_v5 = vpop.permute.xlu1 %9042  ;;  %v15296_v39 = vld [vmem:[#allocation99_spill] sm:$0xff] }
 0xc91   : > { %9052 = vrot.lane.b32.xlu1 %v9051_v3, %s9911_s21  ;;  %15292 = vst [vmem:[#allocation114_spill] sm:$0xff] %v13263_v9  ;;  %v4839_v3 = vunpack.c.h.bf16 %v12939_v61  ;;  %v4358_v29 = vunpack.c.l.bf16 %v15296_v39  ;;  %v15297_v61 = vld [vmem:[#allocation174_spill] sm:$0xff] }
 0xc94   : > { %v13267_v6 = vpop.xlane.xlu0 %4856 }
 0xc95   : > { %9062 = vrot.lane.b32.xlu1 %v9061_v33, %s9909_s19  ;;  %15294 = vst [vmem:[#allocation161_spill] sm:$0xff] %v13267_v6 }
 0xcae   : > { %v5231_v60 = vpop.xlane.xlu0 %5230 }
 0xcaf   : > { %4870 = vadd.xlane.f32.xlu0 %v4839_v3  ;;  %v5260_v9 = vsub.f32 %v13065_v14, %v5231_v60  ;;  %v9564_v14 = vpop.eup %9563 }
 0xcb2   : > { %v5227_v13 = vpop.xlane.xlu0 %5226 }
 0xcb3   : > { %4374 = vadd.xlane.f32.xlu0 %v4358_v29  ;;  %v5258_v8 = vsub.f32 %v13074_v31, %v5227_v13  ;;  %v4359_v31 = vunpack.c.h.bf16 %v15296_v39 }
 0xcb4   : > { %v5229_v33 = vpop.xlane.xlu1 %5228 }
 0xcb5   : > { %v5259_v45 = vsub.f32 %v13079_v21, %v5229_v33  ;;  %v9566_v21 = vpop.eup %9565 }
 0xcb6   : > { %v5233_v6 = vpop.xlane.xlu0 %5232  ;;  %v9568_v54 = vpop.eup %9567 }
 0xcb7   : > { %v5274_v63 = vpack.c.bf16 %v5259_v45, %v5258_v8  ;;  %v5261_v3 = vsub.f32 %v13084_v57, %v5233_v6  ;;  %v2922_v57 = vmul.f32 %v9564_v14, %v15297_v61  ;;  %v15298_v6 = vld [vmem:[#allocation172_spill] sm:$0xff]  ;;  %v15301_v8 = vld [vmem:[#allocation121_spill] sm:$0xff] }
 0xcb8   : > { %v5235_v33 = vpop.xlane.xlu1 %5234  ;;  %v5585_v45 = vsel %vm15302_vm11, %v15301_v8, 0  ;;  %v15306_v14 = vld [vmem:[#allocation112_spill] sm:$0xff]  ;;  %vm15309_vm11 = vmmov %vm15305_vm5 }
 0xcb9   : > { %v5283_v28 = vmul.bf16 1069105081, %v5274_v63  ;;  %v5275_v22 = vpack.c.bf16 %v5261_v3, %v5260_v9  ;;  %4868 = vadd.xlane.f32.xlu1 %v4838_v37  ;;  %v2921_v9 = vmul.f32 %v9566_v21, %v15298_v6  ;;  %v9570_v37 = vpop.eup %9569  ;;  %v15308_v6 = vld [vmem:[#allocation205_spill] sm:$0xff] }
 0xcba   : > { %v13319_v8 = vpop.permute.xlu0 %9037 }
 0xcbb   : > { %9571 = vpow.bf16 %v5283_v28  ;;  %v5286_v53 = vmul.bf16 1069105081, %v5275_v22  ;;  %v9066_v63 = vpack.i.bf16 %v2922_v57, %v2921_v9  ;;  %v3396_v28 = vmul.f32 %v9568_v54, %v15299_v19  ;;  %v15303_v22 = vld [vmem:[#allocation107_spill] sm:$0xff]  ;;  %v15311_v19 = vld [vmem:[#allocation209_spill] sm:$0xff] }
 0xcbc   : > { %9573 = vrcp.f32 %v13090_v40  ;;  %v15300_v40 = vld [vmem:[#allocation186_spill] sm:$0xff]  ;;  %v5241_v57 = vpop.xlane.xlu1 %5240 }
 0xcbd   : > { %9575 = vpow.bf16 %v5286_v53  ;;  %4376 = vadd.xlane.f32.xlu1 %v4359_v31  ;;  %v15304_v31 = vld [vmem:[#allocation98_spill] sm:$0xff] }
 0xcbe   : > { %9577 = vrcp.f32 %v13049_v55  ;;  %v3395_v55 = vmul.f32 %v9570_v37, %v15300_v40  ;;  %v5582_v54 = vsel %vm15307_vm9, %v15304_v31, 0  ;;  %v5579_v37 = vsel %vm15310_vm14, %v15308_v6, 0  ;;  %v15313_v40 = vld [vmem:[#allocation206_spill] sm:$0xff]  ;;  %vm15314_vm9 = vmmov %vm15305_vm5 }
 0xcbf   : > { %9579 = vrcp.f32 %v13105_v38  ;;  %vm15318_vm14 = vmmov %vm15305_vm5 }
 0xcc0   : > { %v9071_v3 = vpack.i.bf16 %v3396_v28, %v3395_v55  ;;  %v5247_v9 = vpop.xlane.xlu1 %5246  ;;  %v15315_v55 = vld [vmem:[#allocation100_spill] sm:$0xff]  ;;  %9581 = vrcp.f32 %v13059_v41 }
 0xcc1   : > { %9583 = vrcp.f32 %v13130_v52  ;;  %v5262_v52 = vsub.f32 %v13094_v18, %v5235_v33  ;;  %v5268_v33 = vsub.f32 %v13109_v51, %v5247_v9  ;;  %v15322_v9 = vld [vmem:[#allocation177_spill] sm:$0xff] }
 0xcc2   : > { %9585 = vrcp.f32 %v13088_v32 }
 0xcc3   : > { %9587 = vrcp.f32 %v13114_v26  ;;  %v15320_v26 = vld [vmem:[#allocation130_spill] sm:$0xff] }
 0xcc4   : > { %9589 = vrcp.f32 %v13068_v17 }
 0xcc9   : > { %v13290_v60 = vpop.eup %9571  ;;  %9067 = vrot.lane.b32.xlu0 %v9066_v63, %s9911_s21  ;;  %v5243_v63 = vpop.xlane.xlu1 %5242 }
 0xcca   : > { %v9574_v39 = vpop.eup %9573  ;;  %8808 = vmatprep.mubr.bf16.mxu0 %v13290_v60  ;;  %v5266_v38 = vsub.f32 %v13118_v56, %v5243_v63  ;;  %v4361_v63 = vunpack.c.h.bf16 %v15315_v55 }
 0xccb   : > { %v13295_v29 = vpop.eup %9575  ;;  %v3870_v53 = vmul.f32 %v9574_v39, %v15303_v22  ;;  %v5576_v39 = vsel %vm15312_vm13, %v15311_v19, 0  ;;  %vm15316_vm13 = vmmov %vm15305_vm5 }
 0xccc   : > { %v9578_v13 = vpop.eup %9577  ;;  %8809 = vmatmul.mubr.bf16.vlgmr.msra.gmra.mxu0 %v13295_v29 }
 0xccd   : > { %8825 = vmatpush3.bf16.xpose.msra.mxu0 %v5585_v45  ;;  %v3869_v21 = vmul.f32 %v9578_v13, %v15306_v14  ;;  %v5249_v28 = vpop.xlane.xlu1 %5248  ;;  %v4360_v13 = vunpack.c.l.bf16 %v15315_v55  ;;  %v5265_v14 = vsub.f32 %v13100_v1, %v5241_v57  ;;  %v9580_v18 = vpop.eup %9579 }
 0xcce   : > { %8961 = vmatprep.subr.msk.bf16.mxu0 %vm15305_vm5, %v15304_v31  ;;  %9072 = vrot.lane.b32.xlu1 %v9071_v3, %s9910_s20  ;;  %v5573_v31 = vsel %vm15316_vm13, %v15313_v40, 0  ;;  %v5269_v1 = vsub.f32 %v13124_v44, %v5249_v28  ;;  %v9582_v44 = vpop.eup %9581  ;;  %vm15326_vm13 = vmmov %vm15305_vm5 }
 0xccf   : > { %v9076_v61 = vpack.i.bf16 %v3870_v53, %v3869_v21  ;;  %v15317_v21 = vld [vmem:[#allocation128_spill] sm:$0xff] }
 0xcd0   : > { %v5279_v17 = vpack.c.bf16 %v5269_v1, %v5268_v33 }
 0xcd1   : > { %v5245_v45 = vpop.xlane.xlu1 %5244 }
 0xcd2   : > { %9077 = vrot.lane.b32.xlu1 %v9076_v61, %s9909_s19  ;;  %v5267_v22 = vsub.f32 %v13135_v4, %v5245_v45  ;;  %v2923_v45 = vmul.f32 %v9582_v44, %v15322_v9 }
 0xcd4   : > { %v5278_v4 = vpack.c.bf16 %v5267_v22, %v5266_v38  ;;  %v5298_v22 = vmul.bf16 1069105081, %v5279_v17 }
 0xcd5   : > { %8827 = vmatpush3.bf16.xpose.msra.mxu0 %v5582_v54 }
 0xcd6   : > { %8962 = vmatprep.subr.msk.bf16.mxu0 %vm15309_vm11, %v15308_v6  ;;  %v5295_v56 = vmul.bf16 1069105081, %v5278_v4  ;;  %vm15319_vm11 = vmmov %vm15305_vm5  ;;  %v15327_v4 = vld [vmem:[#allocation103_spill] sm:$0xff] }
 0xcdd   : > { %8829 = vmatpush3.bf16.xpose.msra.mxu0 %v5579_v37  ;;  %v5570_v37 = vsel %vm15319_vm11, %v15317_v21, 0  ;;  %vm15332_vm11 = vmmov %vm15305_vm5 }
 0xcde   : > { %8963 = vmatprep.subr.msk.bf16.mxu0 %vm15305_vm5, %v15311_v19 }
 0xce5   : > { %8831 = vmatpush3.bf16.xpose.msra.mxu0 %v5576_v39 }
 0xce6   : > { %8964 = vmatprep.subr.msk.bf16.mxu0 %vm15314_vm9, %v15313_v40  ;;  %v15321_v40 = vld [vmem:[#allocation179_spill] sm:$0xff]  ;;  %vm15323_vm9 = vmmov %vm15305_vm5 }
 0xce7   : > { %v2924_v55 = vmul.f32 %v9580_v18, %v15321_v40  ;;  %v9364_v40 = vld [vmem:[%s13257_s23 + $0xcc] ss:$16 sps:$4 sm:$0xff]  }
 0xce8   : > { %4378 = vadd.xlane.f32.xlu0 %v4360_v13  ;;  %v9584_v13 = vpop.eup %9583 }
 0xceb   : > { %v5239_v3 = vpop.xlane.xlu0 %5238 }
 0xcec   : > { %v5264_v53 = vsub.f32 %v13170_v27, %v5239_v3  ;;  %v9586_v3 = vpop.eup %9585 }
 0xced   : > { %8833 = vmatpush3.bf16.xpose.msra.mxu0 %v5573_v31  ;;  %v5567_v31 = vsel %vm15323_vm9, %v15320_v26, 0  ;;  %vm15335_vm9 = vmmov %vm15305_vm5 }
 0xcee   : > { %8965 = vmatprep.subr.msk.bf16.mxu0 %vm15318_vm14, %v15317_v21  ;;  %v5277_v41 = vpack.c.bf16 %v5265_v14, %v5264_v53  ;;  %v9081_v21 = vpack.i.bf16 %v2924_v55, %v2923_v45  ;;  %vm15330_vm14 = vmmov %vm15305_vm5  ;;  %v15333_v55 = vld [vmem:[#allocation207_spill] sm:$0xff] }
 0xcef   : > { %v5237_v61 = vpop.xlane.xlu0 %5236  ;;  %v9362_v45 = vld [vmem:[%s13257_s23 + $0xc8] ss:$16 sps:$4 sm:$0xff]  }
 0xcf0   : > { %v5263_v27 = vsub.f32 %v13179_v12, %v5237_v61  ;;  %v5292_v32 = vmul.bf16 1069105081, %v5277_v41  ;;  %v5253_v12 = vpop.xlane.xlu1 %5252  ;;  %v9588_v61 = vpop.eup %9587 }
 0xcf1   : > { %v5271_v28 = vsub.f32 %v13146_v46, %v5253_v12  ;;  %v15324_v46 = vld [vmem:[#allocation102_spill] sm:$0xff]  ;;  %v9590_v1 = vpop.eup %9589 }
 0xcf2   : > { %v5276_v54 = vpack.c.bf16 %v5263_v27, %v5262_v52  ;;  %v3872_v41 = vmul.f32 %v9584_v13, %v15324_v46  ;;  %v15325_v52 = vld [vmem:[#allocation181_spill] sm:$0xff]  ;;  %v3871_v27 = vmul.f32 %v9586_v3, %v15327_v4  ;;  %v15334_v13 = vld [vmem:[#allocation123_spill] sm:$0xff]  ;;  %v9367_v3 = vld [vmem:[%s13257_s23 + $0xac] ss:$16 sps:$4 sm:$0xff]  }
 0xcf3   : > { %v5255_v57 = vpop.xlane.xlu0 %5254  ;;  %v5564_v18 = vsel %vm15330_vm14, %v15325_v52, 0  ;;  %vm15340_vm14 = vmmov %vm15305_vm5 }
 0xcf4   : > { %v5289_v6 = vmul.bf16 1069105081, %v5276_v54 }
 0xcf5   : > { %8835 = vmatpush3.bf16.xpose.msra.mxu0 %v5570_v37 }
 0xcf6   : > { %9591 = vpow.bf16 %v5289_v6  ;;  %8966 = vmatprep.subr.msk.bf16.mxu0 %vm15305_vm5, %v15320_v26  ;;  %4380 = vadd.xlane.f32.xlu1 %v4361_v63  ;;  %v9361_v6 = vld [vmem:[%s13257_s23 + $0xec] ss:$16 sps:$4 sm:$0xff]  }
 0xcf7   : > { %9593 = vpow.bf16 %v5292_v32  ;;  %v5251_v19 = vpop.xlane.xlu0 %5250  ;;  %v15328_v32 = vld [vmem:[#allocation193_spill] sm:$0xff] }
 0xcf8   : > { %9595 = vpow.bf16 %v5295_v56  ;;  %v5270_v39 = vsub.f32 %v13195_v11, %v5251_v19  ;;  %v5272_v11 = vsub.f32 %v13186_v62, %v5255_v57  ;;  %v3398_v56 = vmul.f32 %v9588_v61, %v15328_v32  ;;  %v15329_v57 = vld [vmem:[#allocation191_spill] sm:$0xff]  ;;  %v15344_v61 = vld [vmem:[#allocation178_spill] sm:$0xff]  ;;  %v15347_v32 = vld [vmem:[#allocation176_spill] sm:$0xff] }
 0xcf9   : > { %9597 = vpow.bf16 %v5298_v22  ;;  %v3397_v37 = vmul.f32 %v9590_v1, %v15329_v57  ;;  %v9365_v22 = vld [vmem:[%s13257_s23 + $0xa8] ss:$16 sps:$4 sm:$0xff]   ;;  %v8995_v57 = vunpack.i.h.bf16 %v13164_v24 }
 0xcfa   : > { %v5280_v51 = vpack.c.bf16 %v5271_v28, %v5270_v39  ;;  %v15331_v28 = vld [vmem:[#allocation183_spill] sm:$0xff] }
 0xcfb   : > { %v5257_v53 = vpop.xlane.xlu0 %5256  ;;  %v9086_v12 = vpack.i.bf16 %v3398_v56, %v3397_v37  ;;  %v9359_v39 = vld [vmem:[%s13257_s23 + $0xe8] ss:$16 sps:$4 sm:$0xff]   ;;  %v8999_v37 = vunpack.i.l.bf16 %v13197_v2 }
 0xcfc   : > { %v5301_v14 = vmul.bf16 1069105081, %v5280_v51  ;;  %v5273_v38 = vsub.f32 %v13202_v15, %v5257_v53  ;;  %v9091_v15 = vpack.i.bf16 %v3872_v41, %v3871_v27  ;;  %v15336_v51 = vld [vmem:[#allocation97_spill] sm:$0xff]  ;;  %v9370_v53 = vld [vmem:[%s13257_s23 + $0x8c] ss:$16 sps:$4 sm:$0xff]   ;;  %v8994_v27 = vunpack.i.l.bf16 %v13164_v24 }
 0xcfd   : > { %8837 = vmatpush3.bf16.xpose.msra.mxu0 %v5567_v31  ;;  %v4363_v9 = vunpack.c.h.bf16 %v15336_v51  ;;  %v15337_v31 = vld [vmem:[#allocation208_spill] sm:$0xff] }
 0xcfe   : > { %8967 = vmatprep.subr.msk.bf16.mxu0 %vm15326_vm13, %v15325_v52  ;;  %9082 = vrot.lane.b32.xlu0 %v9081_v21, %s9911_s21  ;;  %v5281_v54 = vpack.c.bf16 %v5273_v38, %v5272_v11  ;;  %9599 = vpow.bf16 %v5301_v14  ;;  %vm15338_vm13 = vmmov %vm15305_vm5  ;;  %v9376_v14 = vld [vmem:[%s13257_s23 + $0x4c] ss:$16 sps:$4 sm:$0xff]   ;;  %v13414_v38 = vpop.permute.xlu1 %9047  ;;  %v15341_v21 = vld [vmem:[#allocation127_spill] sm:$0xff] }
 0xd00   : > { %v5304_v62 = vmul.bf16 1069105081, %v5281_v54  ;;  %v15346_v54 = vld [vmem:[#allocation146_spill] sm:$0xff] }
 0xd02   : > { %9092 = vrot.lane.b32.xlu0 %v9091_v15, %s9909_s19  ;;  %9601 = vpow.bf16 %v5304_v62  ;;  %v9377_v15 = vld [vmem:[%s13257_s23 + $0x28] ss:$16 sps:$4 sm:$0xff]  }
 0xd03   : > { %9603 = vrcp.f32 %v13142_v7  ;;  %v15339_v7 = vld [vmem:[#allocation95_spill] sm:$0xff] }
 0xd04   : > { %v13361_v63 = vpop.eup %9591  ;;  %9605 = vrcp.f32 %v13103_v50  ;;  %v9368_v50 = vld [vmem:[%s13257_s23 + $0x88] ss:$16 sps:$4 sm:$0xff]  }
 0xd05   : > { %v13365_v33 = vpop.eup %9593  ;;  %8839 = vmatpush3.bf16.xpose.msra.mxu0 %v5564_v18  ;;  %8812 = vmatprep.mubr.bf16.mxu0 %v13361_v63  ;;  %9607 = vrcp.f32 %v13155_v58  ;;  %v9373_v58 = vld [vmem:[%s13257_s23 + $0x6c] ss:$16 sps:$4 sm:$0xff]  }
 0xd06   : > { %v13368_v26 = vpop.eup %9595  ;;  %8813 = vmatmul.mubr.bf16.gmra.mxu0 %v13365_v33  ;;  %6753 = vmatprep.subr.bf16.mxu0 %v9361_v6  ;;  %9609 = vrcp.f32 %v13128_v34  ;;  %v4362_v34 = vunpack.c.l.bf16 %v15336_v51  ;;  %v15348_v6 = vld [vmem:[#allocation142_spill] sm:$0xff] }
 0xd07   : > { %9087 = vrot.lane.b32.xlu1 %v9086_v12, %s9910_s20  ;;  %8816 = vmatprep.mubr.bf16.mxu0 %v13368_v26  ;;  %v13373_v44 = vpop.eup %9597  ;;  %9611 = vrcp.f32 %v13151_v35  ;;  %v9371_v35 = vld [vmem:[%s13257_s23 + $0x68] ss:$16 sps:$4 sm:$0xff]   ;;  %v9382_v18 = vld [vmem:[%s13257_s23 + $0xc] ss:$16 sps:$4 sm:$0xff]  }
 0xd08   : > { %9613 = vrcp.f32 %v13112_v20 }
 0xd09   : > { %9615 = vrcp.f32 %v13161_v42  ;;  %v15343_v42 = vld [vmem:[#allocation139_spill] sm:$0xff] }
 0xd0a   : > { %9617 = vrcp.f32 %v13140_v36  ;;  %v9374_v36 = vld [vmem:[%s13257_s23 + $0x48] ss:$16 sps:$4 sm:$0xff]  }
 0xd0b   : > { %9619 = vrcp.f32 %v13149_v10  ;;  %v9379_v10 = vld [vmem:[%s13257_s23 + $0x2c] ss:$16 sps:$4 sm:$0xff]  }
 0xd0c   : > { %v13375_v17 = vpop.eup %9599  ;;  %9621 = vrcp.f32 %v13166_v16  ;;  %v13424_v16 = vpop.xlane.xlu1 %4866 }
 0xd0d   : > { %9623 = vrcp.f32 %v13153_v23  ;;  %15345 = vst [vmem:[#allocation189_spill] sm:$0xff] %v13424_v16  ;;  %v9000_v23 = vunpack.i.h.bf16 %v13197_v2  ;;  %v9380_v2 = vld [vmem:[%s13257_s23 + $0x8] ss:$16 sps:$4 sm:$0xff]  }
 0xd0e   : > { %8817 = vmatmul.mubr.bf16.gmra.mxu0 %v13373_v44  ;;  %9625 = vrcp.f32 %v13175_v47  ;;  %v9005_v47 = vunpack.i.h.bf16 %v13172_v0 }
 0xd0f   : > { %8820 = vmatprep.mubr.bf16.mxu0 %v13375_v17 }
 0xd10   : > { %v13379_v19 = vpop.eup %9601 }
 0xd11   : > { %v9604_v20 = vpop.eup %9603 }
 0xd12   : > { %v9606_v46 = vpop.eup %9605  ;;  %v2926_v52 = vmul.f32 %v9604_v20, %v15344_v61  ;;  %v15358_v61 = vld [vmem:[#allocation185_spill] sm:$0xff] }
 0xd13   : > { %v9608_v41 = vpop.eup %9607  ;;  %v2925_v56 = vmul.f32 %v9606_v46, %v15347_v32 }
 0xd14   : > { %v9610_v11 = vpop.eup %9609  ;;  %v2414_v1 = vmul.f32 %v9608_v41, %v15346_v54  ;;  %v15360_v54 = vld [vmem:[#allocation106_spill] sm:$0xff] }
 0xd15   : > { %v9612_v4 = vpop.eup %9611  ;;  %v2413_v62 = vmul.f32 %v9610_v11, %v15348_v6 }
 0xd16   : > { %8821 = vmatmul.mubr.bf16.gmra.mxu0 %v13379_v19  ;;  %v9614_v12 = vpop.eup %9613 }
 0xd17   : > { %8840 = vmatprep.mubr.msk.bf16.mxu0 %vm15332_vm11, %v15331_v28  ;;  %vm15342_vm11 = vmmov %vm15305_vm5  ;;  %v9004_v28 = vunpack.i.l.bf16 %v13172_v0  ;;  %v9616_v24 = vpop.eup %9615 }
 0xd1e   : > { %8841 = vmatmul.mubr.msk.bf16.vlgmr.msra.gmra.mxu0 %vm15305_vm5, %v15333_v55  ;;  %v15351_v55 = vld [vmem:[#allocation192_spill] sm:$0xff] }
 0xd1f   : > { %8844 = vmatprep.mubr.msk.bf16.mxu0 %vm15335_vm9, %v15334_v13  ;;  %6754 = vmatpush1.bf16.msra.mxu0 %v9359_v39  ;;  %vm4083_vm9 = vcmask 523264   ;;  %v9096_v39 = vpack.i.bf16 %v2926_v52, %v2925_v56  ;;  %v3400_v13 = vmul.f32 %v9612_v4, %v15351_v55  ;;  %v9015_v52 = vunpack.i.h.bf16 %v15358_v61  ;;  %v15362_v56 = vld [vmem:[#allocation144_spill] sm:$0xff] }
 0xd20   : > { %6755 = vmatprep.subr.bf16.mxu0 %v9364_v40  ;;  %v15349_v40 = vld [vmem:[#allocation182_spill] sm:$0xff]  ;;  %v9014_v4 = vunpack.i.l.bf16 %v15358_v61 }
 0xd21   : > { %4384 = vadd.xlane.f32.xlu0 %v4363_v9  ;;  %v4068_v9 = vsel %vm15305_vm5, %v2414_v1, %v8995_v57 }
 0xd22   : > { %v4085_v0 = vsel %vm4083_vm9, %v4068_v9, %v9000_v23 }
 0xd23   : > { %6756 = vmatpush1.bf16.msra.mxu0 %v9362_v45  ;;  %v9618_v45 = vpop.eup %9617 }
 0xd24   : > { %6757 = vmatprep.subr.bf16.mxu0 %v9367_v3  ;;  %v3873_v1 = vmul.f32 %v9618_v45, %v15360_v54  ;;  %v15367_v45 = vld [vmem:[#allocation133_spill] sm:$0xff] }
 0xd26   : > { %8845 = vmatmul.mubr.msk.bf16.gmra.mxu0 %vm15338_vm13, %v15337_v31  ;;  %vm4100_vm13 = vcmask 785408  }
 0xd27   : > { %8848 = vmatprep.mubr.msk.bf16.mxu0 %vm15340_vm14, %v15339_v7  ;;  %6758 = vmatpush1.bf16.msra.mxu0 %v9365_v22  ;;  %vm15350_vm14 = vmmov %vm15305_vm5  ;;  %v13447_v22 = vpop.xlane.xlu1 %2296  ;;  %v14567_v7 = vmov 0  }
 0xd28   : > { %6759 = vmatprep.subr.bf16.mxu0 %v9370_v53  ;;  %v15353_v53 = vld [vmem:[#allocation190_spill] sm:$0xff] }
 0xd29   : > { %v3399_v31 = vmul.f32 %v9614_v12, %v15353_v53  ;;  %v15369_v53 = vld [vmem:[#allocation149_spill] sm:$0xff] }
 0xd2b   : > { %4382 = vadd.xlane.f32.xlu1 %v4362_v34  ;;  %6760 = vmatpush1.bf16.msra.mxu0 %v9368_v50  ;;  %v9620_v50 = vpop.eup %9619  ;;  %v4102_v34 = vsel %vm4100_vm13, %v4085_v0, %v9005_v47  ;;  %v9101_v20 = vpack.i.bf16 %v3400_v13, %v3399_v31  ;;  %v15368_v0 = vld [vmem:[#allocation124_spill] sm:$0xff] }
 0xd2c   : > { %6761 = vmatprep.subr.bf16.mxu0 %v9373_v58  ;;  %v2415_v6 = vmul.f32 %v9620_v50, %v15362_v56  ;;  %v15370_v50 = vld [vmem:[#allocation150_spill] sm:$0xff] }
 0xd2e   : > { %8849 = vmatmul.mubr.msk.bf16.gmra.mxu0 %vm15342_vm11, %v15341_v21  ;;  %vm15352_vm11 = vmmov %vm15305_vm5  ;;  %v15355_v21 = vld [vmem:[#allocation104_spill] sm:$0xff] }
 0xd2f   : > { %8852 = vmatprep.mubr.msk.bf16.mxu0 %vm15305_vm5, %v15343_v42  ;;  %6762 = vmatpush1.bf16.msra.mxu0 %v9371_v35  ;;  %v4067_v51 = vsel %vm15352_vm11, %v2413_v62, %v8994_v27  ;;  %v9622_v35 = vpop.eup %9621  ;;  %v3874_v46 = vmul.f32 %v9616_v24, %v15355_v21  ;;  %v15356_v42 = vld [vmem:[#allocation94_spill] sm:$0xff]  ;;  %v13462_v27 = vpop.xlane.xlu0 %4864  ;;  %v15363_v62 = vld [vmem:[#allocation171_spill] sm:$0xff]  ;;  %vm15365_vm11 = vmmov %vm15305_vm5 }
 0xd30   : > { %6763 = vmatprep.subr.bf16.mxu0 %v9376_v14  ;;  %v4084_v3 = vsel %vm4083_vm9, %v4067_v51, %v8999_v37  ;;  %v15354_v14 = vld [vmem:[#allocation159_spill] sm:$0xff]  ;;  %15359 = vst [vmem:[#allocation175_spill] sm:$0xff] %v13462_v27  ;;  %v9020_v57 = vunpack.i.h.bf16 %v15363_v62  ;;  %v9019_v23 = vunpack.i.l.bf16 %v15363_v62  ;;  %v13470_v37 = vpop.permute.xlu1 %9052  ;;  %v9624_v12 = vpop.eup %9623  ;;  %v15366_v51 = vld [vmem:[#allocation160_spill] sm:$0xff]  ;;  %v9039_v62 = vunpack.i.l.bf16 %v13319_v8 }
 0xd31   : > { %v4101_v58 = vsel %vm4100_vm13, %v4084_v3, %v9004_v28  ;;  %9627 = vrcp.f32 %v15354_v14  ;;  %v9025_v9 = vunpack.i.h.bf16 %v15366_v51  ;;  %v2417_v31 = vmul.f32 %v9624_v12, %v15369_v53  ;;  %v15372_v21 = vld [vmem:[#allocation132_spill] sm:$0xff] }
 0xd32   : > { %9629 = vrcp.f32 %v15356_v42  ;;  %v13458_v11 = vpack.c.bf16 %v4102_v34, %v4101_v58  ;;  %v9034_v42 = vunpack.i.l.bf16 %v15372_v21  ;;  %v15377_v12 = vld [vmem:[#allocation148_spill] sm:$0xff] }
 0xd33   : > { %6764 = vmatpush1.bf16.msra.mxu0 %v9374_v36  ;;  %v15357_v36 = vld [vmem:[#allocation111_spill] sm:$0xff]  ;;  %9631 = vrcp.f32 %v15367_v45  ;;  %v13484_v3 = vpop.xlane.xlu0 %2298 }
 0xd34   : > { %6765 = vmatprep.subr.bf16.mxu0 %v9379_v10  ;;  %v9010_v41 = vunpack.i.h.bf16 %v15357_v36  ;;  %v9009_v10 = vunpack.i.l.bf16 %v15357_v36  ;;  %9633 = vrcp.f32 %v15368_v0  ;;  %v13489_v34 = vpop.permute.xlu1 %9062  ;;  %v15373_v36 = vld [vmem:[#allocation154_spill] sm:$0xff] }
 0xd36   : > { %8853 = vmatmul.mubr.msk.bf16.gmra.mxu0 %vm15350_vm14, %v15349_v40  ;;  %vm15364_vm14 = vmmov %vm15305_vm5  ;;  %v4069_v28 = vsel %vm15365_vm11, %v2415_v6, %v9009_v10  ;;  %v9029_v10 = vunpack.i.l.bf16 %v15373_v36  ;;  %v9040_v6 = vunpack.i.h.bf16 %v13319_v8  ;;  %v9049_v8 = vunpack.i.l.bf16 %v13414_v38 }
 0xd37   : > { %9097 = vrot.lane.b32.xlu0 %v9096_v39, %s9911_s21  ;;  %6766 = vmatpush1.bf16.msra.mxu0 %v9377_v15  ;;  %v15361_v15 = vld [vmem:[#allocation145_spill] sm:$0xff]  ;;  %v9626_v39 = vpop.eup %9625  ;;  %v4086_v55 = vsel %vm4083_vm9, %v4069_v28, %v9014_v4  ;;  %vm15381_vm11 = vmmov %vm15305_vm5 }
 0xd38   : > { %6767 = vmatprep.subr.bf16.mxu0 %v9382_v18  ;;  %6785 = vmatprep.mubr.bf16.mxu0 %v14567_v7  ;;  %v2416_v32 = vmul.f32 %v9622_v35, %v15361_v15  ;;  %v9106_v18 = vpack.i.bf16 %v3874_v46, %v3873_v1  ;;  %v4103_v13 = vsel %vm4100_vm13, %v4086_v55, %v9019_v23  ;;  %v9035_v46 = vunpack.i.h.bf16 %v15372_v21  ;;  %v9058_v1 = vpop.permute.xlu0 %9057  ;;  %v15376_v23 = vld [vmem:[#allocation147_spill] sm:$0xff]  ;;  %v15378_v28 = vld [vmem:[#allocation169_spill] sm:$0xff] }
 0xd39   : > { %v2418_v58 = vmul.f32 %v9626_v39, %v15370_v50 }
 0xd3a   : > { %v4070_v47 = vsel %vm15364_vm14, %v2416_v32, %v9010_v41  ;;  %vm15371_vm14 = vmmov %vm15305_vm5  ;;  %v9030_v41 = vunpack.i.h.bf16 %v15373_v36 }
 0xd3b   : > { %6768 = vmatpush1.bf16.msra.mxu0 %v9380_v2  ;;  %v4087_v40 = vsel %vm4083_vm9, %v4070_v47, %v9015_v52  ;;  %v9024_v2 = vunpack.i.l.bf16 %v15366_v51  ;;  %v4072_v14 = vsel %vm15305_vm5, %v2418_v58, %v9025_v9  ;;  %v9045_v51 = vunpack.i.h.bf16 %v13272_v5 }
 0xd3c   : > { %9102 = vrot.lane.b32.xlu1 %v9101_v20, %s9910_s20  ;;  %v4104_v24 = vsel %vm4100_vm13, %v4087_v40, %v9020_v57  ;;  %v4089_v54 = vsel %vm4083_vm9, %v4072_v14, %v9030_v41  ;;  %v15375_v57 = vld [vmem:[#allocation116_spill] sm:$0xff]  ;;  %v13513_v39 = vpop.xlane.xlu0 %4870  ;;  %v9044_v9 = vunpack.i.l.bf16 %v13272_v5  ;;  %v9055_v58 = vunpack.i.h.bf16 %v13470_v37  ;;  %v15384_v41 = vld [vmem:[#allocation101_spill] sm:$0xff] }
 0xd3d   : > { %v13491_v35 = vpack.c.bf16 %v4104_v24, %v4103_v13  ;;  %v4071_v20 = vsel %vm15371_vm14, %v2417_v31, %v9024_v2  ;;  %v4106_v56 = vsel %vm4100_vm13, %v4089_v54, %v9035_v46  ;;  %9635 = vrcp.f32 %v15375_v57  ;;  %15379 = vst [vmem:[#allocation173_spill] sm:$0xff] %v13513_v39  ;;  %v15383_v46 = vld [vmem:[#allocation141_spill] sm:$0xff]  ;;  %vm15386_vm14 = vmmov %vm15305_vm5 }
 0xd3e   : > { %6786 = vmatmul.mubr.bf16.vlgmr.msra.gmra.mxu0 %v13458_v11  ;;  %v9628_v61 = vpop.eup %9627  ;;  %v4088_v4 = vsel %vm4083_vm9, %v4071_v20, %v9029_v10  ;;  %9637 = vrcp.f32 %v15378_v28  ;;  %v9050_v24 = vunpack.i.h.bf16 %v13414_v38  ;;  %v9054_v5 = vunpack.i.l.bf16 %v13470_v37  ;;  %v15382_v20 = vld [vmem:[#allocation151_spill] sm:$0xff] }
 0xd3f   : > { %6795 = vmatprep.mubr.bf16.mxu0 %v14567_v7  ;;  %v9630_v52 = vpop.eup %9629  ;;  %v4105_v32 = vsel %vm4100_vm13, %v4088_v4, %v9034_v42  ;;  %v2419_v47 = vmul.f32 %v9628_v61, %v15377_v12  ;;  %v4364_v10 = vunpack.c.l.bf16 %v15384_v41  ;;  %v9065_v54 = vunpack.i.h.bf16 %v13489_v34 }
 0xd40   : > { %9107 = vrot.lane.b32.xlu1 %v9106_v18, %s9909_s19  ;;  %v2420_v18 = vmul.f32 %v9630_v52, %v15376_v23  ;;  %v13515_v40 = vpack.c.bf16 %v4106_v56, %v4105_v32  ;;  %v9632_v45 = vpop.eup %9631  ;;  %v13533_v14 = vpop.xlane.xlu0 %4374  ;;  %v9064_v32 = vunpack.i.l.bf16 %v13489_v34  ;;  %v9060_v37 = vunpack.i.h.bf16 %v9058_v1 }
 0xd41   : > { %v4073_v13 = vsel %vm15305_vm5, %v2419_v47, %v9039_v62  ;;  %v9634_v0 = vpop.eup %9633  ;;  %v2421_v21 = vmul.f32 %v9632_v45, %v15382_v20  ;;  %v9059_v56 = vunpack.i.l.bf16 %v9058_v1 }
 0xd42   : > { %v13503_v15 = vpop.xlane.xlu1 %4868  ;;  %15380 = vst [vmem:[#allocation108_spill] sm:$0xff] %v13515_v40  ;;  %v4074_v55 = vsel %vm15381_vm11, %v2420_v18, %v9040_v6  ;;  %v4090_v53 = vsel %vm4083_vm9, %v4073_v13, %v9044_v9  ;;  %v2422_v42 = vmul.f32 %v9634_v0, %v15383_v46  ;;  %vm15387_vm11 = vmmov %vm15305_vm5  ;;  %v5309_v18 = vunpack.c.h.bf16 %v13295_v29  ;;  %v15389_v9 = vld [vmem:[#allocation152_spill] sm:$0xff]  ;;  %v15390_v0 = vld [vmem:[#allocation153_spill] sm:$0xff] }
 0xd43   : > { %15374 = vst [vmem:[#allocation187_spill] sm:$0xff] %v13503_v15  ;;  %v4091_v31 = vsel %vm4083_vm9, %v4074_v55, %v9045_v51  ;;  %v4107_v50 = vsel %vm4100_vm13, %v4090_v53, %v9049_v8  ;;  %v4075_v4 = vsel %vm15387_vm11, %v2421_v21, %v9054_v5  ;;  %v5307_v51 = vunpack.c.h.bf16 %v13290_v60  ;;  %vm15397_vm11 = vmmov %vm15305_vm5 }
 0xd44   : > { %v4108_v38 = vsel %vm4100_vm13, %v4091_v31, %v9050_v24  ;;  %v4076_v52 = vsel %vm15386_vm14, %v2422_v42, %v9055_v58  ;;  %v4092_v62 = vsel %vm4083_vm9, %v4075_v4, %v9059_v56  ;;  %v9068_v23 = vpop.permute.xlu0 %9067  ;;  %vm15391_vm14 = vmmov %vm15305_vm5  ;;  %v5312_v21 = vunpack.c.l.bf16 %v13365_v33 }
 0xd45   : > { %v13538_v61 = vpack.c.bf16 %v4108_v38, %v4107_v50  ;;  %v4093_v57 = vsel %vm4083_vm9, %v4076_v52, %v9060_v37  ;;  %v4109_v47 = vsel %vm4100_vm13, %v4092_v62, %v9064_v32  ;;  %v9070_v1 = vunpack.i.h.bf16 %v9068_v23  ;;  %v15394_v62 = vld [vmem:[#allocation184_spill] sm:$0xff] }
 0xd46   : > { %6796 = vmatmul.mubr.bf16.gmra.mxu0 %v13491_v35  ;;  %v13523_v2 = vpop.xlane.xlu1 %4376  ;;  %v4110_v34 = vsel %vm4100_vm13, %v4093_v57, %v9065_v54  ;;  %v9069_v55 = vunpack.i.l.bf16 %v9068_v23  ;;  %v5311_v52 = vunpack.c.h.bf16 %v13361_v63  ;;  %v5308_v4 = vunpack.c.l.bf16 %v13295_v29 }
 0xd47   : > { %6805 = vmatprep.mubr.bf16.mxu0 %v14567_v7  ;;  %15385 = vst [vmem:[#allocation110_spill] sm:$0xff] %v13538_v61  ;;  %v13551_v13 = vpack.c.bf16 %v4110_v34, %v4109_v47  ;;  %v5316_v54 = vunpack.c.l.bf16 %v13373_v44  ;;  %v5306_v32 = vunpack.c.l.bf16 %v13290_v60  ;;  %v5313_v37 = vunpack.c.h.bf16 %v13365_v33 }
 0xd48   : > { %v5315_v56 = vunpack.c.h.bf16 %v13368_v26  ;;  %v5310_v29 = vunpack.c.l.bf16 %v13361_v63  ;;  %v5320_v57 = vunpack.c.l.bf16 %v13379_v19  ;;  %v5317_v23 = vunpack.c.h.bf16 %v13373_v44 }
 0xd49   : > { %15388 = vst [vmem:[#allocation99_spill] sm:$0xff] %v13551_v13  ;;  %v5318_v33 = vunpack.c.l.bf16 %v13375_v17  ;;  %v5319_v63 = vunpack.c.h.bf16 %v13375_v17 }
 0xd4a   : > { %v9073_v36 = vpop.permute.xlu1 %9072  ;;  %v9636_v6 = vpop.eup %9635 }
 0xd4b   : > { %v9638_v12 = vpop.eup %9637  ;;  %v9075_v24 = vunpack.i.h.bf16 %v9073_v36  ;;  %v9074_v8 = vunpack.i.l.bf16 %v9073_v36  ;;  %v2424_v45 = vmul.f32 %v9636_v6, %v15389_v9  ;;  %v4365_v36 = vunpack.c.h.bf16 %v15384_v41  ;;  %v15393_v6 = vld [vmem:[#allocation134_spill] sm:$0xff] }
 0xd4c   : > { %v2423_v53 = vmul.f32 %v9638_v12, %v15390_v0  ;;  %v5314_v41 = vunpack.c.l.bf16 %v13368_v26  ;;  %9639 = vrcp.f32 %v15393_v6  ;;  %v5321_v26 = vunpack.c.h.bf16 %v13379_v19  ;;  %v15400_v6 = vld [vmem:[#allocation162_spill] sm:$0xff] }
 0xd4d   : > { %v4078_v38 = vsel %vm15305_vm5, %v2424_v45, %v9070_v1  ;;  %9641 = vrcp.f32 %v15394_v62  ;;  %v15401_v62 = vld [vmem:[#allocation140_spill] sm:$0xff] }
 0xd4e   : > { %6806 = vmatmul.mubr.bf16.gmra.mxu0 %v13515_v40  ;;  %v9078_v28 = vpop.permute.xlu1 %9077  ;;  %v4077_v58 = vsel %vm15391_vm14, %v2423_v53, %v9069_v55  ;;  %v4095_v5 = vsel %vm4083_vm9, %v4078_v38, %v9075_v24  ;;  %v15395_v24 = vld [vmem:[#allocation143_spill] sm:$0xff]  ;;  %9643 = vrcp.f32 %v13484_v3  ;;  %vm15402_vm14 = vmmov %vm15305_vm5 }
 0xd4f   : > { %6815 = vmatprep.mubr.bf16.mxu0 %v14567_v7  ;;  %v9080_v31 = vunpack.i.h.bf16 %v9078_v28  ;;  %v9079_v50 = vunpack.i.l.bf16 %v9078_v28  ;;  %v4094_v20 = vsel %vm4083_vm9, %v4077_v58, %v9074_v8  ;;  %v15396_v8 = vld [vmem:[#allocation163_spill] sm:$0xff]  ;;  %9645 = vrcp.f32 %v13447_v22 }
 0xd50   : > { %v6247_v40 = vld [vmem:[#allocation2 + $0x118] sm:$0xff] }
 0xd51   : > { %v4111_v46 = vsel %vm4100_vm13, %v4094_v20, %v9079_v50  ;;  %v4112_v42 = vsel %vm4100_vm13, %v4095_v5, %v9080_v31 }
 0xd56   : > { %4386 = vadd.xlane.f32.xlu0 %v4364_v10  ;;  %6816 = vmatmul.mubr.bf16.gmra.mxu0 %v13538_v61  ;;  %v13566_v10 = vpack.c.bf16 %v4112_v42, %v4111_v46 }
 0xd57   : > { %6825 = vmatprep.mubr.bf16.mxu0 %v14567_v7 }
 0xd58   : > { %15392 = vst [vmem:[#allocation174_spill] sm:$0xff] %v13566_v10 }
 0xd59   : > { %v9640_v12 = vpop.eup %9639 }
 0xd5a   : > { %5328 = vadd.xlane.f32.xlu0 %v5309_v18  ;;  %v9642_v34 = vpop.eup %9641  ;;  %v2425_v44 = vmul.f32 %v9640_v12, %v15395_v24 }
 0xd5e   : > { %5324 = vadd.xlane.f32.xlu0 %v5307_v51  ;;  %6826 = vmatmul.mubr.bf16.gmra.mxu0 %v13551_v13  ;;  %v2426_v51 = vmul.f32 %v9642_v34, %v15396_v8 }
 0xd5f   : > { %6835 = vmatprep.mubr.bf16.mxu0 %v14567_v7 }
 0xd62   : > { %5334 = vadd.xlane.f32.xlu0 %v5312_v21 }
 0xd64   : > { %4388 = vadd.xlane.f32.xlu1 %v4365_v36  ;;  %v9644_v36 = vpop.eup %9643 }
 0xd66   : > { %5332 = vadd.xlane.f32.xlu0 %v5311_v52  ;;  %6836 = vmatmul.mubr.bf16.gmra.mxu0 %v13566_v10  ;;  %v9646_v52 = vpop.eup %9645 }
 0xd67   : > { %6845 = vmatprep.mubr.bf16.mxu0 %v14567_v7  ;;  %v2427_v3 = vmul.f32 %v9646_v52, %v15401_v62 }
 0xd68   : > { %5326 = vadd.xlane.f32.xlu1 %v5308_v4 }
 0xd6a   : > { %5342 = vadd.xlane.f32.xlu0 %v5316_v54 }
 0xd6c   : > { %5322 = vadd.xlane.f32.xlu1 %v5306_v32 }
 0xd6e   : > { %5338 = vadd.xlane.f32.xlu0 %v5314_v41 }
 0xd70   : > { %5336 = vadd.xlane.f32.xlu1 %v5313_v37 }
 0xd71   : > { %v13581_v60 = vpop.xlane.xlu0 %4378 }
 0xd72   : > { %5340 = vadd.xlane.f32.xlu0 %v5315_v56 }
 0xd74   : > { %5330 = vadd.xlane.f32.xlu1 %v5310_v29  ;;  %v2428_v29 = vmul.f32 %v9644_v36, %v15400_v6 }
 0xd75   : > { %v9083_v18 = vpop.permute.xlu0 %9082 }
 0xd76   : > { %5350 = vadd.xlane.f32.xlu0 %v5320_v57  ;;  %v9085_v28 = vunpack.i.h.bf16 %v9083_v18  ;;  %v9084_v1 = vunpack.i.l.bf16 %v9083_v18 }
 0xd78   : > { %5344 = vadd.xlane.f32.xlu1 %v5317_v23  ;;  %v4079_v19 = vsel %vm15397_vm11, %v2425_v44, %v9084_v1  ;;  %v4080_v53 = vsel %vm15305_vm5, %v2426_v51, %v9085_v28  ;;  %vm15403_vm11 = vmmov %vm15305_vm5 }
 0xd79   : > { %v9093_v55 = vpop.permute.xlu0 %9092 }
 0xd7a   : > { %5346 = vadd.xlane.f32.xlu0 %v5318_v33  ;;  %v9095_v17 = vunpack.i.h.bf16 %v9093_v55  ;;  %v9094_v31 = vunpack.i.l.bf16 %v9093_v55 }
 0xd7c   : > { %5352 = vadd.xlane.f32.xlu1 %v5321_v26 }
 0xd7e   : > { %5348 = vadd.xlane.f32.xlu0 %v5319_v63 }
 0xd7f   : > { %v13587_v47 = vpop.xlane.xlu1 %4380 }
 0xd83   : > { %v9088_v9 = vpop.permute.xlu1 %9087 }
 0xd84   : > { %v9090_v45 = vunpack.i.h.bf16 %v9088_v9  ;;  %v9089_v0 = vunpack.i.l.bf16 %v9088_v9 }
 0xd86   : > { %v4097_v50 = vsel %vm4083_vm9, %v4080_v53, %v9090_v45  ;;  %v4096_v38 = vsel %vm4083_vm9, %v4079_v19, %v9089_v0 }
 0xd87   : > { %v4113_v58 = vsel %vm4100_vm13, %v4096_v38, %v9094_v31  ;;  %v4114_v5 = vsel %vm4100_vm13, %v4097_v50, %v9095_v17 }
 0xd88   : > { %v13597_v20 = vpack.c.bf16 %v4114_v5, %v4113_v58 }
 0xd8a   : > { %15398 = vst [vmem:[#allocation172_spill] sm:$0xff] %v13597_v20  ;;  %6846 = vmatmul.mubr.bf16.gmra.mxu0 %v13597_v20  ;;  %v6243_v20 = vld [vmem:[#allocation2 + $0x330] sm:$0xff] }
 0xd8b   : > { %6855 = vmatprep.mubr.bf16.mxu0 %v14567_v7 }
 0xd8c   : > { %v13607_v4 = vpop.f32.mrf.mxu0 }
 0xd8e   : > { %v13611_v57 = vpop.f32.mrf.mxu0 }
 0xd90   : > { %v13619_v1 = vpop.f32.mrf.mxu0 }
 0xd92   : > { %v13625_v24 = vpop.f32.mrf.mxu0 }
 0xdaa   : > { %v13603_v21 = vpop.xlane.xlu0 %4384 }
 0xdae   : > { %v9098_v42 = vpop.permute.xlu0 %9097 }
 0xdaf   : > { %v9100_v32 = vunpack.i.h.bf16 %v9098_v42  ;;  %v9099_v41 = vunpack.i.l.bf16 %v9098_v42 }
 0xdb1   : > { %v4082_v23 = vsel %vm15402_vm14, %v2428_v29, %v9100_v32  ;;  %v4081_v33 = vsel %vm15403_vm11, %v2427_v3, %v9099_v41  ;;  %vm15440_vm14 = vmmov %vm15403_vm11 }
 0xdb4   : > { %v13605_v46 = vpop.xlane.xlu1 %4382 }
 0xdb5   : > { %15399 = vst [vmem:[#allocation188_spill] sm:$0xff] %v13605_v46 }
 0xdb8   : > { %v9103_v54 = vpop.permute.xlu1 %9102 }
 0xdb9   : > { %v9105_v37 = vunpack.i.h.bf16 %v9103_v54  ;;  %v9104_v56 = vunpack.i.l.bf16 %v9103_v54 }
 0xdbb   : > { %v4099_v63 = vsel %vm4083_vm9, %v4082_v23, %v9105_v37  ;;  %v4098_v12 = vsel %vm4083_vm9, %v4081_v33, %v9104_v56 }
 0xdbc   : > { %v9108_v22 = vpop.permute.xlu1 %9107 }
 0xdbd   : > { %v9110_v26 = vunpack.i.h.bf16 %v9108_v22  ;;  %v9109_v18 = vunpack.i.l.bf16 %v9108_v22 }
 0xdbf   : > { %v4115_v34 = vsel %vm4100_vm13, %v4098_v12, %v9109_v18  ;;  %v4116_v28 = vsel %vm4100_vm13, %v4099_v63, %v9110_v26 }
 0xdc0   : > { %v13621_v55 = vpack.c.bf16 %v4116_v28, %v4115_v34 }
 0xdc2   : > { %15404 = vst [vmem:[#allocation186_spill] sm:$0xff] %v13621_v55  ;;  %6856 = vmatmul.mubr.bf16.gmra.mxu0 %v13621_v55 }
 0xdc3   : > { %6865 = vmatprep.mubr.bf16.mxu0 %v14567_v7 }
 0xdc6   : > { %v13627_v44 = vpop.f32.mrf.mxu0 }
 0xdc8   : > { %v13629_v8 = vpop.f32.mrf.mxu0 }
 0xdca   : > { %v13631_v51 = vpop.f32.mrf.mxu0 }
 0xdcc   : > { %v13633_v9 = vpop.f32.mrf.mxu0 }
 0xdce   : > { %v13635_v45 = vpop.f32.mrf.mxu0 }
 0xdd0   : > { %v13637_v0 = vpop.f32.mrf.mxu0 }
 0xdd2   : > { %v13639_v19 = vpop.f32.mrf.mxu0 }
 0xdd4   : > { %v13641_v53 = vpop.f32.mrf.mxu0 }
 0xdd6   : > { %v13643_v17 = vpop.f32.mrf.mxu0 }
 0xdd8   : > { %v13645_v31 = vpop.f32.mrf.mxu0 }
 0xdda   : > { %v13647_v50 = vpop.f32.mrf.mxu0 }
 0xddc   : > { %v13649_v38 = vpop.f32.mrf.mxu0 }
 0xdde   : > { %v8842_v58 = vpop.f32.mrf.mxu0 }
 0xddf   : > { %v13653_v42 = vsel %vm10136_vm2, %v8842_v58, -inf  ;;  %v13655_v36 = vpop.xlane.xlu0 %4386 }
 0xde0   : > { %15406 = vst [vmem:[#allocation121_spill] sm:$0xff] %v13655_v36  ;;  %v5621_v52 = vpop.f32.mrf.mxu0  ;;  %5704 = vmax.xlane.f32.xlu0 %v13653_v42 }
 0xde1   : > { %v13660_v41 = vsel %vm10113_vm0, %v5621_v52, -inf }
 0xde2   : > { %v8843_v54 = vpop.f32.mrf.mxu0 }
 0xde3   : > { %v5329_v37 = vpop.xlane.xlu0 %5328  ;;  %v13670_v22 = vsel %vm10140_vm3, %v8843_v54, -inf }
 0xde4   : > { %v5624_v56 = vpop.f32.mrf.mxu0  ;;  %5700 = vmax.xlane.f32.xlu0 %v13660_v41 }
 0xde5   : > { %v13665_v29 = vsel %vm10132_vm1, %v5624_v56, -inf }
 0xde6   : > { %5702 = vmax.xlane.f32.xlu1 %v13665_v29  ;;  %v8846_v62 = vpop.f32.mrf.mxu0 }
 0xde7   : > { %v5325_v23 = vpop.xlane.xlu0 %5324  ;;  %v13675_v63 = vsel %vm10167_vm6, %v8846_v62, -inf }
 0xde8   : > { %v5637_v33 = vpop.f32.mrf.mxu0  ;;  %5706 = vmax.xlane.f32.xlu0 %v13670_v22 }
 0xde9   : > { %v13687_v32 = vsel %vm10144_vm4, %v5637_v33, -inf }
 0xdea   : > { %v8847_v26 = vpop.f32.mrf.mxu0 }
 0xdeb   : > { %v5335_v12 = vpop.xlane.xlu0 %5334 }
 0xdec   : > { %9647 = vrcp.f32 %v5335_v12  ;;  %v5640_v34 = vpop.f32.mrf.mxu0  ;;  %5712 = vmax.xlane.f32.xlu0 %v13675_v63  ;;  %v13694_v12 = vsel %vm10171_vm7, %v8847_v26, -inf }
 0xded   : > { %v13680_v58 = vsel %vm15262_vm12, %v5640_v34, -inf  ;;  %v13682_v5 = vpop.xlane.xlu1 %4388  ;;  %9649 = vrcp.f32 %v5329_v37 }
 0xdee   : > { %15412 = vst [vmem:[#allocation107_spill] sm:$0xff] %v13682_v5  ;;  %5710 = vmax.xlane.f32.xlu1 %v13680_v58  ;;  %v8850_v52 = vpop.f32.mrf.mxu0  ;;  %v6240_v5 = vld [vmem:[#allocation2 + $0x18] sm:$0xff] }
 0xdef   : > { %v13689_v56 = vpop.xlane.xlu0 %5332  ;;  %v13703_v7 = vsel %vm15080_vm8, %v8850_v52, -inf }
 0xdf0   : > { %v5653_v6 = vpop.f32.mrf.mxu0  ;;  %5708 = vmax.xlane.f32.xlu0 %v13687_v32 }
 0xdf1   : > { %v5327_v62 = vpop.xlane.xlu1 %5326  ;;  %v13715_v27 = vsel %vm15081_vm10, %v5653_v6, -inf }
 0xdf2   : > { %9651 = vrcp.f32 %v5327_v62  ;;  %v8851_v3 = vpop.f32.mrf.mxu0 }
 0xdf3   : > { %9653 = vrcp.f32 %v5325_v23  ;;  %v5343_v34 = vpop.xlane.xlu0 %5342 }
 0xdf4   : > { %9655 = vrcp.f32 %v5343_v34  ;;  %v13696_v28 = vpop.f32.mrf.mxu0  ;;  %5714 = vmax.xlane.f32.xlu0 %v13694_v12 }
 0xdf5   : > { %v5323_v33 = vpop.xlane.xlu1 %5322 }
 0xdf6   : > { %9657 = vrcp.f32 %v5323_v33  ;;  %v13699_v37 = vpop.f32.mrf.mxu0 }
 0xdf7   : > { %v5339_v62 = vpop.xlane.xlu0 %5338 }
 0xdf8   : > { %9659 = vrcp.f32 %v5339_v62  ;;  %v13705_v23 = vpop.f32.mrf.mxu0  ;;  %5720 = vmax.xlane.f32.xlu0 %v13703_v7  ;;  %v6239_v62 = vld [vmem:[#allocation2 + $0xd8] sm:$0xff] }
 0xdf9   : > { %v9648_v26 = vpop.eup %9647  ;;  %v5337_v18 = vpop.xlane.xlu1 %5336 }
 0xdfa   : > { %9661 = vrcp.f32 %v5337_v18  ;;  %v13708_v34 = vpop.f32.mrf.mxu0  ;;  %v13711_v39 = vmul.f32 %v9648_v26, %v13627_v44  ;;  %v9650_v15 = vpop.eup %9649  ;;  %v13725_v26 = vsel %vm15082_vm15, %v8851_v3, -inf }
 0xdfb   : > { %v5341_v52 = vpop.xlane.xlu0 %5340  ;;  %v13732_v13 = vmul.f32 %v9650_v15, %v13619_v1 }
 0xdfc   : > { %9663 = vrcp.f32 %v5341_v52  ;;  %v13717_v54 = vpop.f32.mrf.mxu0  ;;  %5716 = vmax.xlane.f32.xlu0 %v13715_v27 }
 0xdfd   : > { %v13720_v16 = vpop.xlane.xlu1 %5330  ;;  %9665 = vrcp.f32 %v13249_v59 }
 0xdfe   : > { %v6787_v18 = vpop.f32.mrf.mxu0 }
 0xdff   : > { %v9652_v36 = vpop.eup %9651  ;;  %v6948_v6 = vadd.f32 %v6787_v18, %v6239_v62  ;;  %v5351_v33 = vpop.xlane.xlu0 %5350  ;;  %v6244_v18 = vld [vmem:[#allocation2 + $0x48] sm:$0xff] }
 0xe00   : > { %v9654_v52 = vpop.eup %9653  ;;  %9667 = vrcp.f32 %v5351_v33  ;;  %5722 = vmax.xlane.f32.xlu0 %v13725_v26  ;;  %v6789_v55 = vpop.f32.mrf.mxu0  ;;  %v13729_v10 = vmul.f32 %v9652_v36, %v13607_v4 }
 0xe01   : > { %v9656_v61 = vpop.eup %9655  ;;  %9669 = vrcp.f32 %v13247_v25  ;;  %7076 = vst [vmem:[#allocation2 + $0xd8] sm:$0xff] %v6948_v6  ;;  %v6949_v59 = vadd.f32 %v6789_v55, %v6240_v5  ;;  %v5345_v3 = vpop.xlane.xlu1 %5344  ;;  %v5492_v55 = vmul.f32 %v9654_v52, %v13625_v24  ;;  %v6251_v24 = vld [vmem:[#allocation2 + $0x108] sm:$0xff] }
 0xe02   : > { %9671 = vrcp.f32 %v5345_v3  ;;  %v6791_v62 = vpop.f32.mrf.mxu0  ;;  %v13738_v33 = vmul.f32 %v9656_v61, %v13635_v45  ;;  %v6248_v61 = vld [vmem:[#allocation2 + $0x98] sm:$0xff] }
 0xe03   : > { %v9658_v4 = vpop.eup %9657  ;;  %7077 = vst [vmem:[#allocation2 + $0x18] sm:$0xff] %v6949_v59  ;;  %v6952_v36 = vadd.f32 %v6791_v62, %v6243_v20  ;;  %v5347_v15 = vpop.xlane.xlu0 %5346 }
 0xe04   : > { %9673 = vrcp.f32 %v5347_v15  ;;  %v6793_v1 = vpop.f32.mrf.mxu0  ;;  %v5491_v25 = vmul.f32 %v9658_v4, %v13611_v57  ;;  %v6252_v15 = vld [vmem:[#allocation2 + $0x60] sm:$0xff] }
 0xe05   : > { %v9660_v5 = vpop.eup %9659  ;;  %7080 = vst [vmem:[#allocation2 + $0x330] sm:$0xff] %v6952_v36  ;;  %v6953_v6 = vadd.f32 %v6793_v1, %v6244_v18  ;;  %v5353_v3 = vpop.xlane.xlu1 %5352 }
 0xe06   : > { %9675 = vrcp.f32 %v5353_v3  ;;  %v6797_v44 = vpop.f32.mrf.mxu0  ;;  %v9116_v46 = vpack.i.bf16 %v5492_v55, %v5491_v25  ;;  %v13743_v45 = vmul.f32 %v9660_v5, %v13637_v0  ;;  %v6255_v25 = vld [vmem:[#allocation2 + $0x338] sm:$0xff] }
 0xe07   : > { %v9662_v20 = vpop.eup %9661  ;;  %7081 = vst [vmem:[#allocation2 + $0x48] sm:$0xff] %v6953_v6  ;;  %v6956_v59 = vadd.f32 %v6797_v44, %v6247_v40  ;;  %v5349_v62 = vpop.xlane.xlu0 %5348 }
 0xe08   : > { %9677 = vrcp.f32 %v5349_v62  ;;  %9117 = vrot.lane.b32.xlu1 %v9116_v46, %s9910_s20  ;;  %v6799_v57 = vpop.f32.mrf.mxu0  ;;  %v13747_v52 = vmul.f32 %v9662_v20, %v13631_v51  ;;  %v15419_v51 = vld [vmem:[#allocation165_spill] sm:$0xff] }
 0xe09   : > { %v9664_v18 = vpop.eup %9663  ;;  %7084 = vst [vmem:[#allocation2 + $0x118] sm:$0xff] %v6956_v59  ;;  %v6957_v4 = vadd.f32 %v6799_v57, %v6248_v61  ;;  %v6256_v61 = vld [vmem:[#allocation2 + $0x340] sm:$0xff]  ;;  %v6259_v57 = vld [vmem:[#allocation2 + $0x1b8] sm:$0xff]  ;;  %9679 = vrcp.f32 %v13239_v48 }
 0xe0a   : > { %v6801_v36 = vpop.f32.mrf.mxu0  ;;  %v13752_v1 = vmul.f32 %v9664_v18, %v13641_v53  ;;  %v9666_v44 = vpop.eup %9665 }
 0xe0b   : > { %7085 = vst [vmem:[#allocation2 + $0x98] sm:$0xff] %v6957_v4  ;;  %v6960_v40 = vadd.f32 %v6801_v36, %v6251_v24  ;;  %v15418_v24 = vld [vmem:[#allocation156_spill] sm:$0xff] }
 0xe0c   : > { %v6803_v46 = vpop.f32.mrf.mxu0  ;;  %v5017_v18 = vmul.f32 %v9666_v44, %v15418_v24  ;;  %v6267_v24 = vld [vmem:[#allocation2 + $0x1c0] sm:$0xff] }
 0xe0d   : > { %v9668_v55 = vpop.eup %9667  ;;  %7088 = vst [vmem:[#allocation2 + $0x108] sm:$0xff] %v6960_v40  ;;  %v6961_v5 = vadd.f32 %v6803_v46, %v6252_v15  ;;  %v6260_v46 = vld [vmem:[#allocation2 + $0x168] sm:$0xff] }
 0xe0e   : > { %v9670_v6 = vpop.eup %9669  ;;  %v6807_v3 = vpop.f32.mrf.mxu0  ;;  %v13757_v20 = vmul.f32 %v9668_v55, %v13643_v17 }
 0xe0f   : > { %v9672_v59 = vpop.eup %9671  ;;  %7089 = vst [vmem:[#allocation2 + $0x60] sm:$0xff] %v6961_v5  ;;  %v6964_v53 = vadd.f32 %v6807_v3, %v6255_v25  ;;  %v5018_v0 = vmul.f32 %v9670_v6, %v15419_v51 }
 0xe10   : > { %v6809_v62 = vpop.f32.mrf.mxu0  ;;  %v13761_v4 = vmul.f32 %v9672_v59, %v13639_v19  ;;  %v6263_v19 = vld [vmem:[#allocation2 + $0x290] sm:$0xff] }
 0xe11   : > { %v9674_v36 = vpop.eup %9673  ;;  %7092 = vst [vmem:[#allocation2 + $0x338] sm:$0xff] %v6964_v53  ;;  %v6965_v40 = vadd.f32 %v6809_v62, %v6256_v61  ;;  %v9111_v3 = vpack.i.bf16 %v5018_v0, %v5017_v18  ;;  %v6276_v62 = vld [vmem:[#allocation2 + $0x128] sm:$0xff] }
 0xe12   : > { %v6811_v15 = vpop.f32.mrf.mxu0  ;;  %v13765_v17 = vmul.f32 %v9674_v36, %v13645_v31  ;;  %v9191_v25 = vpack.i.bf16 %v13761_v4, %v13738_v33  ;;  %v6264_v31 = vld [vmem:[#allocation2 + $0x28] sm:$0xff] }
 0xe13   : > { %v9676_v55 = vpop.eup %9675  ;;  %7093 = vst [vmem:[#allocation2 + $0x340] sm:$0xff] %v6965_v40  ;;  %v6968_v5 = vadd.f32 %v6811_v15, %v6259_v57  ;;  %v6268_v40 = vld [vmem:[#allocation2 + $0x280] sm:$0xff] }
 0xe14   : > { %v6813_v44 = vpop.f32.mrf.mxu0  ;;  %v13770_v59 = vmul.f32 %v9676_v55, %v13647_v50  ;;  %v6271_v55 = vld [vmem:[#allocation2 + $0x158] sm:$0xff] }
 0xe15   : > { %v9678_v61 = vpop.eup %9677  ;;  %7096 = vst [vmem:[#allocation2 + $0x1b8] sm:$0xff] %v6968_v5  ;;  %v6969_v53 = vadd.f32 %v6813_v44, %v6260_v46  ;;  %v6272_v44 = vld [vmem:[#allocation2 + $0x3e0] sm:$0xff] }
 0xe16   : > { %9112 = vrot.lane.b32.xlu0 %v9111_v3, %s9911_s21  ;;  %v6817_v51 = vpop.f32.mrf.mxu0  ;;  %v13774_v6 = vmul.f32 %v9678_v61, %v13649_v38  ;;  %v6275_v61 = vld [vmem:[#allocation2 + $0x8] sm:$0xff] }
 0xe17   : > { %7097 = vst [vmem:[#allocation2 + $0x168] sm:$0xff] %v6969_v53  ;;  %v6972_v57 = vadd.f32 %v6817_v51, %v6263_v19 }
 0xe18   : > { %v6819_v0 = vpop.f32.mrf.mxu0  ;;  %v9206_v50 = vpack.i.bf16 %v13774_v6, %v13765_v17 }
 0xe19   : > { %7100 = vst [vmem:[#allocation2 + $0x290] sm:$0xff] %v6972_v57  ;;  %v6973_v18 = vadd.f32 %v6819_v0, %v6264_v31  ;;  %v6279_v0 = vld [vmem:[#allocation2 + $0xa0] sm:$0xff] }
 0xe1a   : > { %v6821_v36 = vpop.f32.mrf.mxu0 }
 0xe1b   : > { %7101 = vst [vmem:[#allocation2 + $0x28] sm:$0xff] %v6973_v18  ;;  %v6976_v15 = vadd.f32 %v6821_v36, %v6267_v24  ;;  %v6280_v36 = vld [vmem:[#allocation2 + $0x2c0] sm:$0xff] }
 0xe1c   : > { %v6823_v46 = vpop.f32.mrf.mxu0 }
 0xe1d   : > { %7104 = vst [vmem:[#allocation2 + $0x1c0] sm:$0xff] %v6976_v15  ;;  %v6977_v38 = vadd.f32 %v6823_v46, %v6268_v40  ;;  %v6283_v46 = vld [vmem:[#allocation2 + $0x1f0] sm:$0xff] }
 0xe1e   : > { %v6827_v5 = vpop.f32.mrf.mxu0 }
 0xe1f   : > { %7105 = vst [vmem:[#allocation2 + $0x280] sm:$0xff] %v6977_v38  ;;  %v6980_v3 = vadd.f32 %v6827_v5, %v6271_v55  ;;  %v6284_v5 = vld [vmem:[#allocation2 + $0x10] sm:$0xff] }
 0xe20   : > { %v6829_v19 = vpop.f32.mrf.mxu0 }
 0xe21   : > { %7108 = vst [vmem:[#allocation2 + $0x158] sm:$0xff] %v6980_v3  ;;  %v6981_v53 = vadd.f32 %v6829_v19, %v6272_v44  ;;  %v15420_v44 = vld [vmem:[#allocation35_spill] sm:$0xff] }
 0xe22   : > { %v6831_v51 = vpop.f32.mrf.mxu0  ;;  %vm15421_vm8 = vnez %v15420_v44 }
 0xe23   : > { %7109 = vst [vmem:[#allocation2 + $0x3e0] sm:$0xff] %v6981_v53  ;;  %v6984_v31 = vadd.f32 %v6831_v51, %v6275_v61  ;;  %v13783_v3 = vsel %vm15421_vm8, %v13696_v28, -inf  ;;  %v15422_v53 = vld [vmem:[#allocation105_spill] sm:$0xff]  ;;  %vm15448_vm8 = vmmov %vm15403_vm11 }
 0xe24   : > { %v6833_v57 = vpop.f32.mrf.mxu0  ;;  %v4366_v51 = vunpack.c.l.bf16 %v15422_v53  ;;  %v4367_v28 = vunpack.c.h.bf16 %v15422_v53 }
 0xe25   : > { %7112 = vst [vmem:[#allocation2 + $0x8] sm:$0xff] %v6984_v31  ;;  %v6985_v24 = vadd.f32 %v6833_v57, %v6276_v62  ;;  %v15423_v31 = vld [vmem:[#allocation43_spill] sm:$0xff] }
 0xe26   : > { %v6837_v18 = vpop.f32.mrf.mxu0  ;;  %vm15424_vm10 = vnez %v15423_v31  ;;  %v6292_v31 = vld [vmem:[#allocation2 + $0x2f0] sm:$0xff] }
 0xe27   : > { %7113 = vst [vmem:[#allocation2 + $0x128] sm:$0xff] %v6985_v24  ;;  %v6988_v40 = vadd.f32 %v6837_v18, %v6279_v0  ;;  %v13790_v57 = vsel %vm15424_vm10, %v13699_v37, -inf  ;;  %v15425_v0 = vld [vmem:[#allocation38_spill] sm:$0xff]  ;;  %v15427_v18 = vld [vmem:[#allocation44_spill] sm:$0xff]  ;;  %vm15449_vm10 = vmmov %vm15448_vm8 }
 0xe28   : > { %v6839_v15 = vpop.f32.mrf.mxu0  ;;  %vm15426_vm15 = vnez %v15425_v0  ;;  %vm15428_vm12 = vnez %v15427_v18  ;;  %v15429_v37 = vld [vmem:[#allocation42_spill] sm:$0xff]  ;;  %v15434_v0 = vld [vmem:[#allocation157_spill] sm:$0xff] }
 0xe29   : > { %7116 = vst [vmem:[#allocation2 + $0xa0] sm:$0xff] %v6988_v40  ;;  %v6989_v55 = vadd.f32 %v6839_v15, %v6280_v36  ;;  %v13797_v24 = vsel %vm15426_vm15, %v13705_v23, -inf  ;;  %v13802_v36 = vsel %vm15428_vm12, %v13708_v34, -inf  ;;  %vm15430_vm5 = vnez %v15429_v37  ;;  %v15431_v23 = vld [vmem:[#allocation170_spill] sm:$0xff]  ;;  %v9385_v15 = vld [vmem:[%s13257_s23 + $0xe4] ss:$16 sps:$4 sm:$0xff]   ;;  %vm15456_vm15 = vmmov %vm15448_vm8 }
 0xe2a   : > { %v6841_v38 = vpop.f32.mrf.mxu0  ;;  %v13809_v40 = vsel %vm15430_vm5, %v13717_v54, -inf  ;;  %9681 = vrcp.f32 %v15431_v23  ;;  %6560 = vmatprep.subr.bf16.mxu1 %v9385_v15  ;;  %v15432_v34 = vpack.i.bf16 %v13732_v13, %v13729_v10  ;;  %v15435_v15 = vld [vmem:[#allocation109_spill] sm:$0xff]  ;;  %vm15457_vm12 = vmmov %vm15448_vm8 }
 0xe2b   : > { %7117 = vst [vmem:[#allocation2 + $0x2c0] sm:$0xff] %v6989_v55  ;;  %v6992_v19 = vadd.f32 %v6841_v38, %v6283_v46  ;;  %v6287_v46 = vld [vmem:[#allocation2 + $0x90] sm:$0xff]  ;;  %v9680_v55 = vpop.eup %9679  ;;  %9683 = vrcp.f32 %v13720_v16  ;;  %vm15466_vm5 = vmmov %vm15448_vm8 }
 0xe2c   : > { %5718 = vmax.xlane.f32.xlu1 %v13783_v3  ;;  %v6843_v62 = vpop.f32.mrf.mxu0  ;;  %9685 = vrcp.f32 %v13689_v56 }
 0xe2d   : > { %7120 = vst [vmem:[#allocation2 + $0x1f0] sm:$0xff] %v6992_v19  ;;  %v6993_v61 = vadd.f32 %v6843_v62, %v6284_v5  ;;  %v6288_v5 = vld [vmem:[#allocation2 + $0x3a0] sm:$0xff]  ;;  %v6291_v62 = vld [vmem:[#allocation2 + $0x88] sm:$0xff]  ;;  %9687 = vrcp.f32 %v13261_v49 }
 0xe2e   : > { %9689 = vrcp.f32 %v13259_v30 }
 0xe2f   : > { %7121 = vst [vmem:[#allocation2 + $0x10] sm:$0xff] %v6993_v61  ;;  %v15433_v61 = vld [vmem:[#allocation155_spill] sm:$0xff] }
 0xe30   : > { %4390 = vadd.xlane.f32.xlu1 %v4366_v51  ;;  %v5019_v53 = vmul.f32 %v9680_v55, %v15433_v61 }
 0xe34   : > { %5728 = vmax.xlane.f32.xlu1 %v13790_v57 }
 0xe35   : > { %4392 = vadd.xlane.f32.xlu0 %v4367_v28 }
 0xe37   : > { %v9682_v54 = vpop.eup %9681 }
 0xe38   : > { %5724 = vmax.xlane.f32.xlu1 %v13797_v24  ;;  %v5020_v18 = vmul.f32 %v9682_v54, %v15434_v0  ;;  %v9684_v61 = vpop.eup %9683 }
 0xe39   : > { %5730 = vmax.xlane.f32.xlu0 %v13802_v36 }
 0xe3a   : > { %v9121_v10 = vpack.i.bf16 %v5020_v18, %v5019_v53 }
 0xe3d   : > { %5726 = vmax.xlane.f32.xlu0 %v13809_v40 }
 0xe49   : > { %9127 = vrot.lane.b32.xlu1 %v15432_v34, %s9910_s20 }
 0xe4a   : > { %v6847_v38 = vpop.f32.mrf.mxu0 }
 0xe4b   : > { %v6996_v44 = vadd.f32 %v6847_v38, %v6287_v46  ;;  %v4369_v46 = vunpack.c.h.bf16 %v15435_v15 }
 0xe4c   : > { %v6849_v19 = vpop.f32.mrf.mxu0 }
 0xe4d   : > { %7124 = vst [vmem:[#allocation2 + $0x90] sm:$0xff] %v6996_v44  ;;  %v6997_v48 = vadd.f32 %v6849_v19, %v6288_v5  ;;  %v4368_v44 = vunpack.c.l.bf16 %v15435_v15 }
 0xe4e   : > { %v6851_v51 = vpop.f32.mrf.mxu0 }
 0xe4f   : > { %7125 = vst [vmem:[#allocation2 + $0x3a0] sm:$0xff] %v6997_v48  ;;  %v7000_v28 = vadd.f32 %v6851_v51, %v6291_v62 }
 0xe50   : > { %v6853_v37 = vpop.f32.mrf.mxu0 }
 0xe51   : > { %7128 = vst [vmem:[#allocation2 + $0x88] sm:$0xff] %v7000_v28  ;;  %v7001_v13 = vadd.f32 %v6853_v37, %v6292_v31  ;;  %v5495_v31 = vmul.f32 %v9684_v61, %v13629_v8 }
 0xe53   : > { %7129 = vst [vmem:[#allocation2 + $0x2f0] sm:$0xff] %v7001_v13  ;;  %9122 = vrot.lane.b32.xlu0 %v9121_v10, %s9911_s21 }
 0xe69   : > { %v5705_v23 = vpop.xlane.xlu0 %5704 }
 0xe6a   : > { %v5734_v19 = vsub.f32 %v13653_v42, %v5705_v23 }
 0xe6d   : > { %v5701_v34 = vpop.xlane.xlu0 %5700  ;;  %4396 = vadd.xlane.f32.xlu1 %v4369_v46  ;;  %v6296_v46 = vld [vmem:[#allocation2 + $0x188] sm:$0xff] }
 0xe6e   : > { %v5732_v38 = vsub.f32 %v13660_v41, %v5701_v34 }
 0xe6f   : > { %v5703_v55 = vpop.xlane.xlu1 %5702 }
 0xe70   : > { %v5733_v5 = vsub.f32 %v13665_v29, %v5703_v55  ;;  %v9686_v29 = vpop.eup %9685 }
 0xe71   : > { %v5707_v54 = vpop.xlane.xlu0 %5706  ;;  %v9688_v8 = vpop.eup %9687 }
 0xe72   : > { %v5748_v16 = vpack.c.bf16 %v5733_v5, %v5732_v38  ;;  %v5735_v62 = vsub.f32 %v13670_v22, %v5707_v54  ;;  %4394 = vadd.xlane.f32.xlu0 %v4368_v44  ;;  %v5496_v22 = vmul.f32 %v9686_v29, %v13633_v9  ;;  %v9690_v9 = vpop.eup %9689  ;;  %v6299_v38 = vld [vmem:[#allocation2 + $0x140] sm:$0xff]  ;;  %v15437_v5 = vld [vmem:[#allocation119_spill] sm:$0xff] }
 0xe73   : > { %v5022_v44 = vmul.f32 %v9690_v9, %v15437_v5  ;;  %v9383_v54 = vld [vmem:[%s13257_s23 + $0xe0] ss:$16 sps:$4 sm:$0xff]  }
 0xe74   : > { %v5757_v56 = vmul.bf16 1069105081, %v5748_v16  ;;  %v5749_v48 = vpack.c.bf16 %v5735_v62, %v5734_v19  ;;  %v9136_v30 = vpack.i.bf16 %v5496_v22, %v5495_v31  ;;  %v9388_v62 = vld [vmem:[%s13257_s23 + $0xc4] ss:$16 sps:$4 sm:$0xff]   ;;  %v15439_v9 = vld [vmem:[#allocation180_spill] sm:$0xff] }
 0xe75   : > { %v5713_v53 = vpop.xlane.xlu0 %5712 }
 0xe76   : > { %9691 = vpow.bf16 %v5757_v56  ;;  %v5760_v41 = vmul.bf16 1069105081, %v5749_v48  ;;  %v5738_v37 = vsub.f32 %v13675_v63, %v5713_v53  ;;  %v6300_v53 = vld [vmem:[#allocation2 + $0x2a8] sm:$0xff] }
 0xe77   : > { %v5711_v51 = vpop.xlane.xlu1 %5710 }
 0xe78   : > { %9693 = vpow.bf16 %v5760_v41  ;;  %v5737_v42 = vsub.f32 %v13680_v58, %v5711_v51  ;;  %v9386_v51 = vld [vmem:[%s13257_s23 + $0xc0] ss:$16 sps:$4 sm:$0xff]  }
 0xe79   : > { %v5709_v49 = vpop.xlane.xlu0 %5708  ;;  %9695 = vrcp.f32 %v13533_v14 }
 0xe7a   : > { %v5736_v28 = vsub.f32 %v13687_v32, %v5709_v49  ;;  %9697 = vrcp.f32 %v13523_v2  ;;  %v6295_v32 = vld [vmem:[#allocation2 + $0x350] sm:$0xff]  ;;  %v15436_v2 = vld [vmem:[#allocation137_spill] sm:$0xff] }
 0xe7b   : > { %v5021_v34 = vmul.f32 %v9688_v8, %v15436_v2 }
 0xe7c   : > { %v5750_v0 = vpack.c.bf16 %v5737_v42, %v5736_v28  ;;  %v9391_v42 = vld [vmem:[%s13257_s23 + $0xa4] ss:$16 sps:$4 sm:$0xff]  }
 0xe7d   : > { %v5715_v18 = vpop.xlane.xlu0 %5714  ;;  %v9131_v61 = vpack.i.bf16 %v5022_v44, %v5021_v34 }
 0xe7e   : > { %v5763_v13 = vmul.bf16 1069105081, %v5750_v0  ;;  %v5739_v10 = vsub.f32 %v13694_v12, %v5715_v18  ;;  %9137 = vrot.lane.b32.xlu1 %v9136_v30, %s9910_s20  ;;  %v9118_v0 = vpop.permute.xlu1 %9117  ;;  %v9389_v30 = vld [vmem:[%s13257_s23 + $0xa0] ss:$16 sps:$4 sm:$0xff]  }
 0xe80   : > { %9699 = vpow.bf16 %v5763_v13  ;;  %v5751_v58 = vpack.c.bf16 %v5739_v10, %v5738_v37  ;;  %v9394_v37 = vld [vmem:[%s13257_s23 + $0x84] ss:$16 sps:$4 sm:$0xff]  }
 0xe81   : > { %v13841_v23 = vpop.xlane.xlu0 %5720  ;;  %v15438_v10 = vld [vmem:[#allocation129_spill] sm:$0xff] }
 0xe82   : > { %v5766_v14 = vmul.bf16 1069105081, %v5751_v58  ;;  %v6857_v15 = vpop.f32.mrf.mxu0 }
 0xe83   : > { %v7004_v63 = vadd.f32 %v6857_v15, %v6295_v32  ;;  %v9120_v15 = vunpack.i.h.bf16 %v9118_v0 }
 0xe84   : > { %v13844_v55 = vpop.eup %9691  ;;  %9701 = vpow.bf16 %v5766_v14  ;;  %v6859_v12 = vpop.f32.mrf.mxu0 }
 0xe85   : > { %7132 = vst [vmem:[#allocation2 + $0x350] sm:$0xff] %v7004_v63  ;;  %v7005_v19 = vadd.f32 %v6859_v12, %v6296_v46  ;;  %v13848_v16 = vpop.xlane.xlu0 %5716  ;;  %8872 = vmatprep.mubr.bf16.mxu1 %v13844_v55  ;;  %v9119_v46 = vunpack.i.l.bf16 %v9118_v0  ;;  %v9392_v63 = vld [vmem:[%s13257_s23 + $0x80] ss:$16 sps:$4 sm:$0xff]   ;;  %v9397_v12 = vld [vmem:[%s13257_s23 + $0x64] ss:$16 sps:$4 sm:$0xff]   ;;  %9703 = vrcp.f32 %v13254_v43 }
 0xe86   : > { %v13852_v56 = vpop.eup %9693  ;;  %v6861_v48 = vpop.f32.mrf.mxu0 }
 0xe87   : > { %7133 = vst [vmem:[#allocation2 + $0x188] sm:$0xff] %v7005_v19  ;;  %v7008_v41 = vadd.f32 %v6861_v48, %v6299_v38  ;;  %8873 = vmatmul.mubr.bf16.vlgmr.msra.gmra.mxu1 %v13852_v56  ;;  %v9696_v28 = vpop.eup %9695  ;;  %v9400_v19 = vld [vmem:[%s13257_s23 + $0x44] ss:$16 sps:$4 sm:$0xff]   ;;  %v5783_v0 = vunpack.c.h.bf16 %v13852_v56 }
 0xe88   : > { %9132 = vrot.lane.b32.xlu0 %v9131_v61, %s9911_s21  ;;  %v6863_v29 = vpop.f32.mrf.mxu0  ;;  %6561 = vmatpush1.bf16.msra.mxu1 %v9383_v54  ;;  %v9698_v22 = vpop.eup %9697  ;;  %v4519_v8 = vmul.f32 %v9696_v28, %v15438_v10  ;;  %v9395_v54 = vld [vmem:[%s13257_s23 + $0x60] ss:$16 sps:$4 sm:$0xff]   ;;  %v9403_v48 = vld [vmem:[%s13257_s23 + $0x24] ss:$16 sps:$4 sm:$0xff]   ;;  %v9791_v28 = vld [vmem:[%s13257_s23 + $0xec] ss:$16 sps:$4 sm:$0xff]   ;;  %v5742_v10 = vsub.f32 %v13703_v7, %v13841_v23  ;;  %v15443_v7 = vpack.i.bf16 %v13747_v52, %v13711_v39 }
 0xe89   : > { %7136 = vst [vmem:[#allocation2 + $0x140] sm:$0xff] %v7008_v41  ;;  %v7009_v31 = vadd.f32 %v6863_v29, %v6300_v53  ;;  %v13857_v49 = vpop.xlane.xlu0 %5722  ;;  %6562 = vmatprep.subr.bf16.mxu1 %v9388_v62  ;;  %v4520_v14 = vmul.f32 %v9698_v22, %v15439_v9  ;;  %v9398_v62 = vld [vmem:[%s13257_s23 + $0x40] ss:$16 sps:$4 sm:$0xff]   ;;  %v9406_v53 = vld [vmem:[%s13257_s23 + $0x4] ss:$16 sps:$4 sm:$0xff]   ;;  %v5780_v22 = vunpack.c.l.bf16 %v13844_v55 }
 0xe8a   : > { %v9401_v61 = vld [vmem:[%s13257_s23 + $0x20] ss:$16 sps:$4 sm:$0xff]   ;;  %v15441_v41 = vld [vmem:[#allocation113_spill] sm:$0xff] }
 0xe8b   : > { %7137 = vst [vmem:[#allocation2 + $0x2a8] sm:$0xff] %v7009_v31  ;;  %v4370_v29 = vunpack.c.l.bf16 %v15441_v41  ;;  %v5782_v31 = vunpack.c.l.bf16 %v13852_v56  ;;  %v5740_v56 = vsub.f32 %v13715_v27, %v13848_v16  ;;  %v15444_v16 = vld [vmem:[#allocation167_spill] sm:$0xff] }
 0xe8c   : > { %6563 = vmatpush1.bf16.msra.mxu1 %v9386_v51  ;;  %v9404_v51 = vld [vmem:[%s13257_s23] ss:$16 sps:$4 sm:$0xff]  }
 0xe8d   : > { %v9113_v18 = vpop.permute.xlu0 %9112  ;;  %6564 = vmatprep.subr.bf16.mxu1 %v9391_v42  ;;  %v4371_v42 = vunpack.c.h.bf16 %v15441_v41 }
 0xe8e   : > { %v13862_v13 = vpop.eup %9699  ;;  %v9115_v58 = vunpack.i.h.bf16 %v9113_v18  ;;  %v9114_v32 = vunpack.i.l.bf16 %v9113_v18  ;;  %v15442_v18 = vld [vmem:[#allocation168_spill] sm:$0xff] }
 0xe8f   : > { %8876 = vmatprep.mubr.bf16.mxu1 %v13862_v13  ;;  %9705 = vrcp.f32 %v15442_v18 }
 0xe90   : > { %v6173_v2 = vsel %vm15440_vm14, %v4519_v8, %v9114_v32  ;;  %v6174_v34 = vsel %vm15403_vm11, %v4520_v14, %v9115_v58  ;;  %6565 = vmatpush1.bf16.msra.mxu1 %v9389_v30  ;;  %v5781_v30 = vunpack.c.h.bf16 %v13844_v55  ;;  %9707 = vrcp.f32 %v13581_v60  ;;  %vm15467_vm14 = vmmov %vm15466_vm5 }
 0xe91   : > { %6566 = vmatprep.subr.bf16.mxu1 %v9394_v37  ;;  %v13872_v38 = vsel %vm4083_vm9, %v6173_v2, %v9119_v46  ;;  %v13875_v5 = vsel %vm4083_vm9, %v6174_v34, %v9120_v15  ;;  %v5743_v37 = vsub.f32 %v13725_v26, %v13857_v49  ;;  %9709 = vrcp.f32 %v13587_v47  ;;  %v15445_v15 = vld [vmem:[#allocation135_spill] sm:$0xff]  ;;  %vm15489_vm11 = vmmov %vm15466_vm5 }
 0xe92   : > { %v13877_v44 = vpop.eup %9701 }
 0xe93   : > { %8877 = vmatmul.mubr.bf16.gmra.mxu1 %v13877_v44  ;;  %v5753_v8 = vpack.c.bf16 %v5743_v37, %v5742_v10  ;;  %v9704_v26 = vpop.eup %9703 }
 0xe94   : > { %6567 = vmatpush1.bf16.msra.mxu1 %v9392_v63  ;;  %v5023_v49 = vmul.f32 %v9704_v26, %v15444_v16  ;;  %v9792_v26 = vld [vmem:[%s13257_s23 + $0xe8] ss:$16 sps:$4 sm:$0xff]  }
 0xe95   : > { %6568 = vmatprep.subr.bf16.mxu1 %v9397_v12  ;;  %v5772_v55 = vmul.bf16 1069105081, %v5753_v8  ;;  %v9794_v16 = vld [vmem:[%s13257_s23 + $0xc8] ss:$16 sps:$4 sm:$0xff]  }
 0xe98   : > { %6569 = vmatpush1.bf16.msra.mxu1 %v9395_v54 }
 0xe99   : > { %6570 = vmatprep.subr.bf16.mxu1 %v9400_v19 }
 0xe9c   : > { %6571 = vmatpush1.bf16.msra.mxu1 %v9398_v62  ;;  %v9706_v23 = vpop.eup %9705 }
 0xe9d   : > { %6572 = vmatprep.subr.bf16.mxu1 %v9403_v48  ;;  %v5024_v46 = vmul.f32 %v9706_v23, %v15445_v15  ;;  %v9708_v12 = vpop.eup %9707  ;;  %v9796_v15 = vld [vmem:[%s13257_s23 + $0xa8] ss:$16 sps:$4 sm:$0xff]  }
 0xe9e   : > { %v9710_v62 = vpop.eup %9709 }
 0xe9f   : > { %v9141_v34 = vpack.i.bf16 %v5024_v46, %v5023_v49  ;;  %v9795_v49 = vld [vmem:[%s13257_s23 + $0xac] ss:$16 sps:$4 sm:$0xff]  }
 0xea0   : > { %6573 = vmatpush1.bf16.msra.mxu1 %v9401_v61  ;;  %v9797_v46 = vld [vmem:[%s13257_s23 + $0x8c] ss:$16 sps:$4 sm:$0xff]  }
 0xea1   : > { %6574 = vmatprep.subr.bf16.mxu1 %v9406_v53 }
 0xea2   : > { %4398 = vadd.xlane.f32.xlu1 %v4370_v29  ;;  %v15446_v29 = vld [vmem:[#allocation125_spill] sm:$0xff] }
 0xea4   : > { %6575 = vmatpush1.bf16.msra.mxu1 %v9404_v51  ;;  %v4521_v51 = vmul.f32 %v9708_v12, %v15446_v29  ;;  %v9804_v29 = vld [vmem:[%s13257_s23 + $0x28] ss:$16 sps:$4 sm:$0xff]  }
 0xea5   : > { %8888 = vmatprep.subr.bf16.mxu1 %v9791_v28 }
 0xea6   : > { %5800 = vadd.xlane.f32.xlu1 %v5782_v31 }
 0xea7   : > { %4400 = vadd.xlane.f32.xlu0 %v4371_v42 }
 0xeaa   : > { %5796 = vadd.xlane.f32.xlu1 %v5780_v22  ;;  %v15447_v22 = vld [vmem:[#allocation96_spill] sm:$0xff] }
 0xeab   : > { %5802 = vadd.xlane.f32.xlu0 %v5783_v0  ;;  %v4522_v0 = vmul.f32 %v9710_v62, %v15447_v22  ;;  %v9803_v62 = vld [vmem:[%s13257_s23 + $0x2c] ss:$16 sps:$4 sm:$0xff]  }
 0xeac   : > { %v15455_v22 = vld [vmem:[#allocation194_spill] sm:$0xff] }
 0xeaf   : > { %5798 = vadd.xlane.f32.xlu0 %v5781_v30 }
 0xeb5   : > { %v5719_v58 = vpop.xlane.xlu1 %5718 }
 0xeb6   : > { %v5741_v32 = vsub.f32 %v13783_v3, %v5719_v58 }
 0xeb8   : > { %v5752_v9 = vpack.c.bf16 %v5741_v32, %v5740_v56  ;;  %v5787_v56 = vunpack.c.h.bf16 %v13877_v44  ;;  %v15450_v32 = vmov 0  }
 0xeb9   : > { %v13903_v14 = vpop.xlane.xlu1 %4390 }
 0xeba   : > { %v5769_v43 = vmul.bf16 1069105081, %v5752_v9  ;;  %v5784_v9 = vunpack.c.l.bf16 %v13862_v13 }
 0xebb   : > { %9147 = vrot.lane.b32.xlu1 %v15443_v7, %s9910_s20  ;;  %v5785_v7 = vunpack.c.h.bf16 %v13862_v13 }
 0xebc   : > { %9711 = vpow.bf16 %v5769_v43 }
 0xebd   : > { %9713 = vpow.bf16 %v5772_v55  ;;  %v5729_v27 = vpop.xlane.xlu1 %5728  ;;  %v5786_v55 = vunpack.c.l.bf16 %v13877_v44 }
 0xebe   : > { %v13911_v3 = vpop.xlane.xlu0 %4392  ;;  %v5746_v63 = vsub.f32 %v13790_v57, %v5729_v27  ;;  %v9793_v27 = vld [vmem:[%s13257_s23 + $0xcc] ss:$16 sps:$4 sm:$0xff]  }
 0xec1   : > { %v5725_v2 = vpop.xlane.xlu1 %5724 }
 0xec2   : > { %v5731_v60 = vpop.xlane.xlu0 %5730  ;;  %v5744_v54 = vsub.f32 %v13797_v24, %v5725_v2 }
 0xec3   : > { %v5747_v47 = vsub.f32 %v13802_v36, %v5731_v60  ;;  %v15451_v60 = vld [vmem:[#allocation188_spill] sm:$0xff] }
 0xec5   : > { %9142 = vrot.lane.b32.xlu0 %v9141_v34, %s9911_s21  ;;  %v5755_v39 = vpack.c.bf16 %v5747_v47, %v5746_v63  ;;  %v9128_v48 = vpop.permute.xlu1 %9127  ;;  %v9799_v34 = vld [vmem:[%s13257_s23 + $0x6c] ss:$16 sps:$4 sm:$0xff]  }
 0xec6   : > { %v5727_v52 = vpop.xlane.xlu0 %5726  ;;  %v9130_v30 = vunpack.i.h.bf16 %v9128_v48  ;;  %v9129_v18 = vunpack.i.l.bf16 %v9128_v48  ;;  %v15452_v63 = vld [vmem:[#allocation108_spill] sm:$0xff] }
 0xec7   : > { %v5745_v19 = vsub.f32 %v13809_v40, %v5727_v52  ;;  %v5778_v41 = vmul.bf16 1069105081, %v5755_v39  ;;  %v9800_v39 = vld [vmem:[%s13257_s23 + $0x68] ss:$16 sps:$4 sm:$0xff]   ;;  %v9801_v52 = vld [vmem:[%s13257_s23 + $0x4c] ss:$16 sps:$4 sm:$0xff]  }
 0xec9   : > { %v5754_v61 = vpack.c.bf16 %v5745_v19, %v5744_v54  ;;  %v9802_v54 = vld [vmem:[%s13257_s23 + $0x48] ss:$16 sps:$4 sm:$0xff]  }
 0xeca   : > { %v9712_v53 = vpop.eup %9711  ;;  %v9123_v36 = vpop.permute.xlu0 %9122 }
 0xecb   : > { %v9714_v31 = vpop.eup %9713  ;;  %v5775_v42 = vmul.bf16 1069105081, %v5754_v61  ;;  %v9125_v57 = vunpack.i.h.bf16 %v9123_v36  ;;  %v9124_v28 = vunpack.i.l.bf16 %v9123_v36  ;;  %8880 = vmatprep.mubr.bf16.mxu1 %v9712_v53  ;;  %v5788_v23 = vunpack.c.l.bf16 %v9712_v53  ;;  %v9805_v36 = vld [vmem:[%s13257_s23 + $0xc] ss:$16 sps:$4 sm:$0xff]  }
 0xecc   : > { %8881 = vmatmul.mubr.bf16.gmra.mxu1 %v9714_v31  ;;  %v5791_v43 = vunpack.c.h.bf16 %v9714_v31  ;;  %v5790_v44 = vunpack.c.l.bf16 %v9714_v31  ;;  %v5789_v13 = vunpack.c.h.bf16 %v9712_v53  ;;  %v15453_v53 = vld [vmem:[#allocation110_spill] sm:$0xff]  ;;  %v15454_v31 = vld [vmem:[#allocation196_spill] sm:$0xff] }
 0xecd   : > { %9715 = vpow.bf16 %v5775_v42  ;;  %v6175_v24 = vsel %vm15448_vm8, %v4521_v51, %v9124_v28  ;;  %v6176_v40 = vsel %vm15449_vm10, %v4522_v0, %v9125_v57  ;;  %vm15490_vm8 = vmmov %vm15466_vm5 }
 0xece   : > { %9717 = vpow.bf16 %v5778_v41  ;;  %v13925_v37 = vsel %vm4083_vm9, %v6175_v24, %v9129_v18  ;;  %v13928_v10 = vsel %vm4083_vm9, %v6176_v40, %v9130_v30  ;;  %vm15493_vm10 = vmmov %vm15466_vm5 }
 0xecf   : > { %9719 = vrcp.f32 %v13603_v21 }
 0xed0   : > { %9721 = vrcp.f32 %v15451_v60 }
 0xedb   : > { %v9716_v8 = vpop.eup %9715 }
 0xedc   : > { %v9718_v58 = vpop.eup %9717  ;;  %8884 = vmatprep.mubr.bf16.mxu1 %v9716_v8  ;;  %v5792_v2 = vunpack.c.l.bf16 %v9716_v8  ;;  %v5793_v21 = vunpack.c.h.bf16 %v9716_v8  ;;  %v9806_v8 = vld [vmem:[%s13257_s23 + $0x8] ss:$16 sps:$4 sm:$0xff]  }
 0xedd   : > { %8885 = vmatmul.mubr.bf16.gmra.mxu1 %v9718_v58  ;;  %v5794_v47 = vunpack.c.l.bf16 %v9718_v58  ;;  %v9720_v48 = vpop.eup %9719 }
 0xede   : > { %6592 = vmatprep.mubr.bf16.mxu1 %v15450_v32  ;;  %v9722_v61 = vpop.eup %9721  ;;  %v4524_v42 = vmul.f32 %v9720_v48, %v15454_v31 }
 0xedf   : > { %5810 = vadd.xlane.f32.xlu1 %v5787_v56  ;;  %v4523_v0 = vmul.f32 %v9722_v61, %v15455_v22 }
 0xee3   : > { %5804 = vadd.xlane.f32.xlu1 %v5784_v9  ;;  %v15458_v9 = vld [vmem:[#allocation99_spill] sm:$0xff] }
 0xee4   : > { %5808 = vadd.xlane.f32.xlu0 %v5786_v55  ;;  %v15459_v55 = vld [vmem:[#allocation174_spill] sm:$0xff] }
 0xee5   : > { %6593 = vmatmul.mubr.bf16.vlgmr.msra.gmra.mxu1 %v13458_v11  ;;  %v5795_v11 = vunpack.c.h.bf16 %v9718_v58 }
 0xee6   : > { %6602 = vmatprep.mubr.bf16.mxu1 %v15450_v32  ;;  %8896 = vmatpush1.bf16.msra.mxu1 %v9792_v26 }
 0xee7   : > { %5818 = vadd.xlane.f32.xlu1 %v5791_v43  ;;  %8889 = vmatprep.subr.bf16.mxu1 %v9793_v27  ;;  %v15460_v43 = vld [vmem:[#allocation172_spill] sm:$0xff]  ;;  %v15462_v27 = vld [vmem:[#allocation121_spill] sm:$0xff] }
 0xee8   : > { %5806 = vadd.xlane.f32.xlu0 %v5785_v7  ;;  %v15461_v7 = vld [vmem:[#allocation186_spill] sm:$0xff]  ;;  %9723 = vrcp.f32 %v15462_v27 }
 0xeea   : > { %8897 = vmatpush1.bf16.msra.mxu1 %v9794_v16 }
 0xeeb   : > { %5812 = vadd.xlane.f32.xlu1 %v5788_v23  ;;  %8890 = vmatprep.subr.bf16.mxu1 %v9795_v49  ;;  %v15463_v23 = vld [vmem:[#allocation107_spill] sm:$0xff] }
 0xeec   : > { %5816 = vadd.xlane.f32.xlu0 %v5790_v44  ;;  %9725 = vrcp.f32 %v15463_v23 }
 0xeed   : > { %6603 = vmatmul.mubr.bf16.gmra.mxu1 %v13491_v35  ;;  %v9798_v35 = vld [vmem:[%s13257_s23 + $0x88] ss:$16 sps:$4 sm:$0xff]  }
 0xeee   : > { %6612 = vmatprep.mubr.bf16.mxu1 %v15450_v32  ;;  %8898 = vmatpush1.bf16.msra.mxu1 %v9796_v15 }
 0xeef   : > { %5826 = vadd.xlane.f32.xlu1 %v5795_v11  ;;  %8891 = vmatprep.subr.bf16.mxu1 %v9797_v46 }
 0xef0   : > { %5814 = vadd.xlane.f32.xlu0 %v5789_v13 }
 0xef2   : > { %8899 = vmatpush1.bf16.msra.mxu1 %v9798_v35 }
 0xef3   : > { %5820 = vadd.xlane.f32.xlu1 %v5792_v2  ;;  %8892 = vmatprep.subr.bf16.mxu1 %v9799_v34  ;;  %v15464_v2 = vld [vmem:[#allocation131_spill] sm:$0xff] }
 0xef4   : > { %5824 = vadd.xlane.f32.xlu0 %v5794_v47  ;;  %v15465_v34 = vld [vmem:[#allocation195_spill] sm:$0xff] }
 0xef5   : > { %6613 = vmatmul.mubr.bf16.gmra.mxu1 %v15452_v63  ;;  %v9724_v15 = vpop.eup %9723 }
 0xef6   : > { %6622 = vmatprep.mubr.bf16.mxu1 %v15450_v32  ;;  %8900 = vmatpush1.bf16.msra.mxu1 %v9800_v39  ;;  %v13953_v12 = vpop.xlane.xlu1 %4396  ;;  %v4525_v47 = vmul.f32 %v9724_v15, %v15464_v2 }
 0xef7   : > { %8893 = vmatprep.subr.bf16.mxu1 %v9801_v52 }
 0xef8   : > { %5822 = vadd.xlane.f32.xlu0 %v5793_v21 }
 0xef9   : > { %v9726_v46 = vpop.eup %9725 }
 0xefa   : > { %8901 = vmatpush1.bf16.msra.mxu1 %v9802_v54  ;;  %v9138_v41 = vpop.permute.xlu1 %9137  ;;  %v4526_v63 = vmul.f32 %v9726_v46, %v15465_v34 }
 0xefb   : > { %v13956_v19 = vpop.xlane.xlu0 %4394  ;;  %8894 = vmatprep.subr.bf16.mxu1 %v9803_v62  ;;  %v9140_v30 = vunpack.i.h.bf16 %v9138_v41  ;;  %v9139_v18 = vunpack.i.l.bf16 %v9138_v41 }
 0xefd   : > { %6623 = vmatmul.mubr.bf16.gmra.mxu1 %v15453_v53 }
 0xefe   : > { %6632 = vmatprep.mubr.bf16.mxu1 %v15450_v32  ;;  %8902 = vmatpush1.bf16.msra.mxu1 %v9804_v29 }
 0xeff   : > { %v9133_v51 = vpop.permute.xlu0 %9132  ;;  %8895 = vmatprep.subr.bf16.mxu1 %v9805_v36 }
 0xf00   : > { %v9135_v57 = vunpack.i.h.bf16 %v9133_v51  ;;  %v9134_v28 = vunpack.i.l.bf16 %v9133_v51 }
 0xf02   : > { %v6178_v24 = vsel %vm15456_vm15, %v4524_v42, %v9135_v57  ;;  %v6177_v40 = vsel %vm15457_vm12, %v4523_v0, %v9134_v28  ;;  %8903 = vmatpush1.bf16.msra.mxu1 %v9806_v8  ;;  %vm15494_vm15 = vmmov %vm15466_vm5 }
 0xf03   : > { %v13969_v58 = vsel %vm4083_vm9, %v6177_v40, %v9139_v18  ;;  %v13972_v56 = vsel %vm4083_vm9, %v6178_v24, %v9140_v30  ;;  %vm15497_vm12 = vmmov %vm15466_vm5 }
 0xf05   : > { %6633 = vmatmul.mubr.bf16.gmra.mxu1 %v15458_v9 }
 0xf06   : > { %6642 = vmatprep.mubr.bf16.mxu1 %v15450_v32 }
 0xf0d   : > { %6643 = vmatmul.mubr.bf16.gmra.mxu1 %v15459_v55 }
 0xf0e   : > { %6652 = vmatprep.mubr.bf16.mxu1 %v15450_v32 }
 0xf15   : > { %6653 = vmatmul.mubr.bf16.gmra.mxu1 %v15460_v43 }
 0xf16   : > { %6662 = vmatprep.mubr.bf16.mxu1 %v15450_v32 }
 0xf1d   : > { %6663 = vmatmul.mubr.bf16.gmra.mxu1 %v15461_v7 }
 0xf1e   : > { %6672 = vmatprep.mubr.bf16.mxu1 %v15450_v32 }
 0xf2b   : > { %v13982_v26 = vpop.xlane.xlu1 %4398 }
 0xf2f   : > { %v5801_v44 = vpop.xlane.xlu1 %5800 }
 0xf30   : > { %v13986_v16 = vpop.xlane.xlu0 %4400  ;;  %9727 = vrcp.f32 %v5801_v44 }
 0xf33   : > { %v5797_v11 = vpop.xlane.xlu1 %5796 }
 0xf34   : > { %v5803_v49 = vpop.xlane.xlu0 %5802 }
 0xf35   : > { %9729 = vrcp.f32 %v5803_v49 }
 0xf36   : > { %9731 = vrcp.f32 %v5797_v11 }
 0xf37   : > { %v9148_v60 = vpop.permute.xlu1 %9147 }
 0xf38   : > { %v5799_v13 = vpop.xlane.xlu0 %5798  ;;  %v9150_v52 = vunpack.i.h.bf16 %v9148_v60  ;;  %v9149_v54 = vunpack.i.l.bf16 %v9148_v60 }
 0xf39   : > { %9733 = vrcp.f32 %v5799_v13 }
 0xf3c   : > { %v9143_v35 = vpop.permute.xlu0 %9142 }
 0xf3d   : > { %v9145_v21 = vunpack.i.h.bf16 %v9143_v35  ;;  %v9144_v39 = vunpack.i.l.bf16 %v9143_v35  ;;  %v9728_v51 = vpop.eup %9727 }
 0xf3f   : > { %v6180_v62 = vsel %vm15466_vm5, %v4526_v63, %v9145_v21  ;;  %v6179_v48 = vsel %vm15467_vm14, %v4525_v47, %v9144_v39  ;;  %vm15500_vm14 = vmmov %vm15466_vm5 }
 0xf40   : > { %v13993_v61 = vsel %vm4083_vm9, %v6179_v48, %v9149_v54  ;;  %v13996_v53 = vsel %vm4083_vm9, %v6180_v62, %v9150_v52 }
 0xf42   : > { %v9730_v36 = vpop.eup %9729 }
 0xf43   : > { %v9732_v42 = vpop.eup %9731 }
 0xf46   : > { %v9734_v22 = vpop.eup %9733 }
 0xf47   : > { %v8874_v41 = vpop.f32.mrf.mxu1 }
 0xf48   : > { %v5967_v57 = vmul.f32 %v9728_v51, %v8874_v41  ;;  %v15468_v51 = vld [vmem:[#allocation117_spill] sm:$0xff] }
 0xf49   : > { %v5886_v29 = vpop.f32.mrf.mxu1 }
 0xf4a   : > { %v5965_v30 = vmul.f32 %v9732_v42, %v5886_v29  ;;  %v4373_v42 = vunpack.c.h.bf16 %v15468_v51 }
 0xf4b   : > { %v8875_v31 = vpop.f32.mrf.mxu1 }
 0xf4c   : > { %v5968_v28 = vmul.f32 %v9730_v36, %v8875_v31  ;;  %v4372_v36 = vunpack.c.l.bf16 %v15468_v51  ;;  %v15469_v31 = vld [vmem:[#allocation115_spill] sm:$0xff] }
 0xf4d   : > { %v5889_v0 = vpop.f32.mrf.mxu1  ;;  %v15475_v51 = vld [vmem:[#allocation175_spill] sm:$0xff] }
 0xf4e   : > { %v9151_v18 = vpack.i.bf16 %v5968_v28, %v5967_v57  ;;  %v5966_v24 = vmul.f32 %v9734_v22, %v5889_v0  ;;  %v15470_v57 = vld [vmem:[#allocation126_spill] sm:$0xff] }
 0xf4f   : > { %v6237_v22 = vld [vmem:[#allocation2 + $0x2b0] sm:$0xff] }
 0xf50   : > { %v9156_v40 = vpack.i.bf16 %v5966_v24, %v5965_v30  ;;  %9152 = vrot.lane.b32.xlu1 %v9151_v18, %s9909_s19  ;;  %v15471_v0 = vld [vmem:[#allocation114_spill] sm:$0xff]  ;;  %v15472_v30 = vld [vmem:[#allocation161_spill] sm:$0xff] }
 0xf52   : > { %9157 = vrot.lane.b32.xlu0 %v9156_v40, %s9909_s19  ;;  %v6238_v40 = vld [vmem:[#allocation2 + $0x3b0] sm:$0xff] }
 0xf53   : > { %v8878_v7 = vpop.f32.mrf.mxu1 }
 0xf55   : > { %v5902_v27 = vpop.f32.mrf.mxu1 }
 0xf57   : > { %v8879_v49 = vpop.f32.mrf.mxu1 }
 0xf59   : > { %v5905_v2 = vpop.f32.mrf.mxu1 }
 0xf68   : > { %v5811_v8 = vpop.xlane.xlu1 %5810 }
 0xf69   : > { %9735 = vrcp.f32 %v5811_v8 }
 0xf6c   : > { %v5805_v9 = vpop.xlane.xlu1 %5804 }
 0xf6d   : > { %v5809_v55 = vpop.xlane.xlu0 %5808 }
 0xf6e   : > { %9737 = vrcp.f32 %v5809_v55 }
 0xf6f   : > { %9739 = vrcp.f32 %v5805_v9 }
 0xf70   : > { %v5819_v62 = vpop.xlane.xlu1 %5818 }
 0xf71   : > { %v5807_v43 = vpop.xlane.xlu0 %5806 }
 0xf72   : > { %9741 = vrcp.f32 %v5807_v43  ;;  %v6241_v43 = vld [vmem:[#allocation2 + $0x50] sm:$0xff] }
 0xf73   : > { %9743 = vrcp.f32 %v15469_v31  ;;  %v6249_v31 = vld [vmem:[#allocation2 + $0x320] sm:$0xff] }
 0xf74   : > { %9745 = vrcp.f32 %v15470_v57  ;;  %v5813_v18 = vpop.xlane.xlu1 %5812 }
 0xf75   : > { %v5817_v41 = vpop.xlane.xlu0 %5816  ;;  %9747 = vrcp.f32 %v15471_v0 }
 0xf76   : > { %v9736_v23 = vpop.eup %9735  ;;  %9749 = vrcp.f32 %v15472_v30 }
 0xf77   : > { %v5972_v13 = vmul.f32 %v9736_v23, %v8879_v49  ;;  %9751 = vrcp.f32 %v5819_v62  ;;  %v6242_v23 = vld [vmem:[#allocation2 + $0x368] sm:$0xff] }
 0xf78   : > { %v5827_v49 = vpop.xlane.xlu1 %5826 }
 0xf79   : > { %v5815_v8 = vpop.xlane.xlu0 %5814 }
 0xf7a   : > { %9753 = vrcp.f32 %v5815_v8 }
 0xf7b   : > { %v9738_v44 = vpop.eup %9737  ;;  %9755 = vrcp.f32 %v5813_v18  ;;  %v6250_v18 = vld [vmem:[#allocation2 + $0x150] sm:$0xff] }
 0xf7c   : > { %v5971_v11 = vmul.f32 %v9738_v44, %v8878_v7  ;;  %v9740_v15 = vpop.eup %9739  ;;  %9757 = vrcp.f32 %v5817_v41  ;;  %v5821_v0 = vpop.xlane.xlu1 %5820 }
 0xf7d   : > { %v5969_v47 = vmul.f32 %v9740_v15, %v5902_v27  ;;  %v5825_v15 = vpop.xlane.xlu0 %5824 }
 0xf7e   : > { %v9161_v46 = vpack.i.bf16 %v5972_v13, %v5971_v11  ;;  %v6245_v13 = vld [vmem:[#allocation2 + $0x380] sm:$0xff] }
 0xf7f   : > { %v9742_v60 = vpop.eup %9741 }
 0xf80   : > { %9162 = vrot.lane.b32.xlu1 %v9161_v46, %s9909_s19  ;;  %v5970_v35 = vmul.f32 %v9742_v60, %v5905_v2  ;;  %v15473_v60 = vld [vmem:[#allocation189_spill] sm:$0xff]  ;;  %v9744_v62 = vpop.eup %9743 }
 0xf81   : > { %9759 = vrcp.f32 %v15473_v60  ;;  %v9746_v41 = vpop.eup %9745  ;;  %v6254_v60 = vld [vmem:[#allocation2 + $0x388] sm:$0xff] }
 0xf82   : > { %v9166_v34 = vpack.i.bf16 %v5970_v35, %v5969_v47  ;;  %v6246_v47 = vld [vmem:[#allocation2 + $0x110] sm:$0xff] }
 0xf83   : > { %v15474_v35 = vld [vmem:[#allocation187_spill] sm:$0xff] }
 0xf84   : > { %9167 = vrot.lane.b32.xlu0 %v9166_v34, %s9909_s19  ;;  %9761 = vrcp.f32 %v15474_v35 }
 0xf85   : > { %9763 = vrcp.f32 %v15475_v51 }
 0xf8c   : > { %v14002_v63 = vpop.f32.mrf.mxu1 }
 0xf8e   : > { %v14004_v21 = vpop.f32.mrf.mxu1 }
 0xf90   : > { %v14006_v39 = vpop.f32.mrf.mxu1 }
 0xf92   : > { %v14008_v52 = vpop.f32.mrf.mxu1 }
 0xf9d   : > { %v14010_v54 = vpop.f32.mrf.mxu1 }
 0xf9f   : > { %v14012_v48 = vpop.f32.mrf.mxu1 }
 0xfa1   : > { %v14014_v29 = vpop.f32.mrf.mxu1 }
 0xfa3   : > { %v14020_v28 = vpop.f32.mrf.mxu1  ;;  %4402 = vadd.xlane.f32.xlu0 %v4372_v36 }
 0xfa4   : > { %4404 = vadd.xlane.f32.xlu1 %v4373_v42  ;;  %v15476_v42 = vld [vmem:[#allocation173_spill] sm:$0xff] }
 0xfa5   : > { %v6594_v24 = vpop.f32.mrf.mxu1  ;;  %9765 = vrcp.f32 %v15476_v42 }
 0xfa6   : > { %v6946_v9 = vadd.f32 %v6594_v24, %v6237_v22  ;;  %v9748_v22 = vpop.eup %9747  ;;  %9767 = vrcp.f32 %v5827_v49 }
 0xfa7   : > { %v6596_v55 = vpop.f32.mrf.mxu1  ;;  %v9750_v24 = vpop.eup %9749  ;;  %9769 = vrcp.f32 %v5821_v0 }
 0xfa8   : > { %7074 = vst [vmem:[#allocation2 + $0x2b0] sm:$0xff] %v6946_v9  ;;  %v6947_v7 = vadd.f32 %v6596_v55, %v6238_v40  ;;  %v5823_v40 = vpop.xlane.xlu0 %5822  ;;  %v6253_v55 = vld [vmem:[#allocation2 + $0x2e0] sm:$0xff] }
 0xfa9   : > { %v6598_v27 = vpop.f32.mrf.mxu1  ;;  %9771 = vrcp.f32 %v5823_v40 }
 0xfaa   : > { %7075 = vst [vmem:[#allocation2 + $0x3b0] sm:$0xff] %v6947_v7  ;;  %v6950_v44 = vadd.f32 %v6598_v27, %v6241_v43  ;;  %v15477_v43 = vld [vmem:[#allocation118_spill] sm:$0xff]  ;;  %v15478_v27 = vld [vmem:[#allocation164_spill] sm:$0xff]  ;;  %9773 = vrcp.f32 %v5825_v15 }
 0xfab   : > { %v6600_v11 = vpop.f32.mrf.mxu1  ;;  %v5027_v7 = vmul.f32 %v9744_v62, %v15477_v43  ;;  %9775 = vrcp.f32 %v13903_v14 }
 0xfac   : > { %7078 = vst [vmem:[#allocation2 + $0x50] sm:$0xff] %v6950_v44  ;;  %v6951_v46 = vadd.f32 %v6600_v11, %v6242_v23  ;;  %v5026_v23 = vmul.f32 %v9746_v41, %v15478_v27  ;;  %v9752_v11 = vpop.eup %9751  ;;  %v6262_v27 = vld [vmem:[#allocation2 + $0x2f8] sm:$0xff]  ;;  %9777 = vrcp.f32 %v13911_v3 }
 0xfad   : > { %v6604_v2 = vpop.f32.mrf.mxu1  ;;  %9779 = vrcp.f32 %v13953_v12 }
 0xfae   : > { %7079 = vst [vmem:[#allocation2 + $0x368] sm:$0xff] %v6951_v46  ;;  %v6954_v34 = vadd.f32 %v6604_v2, %v6245_v13  ;;  %v15479_v13 = vpack.i.bf16 %v13752_v1, %v13743_v45  ;;  %v15480_v2 = vld [vmem:[#allocation166_spill] sm:$0xff]  ;;  %v6257_v45 = vld [vmem:[#allocation2 + $0x80] sm:$0xff]  ;;  %9781 = vrcp.f32 %v13956_v19 }
 0xfaf   : > { %v6606_v36 = vpop.f32.mrf.mxu1  ;;  %v5028_v49 = vmul.f32 %v9748_v22, %v15480_v2  ;;  %v6265_v2 = vld [vmem:[#allocation2 + $0x138] sm:$0xff]  ;;  %9783 = vrcp.f32 %v13982_v26 }
 0xfb0   : > { %7082 = vst [vmem:[#allocation2 + $0x380] sm:$0xff] %v6954_v34  ;;  %v6955_v57 = vadd.f32 %v6606_v36, %v6246_v47  ;;  %v15481_v47 = vld [vmem:[#allocation158_spill] sm:$0xff]  ;;  %v9754_v34 = vpop.eup %9753  ;;  %v5976_v36 = vmul.f32 %v9752_v11, %v14006_v39  ;;  %9785 = vrcp.f32 %v13986_v16 }
 0xfb1   : > { %v6608_v30 = vpop.f32.mrf.mxu1  ;;  %v5025_v35 = vmul.f32 %v9750_v24, %v15481_v47  ;;  %v9756_v51 = vpop.eup %9755  ;;  %v9186_v42 = vpack.i.bf16 %v5028_v49, %v5027_v7 }
 0xfb2   : > { %7083 = vst [vmem:[#allocation2 + $0x110] sm:$0xff] %v6955_v57  ;;  %v6958_v8 = vadd.f32 %v6608_v30, %v6249_v31  ;;  %v5974_v31 = vmul.f32 %v9754_v34, %v14008_v52  ;;  %v9758_v1 = vpop.eup %9757  ;;  %v5973_v30 = vmul.f32 %v9756_v51, %v14004_v21 }
 0xfb3   : > { %v6610_v9 = vpop.f32.mrf.mxu1  ;;  %v9171_v57 = vpack.i.bf16 %v5026_v23, %v5025_v35  ;;  %v5975_v22 = vmul.f32 %v9758_v1, %v14002_v63  ;;  %v9760_v39 = vpop.eup %9759  ;;  %v15484_v35 = vld [vmem:[#allocation120_spill] sm:$0xff] }
 0xfb4   : > { %7086 = vst [vmem:[#allocation2 + $0x320] sm:$0xff] %v6958_v8  ;;  %v6959_v44 = vadd.f32 %v6610_v9, %v6250_v18  ;;  %v6258_v18 = vld [vmem:[#allocation2 + $0x1a8] sm:$0xff]  ;;  %v9762_v24 = vpop.eup %9761  ;;  %v9181_v8 = vpack.i.bf16 %v5974_v31, %v5973_v30 }
 0xfb5   : > { %9177 = vrot.lane.b32.xlu1 %v15479_v13, %s9910_s20  ;;  %v6614_v46 = vpop.f32.mrf.mxu1  ;;  %v9196_v40 = vpack.i.bf16 %v5976_v36, %v5975_v22  ;;  %v9764_v43 = vpop.eup %9763  ;;  %v15483_v13 = vld [vmem:[#allocation122_spill] sm:$0xff] }
 0xfb6   : > { %7087 = vst [vmem:[#allocation2 + $0x150] sm:$0xff] %v6959_v44  ;;  %v6962_v62 = vadd.f32 %v6614_v46, %v6253_v55  ;;  %v6261_v55 = vld [vmem:[#allocation2 + $0x3e8] sm:$0xff]  ;;  %v9766_v63 = vpop.eup %9765  ;;  %v15482_v44 = vld [vmem:[#allocation136_spill] sm:$0xff]  ;;  %v5030_v46 = vmul.f32 %v9760_v39, %v15483_v13  ;;  %v15486_v13 = vpack.i.bf16 %v13770_v59, %v13757_v20 }
 0xfb7   : > { %v6616_v41 = vpop.f32.mrf.mxu1  ;;  %v5031_v11 = vmul.f32 %v9762_v24, %v15482_v44  ;;  %v9768_v49 = vpop.eup %9767  ;;  %v5032_v34 = vmul.f32 %v9766_v63, %v15484_v35 }
 0xfb8   : > { %7090 = vst [vmem:[#allocation2 + $0x2e0] sm:$0xff] %v6962_v62  ;;  %v6963_v0 = vadd.f32 %v6616_v41, %v6254_v60  ;;  %v15485_v62 = vld [vmem:[#allocation138_spill] sm:$0xff]  ;;  %v9770_v36 = vpop.eup %9769  ;;  %v6266_v41 = vld [vmem:[#allocation2 + $0xc0] sm:$0xff]  ;;  %v5980_v30 = vmul.f32 %v9768_v49, %v14014_v29 }
 0xfb9   : > { %9187 = vrot.lane.b32.xlu1 %v9186_v42, %s9911_s21  ;;  %9172 = vrot.lane.b32.xlu0 %v9171_v57, %s9911_s21  ;;  %v6618_v15 = vpop.f32.mrf.mxu1  ;;  %v5029_v51 = vmul.f32 %v9764_v43, %v15485_v62  ;;  %v9772_v42 = vpop.eup %9771  ;;  %v9216_v1 = vpack.i.bf16 %v5032_v34, %v5031_v11  ;;  %v5977_v4 = vmul.f32 %v9770_v36, %v14012_v48  ;;  %v6282_v62 = vld [vmem:[#allocation2 + $0x1e0] sm:$0xff] }
 0xfba   : > { %7091 = vst [vmem:[#allocation2 + $0x388] sm:$0xff] %v6963_v0  ;;  %v6966_v52 = vadd.f32 %v6618_v15, %v6257_v45  ;;  %v9774_v22 = vpop.eup %9773  ;;  %v5978_v15 = vmul.f32 %v9772_v42, %v14020_v28 }
 0xfbb   : > { %v6620_v9 = vpop.f32.mrf.mxu1  ;;  %v9201_v0 = vpack.i.bf16 %v5030_v46, %v5029_v51  ;;  %v5979_v33 = vmul.f32 %v9774_v22, %v14010_v54  ;;  %v6290_v22 = vld [vmem:[#allocation2 + $0xd0] sm:$0xff] }
 0xfbc   : > { %7094 = vst [vmem:[#allocation2 + $0x80] sm:$0xff] %v6966_v52  ;;  %v6967_v7 = vadd.f32 %v6620_v9, %v6258_v18  ;;  %v6269_v18 = vld [vmem:[#allocation2 + $0x100] sm:$0xff] }
 0xfbd   : > { %9197 = vrot.lane.b32.xlu1 %v9196_v40, %s9909_s19  ;;  %9182 = vrot.lane.b32.xlu0 %v9181_v8, %s9909_s19  ;;  %v6624_v21 = vpop.f32.mrf.mxu1  ;;  %v6270_v8 = vld [vmem:[#allocation2 + $0x3c0] sm:$0xff]  ;;  %v9226_v9 = vpack.i.bf16 %v5980_v30, %v5979_v33 }
 0xfbe   : > { %7095 = vst [vmem:[#allocation2 + $0x1a8] sm:$0xff] %v6967_v7  ;;  %v6970_v23 = vadd.f32 %v6624_v21, %v6261_v55  ;;  %v9211_v55 = vpack.i.bf16 %v5978_v15, %v5977_v4  ;;  %v6273_v7 = vld [vmem:[#allocation2 + $0x218] sm:$0xff] }
 0xfbf   : > { %v6626_v60 = vpop.f32.mrf.mxu1 }
 0xfc0   : > { %7098 = vst [vmem:[#allocation2 + $0x3e8] sm:$0xff] %v6970_v23  ;;  %v6971_v47 = vadd.f32 %v6626_v60, %v6262_v27  ;;  %v6274_v23 = vld [vmem:[#allocation2 + $0x3f8] sm:$0xff]  ;;  %v6278_v60 = vld [vmem:[#allocation2 + $0x3f0] sm:$0xff] }
 0xfc1   : > { %9207 = vrot.lane.b32.xlu1 %v9206_v50, %s9910_s20  ;;  %9192 = vrot.lane.b32.xlu0 %v9191_v25, %s9910_s20  ;;  %v6628_v31 = vpop.f32.mrf.mxu1 }
 0xfc2   : > { %7099 = vst [vmem:[#allocation2 + $0x2f8] sm:$0xff] %v6971_v47  ;;  %v6974_v57 = vadd.f32 %v6628_v31, %v6265_v2  ;;  %v9153_v45 = vpop.permute.xlu1 %9152  ;;  %v6281_v47 = vld [vmem:[#allocation2 + $0xb0] sm:$0xff] }
 0xfc3   : > { %v9155_v17 = vunpack.i.h.bf16 %v9153_v45  ;;  %v9154_v6 = vunpack.i.l.bf16 %v9153_v45  ;;  %v6630_v50 = vpop.f32.mrf.mxu1  ;;  %v6285_v31 = vld [vmem:[#allocation2 + $0x230] sm:$0xff]  ;;  %v6289_v45 = vld [vmem:[#allocation2 + $0x208] sm:$0xff] }
 0xfc4   : > { %7102 = vst [vmem:[#allocation2 + $0x138] sm:$0xff] %v6974_v57  ;;  %v6975_v25 = vadd.f32 %v6630_v50, %v6266_v41  ;;  %v9158_v39 = vpop.permute.xlu0 %9157  ;;  %v6286_v41 = vld [vmem:[#allocation2 + $0x240] sm:$0xff] }
 0xfc5   : > { %v6207_v52 = vsel %vm4100_vm13, %v13925_v37, %v9154_v6  ;;  %v6208_v24 = vsel %vm4100_vm13, %v13928_v10, %v9155_v17  ;;  %v9160_v29 = vunpack.i.h.bf16 %v9158_v39  ;;  %v9159_v40 = vunpack.i.l.bf16 %v9158_v39  ;;  %9217 = vrot.lane.b32.xlu1 %v9216_v1, %s9911_s21  ;;  %9202 = vrot.lane.b32.xlu0 %v9201_v0, %s9911_s21  ;;  %v6634_v28 = vpop.f32.mrf.mxu1  ;;  %v6293_v17 = vld [vmem:[#allocation2 + $0x358] sm:$0xff] }
 0xfc6   : > { %v6230_v54 = vpack.c.bf16 %v6208_v24, %v6207_v52  ;;  %7103 = vst [vmem:[#allocation2 + $0xc0] sm:$0xff] %v6975_v25  ;;  %v6978_v48 = vadd.f32 %v6634_v28, %v6269_v18  ;;  %v6294_v18 = vld [vmem:[#allocation2 + $0x268] sm:$0xff]  ;;  %v6297_v25 = vld [vmem:[#allocation2 + $0x1d8] sm:$0xff]  ;;  %v6298_v24 = vld [vmem:[#allocation2 + $0x30] sm:$0xff] }
 0xfc7   : > { %v6205_v43 = vsel %vm4100_vm13, %v13872_v38, %v9159_v40  ;;  %v6206_v37 = vsel %vm4100_vm13, %v13875_v5, %v9160_v29  ;;  %v6636_v10 = vpop.f32.mrf.mxu1  ;;  %v6277_v38 = vld [vmem:[#allocation2 + $0x2a0] sm:$0xff] }
 0xfc8   : > { %v6229_v63 = vpack.c.bf16 %v6206_v37, %v6205_v43  ;;  %7106 = vst [vmem:[#allocation2 + $0x100] sm:$0xff] %v6978_v48  ;;  %v6979_v21 = vadd.f32 %v6636_v10, %v6270_v8 }
 0xfc9   : > { %9227 = vrot.lane.b32.xlu1 %v9226_v9, %s9909_s19  ;;  %9212 = vrot.lane.b32.xlu0 %v9211_v55, %s9909_s19  ;;  %v6638_v27 = vpop.f32.mrf.mxu1 }
 0xfca   : > { %7107 = vst [vmem:[#allocation2 + $0x3c0] sm:$0xff] %v6979_v21  ;;  %v6982_v44 = vadd.f32 %v6638_v27, %v6273_v7  ;;  %6673 = vmatmul.mubr.bf16.gmra.mxu1 %v6229_v63  ;;  %6866 = vmatmul.mubr.bf16.gmra.mxu0 %v6229_v63 }
 0xfcb   : > { %v6640_v11 = vpop.f32.mrf.mxu1  ;;  %6682 = vmatprep.mubr.bf16.mxu1 %v15450_v32  ;;  %6875 = vmatprep.mubr.bf16.mxu0 %v15450_v32 }
 0xfcc   : > { %7110 = vst [vmem:[#allocation2 + $0x218] sm:$0xff] %v6982_v44  ;;  %v6983_v5 = vadd.f32 %v6640_v11, %v6274_v23  ;;  %v15487_v44 = vld [vmem:[#allocation198_spill] sm:$0xff] }
 0xfcd   : > { %9222 = vrot.lane.b32.xlu0 %v15486_v13, %s9910_s20  ;;  %v6644_v46 = vpop.f32.mrf.mxu1 }
 0xfce   : > { %7111 = vst [vmem:[#allocation2 + $0x3f8] sm:$0xff] %v6983_v5  ;;  %v6986_v2 = vadd.f32 %v6644_v46, %v6277_v38  ;;  %v15488_v38 = vld [vmem:[#allocation200_spill] sm:$0xff] }
 0xfcf   : > { %v6646_v49 = vpop.f32.mrf.mxu1 }
 0xfd0   : > { %7114 = vst [vmem:[#allocation2 + $0x2a0] sm:$0xff] %v6986_v2  ;;  %v6987_v35 = vadd.f32 %v6646_v49, %v6278_v60 }
 0xfd1   : > { %v6648_v34 = vpop.f32.mrf.mxu1 }
 0xfd2   : > { %7115 = vst [vmem:[#allocation2 + $0x3f0] sm:$0xff] %v6987_v35  ;;  %v6990_v51 = vadd.f32 %v6648_v34, %v6281_v47  ;;  %6683 = vmatmul.mubr.bf16.gmra.mxu1 %v6230_v54  ;;  %6876 = vmatmul.mubr.bf16.gmra.mxu0 %v6230_v54 }
 0xfd3   : > { %v6650_v36 = vpop.f32.mrf.mxu1  ;;  %6692 = vmatprep.mubr.bf16.mxu1 %v15450_v32  ;;  %6885 = vmatprep.mubr.bf16.mxu0 %v15450_v32 }
 0xfd4   : > { %7118 = vst [vmem:[#allocation2 + $0xb0] sm:$0xff] %v6990_v51  ;;  %v6991_v20 = vadd.f32 %v6650_v36, %v6282_v62 }
 0xfd5   : > { %v6654_v59 = vpop.f32.mrf.mxu1 }
 0xfd6   : > { %7119 = vst [vmem:[#allocation2 + $0x1e0] sm:$0xff] %v6991_v20  ;;  %v6994_v42 = vadd.f32 %v6654_v59, %v6285_v31 }
 0xfd7   : > { %v6656_v57 = vpop.f32.mrf.mxu1 }
 0xfd8   : > { %7122 = vst [vmem:[#allocation2 + $0x230] sm:$0xff] %v6994_v42  ;;  %v6995_v1 = vadd.f32 %v6656_v57, %v6286_v41  ;;  %v15491_v41 = vld [vmem:[#allocation197_spill] sm:$0xff]  ;;  %v15492_v57 = vld [vmem:[#allocation199_spill] sm:$0xff] }
 0xfd9   : > { %v6658_v0 = vpop.f32.mrf.mxu1 }
 0xfda   : > { %7123 = vst [vmem:[#allocation2 + $0x240] sm:$0xff] %v6995_v1  ;;  %v6998_v30 = vadd.f32 %v6658_v0, %v6289_v45 }
 0xfdb   : > { %v6660_v15 = vpop.f32.mrf.mxu1 }
 0xfdc   : > { %7126 = vst [vmem:[#allocation2 + $0x208] sm:$0xff] %v6998_v30  ;;  %v6999_v6 = vadd.f32 %v6660_v15, %v6290_v22 }
 0xfdd   : > { %v6664_v50 = vpop.f32.mrf.mxu1 }
 0xfde   : > { %7127 = vst [vmem:[#allocation2 + $0xd0] sm:$0xff] %v6999_v6  ;;  %v7002_v33 = vadd.f32 %v6664_v50, %v6293_v17 }
 0xfdf   : > { %v6666_v4 = vpop.f32.mrf.mxu1 }
 0xfe0   : > { %7130 = vst [vmem:[#allocation2 + $0x358] sm:$0xff] %v7002_v33  ;;  %v7003_v39 = vadd.f32 %v6666_v4, %v6294_v18 }
 0xfe1   : > { %v6668_v52 = vpop.f32.mrf.mxu1 }
 0xfe2   : > { %7131 = vst [vmem:[#allocation2 + $0x268] sm:$0xff] %v7003_v39  ;;  %v7006_v29 = vadd.f32 %v6668_v52, %v6297_v25 }
 0xfe3   : > { %v6670_v40 = vpop.f32.mrf.mxu1 }
 0xfe4   : > { %7134 = vst [vmem:[#allocation2 + $0x1d8] sm:$0xff] %v7006_v29  ;;  %v7007_v28 = vadd.f32 %v6670_v40, %v6298_v24  ;;  %v15495_v24 = vld [vmem:[#allocation202_spill] sm:$0xff] }
 0xfe6   : > { %7135 = vst [vmem:[#allocation2 + $0x30] sm:$0xff] %v7007_v28 }
 0xff2   : > { %v9163_v8 = vpop.permute.xlu1 %9162 }
 0xff3   : > { %v9165_v54 = vunpack.i.h.bf16 %v9163_v8  ;;  %v9164_v48 = vunpack.i.l.bf16 %v9163_v8  ;;  %v15496_v8 = vld [vmem:[#allocation204_spill] sm:$0xff] }
 0xff5   : > { %v6211_v9 = vsel %vm4100_vm13, %v13993_v61, %v9164_v48  ;;  %v6212_v55 = vsel %vm4100_vm13, %v13996_v53, %v9165_v54 }
 0xff6   : > { %v6232_v43 = vpack.c.bf16 %v6212_v55, %v6211_v9  ;;  %v9168_v37 = vpop.permute.xlu0 %9167 }
 0xff7   : > { %v9170_v10 = vunpack.i.h.bf16 %v9168_v37  ;;  %v9169_v7 = vunpack.i.l.bf16 %v9168_v37 }
 0xff9   : > { %v6209_v63 = vsel %vm4100_vm13, %v13969_v58, %v9169_v7  ;;  %v6210_v21 = vsel %vm4100_vm13, %v13972_v56, %v9170_v10  ;;  %v9776_v56 = vpop.eup %9775 }
 0xffa   : > { %v6231_v27 = vpack.c.bf16 %v6210_v21, %v6209_v63  ;;  %v9778_v53 = vpop.eup %9777  ;;  %v4527_v11 = vmul.f32 %v9776_v56, %v15487_v44 }
 0xffb   : > { %v4528_v5 = vmul.f32 %v9778_v53, %v15488_v38  ;;  %v9780_v60 = vpop.eup %9779 }
 0xffc   : > { %6693 = vmatmul.mubr.bf16.gmra.mxu1 %v6231_v27  ;;  %6886 = vmatmul.mubr.bf16.gmra.mxu0 %v6231_v27  ;;  %v9782_v49 = vpop.eup %9781  ;;  %v4530_v45 = vmul.f32 %v9780_v60, %v15492_v57  ;;  %v15499_v60 = vld [vmem:[#allocation203_spill] sm:$0xff]  ;;  %v6302_v57 = vld [vmem:[#allocation2 + $0x200] sm:$0xff] }
 0xffd   : > { %6702 = vmatprep.mubr.bf16.mxu1 %v15450_v32  ;;  %6895 = vmatprep.mubr.bf16.mxu0 %v15450_v32  ;;  %v4529_v42 = vmul.f32 %v9782_v49, %v15491_v41  ;;  %v9784_v0 = vpop.eup %9783 }
 0xffe   : > { %v9786_v17 = vpop.eup %9785  ;;  %v4531_v29 = vmul.f32 %v9784_v0, %v15495_v24 }
 0xfff   : > { %v4532_v54 = vmul.f32 %v9786_v17, %v15496_v8  ;;  %v6307_v17 = vld [vmem:[#allocation2 + $0xe0] sm:$0xff] }
0x1004   : > { %6703 = vmatmul.mubr.bf16.gmra.mxu1 %v6232_v43  ;;  %6896 = vmatmul.mubr.bf16.gmra.mxu0 %v6232_v43 }
0x1005   : > { %6712 = vmatprep.mubr.bf16.mxu1 %v15450_v32  ;;  %6905 = vmatprep.mubr.bf16.mxu0 %v15450_v32 }
0x102c   : > { %v4403_v58 = vpop.xlane.xlu0 %4402 }
0x102d   : > { %v4405_v61 = vpop.xlane.xlu1 %4404  ;;  %9787 = vrcp.f32 %v4403_v58 }
0x102e   : > { %9789 = vrcp.f32 %v4405_v61 }
0x1030   : > { %v9173_v23 = vpop.permute.xlu0 %9172 }
0x1031   : > { %v9175_v14 = vunpack.i.h.bf16 %v9173_v23  ;;  %v9174_v13 = vunpack.i.l.bf16 %v9173_v23  ;;  %v9178_v3 = vpop.permute.xlu1 %9177 }
0x1032   : > { %v9180_v46 = vunpack.i.h.bf16 %v9178_v3  ;;  %v9179_v12 = vunpack.i.l.bf16 %v9178_v3 }
0x1033   : > { %v6182_v19 = vsel %vm15489_vm11, %v4528_v5, %v9175_v14  ;;  %v6181_v26 = vsel %vm15490_vm8, %v4527_v11, %v9174_v13  ;;  %vm15501_vm11 = vmmov %vm15466_vm5 }
0x1034   : > { %v9183_v2 = vpop.permute.xlu0 %9182  ;;  %v6198_v34 = vsel %vm4083_vm9, %v6182_v19, %v9180_v46  ;;  %v6197_v62 = vsel %vm4083_vm9, %v6181_v26, %v9179_v12  ;;  %v15498_v19 = vld [vmem:[#allocation201_spill] sm:$0xff] }
0x1035   : > { %v9185_v16 = vunpack.i.h.bf16 %v9183_v2  ;;  %v9184_v47 = vunpack.i.l.bf16 %v9183_v2  ;;  %v9188_v35 = vpop.permute.xlu1 %9187 }
0x1036   : > { %v9190_v51 = vunpack.i.h.bf16 %v9188_v35  ;;  %v9189_v36 = vunpack.i.l.bf16 %v9188_v35 }
0x1037   : > { %v6213_v31 = vsel %vm4100_vm13, %v6197_v62, %v9184_v47  ;;  %v6214_v20 = vsel %vm4100_vm13, %v6198_v34, %v9185_v16 }
0x1038   : > { %v6233_v59 = vpack.c.bf16 %v6214_v20, %v6213_v31  ;;  %v9193_v1 = vpop.permute.xlu0 %9192  ;;  %v6184_v6 = vsel %vm15493_vm10, %v4530_v45, %v9190_v51  ;;  %v6183_v50 = vsel %vm15494_vm15, %v4529_v42, %v9189_v36  ;;  %v6301_v20 = vld [vmem:[#allocation2 + $0x130] sm:$0xff]  ;;  %v6304_v45 = vld [vmem:[#allocation2 + $0x220] sm:$0xff] }
0x1039   : > { %v9195_v22 = vunpack.i.h.bf16 %v9193_v1  ;;  %v9194_v30 = vunpack.i.l.bf16 %v9193_v1  ;;  %v9198_v15 = vpop.permute.xlu1 %9197 }
0x103a   : > { %v9200_v18 = vunpack.i.h.bf16 %v9198_v15  ;;  %v9199_v33 = vunpack.i.l.bf16 %v9198_v15  ;;  %6713 = vmatmul.mubr.bf16.gmra.mxu1 %v6233_v59  ;;  %6906 = vmatmul.mubr.bf16.gmra.mxu0 %v6233_v59  ;;  %v9788_v56 = vpop.eup %9787  ;;  %v6303_v59 = vld [vmem:[#allocation2 + $0x318] sm:$0xff]  ;;  %v6305_v15 = vld [vmem:[#allocation2 + $0x70] sm:$0xff] }
0x103b   : > { %v6199_v4 = vsel %vm4083_vm9, %v6183_v50, %v9194_v30  ;;  %v6200_v25 = vsel %vm4083_vm9, %v6184_v6, %v9195_v22  ;;  %6722 = vmatprep.mubr.bf16.mxu1 %v15450_v32  ;;  %6915 = vmatprep.mubr.bf16.mxu0 %v15450_v32  ;;  %v9790_v11 = vpop.eup %9789  ;;  %v4533_v26 = vmul.f32 %v9788_v56, %v15498_v19 }
0x103c   : > { %v6215_v39 = vsel %vm4100_vm13, %v6199_v4, %v9199_v33  ;;  %v6216_v52 = vsel %vm4100_vm13, %v6200_v25, %v9200_v18  ;;  %v9203_v40 = vpop.permute.xlu0 %9202  ;;  %v4534_v2 = vmul.f32 %v9790_v11, %v15499_v60  ;;  %v6308_v4 = vld [vmem:[#allocation2 + $0x178] sm:$0xff]  ;;  %v6320_v60 = vld [vmem:[#allocation2 + $0x160] sm:$0xff] }
0x103d   : > { %v6234_v28 = vpack.c.bf16 %v6216_v52, %v6215_v39  ;;  %v9205_v48 = vunpack.i.h.bf16 %v9203_v40  ;;  %v9204_v9 = vunpack.i.l.bf16 %v9203_v40  ;;  %v9208_v55 = vpop.permute.xlu1 %9207  ;;  %v6311_v40 = vld [vmem:[#allocation2 + $0x3b8] sm:$0xff] }
0x103e   : > { %v9210_v43 = vunpack.i.h.bf16 %v9208_v55  ;;  %v9209_v37 = vunpack.i.l.bf16 %v9208_v55  ;;  %v6312_v55 = vld [vmem:[#allocation2 + $0x2b8] sm:$0xff] }
0x103f   : > { %v6186_v10 = vsel %vm15497_vm12, %v4532_v54, %v9205_v48  ;;  %v6185_v7 = vsel %vm15466_vm5, %v4531_v29, %v9204_v9  ;;  %v6309_v29 = vld [vmem:[#allocation2 + $0x328] sm:$0xff]  ;;  %v6310_v9 = vld [vmem:[#allocation2 + $0x260] sm:$0xff] }
0x1040   : > { %v9213_v63 = vpop.permute.xlu0 %9212  ;;  %v6202_v61 = vsel %vm4083_vm9, %v6186_v10, %v9210_v43  ;;  %v6201_v53 = vsel %vm4083_vm9, %v6185_v7, %v9209_v37 }
0x1041   : > { %v9215_v21 = vunpack.i.h.bf16 %v9213_v63  ;;  %v9214_v27 = vunpack.i.l.bf16 %v9213_v63  ;;  %v9218_v58 = vpop.permute.xlu1 %9217  ;;  %v6313_v63 = vld [vmem:[#allocation2 + $0x248] sm:$0xff] }
0x1042   : > { %6723 = vmatmul.mubr.bf16.gmra.mxu1 %v6234_v28  ;;  %6916 = vmatmul.mubr.bf16.gmra.mxu0 %v6234_v28  ;;  %v9220_v14 = vunpack.i.h.bf16 %v9218_v58  ;;  %v9219_v13 = vunpack.i.l.bf16 %v9218_v58 }
0x1043   : > { %v6217_v23 = vsel %vm4100_vm13, %v6201_v53, %v9214_v27  ;;  %v6218_v44 = vsel %vm4100_vm13, %v6202_v61, %v9215_v21  ;;  %6732 = vmatprep.mubr.bf16.mxu1 %v15450_v32  ;;  %v6315_v21 = vld [vmem:[#allocation2 + $0x20] sm:$0xff] }
0x1044   : > { %v6235_v38 = vpack.c.bf16 %v6218_v44, %v6217_v23  ;;  %v9223_v5 = vpop.permute.xlu0 %9222  ;;  %v6188_v49 = vsel %vm15500_vm14, %v4534_v2, %v9220_v14  ;;  %v6187_v16 = vsel %vm15501_vm11, %v4533_v26, %v9219_v13  ;;  %v6314_v53 = vld [vmem:[#allocation2 + $0x40] sm:$0xff]  ;;  %v6316_v23 = vld [vmem:[#allocation2 + $0xe8] sm:$0xff] }
0x1045   : > { %v9225_v3 = vunpack.i.h.bf16 %v9223_v5  ;;  %v9224_v46 = vunpack.i.l.bf16 %v9223_v5  ;;  %v9228_v12 = vpop.permute.xlu1 %9227  ;;  %v6318_v26 = vld [vmem:[#allocation2 + $0x3a8] sm:$0xff] }
0x1046   : > { %v9230_v47 = vunpack.i.h.bf16 %v9228_v12  ;;  %v9229_v35 = vunpack.i.l.bf16 %v9228_v12 }
0x1047   : > { %v6203_v34 = vsel %vm4083_vm9, %v6187_v16, %v9224_v46  ;;  %v6204_v62 = vsel %vm4083_vm9, %v6188_v49, %v9225_v3  ;;  %v6317_v3 = vld [vmem:[#allocation2 + $0x288] sm:$0xff] }
0x1048   : > { %v6219_v51 = vsel %vm4100_vm13, %v6203_v34, %v9229_v35  ;;  %v6220_v36 = vsel %vm4100_vm13, %v6204_v62, %v9230_v47  ;;  %v6319_v46 = vld [vmem:[#allocation2 + $0x3c8] sm:$0xff]  ;;  %v6323_v34 = vld [vmem:[#allocation2 + $0x3d8] sm:$0xff] }
0x1049   : > { %v6236_v31 = vpack.c.bf16 %v6220_v36, %v6219_v51  ;;  %v6321_v35 = vld [vmem:[#allocation2 + $0x2c8] sm:$0xff] }
0x104a   : > { %6733 = vmatmul.mubr.bf16.gmra.mxu1 %v6235_v38 }
0x104b   : > { %6742 = vmatprep.mubr.bf16.mxu1 %v15450_v32 }
0x1052   : > { %6743 = vmatmul.mubr.bf16.gmra.mxu1 %v6236_v31 }
0x1053   : > { %6925 = vmatprep.mubr.bf16.mxu1 %v15450_v32 }
0x105a   : > { %6926 = vmatmul.mubr.bf16.vlgmr.msra.gmra.mxu1 %v6235_v38 }
0x105b   : > { %6935 = vmatprep.mubr.bf16.mxu1 %v15450_v32  ;;  %v6306_v32 = vld [vmem:[#allocation2 + $0x300] sm:$0xff] }
0x1062   : > { %6936 = vmatmul.mubr.bf16.gmra.mxu1 %v6236_v31 }
0x108a   : > { %v6674_v41 = vpop.f32.mrf.mxu1  ;;  %v6867_v42 = vpop.f32.mrf.mxu0 }
0x108b   : > { %v7010_v1 = vadd.f32 %v6674_v41, %v6301_v20  ;;  %v7012_v0 = vadd.f32 %v6867_v42, %v6303_v59  ;;  %v6322_v20 = vld [vmem:[#allocation2 + $0x210] sm:$0xff]  ;;  %v6324_v59 = vld [vmem:[#allocation2 + $0x1e8] sm:$0xff] }
0x108c   : > { %v6676_v22 = vpop.f32.mrf.mxu1  ;;  %v6869_v30 = vpop.f32.mrf.mxu0 }
0x108d   : > { %7138 = vst [vmem:[#allocation2 + $0x130] sm:$0xff] %v7010_v1  ;;  %7140 = vst [vmem:[#allocation2 + $0x318] sm:$0xff] %v7012_v0  ;;  %v7011_v6 = vadd.f32 %v6676_v22, %v6302_v57  ;;  %v7013_v50 = vadd.f32 %v6869_v30, %v6304_v45  ;;  %v6325_v1 = vld [vmem:[#allocation2 + $0x1b0] sm:$0xff] }
0x108e   : > { %v6678_v18 = vpop.f32.mrf.mxu1  ;;  %v6871_v33 = vpop.f32.mrf.mxu0  ;;  %v6327_v0 = vld [vmem:[#allocation2 + $0x2d0] sm:$0xff] }
0x108f   : > { %7139 = vst [vmem:[#allocation2 + $0x200] sm:$0xff] %v7011_v6  ;;  %7141 = vst [vmem:[#allocation2 + $0x220] sm:$0xff] %v7013_v50  ;;  %v7014_v25 = vadd.f32 %v6678_v18, %v6305_v15  ;;  %v7016_v39 = vadd.f32 %v6871_v33, %v6307_v17  ;;  %v6326_v6 = vld [vmem:[#allocation2 + $0x1c8] sm:$0xff]  ;;  %v6328_v50 = vld [vmem:[#allocation2 + $0x1d0] sm:$0xff] }
0x1090   : > { %v6680_v52 = vpop.f32.mrf.mxu1  ;;  %v6873_v24 = vpop.f32.mrf.mxu0 }
0x1091   : > { %7142 = vst [vmem:[#allocation2 + $0x70] sm:$0xff] %v7014_v25  ;;  %7144 = vst [vmem:[#allocation2 + $0xe0] sm:$0xff] %v7016_v39  ;;  %v7015_v28 = vadd.f32 %v6680_v52, %v6306_v32  ;;  %v7017_v8 = vadd.f32 %v6873_v24, %v6308_v4  ;;  %v6329_v25 = vld [vmem:[#allocation2 + $0x58] sm:$0xff] }
0x1092   : > { %v6684_v54 = vpop.f32.mrf.mxu1  ;;  %v6877_v48 = vpop.f32.mrf.mxu0  ;;  %v6331_v39 = vld [vmem:[#allocation2 + $0x198] sm:$0xff] }
0x1093   : > { %7143 = vst [vmem:[#allocation2 + $0x300] sm:$0xff] %v7015_v28  ;;  %7145 = vst [vmem:[#allocation2 + $0x178] sm:$0xff] %v7017_v8  ;;  %v7018_v43 = vadd.f32 %v6684_v54, %v6309_v29  ;;  %v7020_v37 = vadd.f32 %v6877_v48, %v6311_v40  ;;  %v6330_v28 = vld [vmem:[#allocation2 + $0x120] sm:$0xff]  ;;  %v6332_v8 = vld [vmem:[#allocation2 + $0x2e8] sm:$0xff] }
0x1094   : > { %v6686_v10 = vpop.f32.mrf.mxu1  ;;  %v6879_v7 = vpop.f32.mrf.mxu0 }
0x1095   : > { %7146 = vst [vmem:[#allocation2 + $0x328] sm:$0xff] %v7018_v43  ;;  %7148 = vst [vmem:[#allocation2 + $0x3b8] sm:$0xff] %v7020_v37  ;;  %v7019_v27 = vadd.f32 %v6686_v10, %v6310_v9  ;;  %v7021_v58 = vadd.f32 %v6879_v7, %v6312_v55  ;;  %v6333_v10 = vld [vmem:[#allocation2 + $0x1f8] sm:$0xff] }
0x1096   : > { %v6688_v56 = vpop.f32.mrf.mxu1  ;;  %v6881_v61 = vpop.f32.mrf.mxu0  ;;  %v6335_v7 = vld [vmem:[#allocation2 + $0x398] sm:$0xff] }
0x1097   : > { %7147 = vst [vmem:[#allocation2 + $0x260] sm:$0xff] %v7019_v27  ;;  %7149 = vst [vmem:[#allocation2 + $0x2b8] sm:$0xff] %v7021_v58  ;;  %v7022_v44 = vadd.f32 %v6688_v56, %v6313_v63  ;;  %v7024_v11 = vadd.f32 %v6881_v61, %v6315_v21  ;;  %v6334_v27 = vld [vmem:[#allocation2 + $0x238] sm:$0xff]  ;;  %v6336_v58 = vld [vmem:[#allocation2 + $0x390] sm:$0xff] }
0x1098   : > { %v6690_v38 = vpop.f32.mrf.mxu1  ;;  %v6883_v5 = vpop.f32.mrf.mxu0 }
0x1099   : > { %7150 = vst [vmem:[#allocation2 + $0x248] sm:$0xff] %v7022_v44  ;;  %7152 = vst [vmem:[#allocation2 + $0x20] sm:$0xff] %v7024_v11  ;;  %v7023_v14 = vadd.f32 %v6690_v38, %v6314_v53  ;;  %v7025_v13 = vadd.f32 %v6883_v5, %v6316_v23  ;;  %v6337_v44 = vld [vmem:[#allocation2 + $0x1a0] sm:$0xff]  ;;  %v6339_v11 = vld [vmem:[#allocation2 + $0x258] sm:$0xff] }
0x109b   : > { %7151 = vst [vmem:[#allocation2 + $0x40] sm:$0xff] %v7023_v14  ;;  %7153 = vst [vmem:[#allocation2 + $0xe8] sm:$0xff] %v7025_v13 }
0x10bc   : > { %v6694_v12 = vpop.f32.mrf.mxu1  ;;  %v6887_v19 = vpop.f32.mrf.mxu0 }
0x10bd   : > { %v7026_v2 = vadd.f32 %v6694_v12, %v6317_v3  ;;  %v7028_v49 = vadd.f32 %v6887_v19, %v6319_v46  ;;  %v6338_v3 = vld [vmem:[#allocation2 + $0xa8] sm:$0xff]  ;;  %v6340_v46 = vld [vmem:[#allocation2 + $0x2d8] sm:$0xff] }
0x10be   : > { %v6696_v16 = vpop.f32.mrf.mxu1  ;;  %v6889_v47 = vpop.f32.mrf.mxu0 }
0x10bf   : > { %7154 = vst [vmem:[#allocation2 + $0x288] sm:$0xff] %v7026_v2  ;;  %7156 = vst [vmem:[#allocation2 + $0x3c8] sm:$0xff] %v7028_v49  ;;  %v7027_v62 = vadd.f32 %v6696_v16, %v6318_v26  ;;  %v7029_v51 = vadd.f32 %v6889_v47, %v6320_v60  ;;  %v6341_v2 = vld [vmem:[#allocation2 + $0xf0] sm:$0xff] }
0x10c0   : > { %v6698_v36 = vpop.f32.mrf.mxu1  ;;  %v6891_v31 = vpop.f32.mrf.mxu0  ;;  %v6343_v49 = vld [vmem:[#allocation2 + $0x170] sm:$0xff] }
0x10c1   : > { %7155 = vst [vmem:[#allocation2 + $0x3a8] sm:$0xff] %v7027_v62  ;;  %7157 = vst [vmem:[#allocation2 + $0x160] sm:$0xff] %v7029_v51  ;;  %v7030_v41 = vadd.f32 %v6698_v36, %v6321_v35  ;;  %v7032_v42 = vadd.f32 %v6891_v31, %v6323_v34  ;;  %v6342_v62 = vld [vmem:[#allocation2 + $0x180] sm:$0xff]  ;;  %v6344_v51 = vld [vmem:[#allocation2 + $0x3d0] sm:$0xff] }
0x10c2   : > { %v6700_v57 = vpop.f32.mrf.mxu1  ;;  %v6893_v45 = vpop.f32.mrf.mxu0 }
0x10c3   : > { %7158 = vst [vmem:[#allocation2 + $0x2c8] sm:$0xff] %v7030_v41  ;;  %7160 = vst [vmem:[#allocation2 + $0x3d8] sm:$0xff] %v7032_v42  ;;  %v7031_v22 = vadd.f32 %v6700_v57, %v6322_v20  ;;  %v7033_v30 = vadd.f32 %v6893_v45, %v6324_v59  ;;  %v6345_v41 = vld [vmem:[#allocation2 + $0x250] sm:$0xff]  ;;  %v6347_v42 = vld [vmem:[#allocation2 + $0xb8] sm:$0xff] }
0x10c4   : > { %v6704_v15 = vpop.f32.mrf.mxu1  ;;  %v6897_v17 = vpop.f32.mrf.mxu0 }
0x10c5   : > { %7159 = vst [vmem:[#allocation2 + $0x210] sm:$0xff] %v7031_v22  ;;  %7161 = vst [vmem:[#allocation2 + $0x1e8] sm:$0xff] %v7033_v30  ;;  %v7034_v18 = vadd.f32 %v6704_v15, %v6325_v1  ;;  %v7036_v33 = vadd.f32 %v6897_v17, %v6327_v0  ;;  %v6346_v22 = vld [vmem:[#allocation2 + $0x378] sm:$0xff] }
0x10c6   : > { %v6706_v32 = vpop.f32.mrf.mxu1  ;;  %v6899_v4 = vpop.f32.mrf.mxu0  ;;  %v6348_v30 = vld [vmem:[#allocation2 + $0x38] sm:$0xff] }
0x10c7   : > { %7162 = vst [vmem:[#allocation2 + $0x1b0] sm:$0xff] %v7034_v18  ;;  %7164 = vst [vmem:[#allocation2 + $0x2d0] sm:$0xff] %v7036_v33  ;;  %v7035_v52 = vadd.f32 %v6706_v32, %v6326_v6  ;;  %v7037_v24 = vadd.f32 %v6899_v4, %v6328_v50  ;;  %v6349_v18 = vld [vmem:[#allocation2 + $0x78] sm:$0xff] }
0x10c8   : > { %v6708_v29 = vpop.f32.mrf.mxu1  ;;  %v6901_v40 = vpop.f32.mrf.mxu0 }
0x10c9   : > { %7163 = vst [vmem:[#allocation2 + $0x1c8] sm:$0xff] %v7035_v52  ;;  %7165 = vst [vmem:[#allocation2 + $0x1d0] sm:$0xff] %v7037_v24  ;;  %v7038_v54 = vadd.f32 %v6708_v29, %v6329_v25  ;;  %v7040_v48 = vadd.f32 %v6901_v40, %v6331_v39  ;;  %v6350_v25 = vld [vmem:[#allocation2 + $0x308] sm:$0xff]  ;;  %v6353_v24 = vld [vmem:[#allocation2 + $0x278] sm:$0xff] }
0x10ca   : > { %v6710_v9 = vpop.f32.mrf.mxu1  ;;  %v6903_v55 = vpop.f32.mrf.mxu0 }
0x10cb   : > { %7166 = vst [vmem:[#allocation2 + $0x58] sm:$0xff] %v7038_v54  ;;  %7168 = vst [vmem:[#allocation2 + $0x198] sm:$0xff] %v7040_v48  ;;  %v7039_v43 = vadd.f32 %v6710_v9, %v6330_v28  ;;  %v7041_v37 = vadd.f32 %v6903_v55, %v6332_v8  ;;  %v6354_v28 = vld [vmem:[#allocation2 + $0x360] sm:$0xff]  ;;  %v6357_v48 = vld [vmem:[#allocation2 + $0x148] sm:$0xff] }
0x10cd   : > { %7167 = vst [vmem:[#allocation2 + $0x120] sm:$0xff] %v7039_v43  ;;  %7169 = vst [vmem:[#allocation2 + $0x2e8] sm:$0xff] %v7041_v37  ;;  %v6358_v43 = vld [vmem:[#allocation2 + $0xf8] sm:$0xff] }
0x10fa   : > { %v6714_v63 = vpop.f32.mrf.mxu1  ;;  %v6907_v21 = vpop.f32.mrf.mxu0 }
0x10fb   : > { %v7042_v56 = vadd.f32 %v6714_v63, %v6333_v10  ;;  %v7044_v61 = vadd.f32 %v6907_v21, %v6335_v7  ;;  %v6361_v7 = vld [vmem:[#allocation2 + $0x298] sm:$0xff] }
0x10fc   : > { %v6716_v53 = vpop.f32.mrf.mxu1  ;;  %v6909_v23 = vpop.f32.mrf.mxu0 }
0x10fd   : > { %7170 = vst [vmem:[#allocation2 + $0x1f8] sm:$0xff] %v7042_v56  ;;  %7172 = vst [vmem:[#allocation2 + $0x398] sm:$0xff] %v7044_v61  ;;  %v7043_v38 = vadd.f32 %v6716_v53, %v6334_v27  ;;  %v7045_v5 = vadd.f32 %v6909_v23, %v6336_v58  ;;  %v6362_v27 = vld [vmem:[#allocation2 + $0x270] sm:$0xff] }
0x10fe   : > { %v6718_v14 = vpop.f32.mrf.mxu1  ;;  %v6911_v13 = vpop.f32.mrf.mxu0  ;;  %v6351_v61 = vld [vmem:[#allocation2 + $0x370] sm:$0xff] }
0x10ff   : > { %7171 = vst [vmem:[#allocation2 + $0x238] sm:$0xff] %v7043_v38  ;;  %7173 = vst [vmem:[#allocation2 + $0x390] sm:$0xff] %v7045_v5  ;;  %v7046_v12 = vadd.f32 %v6718_v14, %v6337_v44  ;;  %v7048_v19 = vadd.f32 %v6911_v13, %v6339_v11  ;;  %v6352_v44 = vld [vmem:[#allocation2 + $0xc8] sm:$0xff] }
0x1100   : > { %v6720_v26 = vpop.f32.mrf.mxu1  ;;  %v6913_v60 = vpop.f32.mrf.mxu0  ;;  %v6355_v5 = vld [vmem:[#allocation2 + $0x228] sm:$0xff] }
0x1101   : > { %7174 = vst [vmem:[#allocation2 + $0x1a0] sm:$0xff] %v7046_v12  ;;  %7176 = vst [vmem:[#allocation2 + $0x258] sm:$0xff] %v7048_v19  ;;  %v7047_v16 = vadd.f32 %v6720_v26, %v6338_v3  ;;  %v7049_v47 = vadd.f32 %v6913_v60, %v6340_v46  ;;  %v6356_v3 = vld [vmem:[#allocation2 + $0x348] sm:$0xff] }
0x1102   : > { %v6724_v35 = vpop.f32.mrf.mxu1  ;;  %v6917_v34 = vpop.f32.mrf.mxu0  ;;  %v6359_v19 = vld [vmem:[#allocation2 + $0x68] sm:$0xff] }
0x1103   : > { %7175 = vst [vmem:[#allocation2 + $0xa8] sm:$0xff] %v7047_v16  ;;  %7177 = vst [vmem:[#allocation2 + $0x2d8] sm:$0xff] %v7049_v47  ;;  %v7050_v36 = vadd.f32 %v6724_v35, %v6341_v2  ;;  %v7052_v31 = vadd.f32 %v6917_v34, %v6343_v49  ;;  %v6360_v2 = vld [vmem:[#allocation2] sm:$0xff]  ;;  %v6363_v47 = vld [vmem:[#allocation2 + $0x310] sm:$0xff] }
0x1104   : > { %v6726_v20 = vpop.f32.mrf.mxu1  ;;  %v6919_v59 = vpop.f32.mrf.mxu0 }
0x1105   : > { %7178 = vst [vmem:[#allocation2 + $0xf0] sm:$0xff] %v7050_v36  ;;  %7180 = vst [vmem:[#allocation2 + $0x170] sm:$0xff] %v7052_v31  ;;  %v7051_v57 = vadd.f32 %v6726_v20, %v6342_v62  ;;  %v7053_v45 = vadd.f32 %v6919_v59, %v6344_v51  ;;  %v6364_v62 = vld [vmem:[#allocation2 + $0x190] sm:$0xff]  ;;  %v7330_v59 = vld [vmem:[#allocation8] sm:$0xf] (%p287_p1) }
0x1106   : > { %v6728_v1 = vpop.f32.mrf.mxu1  ;;  %v6921_v0 = vpop.f32.mrf.mxu0  ;;  %v7202_v20 = vld [vmem:[#allocation2 + $0x2b0] sm:$0xff] (%p287_p1) }
0x1107   : > { %7179 = vst [vmem:[#allocation2 + $0x180] sm:$0xff] %v7051_v57  ;;  %7181 = vst [vmem:[#allocation2 + $0x3d0] sm:$0xff] %v7053_v45  ;;  %v7054_v15 = vadd.f32 %v6728_v1, %v6345_v41  ;;  %v7056_v17 = vadd.f32 %v6921_v0, %v6347_v42  ;;  %v15502_v41 = vld [vmem:[#allocation13_spill] sm:$0xff] (%p287_p1)  ;;  %v7203_v57 = vld [vmem:[#allocation2 + $0x3b0] sm:$0xff] (%p287_p1) }
0x1108   : > { %v6730_v6 = vpop.f32.mrf.mxu1  ;;  %v6923_v50 = vpop.f32.mrf.mxu0  ;;  %v7334_v42 = vsub.s32 (%p287_p1), 0, %v15502_v41  ;;  %v7338_v45 = vsub.s32 (%p287_p1), 1, %v15502_v41  ;;  %v7204_v1 = vld [vmem:[#allocation2 + $0xd8] sm:$0xff] (%p287_p1)  ;;  %v7342_v0 = vsub.s32 (%p287_p1), 2, %v15502_v41 }
0x1109   : > { %7182 = vst [vmem:[#allocation2 + $0x250] sm:$0xff] %v7054_v15  ;;  %7184 = vst [vmem:[#allocation2 + $0xb8] sm:$0xff] %v7056_v17  ;;  %v7055_v33 = vadd.f32 %v6730_v6, %v6346_v22  ;;  %v7057_v32 = vadd.f32 %v6923_v50, %v6348_v30  ;;  %v7205_v22 = vld [vmem:[#allocation2 + $0x18] sm:$0xff] (%p287_p1)  ;;  %v7346_v30 = vsub.s32 (%p287_p1), 3, %v15502_v41  ;;  %v7206_v15 = vld [vmem:[#allocation2 + $0x50] sm:$0xff] (%p287_p1) }
0x110a   : > { %v6734_v4 = vpop.f32.mrf.mxu1  ;;  %v14143_v17 = vrot.slane (%p287_p1), %v7330_v59, %v7334_v42  ;;  %v14145_v6 = vrot.slane (%p287_p1), %v7330_v59, %v7338_v45  ;;  %v7207_v50 = vld [vmem:[#allocation2 + $0x368] sm:$0xff] (%p287_p1)  ;;  %v7231_v42 = vld [vmem:[#allocation2 + $0xc0] sm:$0xff] (%p287_p1) }
0x110b   : > { %7183 = vst [vmem:[#allocation2 + $0x378] sm:$0xff] %v7055_v33  ;;  %7185 = vst [vmem:[#allocation2 + $0x38] sm:$0xff] %v7057_v32  ;;  %v7058_v39 = vadd.f32 %v6734_v4, %v6349_v18  ;;  %v7208_v18 = vld [vmem:[#allocation2 + $0x330] sm:$0xff] (%p287_p1)  ;;  %v7209_v33 = vld [vmem:[#allocation2 + $0x48] sm:$0xff] (%p287_p1)  ;;  %v14147_v32 = vrot.slane (%p287_p1), %v7330_v59, %v7342_v0  ;;  %v14149_v4 = vrot.slane (%p287_p1), %v7330_v59, %v7346_v30 }
0x110c   : > { %v6736_v52 = vpop.f32.mrf.mxu1  ;;  %v7233_v45 = vld [vmem:[#allocation2 + $0x280] sm:$0xff] (%p287_p1)  ;;  %v7381_v0 = vadd.f32 (%p287_p1), %v14145_v6, %v7231_v42 }
0x110d   : > { %7186 = vst [vmem:[#allocation2 + $0x78] sm:$0xff] %v7058_v39  ;;  %v7059_v29 = vadd.f32 %v6736_v52, %v6350_v25  ;;  %v7210_v25 = vld [vmem:[#allocation2 + $0x380] sm:$0xff] (%p287_p1)  ;;  %v7211_v39 = vld [vmem:[#allocation2 + $0x110] sm:$0xff] (%p287_p1)  ;;  %v7212_v52 = vld [vmem:[#allocation2 + $0x118] sm:$0xff] (%p287_p1)  ;;  %v7383_v30 = vadd.f32 (%p287_p1), %v14149_v4, %v7233_v45 }
0x110e   : > { %v6738_v40 = vpop.f32.mrf.mxu1  ;;  %7509 = vst [vmem:[#allocation9 + $0xe8] sm:$0xff] (%p287_p1), %v7381_v0  ;;  %v7262_v45 = vld [vmem:[#allocation2 + $0x1d8] sm:$0xff] (%p287_p1) }
0x110f   : > { %7187 = vst [vmem:[#allocation2 + $0x308] sm:$0xff] %v7059_v29  ;;  %v7062_v8 = vadd.f32 %v6738_v40, %v6353_v24  ;;  %v7352_v24 = vadd.f32 (%p287_p1), %v14143_v17, %v7202_v20  ;;  %v7353_v29 = vadd.f32 (%p287_p1), %v14145_v6, %v7203_v57  ;;  %v7356_v40 = vadd.f32 (%p287_p1), %v14143_v17, %v7206_v15  ;;  %v7232_v57 = vld [vmem:[#allocation2 + $0x1c0] sm:$0xff] (%p287_p1) }
0x1110   : > { %v6740_v54 = vpop.f32.mrf.mxu1  ;;  %v7234_v15 = vld [vmem:[#allocation2 + $0x100] sm:$0xff] (%p287_p1)  ;;  %7511 = vst [vmem:[#allocation9 + $0xf8] sm:$0xff] (%p287_p1), %v7383_v30 }
0x1111   : > { %7190 = vst [vmem:[#allocation2 + $0x278] sm:$0xff] %v7062_v8  ;;  %v7063_v9 = vadd.f32 %v6740_v54, %v6354_v28  ;;  %v7357_v28 = vadd.f32 (%p287_p1), %v14145_v6, %v7207_v50  ;;  %v7213_v8 = vld [vmem:[#allocation2 + $0x98] sm:$0xff] (%p287_p1)  ;;  %v7214_v54 = vld [vmem:[#allocation2 + $0x320] sm:$0xff] (%p287_p1)  ;;  %7480 = vst [vmem:[#allocation9] sm:$0xff] (%p287_p1), %v7352_v24 }
0x1112   : > { %v6744_v55 = vpop.f32.mrf.mxu1  ;;  %7481 = vst [vmem:[#allocation9 + $0x8] sm:$0xff] (%p287_p1), %v7353_v29  ;;  %7484 = vst [vmem:[#allocation9 + $0x20] sm:$0xff] (%p287_p1), %v7356_v40  ;;  %v7235_v50 = vld [vmem:[#allocation2 + $0x3c0] sm:$0xff] (%p287_p1)  ;;  %v7238_v24 = vld [vmem:[#allocation2 + $0x218] sm:$0xff] (%p287_p1) }
0x1113   : > { %7191 = vst [vmem:[#allocation2 + $0x360] sm:$0xff] %v7063_v9  ;;  %v7066_v37 = vadd.f32 %v6744_v55, %v6357_v48  ;;  %v7215_v48 = vld [vmem:[#allocation2 + $0x150] sm:$0xff] (%p287_p1)  ;;  %v7354_v9 = vadd.f32 (%p287_p1), %v14147_v32, %v7204_v1  ;;  %v7355_v55 = vadd.f32 (%p287_p1), %v14149_v4, %v7205_v22  ;;  %7485 = vst [vmem:[#allocation9 + $0x28] sm:$0xff] (%p287_p1), %v7357_v28  ;;  %v7239_v29 = vld [vmem:[#allocation2 + $0x3f8] sm:$0xff] (%p287_p1) }
0x1114   : > { %v6746_v10 = vpop.f32.mrf.mxu1  ;;  %v7382_v22 = vadd.f32 (%p287_p1), %v14147_v32, %v7232_v57  ;;  %v7388_v28 = vadd.f32 (%p287_p1), %v14143_v17, %v7238_v24  ;;  %v7261_v57 = vld [vmem:[#allocation2 + $0x188] sm:$0xff] (%p287_p1)  ;;  %v7268_v24 = vld [vmem:[#allocation2 + $0x318] sm:$0xff] (%p287_p1) }
0x1115   : > { %7194 = vst [vmem:[#allocation2 + $0x148] sm:$0xff] %v7066_v37  ;;  %v7067_v63 = vadd.f32 %v6746_v10, %v6358_v43  ;;  %v7358_v43 = vadd.f32 (%p287_p1), %v14147_v32, %v7208_v18  ;;  %v7359_v37 = vadd.f32 (%p287_p1), %v14149_v4, %v7209_v33  ;;  %v7216_v10 = vld [vmem:[#allocation2 + $0x108] sm:$0xff] (%p287_p1)  ;;  %7482 = vst [vmem:[#allocation9 + $0x10] sm:$0xff] (%p287_p1), %v7354_v9  ;;  %v7236_v18 = vld [vmem:[#allocation2 + $0x158] sm:$0xff] (%p287_p1) }
0x1116   : > { %v6748_v21 = vpop.f32.mrf.mxu1  ;;  %7483 = vst [vmem:[#allocation9 + $0x18] sm:$0xff] (%p287_p1), %v7355_v55  ;;  %v7384_v33 = vadd.f32 (%p287_p1), %v14143_v17, %v7234_v15  ;;  %7510 = vst [vmem:[#allocation9 + $0xf0] sm:$0xff] (%p287_p1), %v7382_v22  ;;  %v7242_v9 = vld [vmem:[#allocation2 + $0x2a0] sm:$0xff] (%p287_p1)  ;;  %v7411_v0 = vadd.f32 (%p287_p1), %v14149_v4, %v7261_v57  ;;  %v7412_v22 = vadd.f32 (%p287_p1), %v14143_v17, %v7262_v45  ;;  %v7291_v57 = vld [vmem:[#allocation2 + $0x1c8] sm:$0xff] (%p287_p1) }
0x1117   : > { %7195 = vst [vmem:[#allocation2 + $0xf8] sm:$0xff] %v7067_v63  ;;  %v7070_v58 = vadd.f32 %v6748_v21, %v6361_v7  ;;  %v7217_v7 = vld [vmem:[#allocation2 + $0x60] sm:$0xff] (%p287_p1)  ;;  %v7360_v21 = vadd.f32 (%p287_p1), %v14143_v17, %v7210_v25  ;;  %7486 = vst [vmem:[#allocation9 + $0x30] sm:$0xff] (%p287_p1), %v7358_v43  ;;  %v7385_v25 = vadd.f32 (%p287_p1), %v14145_v6, %v7235_v50  ;;  %v7265_v50 = vld [vmem:[#allocation2 + $0x2a8] sm:$0xff] (%p287_p1) }
0x1118   : > { %v6750_v56 = vpop.f32.mrf.mxu1  ;;  %v7218_v63 = vld [vmem:[#allocation2 + $0x2e0] sm:$0xff] (%p287_p1)  ;;  %7487 = vst [vmem:[#allocation9 + $0x38] sm:$0xff] (%p287_p1), %v7359_v37  ;;  %7512 = vst [vmem:[#allocation9 + $0x100] sm:$0xff] (%p287_p1), %v7384_v33  ;;  %v7392_v37 = vadd.f32 (%p287_p1), %v14143_v17, %v7242_v9  ;;  %v7292_v45 = vld [vmem:[#allocation2 + $0x2d0] sm:$0xff] (%p287_p1) }
0x1119   : > { %7198 = vst [vmem:[#allocation2 + $0x298] sm:$0xff] %v7070_v58  ;;  %v7071_v53 = vadd.f32 %v6750_v56, %v6362_v27  ;;  %v7361_v27 = vadd.f32 (%p287_p1), %v14145_v6, %v7211_v39  ;;  %v7362_v58 = vadd.f32 (%p287_p1), %v14147_v32, %v7212_v52  ;;  %v7363_v56 = vadd.f32 (%p287_p1), %v14149_v4, %v7213_v8  ;;  %v7237_v52 = vld [vmem:[#allocation2 + $0x3e0] sm:$0xff] (%p287_p1) }
0x111a   : > { %v6927_v23 = vpop.f32.mrf.mxu1  ;;  %7488 = vst [vmem:[#allocation9 + $0x40] sm:$0xff] (%p287_p1), %v7360_v21  ;;  %v7386_v39 = vadd.f32 (%p287_p1), %v14147_v32, %v7236_v18  ;;  %v7387_v40 = vadd.f32 (%p287_p1), %v14149_v4, %v7237_v52  ;;  %v7389_v8 = vadd.f32 (%p287_p1), %v14145_v6, %v7239_v29  ;;  %7513 = vst [vmem:[#allocation9 + $0x108] sm:$0xff] (%p287_p1), %v7385_v25  ;;  %v7264_v15 = vld [vmem:[#allocation2 + $0x140] sm:$0xff] (%p287_p1)  ;;  %v7266_v18 = vld [vmem:[#allocation2 + $0x130] sm:$0xff] (%p287_p1) }
0x111b   : > { %7199 = vst [vmem:[#allocation2 + $0x270] sm:$0xff] %v7071_v53  ;;  %v7060_v11 = vadd.f32 %v6927_v23, %v6351_v61  ;;  %v7219_v61 = vld [vmem:[#allocation2 + $0x388] sm:$0xff] (%p287_p1)  ;;  %v7220_v53 = vld [vmem:[#allocation2 + $0x338] sm:$0xff] (%p287_p1)  ;;  %v7221_v23 = vld [vmem:[#allocation2 + $0x340] sm:$0xff] (%p287_p1)  ;;  %v7414_v33 = vadd.f32 (%p287_p1), %v14147_v32, %v7264_v15  ;;  %v7415_v25 = vadd.f32 (%p287_p1), %v14149_v4, %v7265_v50 }
0x111c   : > { %v6929_v38 = vpop.f32.mrf.mxu1  ;;  %7489 = vst [vmem:[#allocation9 + $0x48] sm:$0xff] (%p287_p1), %v7361_v27  ;;  %7490 = vst [vmem:[#allocation9 + $0x50] sm:$0xff] (%p287_p1), %v7362_v58  ;;  %v7267_v52 = vld [vmem:[#allocation2 + $0x200] sm:$0xff] (%p287_p1)  ;;  %v7294_v15 = vld [vmem:[#allocation2 + $0x58] sm:$0xff] (%p287_p1) }
0x111d   : > { %7188 = vst [vmem:[#allocation2 + $0x370] sm:$0xff] %v7060_v11  ;;  %v7061_v14 = vadd.f32 %v6929_v38, %v6352_v44  ;;  %v7364_v44 = vadd.f32 (%p287_p1), %v14143_v17, %v7214_v54  ;;  %v7365_v11 = vadd.f32 (%p287_p1), %v14145_v6, %v7215_v48  ;;  %v7366_v38 = vadd.f32 (%p287_p1), %v14147_v32, %v7216_v10  ;;  %v7240_v54 = vld [vmem:[#allocation2 + $0x8] sm:$0xff] (%p287_p1)  ;;  %v7243_v10 = vld [vmem:[#allocation2 + $0x3f0] sm:$0xff] (%p287_p1)  ;;  %v7269_v29 = vld [vmem:[#allocation2 + $0x220] sm:$0xff] (%p287_p1) }
0x111e   : > { %v6931_v13 = vpop.f32.mrf.mxu1  ;;  %7491 = vst [vmem:[#allocation9 + $0x58] sm:$0xff] (%p287_p1), %v7363_v56  ;;  %v7241_v48 = vld [vmem:[#allocation2 + $0x128] sm:$0xff] (%p287_p1)  ;;  %7514 = vst [vmem:[#allocation9 + $0x110] sm:$0xff] (%p287_p1), %v7386_v39  ;;  %v7390_v55 = vadd.f32 (%p287_p1), %v14147_v32, %v7240_v54  ;;  %v7393_v21 = vadd.f32 (%p287_p1), %v14145_v6, %v7243_v10  ;;  %v7246_v56 = vld [vmem:[#allocation2 + $0xb0] sm:$0xff] (%p287_p1)  ;;  %v7416_v39 = vadd.f32 (%p287_p1), %v14143_v17, %v7266_v18 }
0x111f   : > { %7189 = vst [vmem:[#allocation2 + $0xc8] sm:$0xff] %v7061_v14  ;;  %v7064_v46 = vadd.f32 %v6931_v13, %v6355_v5  ;;  %v7367_v5 = vadd.f32 (%p287_p1), %v14149_v4, %v7217_v7  ;;  %v7222_v14 = vld [vmem:[#allocation2 + $0x80] sm:$0xff] (%p287_p1)  ;;  %v7223_v13 = vld [vmem:[#allocation2 + $0x1a8] sm:$0xff] (%p287_p1)  ;;  %7492 = vst [vmem:[#allocation9 + $0x60] sm:$0xff] (%p287_p1), %v7364_v44  ;;  %v7391_v43 = vadd.f32 (%p287_p1), %v14149_v4, %v7241_v48 }
0x1120   : > { %v6933_v12 = vpop.f32.mrf.mxu1  ;;  %7493 = vst [vmem:[#allocation9 + $0x68] sm:$0xff] (%p287_p1), %v7365_v11  ;;  %7494 = vst [vmem:[#allocation9 + $0x70] sm:$0xff] (%p287_p1), %v7366_v38  ;;  %v7244_v7 = vld [vmem:[#allocation2 + $0xa0] sm:$0xff] (%p287_p1)  ;;  %v7249_v38 = vld [vmem:[#allocation2 + $0x10] sm:$0xff] (%p287_p1) }
0x1121   : > { %7192 = vst [vmem:[#allocation2 + $0x228] sm:$0xff] %v7064_v46  ;;  %v7065_v26 = vadd.f32 %v6933_v12, %v6356_v3  ;;  %v7224_v3 = vld [vmem:[#allocation2 + $0x1b8] sm:$0xff] (%p287_p1)  ;;  %v7368_v46 = vadd.f32 (%p287_p1), %v14143_v17, %v7218_v63  ;;  %v7369_v12 = vadd.f32 (%p287_p1), %v14145_v6, %v7219_v61  ;;  %7495 = vst [vmem:[#allocation9 + $0x78] sm:$0xff] (%p287_p1), %v7367_v5  ;;  %v7245_v63 = vld [vmem:[#allocation2 + $0x2c0] sm:$0xff] (%p287_p1) }
0x1122   : > { %v6937_v60 = vpop.f32.mrf.mxu1  ;;  %7515 = vst [vmem:[#allocation9 + $0x118] sm:$0xff] (%p287_p1), %v7387_v40  ;;  %7516 = vst [vmem:[#allocation9 + $0x120] sm:$0xff] (%p287_p1), %v7388_v28  ;;  %v7394_v27 = vadd.f32 (%p287_p1), %v14147_v32, %v7244_v7  ;;  %v7395_v58 = vadd.f32 (%p287_p1), %v14149_v4, %v7245_v63  ;;  %v7247_v61 = vld [vmem:[#allocation2 + $0x1e0] sm:$0xff] (%p287_p1)  ;;  %v7250_v5 = vld [vmem:[#allocation2 + $0x230] sm:$0xff] (%p287_p1)  ;;  %v7417_v40 = vadd.f32 (%p287_p1), %v14145_v6, %v7267_v52 }
0x1123   : > { %7193 = vst [vmem:[#allocation2 + $0x348] sm:$0xff] %v7065_v26  ;;  %v7068_v49 = vadd.f32 %v6937_v60, %v6359_v19  ;;  %v7370_v19 = vadd.f32 (%p287_p1), %v14147_v32, %v7220_v53  ;;  %v7371_v26 = vadd.f32 (%p287_p1), %v14149_v4, %v7221_v23  ;;  %v7225_v60 = vld [vmem:[#allocation2 + $0x168] sm:$0xff] (%p287_p1)  ;;  %7496 = vst [vmem:[#allocation9 + $0x80] sm:$0xff] (%p287_p1), %v7368_v46  ;;  %v7248_v53 = vld [vmem:[#allocation2 + $0x1f0] sm:$0xff] (%p287_p1) }
0x1124   : > { %v6939_v16 = vpop.f32.mrf.mxu1  ;;  %7497 = vst [vmem:[#allocation9 + $0x88] sm:$0xff] (%p287_p1), %v7369_v12  ;;  %7517 = vst [vmem:[#allocation9 + $0x128] sm:$0xff] (%p287_p1), %v7389_v8  ;;  %v7396_v23 = vadd.f32 (%p287_p1), %v14143_v17, %v7246_v56  ;;  %v7397_v44 = vadd.f32 (%p287_p1), %v14145_v6, %v7247_v61  ;;  %v7398_v11 = vadd.f32 (%p287_p1), %v14147_v32, %v7248_v53  ;;  %v7252_v12 = vld [vmem:[#allocation2 + $0x90] sm:$0xff] (%p287_p1)  ;;  %v7271_v48 = vld [vmem:[#allocation2 + $0x300] sm:$0xff] (%p287_p1) }
0x1125   : > { %7196 = vst [vmem:[#allocation2 + $0x68] sm:$0xff] %v7068_v49  ;;  %v7069_v35 = vadd.f32 %v6939_v16, %v6360_v2  ;;  %v7226_v2 = vld [vmem:[#allocation2 + $0x3e8] sm:$0xff] (%p287_p1)  ;;  %v7227_v49 = vld [vmem:[#allocation2 + $0x2f8] sm:$0xff] (%p287_p1)  ;;  %v7372_v16 = vadd.f32 (%p287_p1), %v14143_v17, %v7222_v14  ;;  %7498 = vst [vmem:[#allocation9 + $0x90] sm:$0xff] (%p287_p1), %v7370_v19  ;;  %v7418_v28 = vadd.f32 (%p287_p1), %v14147_v32, %v7268_v24 }
0x1126   : > { %v6941_v34 = vpop.f32.mrf.mxu1  ;;  %7499 = vst [vmem:[#allocation9 + $0x98] sm:$0xff] (%p287_p1), %v7371_v26  ;;  %v7377_v20 = vadd.f32 (%p287_p1), %v14145_v6, %v7227_v49  ;;  %7518 = vst [vmem:[#allocation9 + $0x130] sm:$0xff] (%p287_p1), %v7390_v55  ;;  %v7251_v14 = vld [vmem:[#allocation2 + $0x240] sm:$0xff] (%p287_p1)  ;;  %v7254_v26 = vld [vmem:[#allocation2 + $0x208] sm:$0xff] (%p287_p1)  ;;  %v7419_v8 = vadd.f32 (%p287_p1), %v14149_v4, %v7269_v29 }
0x1127   : > { %7197 = vst [vmem:[#allocation2] sm:$0xff] %v7069_v35  ;;  %v7072_v51 = vadd.f32 %v6941_v34, %v6363_v47  ;;  %289 = sbr.rel (!%p287_p1) target bundleno = 146 (0x92), region = 57  ;;  %v7373_v47 = vadd.f32 (%p287_p1), %v14145_v6, %v7223_v13  ;;  %v7374_v35 = vadd.f32 (%p287_p1), %v14147_v32, %v7224_v3  ;;  %v7375_v34 = vadd.f32 (%p287_p1), %v14149_v4, %v7225_v60  ;;  %v7253_v19 = vld [vmem:[#allocation2 + $0x3a0] sm:$0xff] (%p287_p1)  ;;  %v7270_v54 = vld [vmem:[#allocation2 + $0x70] sm:$0xff] (%p287_p1)  ;;  %v7273_v10 = vld [vmem:[#allocation2 + $0x178] sm:$0xff] (%p287_p1) }
0x1128   : > { %v6943_v36 = vpop.f32.mrf.mxu1  ;;  %7500 = vst [vmem:[#allocation9 + $0xa0] sm:$0xff] (%p287_p1), %v7372_v16  ;;  %7505 = vst [vmem:[#allocation9 + $0xc8] sm:$0xff] (%p287_p1), %v7377_v20  ;;  %v7399_v13 = vadd.f32 (%p287_p1), %v14149_v4, %v7249_v38  ;;  %v7400_v3 = vadd.f32 (%p287_p1), %v14143_v17, %v7250_v5  ;;  %v7401_v46 = vadd.f32 (%p287_p1), %v14145_v6, %v7251_v14  ;;  %v7255_v16 = vld [vmem:[#allocation2 + $0xd0] sm:$0xff] (%p287_p1)  ;;  %v7272_v9 = vld [vmem:[#allocation2 + $0xe0] sm:$0xff] (%p287_p1) }
0x1129   : > { %7200 = vst [vmem:[#allocation2 + $0x310] sm:$0xff] %v7072_v51  ;;  %v7073_v31 = vadd.f32 %v6943_v36, %v6364_v62  ;;  %v7228_v62 = vld [vmem:[#allocation2 + $0x290] sm:$0xff] (%p287_p1)  ;;  %v7229_v51 = vld [vmem:[#allocation2 + $0x28] sm:$0xff] (%p287_p1)  ;;  %v7230_v36 = vld [vmem:[#allocation2 + $0x138] sm:$0xff] (%p287_p1)  ;;  %v7402_v60 = vadd.f32 (%p287_p1), %v14147_v32, %v7252_v12  ;;  %v7404_v49 = vadd.f32 (%p287_p1), %v14143_v17, %v7254_v26  ;;  %v7420_v55 = vadd.f32 (%p287_p1), %v14143_v17, %v7270_v54 }
0x112a   :  { %v7378_v59 = vadd.f32 (%p287_p1), %v14147_v32, %v7228_v62  ;;  %v7379_v41 = vadd.f32 (%p287_p1), %v14149_v4, %v7229_v51  ;;  %7501 = vst [vmem:[#allocation9 + $0xa8] sm:$0xff] (%p287_p1), %v7373_v47  ;;  %7502 = vst [vmem:[#allocation9 + $0xb0] sm:$0xff] (%p287_p1), %v7374_v35  ;;  %v7380_v1 = vadd.f32 (%p287_p1), %v14143_v17, %v7230_v36  ;;  %v7256_v47 = vld [vmem:[#allocation2 + $0x88] sm:$0xff] (%p287_p1)  ;;  %v7257_v35 = vld [vmem:[#allocation2 + $0x2f0] sm:$0xff] (%p287_p1) }
0x112b   : > { %7201 = vst [vmem:[#allocation2 + $0x190] sm:$0xff] %v7073_v31  ;;  %v7376_v31 = vadd.f32 (%p287_p1), %v14143_v17, %v7226_v2  ;;  %7503 = vst [vmem:[#allocation9 + $0xb8] sm:$0xff] (%p287_p1), %v7375_v34  ;;  %v7403_v2 = vadd.f32 (%p287_p1), %v14149_v4, %v7253_v19  ;;  %v7405_v34 = vadd.f32 (%p287_p1), %v14145_v6, %v7255_v16  ;;  %v7258_v36 = vld [vmem:[#allocation2 + $0x358] sm:$0xff] (%p287_p1)  ;;  %v7260_v20 = vld [vmem:[#allocation2 + $0x350] sm:$0xff] (%p287_p1) }
0x112c   :  { %7506 = vst [vmem:[#allocation9 + $0xd0] sm:$0xff] %v7378_v59  ;;  %7507 = vst [vmem:[#allocation9 + $0xd8] sm:$0xff] %v7379_v41  ;;  %v7406_v62 = vadd.f32 %v14147_v32, %v7256_v47  ;;  %v7407_v51 = vadd.f32 %v14149_v4, %v7257_v35  ;;  %v7408_v59 = vadd.f32 %v14143_v17, %v7258_v36  ;;  %v7274_v7 = vld [vmem:[#allocation2 + $0x328] sm:$0xff]  ;;  %v7275_v63 = vld [vmem:[#allocation2 + $0x260] sm:$0xff] }
0x112d   :  { %7504 = vst [vmem:[#allocation9 + $0xc0] sm:$0xff] %v7376_v31  ;;  %7508 = vst [vmem:[#allocation9 + $0xe0] sm:$0xff] %v7380_v1  ;;  %v7259_v31 = vld [vmem:[#allocation2 + $0x268] sm:$0xff]  ;;  %v7410_v42 = vadd.f32 %v14147_v32, %v7260_v20  ;;  %v7263_v1 = vld [vmem:[#allocation2 + $0x30] sm:$0xff] }
0x112e   :  { %7519 = vst [vmem:[#allocation9 + $0x138] sm:$0xff] %v7391_v43  ;;  %7520 = vst [vmem:[#allocation9 + $0x140] sm:$0xff] %v7392_v37  ;;  %v7409_v41 = vadd.f32 %v14145_v6, %v7259_v31  ;;  %v7413_v30 = vadd.f32 %v14145_v6, %v7263_v1  ;;  %v7421_v43 = vadd.f32 %v14145_v6, %v7271_v48  ;;  %v7276_v56 = vld [vmem:[#allocation2 + $0x3b8] sm:$0xff]  ;;  %v7278_v53 = vld [vmem:[#allocation2 + $0x248] sm:$0xff] }
0x112f   :  { %7521 = vst [vmem:[#allocation9 + $0x148] sm:$0xff] %v7393_v21  ;;  %7522 = vst [vmem:[#allocation9 + $0x150] sm:$0xff] %v7394_v27  ;;  %v7422_v37 = vadd.f32 %v14147_v32, %v7272_v9  ;;  %v7423_v21 = vadd.f32 %v14149_v4, %v7273_v10  ;;  %v7424_v27 = vadd.f32 %v14143_v17, %v7274_v7  ;;  %v7277_v61 = vld [vmem:[#allocation2 + $0x2b8] sm:$0xff]  ;;  %v7279_v38 = vld [vmem:[#allocation2 + $0x40] sm:$0xff] }
0x1130   :  { %7523 = vst [vmem:[#allocation9 + $0x158] sm:$0xff] %v7395_v58  ;;  %7524 = vst [vmem:[#allocation9 + $0x160] sm:$0xff] %v7396_v23  ;;  %v7425_v58 = vadd.f32 %v14145_v6, %v7275_v63  ;;  %v7426_v23 = vadd.f32 %v14147_v32, %v7276_v56  ;;  %v7280_v5 = vld [vmem:[#allocation2 + $0x20] sm:$0xff]  ;;  %v7281_v14 = vld [vmem:[#allocation2 + $0xe8] sm:$0xff] }
0x1131   :  { %7525 = vst [vmem:[#allocation9 + $0x168] sm:$0xff] %v7397_v44  ;;  %7526 = vst [vmem:[#allocation9 + $0x170] sm:$0xff] %v7398_v11  ;;  %v7427_v44 = vadd.f32 %v14149_v4, %v7277_v61  ;;  %v7428_v11 = vadd.f32 %v14143_v17, %v7278_v53  ;;  %v7282_v12 = vld [vmem:[#allocation2 + $0x288] sm:$0xff]  ;;  %v7285_v16 = vld [vmem:[#allocation2 + $0x160] sm:$0xff] }
0x1132   :  { %7527 = vst [vmem:[#allocation9 + $0x178] sm:$0xff] %v7399_v13  ;;  %7528 = vst [vmem:[#allocation9 + $0x180] sm:$0xff] %v7400_v3  ;;  %v7429_v13 = vadd.f32 %v14145_v6, %v7279_v38  ;;  %v7430_v3 = vadd.f32 %v14147_v32, %v7280_v5  ;;  %v7283_v19 = vld [vmem:[#allocation2 + $0x3a8] sm:$0xff]  ;;  %v7287_v35 = vld [vmem:[#allocation2 + $0x210] sm:$0xff] }
0x1133   :  { %7529 = vst [vmem:[#allocation9 + $0x188] sm:$0xff] %v7401_v46  ;;  %7530 = vst [vmem:[#allocation9 + $0x190] sm:$0xff] %v7402_v60  ;;  %v7431_v46 = vadd.f32 %v14149_v4, %v7281_v14  ;;  %v7284_v26 = vld [vmem:[#allocation2 + $0x3c8] sm:$0xff]  ;;  %v7432_v60 = vadd.f32 %v14143_v17, %v7282_v12  ;;  %v7288_v36 = vld [vmem:[#allocation2 + $0x3d8] sm:$0xff] }
0x1134   :  { %7531 = vst [vmem:[#allocation9 + $0x198] sm:$0xff] %v7403_v2  ;;  %7532 = vst [vmem:[#allocation9 + $0x1a0] sm:$0xff] %v7404_v49  ;;  %v7433_v2 = vadd.f32 %v14145_v6, %v7283_v19  ;;  %v7434_v49 = vadd.f32 %v14147_v32, %v7284_v26  ;;  %v7286_v47 = vld [vmem:[#allocation2 + $0x2c8] sm:$0xff]  ;;  %v7290_v20 = vld [vmem:[#allocation2 + $0x1b0] sm:$0xff] }
0x1135   :  { %7533 = vst [vmem:[#allocation9 + $0x1a8] sm:$0xff] %v7405_v34  ;;  %7534 = vst [vmem:[#allocation9 + $0x1b0] sm:$0xff] %v7406_v62  ;;  %v7435_v34 = vadd.f32 %v14149_v4, %v7285_v16  ;;  %v7436_v62 = vadd.f32 %v14143_v17, %v7286_v47  ;;  %v7289_v31 = vld [vmem:[#allocation2 + $0x1e8] sm:$0xff]  ;;  %v7293_v1 = vld [vmem:[#allocation2 + $0x1d0] sm:$0xff] }
0x1136   :  { %7535 = vst [vmem:[#allocation9 + $0x1b8] sm:$0xff] %v7407_v51  ;;  %7536 = vst [vmem:[#allocation9 + $0x1c0] sm:$0xff] %v7408_v59  ;;  %v7437_v51 = vadd.f32 %v14145_v6, %v7287_v35  ;;  %v7438_v59 = vadd.f32 %v14147_v32, %v7288_v36  ;;  %v7295_v50 = vld [vmem:[#allocation2 + $0x120] sm:$0xff]  ;;  %v7296_v18 = vld [vmem:[#allocation2 + $0x198] sm:$0xff] }
0x1137   :  { %7537 = vst [vmem:[#allocation9 + $0x1c8] sm:$0xff] %v7409_v41  ;;  %7538 = vst [vmem:[#allocation9 + $0x1d0] sm:$0xff] %v7410_v42  ;;  %v7439_v41 = vadd.f32 %v14149_v4, %v7289_v31  ;;  %v7440_v42 = vadd.f32 %v14143_v17, %v7290_v20  ;;  %v7297_v52 = vld [vmem:[#allocation2 + $0x2e8] sm:$0xff]  ;;  %v7298_v24 = vld [vmem:[#allocation2 + $0x1f8] sm:$0xff] }
0x1138   :  { %7539 = vst [vmem:[#allocation9 + $0x1d8] sm:$0xff] %v7411_v0  ;;  %7540 = vst [vmem:[#allocation9 + $0x1e0] sm:$0xff] %v7412_v22  ;;  %v7441_v0 = vadd.f32 %v14145_v6, %v7291_v57  ;;  %v7442_v22 = vadd.f32 %v14147_v32, %v7292_v45  ;;  %v7299_v29 = vld [vmem:[#allocation2 + $0x238] sm:$0xff]  ;;  %v7301_v48 = vld [vmem:[#allocation2 + $0x390] sm:$0xff] }
0x1139   :  { %7541 = vst [vmem:[#allocation9 + $0x1e8] sm:$0xff] %v7413_v30  ;;  %7542 = vst [vmem:[#allocation9 + $0x1f0] sm:$0xff] %v7414_v33  ;;  %v7443_v30 = vadd.f32 %v14149_v4, %v7293_v1  ;;  %v7444_v33 = vadd.f32 %v14143_v17, %v7294_v15  ;;  %v7300_v54 = vld [vmem:[#allocation2 + $0x398] sm:$0xff]  ;;  %v7302_v9 = vld [vmem:[#allocation2 + $0x1a0] sm:$0xff] }
0x113a   :  { %7543 = vst [vmem:[#allocation9 + $0x1f8] sm:$0xff] %v7415_v25  ;;  %7544 = vst [vmem:[#allocation9 + $0x200] sm:$0xff] %v7416_v39  ;;  %v7445_v25 = vadd.f32 %v14145_v6, %v7295_v50  ;;  %v7446_v39 = vadd.f32 %v14147_v32, %v7296_v18  ;;  %v7303_v10 = vld [vmem:[#allocation2 + $0xa8] sm:$0xff]  ;;  %v7304_v7 = vld [vmem:[#allocation2 + $0x258] sm:$0xff] }
0x113b   :  { %7545 = vst [vmem:[#allocation9 + $0x208] sm:$0xff] %v7417_v40  ;;  %7546 = vst [vmem:[#allocation9 + $0x210] sm:$0xff] %v7418_v28  ;;  %v7447_v40 = vadd.f32 %v14149_v4, %v7297_v52  ;;  %v7448_v28 = vadd.f32 %v14143_v17, %v7298_v24  ;;  %v7305_v63 = vld [vmem:[#allocation2 + $0x2d8] sm:$0xff]  ;;  %v7306_v56 = vld [vmem:[#allocation2 + $0xf0] sm:$0xff] }
0x113c   :  { %7547 = vst [vmem:[#allocation9 + $0x218] sm:$0xff] %v7419_v8  ;;  %7548 = vst [vmem:[#allocation9 + $0x220] sm:$0xff] %v7420_v55  ;;  %v7449_v8 = vadd.f32 %v14145_v6, %v7299_v29  ;;  %v7450_v55 = vadd.f32 %v14147_v32, %v7300_v54  ;;  %v7307_v61 = vld [vmem:[#allocation2 + $0x180] sm:$0xff]  ;;  %v7308_v53 = vld [vmem:[#allocation2 + $0x170] sm:$0xff] }
0x113d   :  { %7549 = vst [vmem:[#allocation9 + $0x228] sm:$0xff] %v7421_v43  ;;  %7550 = vst [vmem:[#allocation9 + $0x230] sm:$0xff] %v7422_v37  ;;  %v7451_v43 = vadd.f32 %v14149_v4, %v7301_v48  ;;  %v7452_v37 = vadd.f32 %v14143_v17, %v7302_v9  ;;  %v7309_v38 = vld [vmem:[#allocation2 + $0x3d0] sm:$0xff]  ;;  %v7311_v14 = vld [vmem:[#allocation2 + $0x378] sm:$0xff] }
0x113e   :  { %7551 = vst [vmem:[#allocation9 + $0x238] sm:$0xff] %v7423_v21  ;;  %7552 = vst [vmem:[#allocation9 + $0x240] sm:$0xff] %v7424_v27  ;;  %v7453_v21 = vadd.f32 %v14145_v6, %v7303_v10  ;;  %v7454_v27 = vadd.f32 %v14147_v32, %v7304_v7  ;;  %v7310_v5 = vld [vmem:[#allocation2 + $0x250] sm:$0xff]  ;;  %v7312_v12 = vld [vmem:[#allocation2 + $0xb8] sm:$0xff] }
0x113f   :  { %7553 = vst [vmem:[#allocation9 + $0x248] sm:$0xff] %v7425_v58  ;;  %7554 = vst [vmem:[#allocation9 + $0x250] sm:$0xff] %v7426_v23  ;;  %v7455_v58 = vadd.f32 %v14149_v4, %v7305_v63  ;;  %v7456_v23 = vadd.f32 %v14143_v17, %v7306_v56  ;;  %v7313_v19 = vld [vmem:[#allocation2 + $0x38] sm:$0xff]  ;;  %v7315_v16 = vld [vmem:[#allocation2 + $0x308] sm:$0xff] }
0x1140   :  { %7555 = vst [vmem:[#allocation9 + $0x258] sm:$0xff] %v7427_v44  ;;  %7556 = vst [vmem:[#allocation9 + $0x260] sm:$0xff] %v7428_v11  ;;  %v7457_v44 = vadd.f32 %v14145_v6, %v7307_v61  ;;  %v7458_v11 = vadd.f32 %v14147_v32, %v7308_v53  ;;  %v7314_v26 = vld [vmem:[#allocation2 + $0x78] sm:$0xff]  ;;  %v7316_v47 = vld [vmem:[#allocation2 + $0x370] sm:$0xff] }
0x1141   :  { %7557 = vst [vmem:[#allocation9 + $0x268] sm:$0xff] %v7429_v13  ;;  %7558 = vst [vmem:[#allocation9 + $0x270] sm:$0xff] %v7430_v3  ;;  %v7459_v13 = vadd.f32 %v14149_v4, %v7309_v38  ;;  %v7460_v3 = vadd.f32 %v14143_v17, %v7310_v5  ;;  %v7317_v35 = vld [vmem:[#allocation2 + $0xc8] sm:$0xff]  ;;  %v7318_v36 = vld [vmem:[#allocation2 + $0x278] sm:$0xff] }
0x1142   :  { %7559 = vst [vmem:[#allocation9 + $0x278] sm:$0xff] %v7431_v46  ;;  %7560 = vst [vmem:[#allocation9 + $0x280] sm:$0xff] %v7432_v60  ;;  %v7461_v46 = vadd.f32 %v14145_v6, %v7311_v14  ;;  %v7462_v60 = vadd.f32 %v14147_v32, %v7312_v12  ;;  %v7319_v31 = vld [vmem:[#allocation2 + $0x360] sm:$0xff]  ;;  %v7320_v20 = vld [vmem:[#allocation2 + $0x228] sm:$0xff] }
0x1143   :  { %7561 = vst [vmem:[#allocation9 + $0x288] sm:$0xff] %v7433_v2  ;;  %7562 = vst [vmem:[#allocation9 + $0x290] sm:$0xff] %v7434_v49  ;;  %v7463_v2 = vadd.f32 %v14149_v4, %v7313_v19  ;;  %v7464_v49 = vadd.f32 %v14143_v17, %v7314_v26  ;;  %v7321_v57 = vld [vmem:[#allocation2 + $0x348] sm:$0xff]  ;;  %v7323_v1 = vld [vmem:[#allocation2 + $0xf8] sm:$0xff] }
0x1144   :  { %7563 = vst [vmem:[#allocation9 + $0x298] sm:$0xff] %v7435_v34  ;;  %7564 = vst [vmem:[#allocation9 + $0x2a0] sm:$0xff] %v7436_v62  ;;  %v7465_v34 = vadd.f32 %v14145_v6, %v7315_v16  ;;  %v7466_v62 = vadd.f32 %v14147_v32, %v7316_v47  ;;  %v7322_v45 = vld [vmem:[#allocation2 + $0x148] sm:$0xff]  ;;  %v7325_v50 = vld [vmem:[#allocation2] sm:$0xff] }
0x1145   :  { %7565 = vst [vmem:[#allocation9 + $0x2a8] sm:$0xff] %v7437_v51  ;;  %7566 = vst [vmem:[#allocation9 + $0x2b0] sm:$0xff] %v7438_v59  ;;  %v7467_v51 = vadd.f32 %v14149_v4, %v7317_v35  ;;  %v7468_v59 = vadd.f32 %v14143_v17, %v7318_v36  ;;  %v7324_v15 = vld [vmem:[#allocation2 + $0x68] sm:$0xff]  ;;  %v7326_v18 = vld [vmem:[#allocation2 + $0x298] sm:$0xff] }
0x1146   :  { %7567 = vst [vmem:[#allocation9 + $0x2b8] sm:$0xff] %v7439_v41  ;;  %7568 = vst [vmem:[#allocation9 + $0x2c0] sm:$0xff] %v7440_v42  ;;  %v7469_v41 = vadd.f32 %v14145_v6, %v7319_v31  ;;  %v7470_v42 = vadd.f32 %v14147_v32, %v7320_v20  ;;  %v7327_v52 = vld [vmem:[#allocation2 + $0x270] sm:$0xff] }
0x1147   :  { %7569 = vst [vmem:[#allocation9 + $0x2c8] sm:$0xff] %v7441_v0  ;;  %7570 = vst [vmem:[#allocation9 + $0x2d0] sm:$0xff] %v7442_v22  ;;  %v7471_v0 = vadd.f32 %v14149_v4, %v7321_v57  ;;  %v7472_v22 = vadd.f32 %v14143_v17, %v7322_v45  ;;  %v7328_v24 = vld [vmem:[#allocation2 + $0x310] sm:$0xff] }
0x1148   :  { %7571 = vst [vmem:[#allocation9 + $0x2d8] sm:$0xff] %v7443_v30  ;;  %7572 = vst [vmem:[#allocation9 + $0x2e0] sm:$0xff] %v7444_v33  ;;  %v7473_v30 = vadd.f32 %v14145_v6, %v7323_v1  ;;  %v7474_v33 = vadd.f32 %v14147_v32, %v7324_v15  ;;  %v7329_v29 = vld [vmem:[#allocation2 + $0x190] sm:$0xff] }
0x1149   :  { %7573 = vst [vmem:[#allocation9 + $0x2e8] sm:$0xff] %v7445_v25  ;;  %7574 = vst [vmem:[#allocation9 + $0x2f0] sm:$0xff] %v7446_v39  ;;  %v7475_v25 = vadd.f32 %v14149_v4, %v7325_v50  ;;  %v7476_v39 = vadd.f32 %v14143_v17, %v7326_v18 }
0x114a   :  { %7575 = vst [vmem:[#allocation9 + $0x2f8] sm:$0xff] %v7447_v40  ;;  %7576 = vst [vmem:[#allocation9 + $0x300] sm:$0xff] %v7448_v28  ;;  %v7477_v40 = vadd.f32 %v14145_v6, %v7327_v52  ;;  %v7478_v28 = vadd.f32 %v14147_v32, %v7328_v24 }
0x114b   :  { %7577 = vst [vmem:[#allocation9 + $0x308] sm:$0xff] %v7449_v8  ;;  %7578 = vst [vmem:[#allocation9 + $0x310] sm:$0xff] %v7450_v55  ;;  %v7479_v8 = vadd.f32 %v14149_v4, %v7329_v29 }
0x114c   :  { %7579 = vst [vmem:[#allocation9 + $0x318] sm:$0xff] %v7451_v43  ;;  %7580 = vst [vmem:[#allocation9 + $0x320] sm:$0xff] %v7452_v37 }
0x114d   :  { %7581 = vst [vmem:[#allocation9 + $0x328] sm:$0xff] %v7453_v21  ;;  %7582 = vst [vmem:[#allocation9 + $0x330] sm:$0xff] %v7454_v27 }
0x114e   :  { %7583 = vst [vmem:[#allocation9 + $0x338] sm:$0xff] %v7455_v58  ;;  %7584 = vst [vmem:[#allocation9 + $0x340] sm:$0xff] %v7456_v23 }
0x114f   :  { %7585 = vst [vmem:[#allocation9 + $0x348] sm:$0xff] %v7457_v44  ;;  %7586 = vst [vmem:[#allocation9 + $0x350] sm:$0xff] %v7458_v11 }
0x1150   :  { %7587 = vst [vmem:[#allocation9 + $0x358] sm:$0xff] %v7459_v13  ;;  %7588 = vst [vmem:[#allocation9 + $0x360] sm:$0xff] %v7460_v3 }
0x1151   :  { %7589 = vst [vmem:[#allocation9 + $0x368] sm:$0xff] %v7461_v46  ;;  %7590 = vst [vmem:[#allocation9 + $0x370] sm:$0xff] %v7462_v60 }
0x1152   :  { %7591 = vst [vmem:[#allocation9 + $0x378] sm:$0xff] %v7463_v2  ;;  %7592 = vst [vmem:[#allocation9 + $0x380] sm:$0xff] %v7464_v49 }
0x1153   :  { %7593 = vst [vmem:[#allocation9 + $0x388] sm:$0xff] %v7465_v34  ;;  %7594 = vst [vmem:[#allocation9 + $0x390] sm:$0xff] %v7466_v62 }
0x1154   :  { %7595 = vst [vmem:[#allocation9 + $0x398] sm:$0xff] %v7467_v51  ;;  %7596 = vst [vmem:[#allocation9 + $0x3a0] sm:$0xff] %v7468_v59 }
0x1155   :  { %7597 = vst [vmem:[#allocation9 + $0x3a8] sm:$0xff] %v7469_v41  ;;  %7598 = vst [vmem:[#allocation9 + $0x3b0] sm:$0xff] %v7470_v42 }
0x1156   :  { %7599 = vst [vmem:[#allocation9 + $0x3b8] sm:$0xff] %v7471_v0  ;;  %7600 = vst [vmem:[#allocation9 + $0x3c0] sm:$0xff] %v7472_v22 }
0x1157   :  { %7601 = vst [vmem:[#allocation9 + $0x3c8] sm:$0xff] %v7473_v30  ;;  %7602 = vst [vmem:[#allocation9 + $0x3d0] sm:$0xff] %v7474_v33 }
0x1158   :  { %7603 = vst [vmem:[#allocation9 + $0x3d8] sm:$0xff] %v7475_v25  ;;  %7604 = vst [vmem:[#allocation9 + $0x3e0] sm:$0xff] %v7476_v39 }
0x1159   :  { %7605 = vst [vmem:[#allocation9 + $0x3e8] sm:$0xff] %v7477_v40  ;;  %7606 = vst [vmem:[#allocation9 + $0x3f0] sm:$0xff] %v7478_v28 }
0x115a   :  { %7607 = vst [vmem:[#allocation9 + $0x3f8] sm:$0xff] %v7479_v8 }
0x115b   :  { %9878 = shalt.err (!%p9875_p6)
}
0x115c   :  { %s9914_s27 = smov 512   ;;  %s9915_s28 = smov 32  }
0x115d   :  { %7619 = dma.vmem_to_hbm [thread:$0]  %s7614_s25, 16384, %s14286_s4, [#allocation5], %s9914_s27, %s9914_s27, %s9915_s28  }
0x115e   :  { %9895 = dma.done.wait [#allocation5], 16384  }
0x115f   :  { %9896 = vsyncadd [#allocation5], 4294950912 }
0x1160   :  { %7623 = vsyncpa [#allocation4], 1 }
0x1161   :  { %7624 = vsyncpa [#allocation7], 1 }
0x1162   :  { %7625 = vsyncpa [#allocation5], 1 }

</bundles_post_ra>
